<compile_context>
chip_gen: v5e
topology: v5e:2x2
jax: 0.10.0
libtpu: 0.0.40
codegen_flags: <defaults>
</compile_context>

<pallas_src>
import math
from functools import partial

import jax
import jax.numpy as jnp
from jax import lax
from jax.experimental import pallas as pl
from jax.experimental.pallas import tpu as pltpu

_EPS = 1e-5


# ------------------------------------------------------------------ kernel ---

def _block35_kernel(x_ref, ws_ref, bs_ref, wbb_ref, bbb_ref, wc_ref, bc_ref,
                    wz0_ref, wz1_ref, wf2_ref, bfin_ref, o_ref,
                    pad_ab, pad_c, t1b_d, t2c_d, *, H, W, C_in):
    """One whole block35 for one image (grid step = one batch element).

    x_ref   : (1, HW, C_in) bf16            ws_ref : (C_in, 96) bf16  [t1a|t2a|t0]
    wbb_ref : (9*64, 64) bf16 block-diag     wc_ref : (9*32, 32) bf16
    wz0_ref : (96, C_in) bf16 (rows 64:96 = t0 block of the final conv, rest 0)
    wz1_ref : (64, C_in) bf16 (rows 32:64 = t1b block, rest 0)
    wf2_ref : (32, C_in) bf16 (t2c block)    b*_ref : f32 biases
    o_ref   : (1, HW, C_in) f32
    Scratch : pad_ab (PBUF,64) f32, pad_c (PBUF,32) f32,
              t1b_d (HW,64) f32, t2c_d (HW,32) f32.
    """
    Wp = W + 2
    HW = H * W
    Mpf = H * Wp                       # rows of the padded-flat conv space
    f32 = jnp.float32

    xb = x_ref[0]                                            # (HW, C_in) bf16

    # ---- stem: the three branch 1x1 convs as one GEMM ([t1a | t2a | t0]) ----
    stem = jnp.dot(xb, ws_ref[...], preferred_element_type=f32)
    stem = jnp.maximum(stem + bs_ref[...], 0.0)              # (HW, 96) f32

    # ---- in-kernel zero padding: scatter [t1a|t2a] into the flat padded
    #      buffer (interior of an (H+2, W+2) image); padding stays zero. ----
    pad_ab[...] = jnp.zeros_like(pad_ab)
    pad_c[...] = jnp.zeros_like(pad_c)
    for i in range(H):
        pad_ab[(i + 1) * Wp + 1:(i + 1) * Wp + 1 + W, :] = \
            stem[i * W:(i + 1) * W, 0:64]

    # ---- 3x3 conv over the flat padded buffer: each tap is a contiguous
    #      row-offset slice (no im2col, no window reshapes). ----
    def conv3x3_pf(buf, w_ref, c):
        acc = jnp.dot(buf[0:Mpf, :].astype(jnp.bfloat16), w_ref[0:c, :],
                      preferred_element_type=f32)
        for t in range(1, 9):
            di, dj = divmod(t, 3)
            s = di * Wp + dj
            acc = acc + jnp.dot(buf[s:s + Mpf, :].astype(jnp.bfloat16),
                                w_ref[t * c:(t + 1) * c, :],
                                preferred_element_type=f32)
        return acc

    # Fused Branch1_0b + Branch2_0b (block-diagonal 64->64), output [t2b|t1b].
    bb = conv3x3_pf(pad_ab, wbb_ref, 64)
    bb = jnp.maximum(bb + bbb_ref[...], 0.0)                 # (Mpf, 64) f32

    # ---- re-pad t2b for the chained 3x3: ONE contiguous masked store. ----
    col = lax.broadcasted_iota(jnp.int32, (Mpf, 1), 0) % Wp
    valid = col < W
    pad_c[Wp + 1:Wp + 1 + Mpf, :] = jnp.where(valid, bb[:, 0:32], 0.0)

    # Branch2_0c 3x3 conv.
    cc = conv3x3_pf(pad_c, wc_ref, 32)
    cc = jnp.maximum(cc + bc_ref[...], 0.0)                  # (Mpf, 32) f32

    # ---- drop the overhang columns: padded-flat -> dense HW rows ----
    for i in range(H):
        t1b_d[i * W:(i + 1) * W, :] = bb[i * Wp:i * Wp + W, :]
        t2c_d[i * W:(i + 1) * W, :] = cc[i * Wp:i * Wp + W, :]

    # ---- final 1x1 conv over the (virtual) concat + residual + ReLU.
    #      concat is a sum of three lane-dense dots (zero-padded weight rows
    #      select the t0 / t1b channels, so no lane slicing is needed). ----
    up = jnp.dot(stem.astype(jnp.bfloat16), wz0_ref[...],
                 preferred_element_type=f32)
    up = up + jnp.dot(t1b_d[...].astype(jnp.bfloat16), wz1_ref[...],
                      preferred_element_type=f32)
    up = up + jnp.dot(t2c_d[...].astype(jnp.bfloat16), wf2_ref[...],
                      preferred_element_type=f32)
    o_ref[0] = jnp.maximum(xb.astype(f32) + up + bfin_ref[...], 0.0)


# ------------------------------------------------------------ pallas wrapper ---

def _fused_block35(x_bf, w_stem, b_stem, w_bb, b_bb, w_c, b_c,
                   wz_stem, wz_bb, w_f2, b_fin, *, H, W):
    N, HW, C_in = x_bf.shape
    Wp = W + 2
    Mpf = H * Wp
    pbuf = (H + 3) * Wp        # +Wp rows so corner-tap slices never run OOB

    cost = pl.CostEstimate(
        flops=2 * N * (HW * C_in * 96 + Mpf * 576 * 64 + Mpf * 288 * 32
                       + HW * 192 * C_in),
        transcendentals=0,
        bytes_accessed=(N * HW * C_in * (2 + 4)
                        + (C_in * 96 + 576 * 64 + 288 * 32 + 192 * C_in) * 2
                        + (96 + 64 + 32 + C_in) * 4))

    const = lambda n: (0, 0)
    return pl.pallas_call(
        partial(_block35_kernel, H=H, W=W, C_in=C_in),
        out_shape=jax.ShapeDtypeStruct((N, HW, C_in), jnp.float32),
        grid=(N,),
        in_specs=[
            pl.BlockSpec((1, HW, C_in), lambda n: (n, 0, 0)),
            pl.BlockSpec((C_in, 96), const),
            pl.BlockSpec((1, 96), const),
            pl.BlockSpec((9 * 64, 64), const),
            pl.BlockSpec((1, 64), const),
            pl.BlockSpec((9 * 32, 32), const),
            pl.BlockSpec((1, 32), const),
            pl.BlockSpec((96, C_in), const),
            pl.BlockSpec((64, C_in), const),
            pl.BlockSpec((32, C_in), const),
            pl.BlockSpec((1, C_in), const),
        ],
        out_specs=pl.BlockSpec((1, HW, C_in), lambda n: (n, 0, 0)),
        scratch_shapes=[
            pltpu.VMEM((pbuf, 64), jnp.float32),   # padded [t1a|t2a]
            pltpu.VMEM((pbuf, 32), jnp.float32),   # padded t2b
            pltpu.VMEM((HW, 64), jnp.float32),     # dense [t2b|t1b]
            pltpu.VMEM((HW, 32), jnp.float32),     # dense t2c
        ],
        compiler_params=pltpu.CompilerParams(
            dimension_semantics=("parallel",),
            vmem_limit_bytes=32 * 1024 * 1024),
        cost_estimate=cost,
    )(x_bf, w_stem, b_stem, w_bb, b_bb, w_c, b_c, wz_stem, wz_bb, w_f2, b_fin)


# ------------------------------------------------------------- module logic ---

def _fold_bn(w, gamma, beta, mean, var, eps=_EPS):
    """Fold inference BN into conv weights: conv(x,w)*s + b == bn(conv(x,w))."""
    s = gamma / jnp.sqrt(var + eps)
    return w * s[:, None, None, None], beta - mean * s


def _prep_1x1(q):
    wf, b = _fold_bn(q["w"], q["gamma"], q["beta"], q["mean"], q["var"])
    return wf[:, :, 0, 0].T, b                                # (C_in, 32), (32,)


def _prep_3x3(q):
    wf, b = _fold_bn(q["w"], q["gamma"], q["beta"], q["mean"], q["var"])
    c_out, c_in = wf.shape[0], wf.shape[1]
    w9 = jnp.transpose(wf, (2, 3, 1, 0)).reshape(9, c_in, c_out)  # tap-major
    return w9, b


def block35_forward(x_nchw, p):
    N, C_in, H, W = x_nchw.shape
    HW = H * W
    x_bf = jnp.transpose(x_nchw, (0, 2, 3, 1)).reshape(N, HW, C_in) \
              .astype(jnp.bfloat16)

    # Stem (three fused 1x1 convs).  Channel order [t1a | t2a | t0] so the
    # 3x3-branch input is a lane-dense prefix of the stem output.
    w0, b0 = _prep_1x1(p["b0"])
    w1a, b1a = _prep_1x1(p["b1a"])
    w2a, b2a = _prep_1x1(p["b2a"])
    w_stem = jnp.concatenate([w1a, w2a, w0], axis=1).astype(jnp.bfloat16)
    b_stem = jnp.concatenate([b1a, b2a, b0]).reshape(1, 96).astype(jnp.float32)

    # Fused Branch1_0b + Branch2_0b 3x3: block-diagonal per-tap weights.
    # Input channels [t1a | t2a], output channels [t2b | t1b] (t2b first so it
    # is the lane-dense prefix feeding the chained conv).
    w1b9, bb1b = _prep_3x3(p["b1b"])                          # (9,32,32)
    w2b9, bb2b = _prep_3x3(p["b2b"])
    w_bb = jnp.zeros((9, 64, 64), jnp.float32)
    w_bb = w_bb.at[:, 0:32, 32:64].set(w1b9)                  # t1a -> t1b
    w_bb = w_bb.at[:, 32:64, 0:32].set(w2b9)                  # t2a -> t2b
    w_bb = w_bb.reshape(9 * 64, 64).astype(jnp.bfloat16)
    b_bb = jnp.concatenate([bb2b, bb1b]).reshape(1, 64).astype(jnp.float32)

    w2c9, bb2c = _prep_3x3(p["b2c"])
    w_c = w2c9.reshape(9 * 32, 32).astype(jnp.bfloat16)
    b_c = bb2c.reshape(1, 32).astype(jnp.float32)

    # Final 1x1 conv (bias=True, no BN); residual scale folded in.  Torch
    # concat order is [t0 | t1b | t2c]; split into row blocks and zero-pad the
    # t0 / t1b blocks so every LHS of the epilogue dots stays lane-dense.
    wf = p["final"]["w"][:, :, 0, 0].T * p["scale"]           # (96, C_in)
    wz_stem = jnp.zeros((96, C_in), jnp.float32).at[64:96, :] \
                 .set(wf[0:32]).astype(jnp.bfloat16)
    wz_bb = jnp.zeros((64, C_in), jnp.float32).at[32:64, :] \
               .set(wf[32:64]).astype(jnp.bfloat16)
    w_f2 = wf[64:96].astype(jnp.bfloat16)
    b_fin = (p["final"]["b"] * p["scale"]).reshape(1, C_in).astype(jnp.float32)

    out_flat = _fused_block35(x_bf, w_stem, b_stem, w_bb, b_bb, w_c, b_c,
                              wz_stem, wz_bb, w_f2, b_fin, H=H, W=W)
    return jnp.transpose(out_flat.reshape(N, H, W, C_in), (0, 3, 1, 2))


def init_params(key, in_ch, scale):
    def conv_bn(k, cin, cout, ks):
        k1, k2, k3, k4, k5 = jax.random.split(k, 5)
        fan_in = cin * ks * ks
        return dict(
            w=jax.random.normal(k1, (cout, cin, ks, ks), jnp.float32)
            / math.sqrt(fan_in),
            gamma=jax.random.uniform(k2, (cout,), jnp.float32, 0.5, 1.5),
            beta=jax.random.normal(k3, (cout,), jnp.float32) * 0.1,
            mean=jax.random.normal(k4, (cout,), jnp.float32) * 0.1,
            var=jax.random.uniform(k5, (cout,), jnp.float32, 0.5, 1.5),
        )

    ks = jax.random.split(key, 8)
    return dict(
        b0=conv_bn(ks[0], in_ch, 32, 1),     # Branch_0_Conv2d_1x1
        b1a=conv_bn(ks[1], in_ch, 32, 1),    # Branch_1_Conv2d_0a_1x1
        b1b=conv_bn(ks[2], 32, 32, 3),       # Branch_1_Conv2d_0b_3x3
        b2a=conv_bn(ks[3], in_ch, 32, 1),    # Branch_2_Conv2d_0a_1x1
        b2b=conv_bn(ks[4], 32, 32, 3),       # Branch_2_Conv2d_0b_3x3
        b2c=conv_bn(ks[5], 32, 32, 3),       # Branch_2_Conv2d_0c_3x3
        final=dict(                          # Conv2d_1x1(96, in_ch, bias=True)
            w=jax.random.normal(ks[6], (in_ch, 96, 1, 1), jnp.float32)
            / math.sqrt(96.0),
            b=jax.random.normal(ks[7], (in_ch,), jnp.float32) * 0.1,
        ),
        scale=scale,
    )


# ---------------------------------------------------------------- reference ---

def _ref_conv_bn_relu(x, w, gamma, beta, mean, var, *, padding, eps=_EPS):
    w_hwio = jnp.transpose(w, (2, 3, 1, 0))
    y = lax.conv_general_dilated(
        x, w_hwio, (1, 1), [(padding, padding), (padding, padding)],
        dimension_numbers=("NHWC", "HWIO", "NHWC"))
    y = (y - mean) / jnp.sqrt(var + eps) * gamma + beta
    return jnp.maximum(y, 0.0)


def _ref_forward(x_nchw, p):
    x = jnp.transpose(x_nchw, (0, 2, 3, 1))
    e1 = _ref_conv_bn_relu(x, **p["b0"], padding=0)
    e2 = _ref_conv_bn_relu(x, **p["b1a"], padding=0)
    e2 = _ref_conv_bn_relu(e2, **p["b1b"], padding=1)
    e3 = _ref_conv_bn_relu(x, **p["b2a"], padding=0)
    e3 = _ref_conv_bn_relu(e3, **p["b2b"], padding=1)
    e3 = _ref_conv_bn_relu(e3, **p["b2c"], padding=1)
    up = jnp.concatenate([e1, e2, e3], axis=-1)
    wf = jnp.transpose(p["final"]["w"], (2, 3, 1, 0))
    up = lax.conv_general_dilated(up, wf, (1, 1), [(0, 0), (0, 0)],
                                  dimension_numbers=("NHWC", "HWIO", "NHWC"))
    up = up + p["final"]["b"]
    out = jnp.maximum(x + p["scale"] * up, 0.0)
    return jnp.transpose(out, (0, 3, 1, 2))


# --------------------------------------------------------------------- main ---

if __name__ == "__main__":
    key = jax.random.PRNGKey(0)
    kx, kp = jax.random.split(key)

    # small config: batch=2, input channels=8, 16x16 spatial, scale=0.17
    N, C_in, H, W = 2, 8, 16, 16
    scale = 0.17

    x = jax.random.normal(kx, (N, C_in, H, W), jnp.float32)   # NCHW like PyTorch
    params = init_params(kp, C_in, scale)

    fwd = jax.jit(block35_forward)
    out = jax.block_until_ready(fwd(x, params))
    ref = jax.block_until_ready(_ref_forward(x, params))

    assert out.shape == (N, C_in, H, W), out.shape
    # bf16 matmul operands / bf16 residual read -> loosened tolerance vs f32 ref.
    assert jnp.allclose(out, ref, rtol=5e-2, atol=5e-2), \
        float(jnp.max(jnp.abs(out - ref)))

    print("KERNEL_OK")
</pallas_src>

<mosaic_0001>
module attributes {stable_mosaic.version = 11 : i64} {
  func.func @_block35_kernel(%arg0: i32, %arg1: memref<1x256x8xbf16, #tpu.memory_space<vmem>>, %arg2: memref<8x96xbf16, #tpu.memory_space<vmem>>, %arg3: memref<1x96xf32, #tpu.memory_space<vmem>>, %arg4: memref<576x64xbf16, #tpu.memory_space<vmem>>, %arg5: memref<1x64xf32, #tpu.memory_space<vmem>>, %arg6: memref<288x32xbf16, #tpu.memory_space<vmem>>, %arg7: memref<1x32xf32, #tpu.memory_space<vmem>>, %arg8: memref<96x8xbf16, #tpu.memory_space<vmem>>, %arg9: memref<64x8xbf16, #tpu.memory_space<vmem>>, %arg10: memref<32x8xbf16, #tpu.memory_space<vmem>>, %arg11: memref<1x8xf32, #tpu.memory_space<vmem>>, %arg12: memref<1x256x8xf32, #tpu.memory_space<vmem>>, %arg13: memref<342x64xf32, #tpu.memory_space<vmem>>, %arg14: memref<342x32xf32, #tpu.memory_space<vmem>>, %arg15: memref<256x64xf32, #tpu.memory_space<vmem>>, %arg16: memref<256x32xf32, #tpu.memory_space<vmem>>) attributes {dimension_semantics = [#tpu.dimension_semantics<parallel>], iteration_bounds = array<i64: 2>, scalar_prefetch = 0 : i64, scratch_operands = 4 : i64, tpu.core_type = #tpu.core_type<tc>, window_params = [{transform_indices = @transform_0, window_bounds = array<i64: 1, 256, 8>}, {pipeline_mode = #tpu.pipeline_mode<synchronous>, transform_indices = @transform_1, window_bounds = array<i64: 8, 96>}, {pipeline_mode = #tpu.pipeline_mode<synchronous>, transform_indices = @transform_2, window_bounds = array<i64: 1, 96>}, {pipeline_mode = #tpu.pipeline_mode<synchronous>, transform_indices = @transform_3, window_bounds = array<i64: 576, 64>}, {pipeline_mode = #tpu.pipeline_mode<synchronous>, transform_indices = @transform_4, window_bounds = array<i64: 1, 64>}, {pipeline_mode = #tpu.pipeline_mode<synchronous>, transform_indices = @transform_5, window_bounds = array<i64: 288, 32>}, {pipeline_mode = #tpu.pipeline_mode<synchronous>, transform_indices = @transform_6, window_bounds = array<i64: 1, 32>}, {pipeline_mode = #tpu.pipeline_mode<synchronous>, transform_indices = @transform_7, window_bounds = array<i64: 96, 8>}, {pipeline_mode = #tpu.pipeline_mode<synchronous>, transform_indices = @transform_8, window_bounds = array<i64: 64, 8>}, {pipeline_mode = #tpu.pipeline_mode<synchronous>, transform_indices = @transform_9, window_bounds = array<i64: 32, 8>}, {pipeline_mode = #tpu.pipeline_mode<synchronous>, transform_indices = @transform_10, window_bounds = array<i64: 1, 8>}, {transform_indices = @transform_11, window_bounds = array<i64: 1, 256, 8>}]} {
    %c0 = arith.constant 0 : index
    %c0_0 = arith.constant 0 : index
    %c0_1 = arith.constant 0 : index
    %0 = vector.load %arg1[%c0, %c0_0, %c0_1] : memref<1x256x8xbf16, #tpu.memory_space<vmem>>, vector<1x256x8xbf16>
    %1 = vector.shape_cast %0 : vector<1x256x8xbf16> to vector<256x8xbf16>
    %c0_2 = arith.constant 0 : index
    %c0_3 = arith.constant 0 : index
    %2 = vector.load %arg2[%c0_2, %c0_3] : memref<8x96xbf16, #tpu.memory_space<vmem>>, vector<8x96xbf16>
    %cst = arith.constant dense<0.000000e+00> : vector<256x96xf32>
    %3 = tpu.matmul %1, %2, %cst {dimension_numbers = #tpu.dot_dimension_numbers<[1], [0], [0], [1], [0, 0, 1, 1], [], []>} : vector<256x8xbf16>, vector<8x96xbf16>, vector<256x96xf32> -> vector<256x96xf32>
    %c0_4 = arith.constant 0 : index
    %c0_5 = arith.constant 0 : index
    %4 = vector.load %arg3[%c0_4, %c0_5] : memref<1x96xf32, #tpu.memory_space<vmem>>, vector<1x96xf32>
    %5 = vector.broadcast %4 : vector<1x96xf32> to vector<256x96xf32>
    %6 = arith.addf %3, %5 : vector<256x96xf32>
    %cst_6 = arith.constant 0.000000e+00 : f32
    %7 = vector.broadcast %cst_6 : f32 to vector<256x96xf32>
    %8 = arith.maximumf %6, %7 : vector<256x96xf32>
    %cst_7 = arith.constant 0.000000e+00 : f32
    %9 = vector.broadcast %cst_7 : f32 to vector<342x64xf32>
    %c0_8 = arith.constant 0 : index
    %c0_9 = arith.constant 0 : index
    %10 = vector.load %arg13[%c0_8, %c0_9] : memref<342x64xf32, #tpu.memory_space<vmem>>, vector<342x64xf32>
    tpu.vector_store %arg13[%c0_8, %c0_9], %9 {strides = array<i32>} : memref<342x64xf32, #tpu.memory_space<vmem>>, vector<342x64xf32>,
    %cst_10 = arith.constant 0.000000e+00 : f32
    %11 = vector.broadcast %cst_10 : f32 to vector<342x32xf32>
    %c0_11 = arith.constant 0 : index
    %c0_12 = arith.constant 0 : index
    %12 = vector.load %arg14[%c0_11, %c0_12] : memref<342x32xf32, #tpu.memory_space<vmem>>, vector<342x32xf32>
    tpu.vector_store %arg14[%c0_11, %c0_12], %11 {strides = array<i32>} : memref<342x32xf32, #tpu.memory_space<vmem>>, vector<342x32xf32>,
    %13 = vector.extract_strided_slice %8 {offsets = [0, 0], sizes = [16, 64], strides = [1, 1]} : vector<256x96xf32> to vector<16x64xf32>
    %c19 = arith.constant 19 : index
    %c0_13 = arith.constant 0 : index
    %14 = vector.load %arg13[%c19, %c0_13] : memref<342x64xf32, #tpu.memory_space<vmem>>, vector<16x64xf32>
    tpu.vector_store %arg13[%c19, %c0_13], %13 {strides = array<i32>} : memref<342x64xf32, #tpu.memory_space<vmem>>, vector<16x64xf32>,
    %15 = vector.extract_strided_slice %8 {offsets = [16, 0], sizes = [16, 64], strides = [1, 1]} : vector<256x96xf32> to vector<16x64xf32>
    %c37 = arith.constant 37 : index
    %c0_14 = arith.constant 0 : index
    %16 = vector.load %arg13[%c37, %c0_14] : memref<342x64xf32, #tpu.memory_space<vmem>>, vector<16x64xf32>
    tpu.vector_store %arg13[%c37, %c0_14], %15 {strides = array<i32>} : memref<342x64xf32, #tpu.memory_space<vmem>>, vector<16x64xf32>,
    %17 = vector.extract_strided_slice %8 {offsets = [32, 0], sizes = [16, 64], strides = [1, 1]} : vector<256x96xf32> to vector<16x64xf32>
    %c55 = arith.constant 55 : index
    %c0_15 = arith.constant 0 : index
    %18 = vector.load %arg13[%c55, %c0_15] : memref<342x64xf32, #tpu.memory_space<vmem>>, vector<16x64xf32>
    tpu.vector_store %arg13[%c55, %c0_15], %17 {strides = array<i32>} : memref<342x64xf32, #tpu.memory_space<vmem>>, vector<16x64xf32>,
    %19 = vector.extract_strided_slice %8 {offsets = [48, 0], sizes = [16, 64], strides = [1, 1]} : vector<256x96xf32> to vector<16x64xf32>
    %c73 = arith.constant 73 : index
    %c0_16 = arith.constant 0 : index
    %20 = vector.load %arg13[%c73, %c0_16] : memref<342x64xf32, #tpu.memory_space<vmem>>, vector<16x64xf32>
    tpu.vector_store %arg13[%c73, %c0_16], %19 {strides = array<i32>} : memref<342x64xf32, #tpu.memory_space<vmem>>, vector<16x64xf32>,
    %21 = vector.extract_strided_slice %8 {offsets = [64, 0], sizes = [16, 64], strides = [1, 1]} : vector<256x96xf32> to vector<16x64xf32>
    %c91 = arith.constant 91 : index
    %c0_17 = arith.constant 0 : index
    %22 = vector.load %arg13[%c91, %c0_17] : memref<342x64xf32, #tpu.memory_space<vmem>>, vector<16x64xf32>
    tpu.vector_store %arg13[%c91, %c0_17], %21 {strides = array<i32>} : memref<342x64xf32, #tpu.memory_space<vmem>>, vector<16x64xf32>,
    %23 = vector.extract_strided_slice %8 {offsets = [80, 0], sizes = [16, 64], strides = [1, 1]} : vector<256x96xf32> to vector<16x64xf32>
    %c109 = arith.constant 109 : index
    %c0_18 = arith.constant 0 : index
    %24 = vector.load %arg13[%c109, %c0_18] : memref<342x64xf32, #tpu.memory_space<vmem>>, vector<16x64xf32>
    tpu.vector_store %arg13[%c109, %c0_18], %23 {strides = array<i32>} : memref<342x64xf32, #tpu.memory_space<vmem>>, vector<16x64xf32>,
    %25 = vector.extract_strided_slice %8 {offsets = [96, 0], sizes = [16, 64], strides = [1, 1]} : vector<256x96xf32> to vector<16x64xf32>
    %c127 = arith.constant 127 : index
    %c0_19 = arith.constant 0 : index
    %26 = vector.load %arg13[%c127, %c0_19] : memref<342x64xf32, #tpu.memory_space<vmem>>, vector<16x64xf32>
    tpu.vector_store %arg13[%c127, %c0_19], %25 {strides = array<i32>} : memref<342x64xf32, #tpu.memory_space<vmem>>, vector<16x64xf32>,
    %27 = vector.extract_strided_slice %8 {offsets = [112, 0], sizes = [16, 64], strides = [1, 1]} : vector<256x96xf32> to vector<16x64xf32>
    %c145 = arith.constant 145 : index
    %c0_20 = arith.constant 0 : index
    %28 = vector.load %arg13[%c145, %c0_20] : memref<342x64xf32, #tpu.memory_space<vmem>>, vector<16x64xf32>
    tpu.vector_store %arg13[%c145, %c0_20], %27 {strides = array<i32>} : memref<342x64xf32, #tpu.memory_space<vmem>>, vector<16x64xf32>,
    %29 = vector.extract_strided_slice %8 {offsets = [128, 0], sizes = [16, 64], strides = [1, 1]} : vector<256x96xf32> to vector<16x64xf32>
    %c163 = arith.constant 163 : index
    %c0_21 = arith.constant 0 : index
    %30 = vector.load %arg13[%c163, %c0_21] : memref<342x64xf32, #tpu.memory_space<vmem>>, vector<16x64xf32>
    tpu.vector_store %arg13[%c163, %c0_21], %29 {strides = array<i32>} : memref<342x64xf32, #tpu.memory_space<vmem>>, vector<16x64xf32>,
    %31 = vector.extract_strided_slice %8 {offsets = [144, 0], sizes = [16, 64], strides = [1, 1]} : vector<256x96xf32> to vector<16x64xf32>
    %c181 = arith.constant 181 : index
    %c0_22 = arith.constant 0 : index
    %32 = vector.load %arg13[%c181, %c0_22] : memref<342x64xf32, #tpu.memory_space<vmem>>, vector<16x64xf32>
    tpu.vector_store %arg13[%c181, %c0_22], %31 {strides = array<i32>} : memref<342x64xf32, #tpu.memory_space<vmem>>, vector<16x64xf32>,
    %33 = vector.extract_strided_slice %8 {offsets = [160, 0], sizes = [16, 64], strides = [1, 1]} : vector<256x96xf32> to vector<16x64xf32>
    %c199 = arith.constant 199 : index
    %c0_23 = arith.constant 0 : index
    %34 = vector.load %arg13[%c199, %c0_23] : memref<342x64xf32, #tpu.memory_space<vmem>>, vector<16x64xf32>
    tpu.vector_store %arg13[%c199, %c0_23], %33 {strides = array<i32>} : memref<342x64xf32, #tpu.memory_space<vmem>>, vector<16x64xf32>,
    %35 = vector.extract_strided_slice %8 {offsets = [176, 0], sizes = [16, 64], strides = [1, 1]} : vector<256x96xf32> to vector<16x64xf32>
    %c217 = arith.constant 217 : index
    %c0_24 = arith.constant 0 : index
    %36 = vector.load %arg13[%c217, %c0_24] : memref<342x64xf32, #tpu.memory_space<vmem>>, vector<16x64xf32>
    tpu.vector_store %arg13[%c217, %c0_24], %35 {strides = array<i32>} : memref<342x64xf32, #tpu.memory_space<vmem>>, vector<16x64xf32>,
    %37 = vector.extract_strided_slice %8 {offsets = [192, 0], sizes = [16, 64], strides = [1, 1]} : vector<256x96xf32> to vector<16x64xf32>
    %c235 = arith.constant 235 : index
    %c0_25 = arith.constant 0 : index
    %38 = vector.load %arg13[%c235, %c0_25] : memref<342x64xf32, #tpu.memory_space<vmem>>, vector<16x64xf32>
    tpu.vector_store %arg13[%c235, %c0_25], %37 {strides = array<i32>} : memref<342x64xf32, #tpu.memory_space<vmem>>, vector<16x64xf32>,
    %39 = vector.extract_strided_slice %8 {offsets = [208, 0], sizes = [16, 64], strides = [1, 1]} : vector<256x96xf32> to vector<16x64xf32>
    %c253 = arith.constant 253 : index
    %c0_26 = arith.constant 0 : index
    %40 = vector.load %arg13[%c253, %c0_26] : memref<342x64xf32, #tpu.memory_space<vmem>>, vector<16x64xf32>
    tpu.vector_store %arg13[%c253, %c0_26], %39 {strides = array<i32>} : memref<342x64xf32, #tpu.memory_space<vmem>>, vector<16x64xf32>,
    %41 = vector.extract_strided_slice %8 {offsets = [224, 0], sizes = [16, 64], strides = [1, 1]} : vector<256x96xf32> to vector<16x64xf32>
    %c271 = arith.constant 271 : index
    %c0_27 = arith.constant 0 : index
    %42 = vector.load %arg13[%c271, %c0_27] : memref<342x64xf32, #tpu.memory_space<vmem>>, vector<16x64xf32>
    tpu.vector_store %arg13[%c271, %c0_27], %41 {strides = array<i32>} : memref<342x64xf32, #tpu.memory_space<vmem>>, vector<16x64xf32>,
    %43 = vector.extract_strided_slice %8 {offsets = [240, 0], sizes = [16, 64], strides = [1, 1]} : vector<256x96xf32> to vector<16x64xf32>
    %c289 = arith.constant 289 : index
    %c0_28 = arith.constant 0 : index
    %44 = vector.load %arg13[%c289, %c0_28] : memref<342x64xf32, #tpu.memory_space<vmem>>, vector<16x64xf32>
    tpu.vector_store %arg13[%c289, %c0_28], %43 {strides = array<i32>} : memref<342x64xf32, #tpu.memory_space<vmem>>, vector<16x64xf32>,
    %c0_29 = arith.constant 0 : index
    %c0_30 = arith.constant 0 : index
    %45 = vector.load %arg13[%c0_29, %c0_30] : memref<342x64xf32, #tpu.memory_space<vmem>>, vector<288x64xf32>
    %46 = arith.truncf %45 : vector<288x64xf32> to vector<288x64xbf16>
    %c0_31 = arith.constant 0 : index
    %c0_32 = arith.constant 0 : index
    %47 = vector.load %arg4[%c0_31, %c0_32] : memref<576x64xbf16, #tpu.memory_space<vmem>>, vector<64x64xbf16>
    %cst_33 = arith.constant dense<0.000000e+00> : vector<288x64xf32>
    %48 = tpu.matmul %46, %47, %cst_33 {dimension_numbers = #tpu.dot_dimension_numbers<[1], [0], [0], [1], [0, 0, 1, 1], [], []>} : vector<288x64xbf16>, vector<64x64xbf16>, vector<288x64xf32> -> vector<288x64xf32>
    %c1 = arith.constant 1 : index
    %c0_34 = arith.constant 0 : index
    %49 = vector.load %arg13[%c1, %c0_34] : memref<342x64xf32, #tpu.memory_space<vmem>>, vector<288x64xf32>
    %50 = arith.truncf %49 : vector<288x64xf32> to vector<288x64xbf16>
    %c64 = arith.constant 64 : index
    %c0_35 = arith.constant 0 : index
    %51 = vector.load %arg4[%c64, %c0_35] : memref<576x64xbf16, #tpu.memory_space<vmem>>, vector<64x64xbf16>
    %cst_36 = arith.constant dense<0.000000e+00> : vector<288x64xf32>
    %52 = tpu.matmul %50, %51, %cst_36 {dimension_numbers = #tpu.dot_dimension_numbers<[1], [0], [0], [1], [0, 0, 1, 1], [], []>} : vector<288x64xbf16>, vector<64x64xbf16>, vector<288x64xf32> -> vector<288x64xf32>
    %53 = arith.addf %48, %52 : vector<288x64xf32>
    %c2 = arith.constant 2 : index
    %c0_37 = arith.constant 0 : index
    %54 = vector.load %arg13[%c2, %c0_37] : memref<342x64xf32, #tpu.memory_space<vmem>>, vector<288x64xf32>
    %55 = arith.truncf %54 : vector<288x64xf32> to vector<288x64xbf16>
    %c128 = arith.constant 128 : index
    %c0_38 = arith.constant 0 : index
    %56 = vector.load %arg4[%c128, %c0_38] : memref<576x64xbf16, #tpu.memory_space<vmem>>, vector<64x64xbf16>
    %cst_39 = arith.constant dense<0.000000e+00> : vector<288x64xf32>
    %57 = tpu.matmul %55, %56, %cst_39 {dimension_numbers = #tpu.dot_dimension_numbers<[1], [0], [0], [1], [0, 0, 1, 1], [], []>} : vector<288x64xbf16>, vector<64x64xbf16>, vector<288x64xf32> -> vector<288x64xf32>
    %58 = arith.addf %53, %57 : vector<288x64xf32>
    %c18 = arith.constant 18 : index
    %c0_40 = arith.constant 0 : index
    %59 = vector.load %arg13[%c18, %c0_40] : memref<342x64xf32, #tpu.memory_space<vmem>>, vector<288x64xf32>
    %60 = arith.truncf %59 : vector<288x64xf32> to vector<288x64xbf16>
    %c192 = arith.constant 192 : index
    %c0_41 = arith.constant 0 : index
    %61 = vector.load %arg4[%c192, %c0_41] : memref<576x64xbf16, #tpu.memory_space<vmem>>, vector<64x64xbf16>
    %cst_42 = arith.constant dense<0.000000e+00> : vector<288x64xf32>
    %62 = tpu.matmul %60, %61, %cst_42 {dimension_numbers = #tpu.dot_dimension_numbers<[1], [0], [0], [1], [0, 0, 1, 1], [], []>} : vector<288x64xbf16>, vector<64x64xbf16>, vector<288x64xf32> -> vector<288x64xf32>
    %63 = arith.addf %58, %62 : vector<288x64xf32>
    %c19_43 = arith.constant 19 : index
    %c0_44 = arith.constant 0 : index
    %64 = vector.load %arg13[%c19_43, %c0_44] : memref<342x64xf32, #tpu.memory_space<vmem>>, vector<288x64xf32>
    %65 = arith.truncf %64 : vector<288x64xf32> to vector<288x64xbf16>
    %c256 = arith.constant 256 : index
    %c0_45 = arith.constant 0 : index
    %66 = vector.load %arg4[%c256, %c0_45] : memref<576x64xbf16, #tpu.memory_space<vmem>>, vector<64x64xbf16>
    %cst_46 = arith.constant dense<0.000000e+00> : vector<288x64xf32>
    %67 = tpu.matmul %65, %66, %cst_46 {dimension_numbers = #tpu.dot_dimension_numbers<[1], [0], [0], [1], [0, 0, 1, 1], [], []>} : vector<288x64xbf16>, vector<64x64xbf16>, vector<288x64xf32> -> vector<288x64xf32>
    %68 = arith.addf %63, %67 : vector<288x64xf32>
    %c20 = arith.constant 20 : index
    %c0_47 = arith.constant 0 : index
    %69 = vector.load %arg13[%c20, %c0_47] : memref<342x64xf32, #tpu.memory_space<vmem>>, vector<288x64xf32>
    %70 = arith.truncf %69 : vector<288x64xf32> to vector<288x64xbf16>
    %c320 = arith.constant 320 : index
    %c0_48 = arith.constant 0 : index
    %71 = vector.load %arg4[%c320, %c0_48] : memref<576x64xbf16, #tpu.memory_space<vmem>>, vector<64x64xbf16>
    %cst_49 = arith.constant dense<0.000000e+00> : vector<288x64xf32>
    %72 = tpu.matmul %70, %71, %cst_49 {dimension_numbers = #tpu.dot_dimension_numbers<[1], [0], [0], [1], [0, 0, 1, 1], [], []>} : vector<288x64xbf16>, vector<64x64xbf16>, vector<288x64xf32> -> vector<288x64xf32>
    %73 = arith.addf %68, %72 : vector<288x64xf32>
    %c36 = arith.constant 36 : index
    %c0_50 = arith.constant 0 : index
    %74 = vector.load %arg13[%c36, %c0_50] : memref<342x64xf32, #tpu.memory_space<vmem>>, vector<288x64xf32>
    %75 = arith.truncf %74 : vector<288x64xf32> to vector<288x64xbf16>
    %c384 = arith.constant 384 : index
    %c0_51 = arith.constant 0 : index
    %76 = vector.load %arg4[%c384, %c0_51] : memref<576x64xbf16, #tpu.memory_space<vmem>>, vector<64x64xbf16>
    %cst_52 = arith.constant dense<0.000000e+00> : vector<288x64xf32>
    %77 = tpu.matmul %75, %76, %cst_52 {dimension_numbers = #tpu.dot_dimension_numbers<[1], [0], [0], [1], [0, 0, 1, 1], [], []>} : vector<288x64xbf16>, vector<64x64xbf16>, vector<288x64xf32> -> vector<288x64xf32>
    %78 = arith.addf %73, %77 : vector<288x64xf32>
    %c37_53 = arith.constant 37 : index
    %c0_54 = arith.constant 0 : index
    %79 = vector.load %arg13[%c37_53, %c0_54] : memref<342x64xf32, #tpu.memory_space<vmem>>, vector<288x64xf32>
    %80 = arith.truncf %79 : vector<288x64xf32> to vector<288x64xbf16>
    %c448 = arith.constant 448 : index
    %c0_55 = arith.constant 0 : index
    %81 = vector.load %arg4[%c448, %c0_55] : memref<576x64xbf16, #tpu.memory_space<vmem>>, vector<64x64xbf16>
    %cst_56 = arith.constant dense<0.000000e+00> : vector<288x64xf32>
    %82 = tpu.matmul %80, %81, %cst_56 {dimension_numbers = #tpu.dot_dimension_numbers<[1], [0], [0], [1], [0, 0, 1, 1], [], []>} : vector<288x64xbf16>, vector<64x64xbf16>, vector<288x64xf32> -> vector<288x64xf32>
    %83 = arith.addf %78, %82 : vector<288x64xf32>
    %c38 = arith.constant 38 : index
    %c0_57 = arith.constant 0 : index
    %84 = vector.load %arg13[%c38, %c0_57] : memref<342x64xf32, #tpu.memory_space<vmem>>, vector<288x64xf32>
    %85 = arith.truncf %84 : vector<288x64xf32> to vector<288x64xbf16>
    %c512 = arith.constant 512 : index
    %c0_58 = arith.constant 0 : index
    %86 = vector.load %arg4[%c512, %c0_58] : memref<576x64xbf16, #tpu.memory_space<vmem>>, vector<64x64xbf16>
    %cst_59 = arith.constant dense<0.000000e+00> : vector<288x64xf32>
    %87 = tpu.matmul %85, %86, %cst_59 {dimension_numbers = #tpu.dot_dimension_numbers<[1], [0], [0], [1], [0, 0, 1, 1], [], []>} : vector<288x64xbf16>, vector<64x64xbf16>, vector<288x64xf32> -> vector<288x64xf32>
    %88 = arith.addf %83, %87 : vector<288x64xf32>
    %c0_60 = arith.constant 0 : index
    %c0_61 = arith.constant 0 : index
    %89 = vector.load %arg5[%c0_60, %c0_61] : memref<1x64xf32, #tpu.memory_space<vmem>>, vector<1x64xf32>
    %90 = vector.broadcast %89 : vector<1x64xf32> to vector<288x64xf32>
    %91 = arith.addf %88, %90 : vector<288x64xf32>
    %cst_62 = arith.constant 0.000000e+00 : f32
    %92 = vector.broadcast %cst_62 : f32 to vector<288x64xf32>
    %93 = arith.maximumf %91, %92 : vector<288x64xf32>
    %94 = tpu.iota {dimensions = array<i32: 0>} : vector<288x1xi32>
    %c18_i32 = arith.constant 18 : i32
    %c0_i32 = arith.constant 0 : i32
    %95 = arith.cmpi eq, %c18_i32, %c0_i32 : i32
    %c1_i32 = arith.constant 1 : i32
    %96 = arith.select %95, %c1_i32, %c18_i32 : i32
    %97 = vector.broadcast %96 : i32 to vector<288x1xi32>
    %98 = arith.remsi %94, %97 : vector<288x1xi32>
    %c0_i32_63 = arith.constant 0 : i32
    %99 = vector.broadcast %c0_i32_63 : i32 to vector<288x1xi32>
    %100 = arith.cmpi ne, %98, %99 : vector<288x1xi32>
    %c0_i32_64 = arith.constant 0 : i32
    %101 = vector.broadcast %c0_i32_64 : i32 to vector<288x1xi32>
    %102 = arith.cmpi slt, %98, %101 : vector<288x1xi32>
    %c0_i32_65 = arith.constant 0 : i32
    %103 = arith.cmpi slt, %96, %c0_i32_65 : i32
    %104 = vector.broadcast %103 : i1 to vector<288x1xi1>
    %105 = vector.broadcast %104 : vector<288x1xi1> to vector<288x1xi1>
    %106 = arith.xori %102, %105 : vector<288x1xi1>
    %107 = arith.andi %106, %100 : vector<288x1xi1>
    %108 = vector.broadcast %96 : i32 to vector<288x1xi32>
    %109 = arith.addi %98, %108 : vector<288x1xi32>
    %110 = arith.select %107, %109, %98 : vector<288x1xi1>, vector<288x1xi32>
    %c16_i32 = arith.constant 16 : i32
    %111 = vector.broadcast %c16_i32 : i32 to vector<288x1xi32>
    %112 = arith.cmpi slt, %110, %111 : vector<288x1xi32>
    %113 = vector.extract_strided_slice %93 {offsets = [0, 0], sizes = [288, 32], strides = [1, 1]} : vector<288x64xf32> to vector<288x32xf32>
    %cst_66 = arith.constant 0.000000e+00 : f32
    %114 = vector.shape_cast %112 : vector<288x1xi1> to vector<288x1xi1>
    %115 = vector.broadcast %114 : vector<288x1xi1> to vector<288x32xi1>
    %116 = vector.broadcast %cst_66 : f32 to vector<288x32xf32>
    %117 = arith.select %115, %113, %116 : vector<288x32xi1>, vector<288x32xf32>
    %c19_67 = arith.constant 19 : index
    %c0_68 = arith.constant 0 : index
    %118 = vector.load %arg14[%c19_67, %c0_68] : memref<342x32xf32, #tpu.memory_space<vmem>>, vector<288x32xf32>
    tpu.vector_store %arg14[%c19_67, %c0_68], %117 {strides = array<i32>} : memref<342x32xf32, #tpu.memory_space<vmem>>, vector<288x32xf32>,
    %c0_69 = arith.constant 0 : index
    %c0_70 = arith.constant 0 : index
    %119 = vector.load %arg14[%c0_69, %c0_70] : memref<342x32xf32, #tpu.memory_space<vmem>>, vector<288x32xf32>
    %120 = arith.truncf %119 : vector<288x32xf32> to vector<288x32xbf16>
    %c0_71 = arith.constant 0 : index
    %c0_72 = arith.constant 0 : index
    %121 = vector.load %arg6[%c0_71, %c0_72] : memref<288x32xbf16, #tpu.memory_space<vmem>>, vector<32x32xbf16>
    %cst_73 = arith.constant dense<0.000000e+00> : vector<288x32xf32>
    %122 = tpu.matmul %120, %121, %cst_73 {dimension_numbers = #tpu.dot_dimension_numbers<[1], [0], [0], [1], [0, 0, 1, 1], [], []>} : vector<288x32xbf16>, vector<32x32xbf16>, vector<288x32xf32> -> vector<288x32xf32>
    %c1_74 = arith.constant 1 : index
    %c0_75 = arith.constant 0 : index
    %123 = vector.load %arg14[%c1_74, %c0_75] : memref<342x32xf32, #tpu.memory_space<vmem>>, vector<288x32xf32>
    %124 = arith.truncf %123 : vector<288x32xf32> to vector<288x32xbf16>
    %c32 = arith.constant 32 : index
    %c0_76 = arith.constant 0 : index
    %125 = vector.load %arg6[%c32, %c0_76] : memref<288x32xbf16, #tpu.memory_space<vmem>>, vector<32x32xbf16>
    %cst_77 = arith.constant dense<0.000000e+00> : vector<288x32xf32>
    %126 = tpu.matmul %124, %125, %cst_77 {dimension_numbers = #tpu.dot_dimension_numbers<[1], [0], [0], [1], [0, 0, 1, 1], [], []>} : vector<288x32xbf16>, vector<32x32xbf16>, vector<288x32xf32> -> vector<288x32xf32>
    %127 = arith.addf %122, %126 : vector<288x32xf32>
    %c2_78 = arith.constant 2 : index
    %c0_79 = arith.constant 0 : index
    %128 = vector.load %arg14[%c2_78, %c0_79] : memref<342x32xf32, #tpu.memory_space<vmem>>, vector<288x32xf32>
    %129 = arith.truncf %128 : vector<288x32xf32> to vector<288x32xbf16>
    %c64_80 = arith.constant 64 : index
    %c0_81 = arith.constant 0 : index
    %130 = vector.load %arg6[%c64_80, %c0_81] : memref<288x32xbf16, #tpu.memory_space<vmem>>, vector<32x32xbf16>
    %cst_82 = arith.constant dense<0.000000e+00> : vector<288x32xf32>
    %131 = tpu.matmul %129, %130, %cst_82 {dimension_numbers = #tpu.dot_dimension_numbers<[1], [0], [0], [1], [0, 0, 1, 1], [], []>} : vector<288x32xbf16>, vector<32x32xbf16>, vector<288x32xf32> -> vector<288x32xf32>
    %132 = arith.addf %127, %131 : vector<288x32xf32>
    %c18_83 = arith.constant 18 : index
    %c0_84 = arith.constant 0 : index
    %133 = vector.load %arg14[%c18_83, %c0_84] : memref<342x32xf32, #tpu.memory_space<vmem>>, vector<288x32xf32>
    %134 = arith.truncf %133 : vector<288x32xf32> to vector<288x32xbf16>
    %c96 = arith.constant 96 : index
    %c0_85 = arith.constant 0 : index
    %135 = vector.load %arg6[%c96, %c0_85] : memref<288x32xbf16, #tpu.memory_space<vmem>>, vector<32x32xbf16>
    %cst_86 = arith.constant dense<0.000000e+00> : vector<288x32xf32>
    %136 = tpu.matmul %134, %135, %cst_86 {dimension_numbers = #tpu.dot_dimension_numbers<[1], [0], [0], [1], [0, 0, 1, 1], [], []>} : vector<288x32xbf16>, vector<32x32xbf16>, vector<288x32xf32> -> vector<288x32xf32>
    %137 = arith.addf %132, %136 : vector<288x32xf32>
    %c19_87 = arith.constant 19 : index
    %c0_88 = arith.constant 0 : index
    %138 = vector.load %arg14[%c19_87, %c0_88] : memref<342x32xf32, #tpu.memory_space<vmem>>, vector<288x32xf32>
    %139 = arith.truncf %138 : vector<288x32xf32> to vector<288x32xbf16>
    %c128_89 = arith.constant 128 : index
    %c0_90 = arith.constant 0 : index
    %140 = vector.load %arg6[%c128_89, %c0_90] : memref<288x32xbf16, #tpu.memory_space<vmem>>, vector<32x32xbf16>
    %cst_91 = arith.constant dense<0.000000e+00> : vector<288x32xf32>
    %141 = tpu.matmul %139, %140, %cst_91 {dimension_numbers = #tpu.dot_dimension_numbers<[1], [0], [0], [1], [0, 0, 1, 1], [], []>} : vector<288x32xbf16>, vector<32x32xbf16>, vector<288x32xf32> -> vector<288x32xf32>
    %142 = arith.addf %137, %141 : vector<288x32xf32>
    %c20_92 = arith.constant 20 : index
    %c0_93 = arith.constant 0 : index
    %143 = vector.load %arg14[%c20_92, %c0_93] : memref<342x32xf32, #tpu.memory_space<vmem>>, vector<288x32xf32>
    %144 = arith.truncf %143 : vector<288x32xf32> to vector<288x32xbf16>
    %c160 = arith.constant 160 : index
    %c0_94 = arith.constant 0 : index
    %145 = vector.load %arg6[%c160, %c0_94] : memref<288x32xbf16, #tpu.memory_space<vmem>>, vector<32x32xbf16>
    %cst_95 = arith.constant dense<0.000000e+00> : vector<288x32xf32>
    %146 = tpu.matmul %144, %145, %cst_95 {dimension_numbers = #tpu.dot_dimension_numbers<[1], [0], [0], [1], [0, 0, 1, 1], [], []>} : vector<288x32xbf16>, vector<32x32xbf16>, vector<288x32xf32> -> vector<288x32xf32>
    %147 = arith.addf %142, %146 : vector<288x32xf32>
    %c36_96 = arith.constant 36 : index
    %c0_97 = arith.constant 0 : index
    %148 = vector.load %arg14[%c36_96, %c0_97] : memref<342x32xf32, #tpu.memory_space<vmem>>, vector<288x32xf32>
    %149 = arith.truncf %148 : vector<288x32xf32> to vector<288x32xbf16>
    %c192_98 = arith.constant 192 : index
    %c0_99 = arith.constant 0 : index
    %150 = vector.load %arg6[%c192_98, %c0_99] : memref<288x32xbf16, #tpu.memory_space<vmem>>, vector<32x32xbf16>
    %cst_100 = arith.constant dense<0.000000e+00> : vector<288x32xf32>
    %151 = tpu.matmul %149, %150, %cst_100 {dimension_numbers = #tpu.dot_dimension_numbers<[1], [0], [0], [1], [0, 0, 1, 1], [], []>} : vector<288x32xbf16>, vector<32x32xbf16>, vector<288x32xf32> -> vector<288x32xf32>
    %152 = arith.addf %147, %151 : vector<288x32xf32>
    %c37_101 = arith.constant 37 : index
    %c0_102 = arith.constant 0 : index
    %153 = vector.load %arg14[%c37_101, %c0_102] : memref<342x32xf32, #tpu.memory_space<vmem>>, vector<288x32xf32>
    %154 = arith.truncf %153 : vector<288x32xf32> to vector<288x32xbf16>
    %c224 = arith.constant 224 : index
    %c0_103 = arith.constant 0 : index
    %155 = vector.load %arg6[%c224, %c0_103] : memref<288x32xbf16, #tpu.memory_space<vmem>>, vector<32x32xbf16>
    %cst_104 = arith.constant dense<0.000000e+00> : vector<288x32xf32>
    %156 = tpu.matmul %154, %155, %cst_104 {dimension_numbers = #tpu.dot_dimension_numbers<[1], [0], [0], [1], [0, 0, 1, 1], [], []>} : vector<288x32xbf16>, vector<32x32xbf16>, vector<288x32xf32> -> vector<288x32xf32>
    %157 = arith.addf %152, %156 : vector<288x32xf32>
    %c38_105 = arith.constant 38 : index
    %c0_106 = arith.constant 0 : index
    %158 = vector.load %arg14[%c38_105, %c0_106] : memref<342x32xf32, #tpu.memory_space<vmem>>, vector<288x32xf32>
    %159 = arith.truncf %158 : vector<288x32xf32> to vector<288x32xbf16>
    %c256_107 = arith.constant 256 : index
    %c0_108 = arith.constant 0 : index
    %160 = vector.load %arg6[%c256_107, %c0_108] : memref<288x32xbf16, #tpu.memory_space<vmem>>, vector<32x32xbf16>
    %cst_109 = arith.constant dense<0.000000e+00> : vector<288x32xf32>
    %161 = tpu.matmul %159, %160, %cst_109 {dimension_numbers = #tpu.dot_dimension_numbers<[1], [0], [0], [1], [0, 0, 1, 1], [], []>} : vector<288x32xbf16>, vector<32x32xbf16>, vector<288x32xf32> -> vector<288x32xf32>
    %162 = arith.addf %157, %161 : vector<288x32xf32>
    %c0_110 = arith.constant 0 : index
    %c0_111 = arith.constant 0 : index
    %163 = vector.load %arg7[%c0_110, %c0_111] : memref<1x32xf32, #tpu.memory_space<vmem>>, vector<1x32xf32>
    %164 = vector.broadcast %163 : vector<1x32xf32> to vector<288x32xf32>
    %165 = arith.addf %162, %164 : vector<288x32xf32>
    %cst_112 = arith.constant 0.000000e+00 : f32
    %166 = vector.broadcast %cst_112 : f32 to vector<288x32xf32>
    %167 = arith.maximumf %165, %166 : vector<288x32xf32>
    %168 = vector.extract_strided_slice %93 {offsets = [0, 0], sizes = [16, 64], strides = [1, 1]} : vector<288x64xf32> to vector<16x64xf32>
    %c0_113 = arith.constant 0 : index
    %c0_114 = arith.constant 0 : index
    %169 = vector.load %arg15[%c0_113, %c0_114] : memref<256x64xf32, #tpu.memory_space<vmem>>, vector<16x64xf32>
    tpu.vector_store %arg15[%c0_113, %c0_114], %168 {strides = array<i32>} : memref<256x64xf32, #tpu.memory_space<vmem>>, vector<16x64xf32>,
    %170 = vector.extract_strided_slice %167 {offsets = [0, 0], sizes = [16, 32], strides = [1, 1]} : vector<288x32xf32> to vector<16x32xf32>
    %c0_115 = arith.constant 0 : index
    %c0_116 = arith.constant 0 : index
    %171 = vector.load %arg16[%c0_115, %c0_116] : memref<256x32xf32, #tpu.memory_space<vmem>>, vector<16x32xf32>
    tpu.vector_store %arg16[%c0_115, %c0_116], %170 {strides = array<i32>} : memref<256x32xf32, #tpu.memory_space<vmem>>, vector<16x32xf32>,
    %172 = vector.extract_strided_slice %93 {offsets = [18, 0], sizes = [16, 64], strides = [1, 1]} : vector<288x64xf32> to vector<16x64xf32>
    %c16 = arith.constant 16 : index
    %c0_117 = arith.constant 0 : index
    %173 = vector.load %arg15[%c16, %c0_117] : memref<256x64xf32, #tpu.memory_space<vmem>>, vector<16x64xf32>
    tpu.vector_store %arg15[%c16, %c0_117], %172 {strides = array<i32>} : memref<256x64xf32, #tpu.memory_space<vmem>>, vector<16x64xf32>,
    %174 = vector.extract_strided_slice %167 {offsets = [18, 0], sizes = [16, 32], strides = [1, 1]} : vector<288x32xf32> to vector<16x32xf32>
    %c16_118 = arith.constant 16 : index
    %c0_119 = arith.constant 0 : index
    %175 = vector.load %arg16[%c16_118, %c0_119] : memref<256x32xf32, #tpu.memory_space<vmem>>, vector<16x32xf32>
    tpu.vector_store %arg16[%c16_118, %c0_119], %174 {strides = array<i32>} : memref<256x32xf32, #tpu.memory_space<vmem>>, vector<16x32xf32>,
    %176 = vector.extract_strided_slice %93 {offsets = [36, 0], sizes = [16, 64], strides = [1, 1]} : vector<288x64xf32> to vector<16x64xf32>
    %c32_120 = arith.constant 32 : index
    %c0_121 = arith.constant 0 : index
    %177 = vector.load %arg15[%c32_120, %c0_121] : memref<256x64xf32, #tpu.memory_space<vmem>>, vector<16x64xf32>
    tpu.vector_store %arg15[%c32_120, %c0_121], %176 {strides = array<i32>} : memref<256x64xf32, #tpu.memory_space<vmem>>, vector<16x64xf32>,
    %178 = vector.extract_strided_slice %167 {offsets = [36, 0], sizes = [16, 32], strides = [1, 1]} : vector<288x32xf32> to vector<16x32xf32>
    %c32_122 = arith.constant 32 : index
    %c0_123 = arith.constant 0 : index
    %179 = vector.load %arg16[%c32_122, %c0_123] : memref<256x32xf32, #tpu.memory_space<vmem>>, vector<16x32xf32>
    tpu.vector_store %arg16[%c32_122, %c0_123], %178 {strides = array<i32>} : memref<256x32xf32, #tpu.memory_space<vmem>>, vector<16x32xf32>,
    %180 = vector.extract_strided_slice %93 {offsets = [54, 0], sizes = [16, 64], strides = [1, 1]} : vector<288x64xf32> to vector<16x64xf32>
    %c48 = arith.constant 48 : index
    %c0_124 = arith.constant 0 : index
    %181 = vector.load %arg15[%c48, %c0_124] : memref<256x64xf32, #tpu.memory_space<vmem>>, vector<16x64xf32>
    tpu.vector_store %arg15[%c48, %c0_124], %180 {strides = array<i32>} : memref<256x64xf32, #tpu.memory_space<vmem>>, vector<16x64xf32>,
    %182 = vector.extract_strided_slice %167 {offsets = [54, 0], sizes = [16, 32], strides = [1, 1]} : vector<288x32xf32> to vector<16x32xf32>
    %c48_125 = arith.constant 48 : index
    %c0_126 = arith.constant 0 : index
    %183 = vector.load %arg16[%c48_125, %c0_126] : memref<256x32xf32, #tpu.memory_space<vmem>>, vector<16x32xf32>
    tpu.vector_store %arg16[%c48_125, %c0_126], %182 {strides = array<i32>} : memref<256x32xf32, #tpu.memory_space<vmem>>, vector<16x32xf32>,
    %184 = vector.extract_strided_slice %93 {offsets = [72, 0], sizes = [16, 64], strides = [1, 1]} : vector<288x64xf32> to vector<16x64xf32>
    %c64_127 = arith.constant 64 : index
    %c0_128 = arith.constant 0 : index
    %185 = vector.load %arg15[%c64_127, %c0_128] : memref<256x64xf32, #tpu.memory_space<vmem>>, vector<16x64xf32>
    tpu.vector_store %arg15[%c64_127, %c0_128], %184 {strides = array<i32>} : memref<256x64xf32, #tpu.memory_space<vmem>>, vector<16x64xf32>,
    %186 = vector.extract_strided_slice %167 {offsets = [72, 0], sizes = [16, 32], strides = [1, 1]} : vector<288x32xf32> to vector<16x32xf32>
    %c64_129 = arith.constant 64 : index
    %c0_130 = arith.constant 0 : index
    %187 = vector.load %arg16[%c64_129, %c0_130] : memref<256x32xf32, #tpu.memory_space<vmem>>, vector<16x32xf32>
    tpu.vector_store %arg16[%c64_129, %c0_130], %186 {strides = array<i32>} : memref<256x32xf32, #tpu.memory_space<vmem>>, vector<16x32xf32>,
    %188 = vector.extract_strided_slice %93 {offsets = [90, 0], sizes = [16, 64], strides = [1, 1]} : vector<288x64xf32> to vector<16x64xf32>
    %c80 = arith.constant 80 : index
    %c0_131 = arith.constant 0 : index
    %189 = vector.load %arg15[%c80, %c0_131] : memref<256x64xf32, #tpu.memory_space<vmem>>, vector<16x64xf32>
    tpu.vector_store %arg15[%c80, %c0_131], %188 {strides = array<i32>} : memref<256x64xf32, #tpu.memory_space<vmem>>, vector<16x64xf32>,
    %190 = vector.extract_strided_slice %167 {offsets = [90, 0], sizes = [16, 32], strides = [1, 1]} : vector<288x32xf32> to vector<16x32xf32>
    %c80_132 = arith.constant 80 : index
    %c0_133 = arith.constant 0 : index
    %191 = vector.load %arg16[%c80_132, %c0_133] : memref<256x32xf32, #tpu.memory_space<vmem>>, vector<16x32xf32>
    tpu.vector_store %arg16[%c80_132, %c0_133], %190 {strides = array<i32>} : memref<256x32xf32, #tpu.memory_space<vmem>>, vector<16x32xf32>,
    %192 = vector.extract_strided_slice %93 {offsets = [108, 0], sizes = [16, 64], strides = [1, 1]} : vector<288x64xf32> to vector<16x64xf32>
    %c96_134 = arith.constant 96 : index
    %c0_135 = arith.constant 0 : index
    %193 = vector.load %arg15[%c96_134, %c0_135] : memref<256x64xf32, #tpu.memory_space<vmem>>, vector<16x64xf32>
    tpu.vector_store %arg15[%c96_134, %c0_135], %192 {strides = array<i32>} : memref<256x64xf32, #tpu.memory_space<vmem>>, vector<16x64xf32>,
    %194 = vector.extract_strided_slice %167 {offsets = [108, 0], sizes = [16, 32], strides = [1, 1]} : vector<288x32xf32> to vector<16x32xf32>
    %c96_136 = arith.constant 96 : index
    %c0_137 = arith.constant 0 : index
    %195 = vector.load %arg16[%c96_136, %c0_137] : memref<256x32xf32, #tpu.memory_space<vmem>>, vector<16x32xf32>
    tpu.vector_store %arg16[%c96_136, %c0_137], %194 {strides = array<i32>} : memref<256x32xf32, #tpu.memory_space<vmem>>, vector<16x32xf32>,
    %196 = vector.extract_strided_slice %93 {offsets = [126, 0], sizes = [16, 64], strides = [1, 1]} : vector<288x64xf32> to vector<16x64xf32>
    %c112 = arith.constant 112 : index
    %c0_138 = arith.constant 0 : index
    %197 = vector.load %arg15[%c112, %c0_138] : memref<256x64xf32, #tpu.memory_space<vmem>>, vector<16x64xf32>
    tpu.vector_store %arg15[%c112, %c0_138], %196 {strides = array<i32>} : memref<256x64xf32, #tpu.memory_space<vmem>>, vector<16x64xf32>,
    %198 = vector.extract_strided_slice %167 {offsets = [126, 0], sizes = [16, 32], strides = [1, 1]} : vector<288x32xf32> to vector<16x32xf32>
    %c112_139 = arith.constant 112 : index
    %c0_140 = arith.constant 0 : index
    %199 = vector.load %arg16[%c112_139, %c0_140] : memref<256x32xf32, #tpu.memory_space<vmem>>, vector<16x32xf32>
    tpu.vector_store %arg16[%c112_139, %c0_140], %198 {strides = array<i32>} : memref<256x32xf32, #tpu.memory_space<vmem>>, vector<16x32xf32>,
    %200 = vector.extract_strided_slice %93 {offsets = [144, 0], sizes = [16, 64], strides = [1, 1]} : vector<288x64xf32> to vector<16x64xf32>
    %c128_141 = arith.constant 128 : index
    %c0_142 = arith.constant 0 : index
    %201 = vector.load %arg15[%c128_141, %c0_142] : memref<256x64xf32, #tpu.memory_space<vmem>>, vector<16x64xf32>
    tpu.vector_store %arg15[%c128_141, %c0_142], %200 {strides = array<i32>} : memref<256x64xf32, #tpu.memory_space<vmem>>, vector<16x64xf32>,
    %202 = vector.extract_strided_slice %167 {offsets = [144, 0], sizes = [16, 32], strides = [1, 1]} : vector<288x32xf32> to vector<16x32xf32>
    %c128_143 = arith.constant 128 : index
    %c0_144 = arith.constant 0 : index
    %203 = vector.load %arg16[%c128_143, %c0_144] : memref<256x32xf32, #tpu.memory_space<vmem>>, vector<16x32xf32>
    tpu.vector_store %arg16[%c128_143, %c0_144], %202 {strides = array<i32>} : memref<256x32xf32, #tpu.memory_space<vmem>>, vector<16x32xf32>,
    %204 = vector.extract_strided_slice %93 {offsets = [162, 0], sizes = [16, 64], strides = [1, 1]} : vector<288x64xf32> to vector<16x64xf32>
    %c144 = arith.constant 144 : index
    %c0_145 = arith.constant 0 : index
    %205 = vector.load %arg15[%c144, %c0_145] : memref<256x64xf32, #tpu.memory_space<vmem>>, vector<16x64xf32>
    tpu.vector_store %arg15[%c144, %c0_145], %204 {strides = array<i32>} : memref<256x64xf32, #tpu.memory_space<vmem>>, vector<16x64xf32>,
    %206 = vector.extract_strided_slice %167 {offsets = [162, 0], sizes = [16, 32], strides = [1, 1]} : vector<288x32xf32> to vector<16x32xf32>
    %c144_146 = arith.constant 144 : index
    %c0_147 = arith.constant 0 : index
    %207 = vector.load %arg16[%c144_146, %c0_147] : memref<256x32xf32, #tpu.memory_space<vmem>>, vector<16x32xf32>
    tpu.vector_store %arg16[%c144_146, %c0_147], %206 {strides = array<i32>} : memref<256x32xf32, #tpu.memory_space<vmem>>, vector<16x32xf32>,
    %208 = vector.extract_strided_slice %93 {offsets = [180, 0], sizes = [16, 64], strides = [1, 1]} : vector<288x64xf32> to vector<16x64xf32>
    %c160_148 = arith.constant 160 : index
    %c0_149 = arith.constant 0 : index
    %209 = vector.load %arg15[%c160_148, %c0_149] : memref<256x64xf32, #tpu.memory_space<vmem>>, vector<16x64xf32>
    tpu.vector_store %arg15[%c160_148, %c0_149], %208 {strides = array<i32>} : memref<256x64xf32, #tpu.memory_space<vmem>>, vector<16x64xf32>,
    %210 = vector.extract_strided_slice %167 {offsets = [180, 0], sizes = [16, 32], strides = [1, 1]} : vector<288x32xf32> to vector<16x32xf32>
    %c160_150 = arith.constant 160 : index
    %c0_151 = arith.constant 0 : index
    %211 = vector.load %arg16[%c160_150, %c0_151] : memref<256x32xf32, #tpu.memory_space<vmem>>, vector<16x32xf32>
    tpu.vector_store %arg16[%c160_150, %c0_151], %210 {strides = array<i32>} : memref<256x32xf32, #tpu.memory_space<vmem>>, vector<16x32xf32>,
    %212 = vector.extract_strided_slice %93 {offsets = [198, 0], sizes = [16, 64], strides = [1, 1]} : vector<288x64xf32> to vector<16x64xf32>
    %c176 = arith.constant 176 : index
    %c0_152 = arith.constant 0 : index
    %213 = vector.load %arg15[%c176, %c0_152] : memref<256x64xf32, #tpu.memory_space<vmem>>, vector<16x64xf32>
    tpu.vector_store %arg15[%c176, %c0_152], %212 {strides = array<i32>} : memref<256x64xf32, #tpu.memory_space<vmem>>, vector<16x64xf32>,
    %214 = vector.extract_strided_slice %167 {offsets = [198, 0], sizes = [16, 32], strides = [1, 1]} : vector<288x32xf32> to vector<16x32xf32>
    %c176_153 = arith.constant 176 : index
    %c0_154 = arith.constant 0 : index
    %215 = vector.load %arg16[%c176_153, %c0_154] : memref<256x32xf32, #tpu.memory_space<vmem>>, vector<16x32xf32>
    tpu.vector_store %arg16[%c176_153, %c0_154], %214 {strides = array<i32>} : memref<256x32xf32, #tpu.memory_space<vmem>>, vector<16x32xf32>,
    %216 = vector.extract_strided_slice %93 {offsets = [216, 0], sizes = [16, 64], strides = [1, 1]} : vector<288x64xf32> to vector<16x64xf32>
    %c192_155 = arith.constant 192 : index
    %c0_156 = arith.constant 0 : index
    %217 = vector.load %arg15[%c192_155, %c0_156] : memref<256x64xf32, #tpu.memory_space<vmem>>, vector<16x64xf32>
    tpu.vector_store %arg15[%c192_155, %c0_156], %216 {strides = array<i32>} : memref<256x64xf32, #tpu.memory_space<vmem>>, vector<16x64xf32>,
    %218 = vector.extract_strided_slice %167 {offsets = [216, 0], sizes = [16, 32], strides = [1, 1]} : vector<288x32xf32> to vector<16x32xf32>
    %c192_157 = arith.constant 192 : index
    %c0_158 = arith.constant 0 : index
    %219 = vector.load %arg16[%c192_157, %c0_158] : memref<256x32xf32, #tpu.memory_space<vmem>>, vector<16x32xf32>
    tpu.vector_store %arg16[%c192_157, %c0_158], %218 {strides = array<i32>} : memref<256x32xf32, #tpu.memory_space<vmem>>, vector<16x32xf32>,
    %220 = vector.extract_strided_slice %93 {offsets = [234, 0], sizes = [16, 64], strides = [1, 1]} : vector<288x64xf32> to vector<16x64xf32>
    %c208 = arith.constant 208 : index
    %c0_159 = arith.constant 0 : index
    %221 = vector.load %arg15[%c208, %c0_159] : memref<256x64xf32, #tpu.memory_space<vmem>>, vector<16x64xf32>
    tpu.vector_store %arg15[%c208, %c0_159], %220 {strides = array<i32>} : memref<256x64xf32, #tpu.memory_space<vmem>>, vector<16x64xf32>,
    %222 = vector.extract_strided_slice %167 {offsets = [234, 0], sizes = [16, 32], strides = [1, 1]} : vector<288x32xf32> to vector<16x32xf32>
    %c208_160 = arith.constant 208 : index
    %c0_161 = arith.constant 0 : index
    %223 = vector.load %arg16[%c208_160, %c0_161] : memref<256x32xf32, #tpu.memory_space<vmem>>, vector<16x32xf32>
    tpu.vector_store %arg16[%c208_160, %c0_161], %222 {strides = array<i32>} : memref<256x32xf32, #tpu.memory_space<vmem>>, vector<16x32xf32>,
    %224 = vector.extract_strided_slice %93 {offsets = [252, 0], sizes = [16, 64], strides = [1, 1]} : vector<288x64xf32> to vector<16x64xf32>
    %c224_162 = arith.constant 224 : index
    %c0_163 = arith.constant 0 : index
    %225 = vector.load %arg15[%c224_162, %c0_163] : memref<256x64xf32, #tpu.memory_space<vmem>>, vector<16x64xf32>
    tpu.vector_store %arg15[%c224_162, %c0_163], %224 {strides = array<i32>} : memref<256x64xf32, #tpu.memory_space<vmem>>, vector<16x64xf32>,
    %226 = vector.extract_strided_slice %167 {offsets = [252, 0], sizes = [16, 32], strides = [1, 1]} : vector<288x32xf32> to vector<16x32xf32>
    %c224_164 = arith.constant 224 : index
    %c0_165 = arith.constant 0 : index
    %227 = vector.load %arg16[%c224_164, %c0_165] : memref<256x32xf32, #tpu.memory_space<vmem>>, vector<16x32xf32>
    tpu.vector_store %arg16[%c224_164, %c0_165], %226 {strides = array<i32>} : memref<256x32xf32, #tpu.memory_space<vmem>>, vector<16x32xf32>,
    %228 = vector.extract_strided_slice %93 {offsets = [270, 0], sizes = [16, 64], strides = [1, 1]} : vector<288x64xf32> to vector<16x64xf32>
    %c240 = arith.constant 240 : index
    %c0_166 = arith.constant 0 : index
    %229 = vector.load %arg15[%c240, %c0_166] : memref<256x64xf32, #tpu.memory_space<vmem>>, vector<16x64xf32>
    tpu.vector_store %arg15[%c240, %c0_166], %228 {strides = array<i32>} : memref<256x64xf32, #tpu.memory_space<vmem>>, vector<16x64xf32>,
    %230 = vector.extract_strided_slice %167 {offsets = [270, 0], sizes = [16, 32], strides = [1, 1]} : vector<288x32xf32> to vector<16x32xf32>
    %c240_167 = arith.constant 240 : index
    %c0_168 = arith.constant 0 : index
    %231 = vector.load %arg16[%c240_167, %c0_168] : memref<256x32xf32, #tpu.memory_space<vmem>>, vector<16x32xf32>
    tpu.vector_store %arg16[%c240_167, %c0_168], %230 {strides = array<i32>} : memref<256x32xf32, #tpu.memory_space<vmem>>, vector<16x32xf32>,
    %232 = arith.truncf %8 : vector<256x96xf32> to vector<256x96xbf16>
    %c0_169 = arith.constant 0 : index
    %c0_170 = arith.constant 0 : index
    %233 = vector.load %arg8[%c0_169, %c0_170] : memref<96x8xbf16, #tpu.memory_space<vmem>>, vector<96x8xbf16>
    %cst_171 = arith.constant dense<0.000000e+00> : vector<256x8xf32>
    %234 = tpu.matmul %232, %233, %cst_171 {dimension_numbers = #tpu.dot_dimension_numbers<[1], [0], [0], [1], [0, 0, 1, 1], [], []>} : vector<256x96xbf16>, vector<96x8xbf16>, vector<256x8xf32> -> vector<256x8xf32>
    %c0_172 = arith.constant 0 : index
    %c0_173 = arith.constant 0 : index
    %235 = vector.load %arg15[%c0_172, %c0_173] : memref<256x64xf32, #tpu.memory_space<vmem>>, vector<256x64xf32>
    %236 = arith.truncf %235 : vector<256x64xf32> to vector<256x64xbf16>
    %c0_174 = arith.constant 0 : index
    %c0_175 = arith.constant 0 : index
    %237 = vector.load %arg9[%c0_174, %c0_175] : memref<64x8xbf16, #tpu.memory_space<vmem>>, vector<64x8xbf16>
    %cst_176 = arith.constant dense<0.000000e+00> : vector<256x8xf32>
    %238 = tpu.matmul %236, %237, %cst_176 {dimension_numbers = #tpu.dot_dimension_numbers<[1], [0], [0], [1], [0, 0, 1, 1], [], []>} : vector<256x64xbf16>, vector<64x8xbf16>, vector<256x8xf32> -> vector<256x8xf32>
    %239 = arith.addf %234, %238 : vector<256x8xf32>
    %c0_177 = arith.constant 0 : index
    %c0_178 = arith.constant 0 : index
    %240 = vector.load %arg16[%c0_177, %c0_178] : memref<256x32xf32, #tpu.memory_space<vmem>>, vector<256x32xf32>
    %241 = arith.truncf %240 : vector<256x32xf32> to vector<256x32xbf16>
    %c0_179 = arith.constant 0 : index
    %c0_180 = arith.constant 0 : index
    %242 = vector.load %arg10[%c0_179, %c0_180] : memref<32x8xbf16, #tpu.memory_space<vmem>>, vector<32x8xbf16>
    %cst_181 = arith.constant dense<0.000000e+00> : vector<256x8xf32>
    %243 = tpu.matmul %241, %242, %cst_181 {dimension_numbers = #tpu.dot_dimension_numbers<[1], [0], [0], [1], [0, 0, 1, 1], [], []>} : vector<256x32xbf16>, vector<32x8xbf16>, vector<256x8xf32> -> vector<256x8xf32>
    %244 = arith.addf %239, %243 : vector<256x8xf32>
    %245 = arith.extf %1 : vector<256x8xbf16> to vector<256x8xf32>
    %246 = arith.addf %245, %244 : vector<256x8xf32>
    %c0_182 = arith.constant 0 : index
    %c0_183 = arith.constant 0 : index
    %247 = vector.load %arg11[%c0_182, %c0_183] : memref<1x8xf32, #tpu.memory_space<vmem>>, vector<1x8xf32>
    %248 = vector.broadcast %247 : vector<1x8xf32> to vector<256x8xf32>
    %249 = arith.addf %246, %248 : vector<256x8xf32>
    %cst_184 = arith.constant 0.000000e+00 : f32
    %250 = vector.broadcast %cst_184 : f32 to vector<256x8xf32>
    %251 = arith.maximumf %249, %250 : vector<256x8xf32>
    %c0_185 = arith.constant 0 : index
    %c0_186 = arith.constant 0 : index
    %c0_187 = arith.constant 0 : index
    %252 = vector.load %arg12[%c0_185, %c0_186, %c0_187] : memref<1x256x8xf32, #tpu.memory_space<vmem>>, vector<1x256x8xf32>
    %253 = vector.shape_cast %252 : vector<1x256x8xf32> to vector<256x8xf32>
    %254 = vector.shape_cast %251 : vector<256x8xf32> to vector<1x256x8xf32>
    tpu.vector_store %arg12[%c0_185, %c0_186, %c0_187], %254 {strides = array<i32>} : memref<1x256x8xf32, #tpu.memory_space<vmem>>, vector<1x256x8xf32>,
    return
  }
  func.func @transform_0(%arg0: i32) -> (i32, i32, i32) {
    %c0_i32 = arith.constant 0 : i32
    %c0_i32_0 = arith.constant 0 : i32
    %c0_i32_1 = arith.constant 0 : i32
    return %arg0, %c0_i32, %c0_i32_0 : i32, i32, i32
  }
  func.func @transform_1(%arg0: i32) -> (i32, i32) {
    %c0_i32 = arith.constant 0 : i32
    %c0_i32_0 = arith.constant 0 : i32
    %c0_i32_1 = arith.constant 0 : i32
    return %c0_i32, %c0_i32_0 : i32, i32
  }
  func.func @transform_2(%arg0: i32) -> (i32, i32) {
    %c0_i32 = arith.constant 0 : i32
    %c0_i32_0 = arith.constant 0 : i32
    %c0_i32_1 = arith.constant 0 : i32
    return %c0_i32, %c0_i32_0 : i32, i32
  }
  func.func @transform_3(%arg0: i32) -> (i32, i32) {
    %c0_i32 = arith.constant 0 : i32
    %c0_i32_0 = arith.constant 0 : i32
    %c0_i32_1 = arith.constant 0 : i32
    return %c0_i32, %c0_i32_0 : i32, i32
  }
  func.func @transform_4(%arg0: i32) -> (i32, i32) {
    %c0_i32 = arith.constant 0 : i32
    %c0_i32_0 = arith.constant 0 : i32
    %c0_i32_1 = arith.constant 0 : i32
    return %c0_i32, %c0_i32_0 : i32, i32
  }
  func.func @transform_5(%arg0: i32) -> (i32, i32) {
    %c0_i32 = arith.constant 0 : i32
    %c0_i32_0 = arith.constant 0 : i32
    %c0_i32_1 = arith.constant 0 : i32
    return %c0_i32, %c0_i32_0 : i32, i32
  }
  func.func @transform_6(%arg0: i32) -> (i32, i32) {
    %c0_i32 = arith.constant 0 : i32
    %c0_i32_0 = arith.constant 0 : i32
    %c0_i32_1 = arith.constant 0 : i32
    return %c0_i32, %c0_i32_0 : i32, i32
  }
  func.func @transform_7(%arg0: i32) -> (i32, i32) {
    %c0_i32 = arith.constant 0 : i32
    %c0_i32_0 = arith.constant 0 : i32
    %c0_i32_1 = arith.constant 0 : i32
    return %c0_i32, %c0_i32_0 : i32, i32
  }
  func.func @transform_8(%arg0: i32) -> (i32, i32) {
    %c0_i32 = arith.constant 0 : i32
    %c0_i32_0 = arith.constant 0 : i32
    %c0_i32_1 = arith.constant 0 : i32
    return %c0_i32, %c0_i32_0 : i32, i32
  }
  func.func @transform_9(%arg0: i32) -> (i32, i32) {
    %c0_i32 = arith.constant 0 : i32
    %c0_i32_0 = arith.constant 0 : i32
    %c0_i32_1 = arith.constant 0 : i32
    return %c0_i32, %c0_i32_0 : i32, i32
  }
  func.func @transform_10(%arg0: i32) -> (i32, i32) {
    %c0_i32 = arith.constant 0 : i32
    %c0_i32_0 = arith.constant 0 : i32
    %c0_i32_1 = arith.constant 0 : i32
    return %c0_i32, %c0_i32_0 : i32, i32
  }
  func.func @transform_11(%arg0: i32) -> (i32, i32, i32) {
    %c0_i32 = arith.constant 0 : i32
    %c0_i32_0 = arith.constant 0 : i32
    %c0_i32_1 = arith.constant 0 : i32
    return %arg0, %c0_i32, %c0_i32_0 : i32, i32, i32
  }
}

</mosaic_0001>

<bundles_post_ra>
// kernel: mul.1
= control target key start
LH: loop header
LB: loop body
LE: loop exit
PB: predicated region body
PF: predicated region fallthrough
CT: control target
= control target key end

     0   :  { %s196_s0 = inlined_call_operand.vmem [shape: f32[8,96,1,1], index: 0, kind: input, shape index: {}]   ;;  %s197_s1 = inlined_call_operand.vmem [shape: f32[8,96,1,1], index: 1, kind: input, shape index: {}]   ;;  %s198_s2 = inlined_call_operand.vmem [shape: bf16[8,96,1,1], index: 2, kind: output, shape index: {}]  }
   0x1   :  { %v3_v0 = vld [vmem:[%s196_s0] sm:$0x1]  ;;  %v88_v2 = vld [vmem:[%s196_s0 + $0x1] sm:$0x1]  ;;  %v91_v5 = vld [vmem:[%s196_s0 + $0x2] sm:$0x1] }
   0x2   :  { %v4_v1 = vld [vmem:[%s197_s1] sm:$0x1]  ;;  %v89_v4 = vld [vmem:[%s197_s1 + $0x1] sm:$0x1]  ;;  %v92_v6 = vld [vmem:[%s197_s1 + $0x2] sm:$0x1] }
   0x3   :  { %v7_v3 = vmul.f32 %v4_v1, %v3_v0  ;;  %v17_v7 = vmul.f32 %v89_v4, %v88_v2  ;;  %v28_v8 = vmul.f32 %v92_v6, %v91_v5  ;;  %v94_v9 = vld [vmem:[%s196_s0 + $0x3] sm:$0x1]  ;;  %v97_v11 = vld [vmem:[%s196_s0 + $0x4] sm:$0x1]  ;;  %v100_v15 = vld [vmem:[%s196_s0 + $0x5] sm:$0x1] }
   0x4   :  { %v95_v10 = vld [vmem:[%s197_s1 + $0x3] sm:$0x1]  ;;  %v98_v14 = vld [vmem:[%s197_s1 + $0x4] sm:$0x1]  ;;  %v101_v19 = vld [vmem:[%s197_s1 + $0x5] sm:$0x1] }
   0x5   :  { %v9_v12 = vpack.c.bf16 0.0, %v7_v3  ;;  %v39_v13 = vmul.f32 %v95_v10, %v94_v9  ;;  %v20_v16 = vpack.c.bf16 0.0, %v17_v7  ;;  %v31_v17 = vpack.c.bf16 0.0, %v28_v8  ;;  %v103_v20 = vld [vmem:[%s196_s0 + $0x6] sm:$0x1] }
   0x6   :  { %v50_v18 = vmul.f32 %v98_v14, %v97_v11  ;;  %v61_v22 = vmul.f32 %v101_v19, %v100_v15  ;;  %v104_v23 = vld [vmem:[%s197_s1 + $0x6] sm:$0x1]  ;;  %v106_v24 = vld [vmem:[%s196_s0 + $0x7] sm:$0x1] }
   0x7   :  { %10 = vst [vmem:[%s198_s2] sm:$0x1] %v9_v12  ;;  %v42_v21 = vpack.c.bf16 0.0, %v39_v13  ;;  %v72_v26 = vmul.f32 %v104_v23, %v103_v20  ;;  %v107_v27 = vld [vmem:[%s197_s1 + $0x7] sm:$0x1] }
   0x8   :  { %90 = vst [vmem:[%s198_s2 + $0x1] sm:$0x1] %v20_v16  ;;  %v53_v25 = vpack.c.bf16 0.0, %v50_v18  ;;  %v64_v28 = vpack.c.bf16 0.0, %v61_v22  ;;  %v83_v29 = vmul.f32 %v107_v27, %v106_v24 }
   0x9   :  { %93 = vst [vmem:[%s198_s2 + $0x2] sm:$0x1] %v31_v17  ;;  %v75_v30 = vpack.c.bf16 0.0, %v72_v26 }
   0xa   :  { %96 = vst [vmem:[%s198_s2 + $0x3] sm:$0x1] %v42_v21  ;;  %v86_v31 = vpack.c.bf16 0.0, %v83_v29 }
   0xb   :  { %99 = vst [vmem:[%s198_s2 + $0x4] sm:$0x1] %v53_v25 }
   0xc   :  { %102 = vst [vmem:[%s198_s2 + $0x5] sm:$0x1] %v64_v28 }
   0xd   :  { %105 = vst [vmem:[%s198_s2 + $0x6] sm:$0x1] %v75_v30 }
   0xe   :  { %108 = vst [vmem:[%s198_s2 + $0x7] sm:$0x1] %v86_v31 }

// kernel: block35_forward.1
= control target key start
LH: loop header
LB: loop body
LE: loop exit
PB: predicated region body
PF: predicated region fallthrough
CT: control target
= control target key end

     0   :  { %s8927_s17 = smov 0   ;;  %s12737_s0 = inlined_call_operand.vmem [shape: bf16[2,256,8], index: 0, kind: input, shape index: {}]   ;;  %s12738_s1 = inlined_call_operand.vmem [shape: bf16[8,96], index: 1, kind: input, shape index: {}]   ;;  %s12739_s2 = inlined_call_operand.vmem [shape: f32[1,96], index: 2, kind: input, shape index: {}]   ;;  %s12740_s3 = inlined_call_operand.vmem [shape: bf16[576,64], index: 3, kind: input, shape index: {}]   ;;  %s12741_s4 = inlined_call_operand.vmem [shape: f32[1,64], index: 4, kind: input, shape index: {}]   ;;  %s12742_s5 = inlined_call_operand.vmem [shape: bf16[288,32], index: 5, kind: input, shape index: {}]   ;;  %s12743_s6 = inlined_call_operand.vmem [shape: f32[1,32], index: 6, kind: input, shape index: {}]   ;;  %s12744_s7 = inlined_call_operand.vmem [shape: bf16[96,8], index: 7, kind: input, shape index: {}]   ;;  %s12745_s8 = inlined_call_operand.vmem [shape: bf16[64,8], index: 8, kind: input, shape index: {}]   ;;  %s12746_s9 = inlined_call_operand.vmem [shape: bf16[32,8], index: 9, kind: input, shape index: {}]   ;;  %s12747_s10 = inlined_call_operand.vmem [shape: f32[1,8], index: 10, kind: input, shape index: {}]   ;;  %s12748_s11 = inlined_call_operand.vmem [shape: f32[2,256,8], index: 11, kind: output, shape index: {}]  }
   0x1 LB: > { %s8025_s18 = sadd.s32 4294967295, %s8863_s17   ;;  %p8029_p0 = scmp.ge.s32.totalorder %s8863_s17, 1  ;;  %s8863_s17 = sphi %s8927_s17, %s21_s17  }
   0x2   : > { %p337_p1 = scmp.lt.s32.totalorder %s8863_s17, 3 }
   0x4   : > { %p338_p2 = pnand %p8029_p0, %p337_p1 }
   0x6   : > { %341 = sbr.rel (%p338_p2) target bundleno = 2205 (0x89d), region = 64 }
   0xb   : > { %v420_v0 = vld [vmem:[%s12738_s1] sm:$0xf]  ;;  %vm554_vm0 = vcmask 1043456   ;;  %p377_p3 = scmp.lt.s32.totalorder %s8025_s18, 1  ;;  %vm505_vm1 = vcmask 64512   ;;  %v8773_v12 = vld [vmem:[%s12740_s3 + $0x18] sm:$0xff] }
   0xc   : > { %v556_v1 = vsel %vm554_vm0, %v420_v0, 0  ;;  %v8777_v13 = vld [vmem:[%s12740_s3 + $0x38] sm:$0xff]  ;;  %v8772_v14 = vld [vmem:[%s12740_s3 + $0x10] sm:$0xff]  ;;  %v8771_v15 = vld [vmem:[%s12740_s3 + $0x8] sm:$0xff]  ;;  %vm679_vm2 = vcmask 523264   ;;  %v12749_v18 = vmov 0.0  }
   0xd   : > { %565 = vmatpush.bf16.msra.mxu0 %v556_v1  ;;  %s13232_s18 = smov (!%p377_p3, %s8025_s18), 1  ;;  %8836 = vmatpush.bf16.msra.mxu2 %v556_v1  ;;  %680 = vst.msk [vmem:[#allocation2] sm:$0xff] %vm679_vm2, %v12749_v18  ;;  %v8776_v19 = vld [vmem:[%s12740_s3 + $0x30] sm:$0xff]  ;;  %v8770_v20 = vld [vmem:[%s12740_s3] sm:$0xff]  ;;  %v8775_v21 = vld [vmem:[%s12740_s3 + $0x28] sm:$0xff]  ;;  %vm724_vm5 = vcmask 261120  }
   0xe   : > { %s8752_s21 = sshll.u32 %s13232_s18, 7  ;;  %1007 = vmatpush.bf16.msra.mxu1 %v8777_v13  ;;  %681 = vst.msk [vmem:[#allocation2 + $0x8] sm:$0xff] %vm679_vm2, %v12749_v18  ;;  %v8774_v22 = vld [vmem:[%s12740_s3 + $0x20] sm:$0xff]  ;;  %v8781_v30 = vld [vmem:[%s12740_s3 + $0x58] sm:$0xff]  ;;  %v8784_v33 = vld [vmem:[%s12740_s3 + $0x70] sm:$0xff]  ;;  %s8753_s25 = sshll.u32 %s13232_s18, 8 }
   0xf   : > { %s8944_s24 = scalar_lea.vmem %s12737_s0, %s8752_s21  ;;  %682 = vst.msk [vmem:[#allocation2 + $0x10] sm:$0xff] %vm679_vm2, %v12749_v18  ;;  %8837 = vmatpush.bf16.msra.mxu3 %v8781_v30  ;;  %v8785_v32 = vld [vmem:[%s12740_s3 + $0x78] sm:$0xff]  ;;  %v8783_v34 = vld [vmem:[%s12740_s3 + $0x68] sm:$0xff]  ;;  %v9097_v35 = vld [vmem:[%s12739_s2] ss:$0 sm:$0xff]  ;;  %s12569_s28 = scalar_lea.vmem %s12748_s11, %s8753_s25 }
  0x10   : > { %v8754_v2 = vld [vmem:[%s8944_s24] sm:$0xff]  ;;  %v8764_v3 = vld [vmem:[%s8944_s24 + $0x50] sm:$0xff]  ;;  %v8755_v4 = vld [vmem:[%s8944_s24 + $0x8] sm:$0xff]  ;;  %683 = vst.msk [vmem:[#allocation2 + $0x18] sm:$0xff] %vm679_vm2, %v12749_v18 }
  0x11   : > { %8098 = vmatmul.msk.bf16.vlgmr.msra.gmra.mxu0 %vm505_vm1, %v8754_v2  ;;  %8108 = vmatmul.msk.bf16.vlgmr.msra.gmra.mxu2 %vm505_vm1, %v8764_v3  ;;  %v8765_v5 = vld [vmem:[%s8944_s24 + $0x58] sm:$0xff]  ;;  %v8756_v6 = vld [vmem:[%s8944_s24 + $0x10] sm:$0xff]  ;;  %v8766_v7 = vld [vmem:[%s8944_s24 + $0x60] sm:$0xff]  ;;  %684 = vst.msk [vmem:[#allocation2 + $0x20] sm:$0xff] %vm679_vm2, %v12749_v18 }
  0x12   : > { %v8757_v8 = vld [vmem:[%s8944_s24 + $0x18] sm:$0xff]  ;;  %v8767_v9 = vld [vmem:[%s8944_s24 + $0x68] sm:$0xff]  ;;  %v8758_v10 = vld [vmem:[%s8944_s24 + $0x20] sm:$0xff]  ;;  %1184 = vmatpush.bf16.msrb.mxu2 %v8773_v12  ;;  %1008 = vmatpush.bf16.msra.mxu1 %v8776_v19  ;;  %685 = vst.msk [vmem:[#allocation2 + $0x28] sm:$0xff] %vm679_vm2, %v12749_v18 }
  0x13   : > { %v8768_v11 = vld [vmem:[%s8944_s24 + $0x70] sm:$0xff]  ;;  %v8759_v16 = vld [vmem:[%s8944_s24 + $0x28] sm:$0xff]  ;;  %v8769_v17 = vld [vmem:[%s8944_s24 + $0x78] sm:$0xff]  ;;  %686 = vst.msk [vmem:[#allocation2 + $0x30] sm:$0xff] %vm679_vm2, %v12749_v18  ;;  %1698 = vmatpush.bf16.msrb.mxu0 %v8785_v32 }
  0x14   : > { %687 = vst.msk [vmem:[#allocation2 + $0x38] sm:$0xff] %vm679_vm2, %v12749_v18  ;;  %v801_v26 = vld [vmem:[#allocation2] sm:$0xff]  ;;  %v8760_v28 = vld [vmem:[%s8944_s24 + $0x30] sm:$0xff]  ;;  %v8761_v31 = vld [vmem:[%s8944_s24 + $0x38] sm:$0xff] }
  0x15   : > { %688 = vst.msk [vmem:[#allocation2 + $0x40] sm:$0xff] %vm679_vm2, %v12749_v18  ;;  %v863_v23 = vld [vmem:[#allocation2 + $0x1] sm:$0xff] }
  0x16   : > { %1185 = vmatpush.bf16.msrb.mxu2 %v8772_v14  ;;  %1009 = vmatpush.bf16.msra.mxu1 %v8775_v21  ;;  %689 = vst.msk [vmem:[#allocation2 + $0x48] sm:$0xff] %vm679_vm2, %v12749_v18  ;;  %v864_v24 = vld [vmem:[#allocation2 + $0x9] sm:$0xff]  ;;  %v8782_v36 = vld [vmem:[%s12740_s3 + $0x60] sm:$0xff] }
  0x17   : > { %690 = vst.msk [vmem:[#allocation2 + $0x50] sm:$0xff] %vm679_vm2, %v12749_v18  ;;  %v899_v25 = vpack.c.bf16 %v864_v24, %v863_v23  ;;  %v802_v27 = vld [vmem:[#allocation2 + $0x8] sm:$0xff]  ;;  %1699 = vmatpush.bf16.msrb.mxu0 %v8784_v33  ;;  %v8762_v37 = vld [vmem:[%s8944_s24 + $0x40] sm:$0xff] }
  0x18   : > { %691 = vst.msk [vmem:[#allocation2 + $0x58] sm:$0xff] %vm679_vm2, %v12749_v18  ;;  %v837_v29 = vpack.c.bf16 %v802_v27, %v801_v26  ;;  %v8763_v49 = vld [vmem:[%s8944_s24 + $0x48] sm:$0xff] }
  0x19   : > { %692 = vst.msk [vmem:[#allocation2 + $0x60] sm:$0xff] %vm679_vm2, %v12749_v18 }
  0x1a   : > { %1186 = vmatpush.bf16.msrb.mxu2 %v8771_v15  ;;  %693 = vst.msk [vmem:[#allocation2 + $0x68] sm:$0xff] %vm679_vm2, %v12749_v18  ;;  %1010 = vmatpush.bf16.msra.mxu1 %v8774_v22 }
  0x1b   : > { %694 = vst.msk [vmem:[#allocation2 + $0x70] sm:$0xff] %vm679_vm2, %v12749_v18  ;;  %1700 = vmatpush.bf16.msrb.mxu0 %v8783_v34 }
  0x1c   : > { %695 = vst.msk [vmem:[#allocation2 + $0x78] sm:$0xff] %vm679_vm2, %v12749_v18 }
  0x1d   : > { %696 = vst.msk [vmem:[#allocation2 + $0x80] sm:$0xff] %vm679_vm2, %v12749_v18  ;;  %8130 = vmatmul.msk.bf16.vlgmr.msra.gmra.mxu1 %vm679_vm2, %v899_v25 }
  0x1e   : > { %1187 = vmatpush.bf16.msrb.mxu2 %v8770_v20  ;;  %697 = vst.msk [vmem:[#allocation2 + $0x88] sm:$0xff] %vm679_vm2, %v12749_v18  ;;  %1423 = vmatpush.bf16.msrb.mxu1 %v8781_v30 }
  0x1f   : > { %698 = vst.msk [vmem:[#allocation2 + $0x90] sm:$0xff] %vm679_vm2, %v12749_v18  ;;  %1701 = vmatpush.bf16.msrb.mxu0 %v8782_v36 }
  0x20   : > { %699 = vst.msk [vmem:[#allocation2 + $0x98] sm:$0xff] %vm679_vm2, %v12749_v18 }
  0x21   : > { %8099 = vmatmul.msk.bf16.gmra.mxu0 %vm505_vm1, %v8755_v4  ;;  %8109 = vmatmul.msk.bf16.gmra.mxu2 %vm505_vm1, %v8765_v5  ;;  %700 = vst.msk [vmem:[#allocation2 + $0xa0] sm:$0xff] %vm679_vm2, %v12749_v18 }
  0x22   : > { %701 = vst.msk [vmem:[#allocation2 + $0xa8] sm:$0xff] %vm679_vm2, %v12749_v18 }
  0x23   : > { %702 = vst.msk [vmem:[#allocation2 + $0xb0] sm:$0xff] %vm679_vm2, %v12749_v18 }
  0x24   : > { %703 = vst.msk [vmem:[#allocation2 + $0xb8] sm:$0xff] %vm679_vm2, %v12749_v18 }
  0x25   : > { %704 = vst.msk [vmem:[#allocation2 + $0xc0] sm:$0xff] %vm679_vm2, %v12749_v18 }
  0x26   : > { %705 = vst.msk [vmem:[#allocation2 + $0xc8] sm:$0xff] %vm679_vm2, %v12749_v18 }
  0x27   : > { %706 = vst.msk [vmem:[#allocation2 + $0xd0] sm:$0xff] %vm679_vm2, %v12749_v18 }
  0x28   : > { %707 = vst.msk [vmem:[#allocation2 + $0xd8] sm:$0xff] %vm679_vm2, %v12749_v18 }
  0x29   : > { %708 = vst.msk [vmem:[#allocation2 + $0xe0] sm:$0xff] %vm679_vm2, %v12749_v18 }
  0x2a   : > { %709 = vst.msk [vmem:[#allocation2 + $0xe8] sm:$0xff] %vm679_vm2, %v12749_v18 }
  0x2b   : > { %710 = vst.msk [vmem:[#allocation2 + $0xf0] sm:$0xff] %vm679_vm2, %v12749_v18 }
  0x2c   : > { %711 = vst.msk [vmem:[#allocation2 + $0xf8] sm:$0xff] %vm679_vm2, %v12749_v18 }
  0x2d   : > { %712 = vst.msk [vmem:[#allocation2 + $0x100] sm:$0xff] %vm679_vm2, %v12749_v18 }
  0x2e   : > { %713 = vst.msk [vmem:[#allocation2 + $0x108] sm:$0xff] %vm679_vm2, %v12749_v18 }
  0x2f   : > { %714 = vst.msk [vmem:[#allocation2 + $0x110] sm:$0xff] %vm679_vm2, %v12749_v18 }
  0x30   : > { %715 = vst.msk [vmem:[#allocation2 + $0x118] sm:$0xff] %vm679_vm2, %v12749_v18 }
  0x31   : > { %8100 = vmatmul.msk.bf16.gmra.mxu0 %vm505_vm1, %v8756_v6  ;;  %8110 = vmatmul.msk.bf16.gmra.mxu2 %vm505_vm1, %v8766_v7  ;;  %716 = vst.msk [vmem:[#allocation2 + $0x120] sm:$0xff] %vm679_vm2, %v12749_v18 }
  0x32   : > { %717 = vst.msk [vmem:[#allocation2 + $0x128] sm:$0xff] %vm679_vm2, %v12749_v18 }
  0x33   : > { %718 = vst.msk [vmem:[#allocation2 + $0x130] sm:$0xff] %vm679_vm2, %v12749_v18 }
  0x34   : > { %719 = vst.msk [vmem:[#allocation2 + $0x138] sm:$0xff] %vm679_vm2, %v12749_v18 }
  0x35   : > { %720 = vst.msk [vmem:[#allocation2 + $0x140] sm:$0xff] %vm679_vm2, %v12749_v18 }
  0x41   : > { %8101 = vmatmul.msk.bf16.gmra.mxu0 %vm505_vm1, %v8757_v8  ;;  %8111 = vmatmul.msk.bf16.gmra.mxu2 %vm505_vm1, %v8767_v9 }
  0x51   : > { %8102 = vmatmul.msk.bf16.gmra.mxu0 %vm505_vm1, %v8758_v10  ;;  %8112 = vmatmul.msk.bf16.gmra.mxu2 %vm505_vm1, %v8768_v11 }
  0x61   : > { %8103 = vmatmul.msk.bf16.gmra.mxu0 %vm505_vm1, %v8759_v16  ;;  %8113 = vmatmul.msk.bf16.gmra.mxu2 %vm505_vm1, %v8769_v17 }
  0x71   : > { %8104 = vmatmul.msk.bf16.gmra.mxu0 %vm505_vm1, %v8760_v28  ;;  %8164 = vmatmul.msk.bf16.vlgmr.msrb.gmra.mxu2 %vm679_vm2, %v837_v29  ;;  %v8780_v29 = vld [vmem:[%s12740_s3 + $0x50] sm:$0xff] }
  0x72   : > { %1424 = vmatpush.bf16.msrb.mxu1 %v8780_v29  ;;  %8838 = vmatpush.bf16.msra.mxu3 %v8780_v29 }
  0x81   : > { %8105 = vmatmul.msk.bf16.gmra.mxu0 %vm505_vm1, %v8761_v31 }
  0x8e   : > { %v567_v38 = vpop.f32.mrf.mxu0 }
  0x8f   : > { %v568_v39 = vadd.f32 %v9097_v35, %v567_v38 }
  0x91   : > { %v647_v40 = vmax.f32 %v568_v39, 0.0  ;;  %8106 = vmatmul.msk.bf16.gmra.mxu0 %vm505_vm1, %v8762_v37 }
  0x93   : > { %769 = vst.msk [vmem:[#allocation2 + $0x13] sm:$0xff] %vm679_vm2, %v647_v40 }
  0x94   : > { %v617_v41 = vpop.f32.mrf.mxu2 }
  0x95   : > { %v618_v42 = vadd.f32 %v9097_v35, %v617_v41 }
  0x96   : > { %v569_v43 = vpop.f32.mrf.mxu0 }
  0x97   : > { %v570_v44 = vadd.f32 %v9097_v35, %v569_v43  ;;  %v667_v45 = vmax.f32 %v618_v42, 0.0 }
  0x99   : > { %v648_v46 = vmax.f32 %v570_v44, 0.0  ;;  %789 = vst.msk [vmem:[#allocation2 + $0xc7] sm:$0xff] %vm679_vm2, %v667_v45 }
  0x9a   : > { %v865_v55 = vld [vmem:[#allocation2 + $0x11] sm:$0xff] }
  0x9b   : > { %770 = vst.msk [vmem:[#allocation2 + $0x1b] sm:$0xff] %vm679_vm2, %v648_v46  ;;  %v9110_v47 = vpack.c.bf16 %v648_v46, %v647_v40  ;;  %v803_v58 = vld [vmem:[#allocation2 + $0x10] sm:$0xff] }
  0x9c   : > { %v619_v48 = vpop.f32.mrf.mxu2  ;;  %v1554_v9 = vld [vmem:[#allocation2 + $0x12] sm:$0xff] }
  0x9d   : > { %12768 = vst [vmem:[#allocation6_spill] sm:$0xff] %v9110_v47  ;;  %v620_v50 = vadd.f32 %v9097_v35, %v619_v48 }
  0x9e   : > { %v572_v51 = vpop.f32.mrf.mxu0 }
  0x9f   : > { %v573_v52 = vadd.f32 %v9097_v35, %v572_v51  ;;  %v668_v53 = vmax.f32 %v620_v50, 0.0 }
  0xa1   : > { %v649_v54 = vmax.f32 %v573_v52, 0.0  ;;  %8107 = vmatmul.msk.bf16.gmra.mxu0 %vm505_vm1, %v8763_v49  ;;  %790 = vst.msk [vmem:[#allocation2 + $0xcf] sm:$0xff] %vm679_vm2, %v668_v53  ;;  %v9117_v56 = vpack.c.bf16 %v668_v53, %v667_v45 }
  0xa2   : > { %v866_v57 = vld [vmem:[#allocation2 + $0x19] sm:$0xff] }
  0xa3   : > { %12769 = vst [vmem:[#allocation7_spill] sm:$0xff] %v9117_v56  ;;  %v804_v59 = vld [vmem:[#allocation2 + $0x18] sm:$0xff]  ;;  %v900_v60 = vpack.c.bf16 %v866_v57, %v865_v55 }
  0xa4   : > { %771 = vst.msk [vmem:[#allocation2 + $0x25] sm:$0xff] %vm679_vm2, %v649_v54  ;;  %v838_v61 = vpack.c.bf16 %v804_v59, %v803_v58  ;;  %v622_v62 = vpop.f32.mrf.mxu2  ;;  %v1555_v5 = vld [vmem:[#allocation2 + $0x1a] sm:$0xff] }
  0xa5   : > { %8131 = vmatmul.msk.bf16.gmra.mxu1 %vm679_vm2, %v900_v60  ;;  %v623_v63 = vadd.f32 %v9097_v35, %v622_v62  ;;  %v1590_v11 = vpack.c.bf16 %v1555_v5, %v1554_v9 }
  0xa6   : > { %8165 = vmatmul.msk.bf16.gmra.mxu2 %vm679_vm2, %v838_v61  ;;  %v574_v0 = vpop.f32.mrf.mxu0 }
  0xa7   : > { %v575_v1 = vadd.f32 %v9097_v35, %v574_v0  ;;  %v669_v2 = vmax.f32 %v623_v63, 0.0 }
  0xa9   : > { %v650_v3 = vmax.f32 %v575_v1, 0.0  ;;  %791 = vst.msk [vmem:[#allocation2 + $0xd9] sm:$0xff] %vm679_vm2, %v669_v2 }
  0xab   : > { %772 = vst.msk [vmem:[#allocation2 + $0x2d] sm:$0xff] %vm679_vm2, %v650_v3  ;;  %v9126_v4 = vpack.c.bf16 %v650_v3, %v649_v54  ;;  %v867_v14 = vld [vmem:[#allocation2 + $0x21] sm:$0xff] }
  0xac   : > { %v624_v6 = vpop.f32.mrf.mxu2  ;;  %v805_v17 = vld [vmem:[#allocation2 + $0x20] sm:$0xff] }
  0xad   : > { %12770 = vst [vmem:[#allocation8_spill] sm:$0xff] %v9126_v4  ;;  %v625_v7 = vadd.f32 %v9097_v35, %v624_v6  ;;  %v1556_v34 = vld [vmem:[#allocation2 + $0x22] sm:$0xff] }
  0xae   : > { %v577_v8 = vpop.f32.mrf.mxu0 }
  0xaf   : > { %v578_v10 = vadd.f32 %v9097_v35, %v577_v8  ;;  %v670_v12 = vmax.f32 %v625_v7, 0.0 }
  0xb1   : > { %v651_v13 = vmax.f32 %v578_v10, 0.0  ;;  %8232 = vmatmul.msk.bf16.vlgmr.msrb.gmra.mxu0 %vm679_vm2, %v1590_v11  ;;  %792 = vst.msk [vmem:[#allocation2 + $0xe1] sm:$0xff] %vm679_vm2, %v670_v12  ;;  %v9132_v15 = vpack.c.bf16 %v670_v12, %v669_v2  ;;  %v8779_v11 = vld [vmem:[%s12740_s3 + $0x48] sm:$0xff] }
  0xb2   : > { %v868_v16 = vld [vmem:[#allocation2 + $0x29] sm:$0xff]  ;;  %8839 = vmatpush.bf16.msra.mxu3 %v8779_v11  ;;  %1425 = vmatpush.bf16.msrb.mxu1 %v8779_v11 }
  0xb3   : > { %12771 = vst [vmem:[#allocation9_spill] sm:$0xff] %v9132_v15  ;;  %v806_v19 = vld [vmem:[#allocation2 + $0x28] sm:$0xff]  ;;  %v901_v20 = vpack.c.bf16 %v868_v16, %v867_v14 }
  0xb4   : > { %773 = vst.msk [vmem:[#allocation2 + $0x37] sm:$0xff] %vm679_vm2, %v651_v13  ;;  %v839_v21 = vpack.c.bf16 %v806_v19, %v805_v17  ;;  %v627_v22 = vpop.f32.mrf.mxu2  ;;  %v1557_v30 = vld [vmem:[#allocation2 + $0x2a] sm:$0xff]  ;;  %v8778_v17 = vld [vmem:[%s12740_s3 + $0x40] sm:$0xff] }
  0xb5   : > { %8132 = vmatmul.msk.bf16.gmra.mxu1 %vm679_vm2, %v901_v20  ;;  %v628_v23 = vadd.f32 %v9097_v35, %v627_v22  ;;  %v1591_v37 = vpack.c.bf16 %v1557_v30, %v1556_v34 }
  0xb6   : > { %8166 = vmatmul.msk.bf16.gmra.mxu2 %vm679_vm2, %v839_v21  ;;  %v579_v24 = vpop.f32.mrf.mxu0  ;;  %8840 = vmatpush.bf16.msra.mxu3 %v8778_v17 }
  0xb7   : > { %v580_v25 = vadd.f32 %v9097_v35, %v579_v24  ;;  %v671_v26 = vmax.f32 %v628_v23, 0.0  ;;  %1426 = vmatpush.bf16.msrb.mxu1 %v8778_v17 }
  0xb9   : > { %v652_v27 = vmax.f32 %v580_v25, 0.0  ;;  %793 = vst.msk [vmem:[#allocation2 + $0xeb] sm:$0xff] %vm679_vm2, %v671_v26 }
  0xbb   : > { %774 = vst.msk [vmem:[#allocation2 + $0x3f] sm:$0xff] %vm679_vm2, %v652_v27  ;;  %v9141_v28 = vpack.c.bf16 %v652_v27, %v651_v13  ;;  %v869_v40 = vld [vmem:[#allocation2 + $0x31] sm:$0xff] }
  0xbc   : > { %v629_v31 = vpop.f32.mrf.mxu2  ;;  %v807_v43 = vld [vmem:[#allocation2 + $0x30] sm:$0xff] }
  0xbd   : > { %12772 = vst [vmem:[#allocation10_spill] sm:$0xff] %v9141_v28  ;;  %v630_v32 = vadd.f32 %v9097_v35, %v629_v31  ;;  %v1558_v60 = vld [vmem:[#allocation2 + $0x32] sm:$0xff] }
  0xbe   : > { %v582_v33 = vpop.f32.mrf.mxu0 }
  0xbf   : > { %v583_v36 = vadd.f32 %v9097_v35, %v582_v33  ;;  %v672_v38 = vmax.f32 %v630_v32, 0.0 }
  0xc1   : > { %v653_v39 = vmax.f32 %v583_v36, 0.0  ;;  %8233 = vmatmul.msk.bf16.gmra.mxu0 %vm679_vm2, %v1591_v37  ;;  %794 = vst.msk [vmem:[#allocation2 + $0xf3] sm:$0xff] %vm679_vm2, %v672_v38  ;;  %v9150_v41 = vpack.c.bf16 %v672_v38, %v671_v26 }
  0xc2   : > { %v870_v42 = vld [vmem:[#allocation2 + $0x39] sm:$0xff]  ;;  %v871_v5 = vld [vmem:[#allocation2 + $0x41] sm:$0xff] }
  0xc3   : > { %12773 = vst [vmem:[#allocation11_spill] sm:$0xff] %v9150_v41  ;;  %v808_v44 = vld [vmem:[#allocation2 + $0x38] sm:$0xff]  ;;  %v902_v45 = vpack.c.bf16 %v870_v42, %v869_v40  ;;  %v809_v6 = vld [vmem:[#allocation2 + $0x40] sm:$0xff] }
  0xc4   : > { %775 = vst.msk [vmem:[#allocation2 + $0x49] sm:$0xff] %vm679_vm2, %v653_v39  ;;  %v840_v46 = vpack.c.bf16 %v808_v44, %v807_v43  ;;  %v632_v48 = vpop.f32.mrf.mxu2  ;;  %v1559_v55 = vld [vmem:[#allocation2 + $0x3a] sm:$0xff] }
  0xc5   : > { %8133 = vmatmul.msk.bf16.gmra.mxu1 %vm679_vm2, %v902_v45  ;;  %v633_v49 = vadd.f32 %v9097_v35, %v632_v48  ;;  %v1592_v62 = vpack.c.bf16 %v1559_v55, %v1558_v60 }
  0xc6   : > { %8167 = vmatmul.msk.bf16.gmra.mxu2 %vm679_vm2, %v840_v46  ;;  %v584_v50 = vpop.f32.mrf.mxu0 }
  0xc7   : > { %v585_v51 = vadd.f32 %v9097_v35, %v584_v50  ;;  %v673_v52 = vmax.f32 %v633_v49, 0.0 }
  0xc9   : > { %v654_v53 = vmax.f32 %v585_v51, 0.0  ;;  %795 = vst.msk [vmem:[#allocation2 + $0xfd] sm:$0xff] %vm679_vm2, %v673_v52 }
  0xcb   : > { %776 = vst.msk [vmem:[#allocation2 + $0x51] sm:$0xff] %vm679_vm2, %v654_v53  ;;  %v9159_v54 = vpack.c.bf16 %v654_v53, %v653_v39  ;;  %v872_v0 = vld [vmem:[#allocation2 + $0x49] sm:$0xff] }
  0xcc   : > { %v634_v57 = vpop.f32.mrf.mxu2  ;;  %v810_v1 = vld [vmem:[#allocation2 + $0x48] sm:$0xff]  ;;  %v903_v7 = vpack.c.bf16 %v872_v0, %v871_v5 }
  0xcd   : > { %12774 = vst [vmem:[#allocation12_spill] sm:$0xff] %v9159_v54  ;;  %v635_v58 = vadd.f32 %v9097_v35, %v634_v57  ;;  %v841_v8 = vpack.c.bf16 %v810_v1, %v809_v6  ;;  %v1560_v24 = vld [vmem:[#allocation2 + $0x42] sm:$0xff]  ;;  %v1012_v1 = vpop.f32.mrf.mxu1 }
  0xce   : > { %v587_v59 = vpop.f32.mrf.mxu0  ;;  %v1287_v28 = vld [vmem:[#allocation2 + $0x42] sm:$0xff] }
  0xcf   : > { %v588_v61 = vadd.f32 %v9097_v35, %v587_v59  ;;  %v674_v63 = vmax.f32 %v635_v58, 0.0 }
  0xd1   : > { %v655_v2 = vmax.f32 %v588_v61, 0.0  ;;  %8234 = vmatmul.msk.bf16.gmra.mxu0 %vm679_vm2, %v1592_v62  ;;  %796 = vst.msk [vmem:[#allocation2 + $0x105] sm:$0xff] %vm679_vm2, %v674_v63  ;;  %v9165_v3 = vpack.c.bf16 %v674_v63, %v673_v52 }
  0xd2   : > { %v1561_v20 = vld [vmem:[#allocation2 + $0x4a] sm:$0xff]  ;;  %v1562_v51 = vld [vmem:[#allocation2 + $0x52] sm:$0xff] }
  0xd3   : > { %12775 = vst [vmem:[#allocation13_spill] sm:$0xff] %v9165_v3  ;;  %v1593_v26 = vpack.c.bf16 %v1561_v20, %v1560_v24  ;;  %v873_v33 = vld [vmem:[#allocation2 + $0x51] sm:$0xff] }
  0xd4   : > { %777 = vst.msk [vmem:[#allocation2 + $0x5b] sm:$0xff] %vm679_vm2, %v655_v2  ;;  %v637_v9 = vpop.f32.mrf.mxu2  ;;  %v811_v34 = vld [vmem:[#allocation2 + $0x50] sm:$0xff] }
  0xd5   : > { %8134 = vmatmul.msk.bf16.gmra.mxu1 %vm679_vm2, %v903_v7  ;;  %v638_v10 = vadd.f32 %v9097_v35, %v637_v9 }
  0xd6   : > { %8168 = vmatmul.msk.bf16.gmra.mxu2 %vm679_vm2, %v841_v8  ;;  %v589_v12 = vpop.f32.mrf.mxu0 }
  0xd7   : > { %v590_v13 = vadd.f32 %v9097_v35, %v589_v12  ;;  %v675_v14 = vmax.f32 %v638_v10, 0.0 }
  0xd9   : > { %v656_v16 = vmax.f32 %v590_v13, 0.0  ;;  %797 = vst.msk [vmem:[#allocation2 + $0x10f] sm:$0xff] %vm679_vm2, %v675_v14 }
  0xdb   : > { %778 = vst.msk [vmem:[#allocation2 + $0x63] sm:$0xff] %vm679_vm2, %v656_v16  ;;  %v9180_v19 = vpack.c.bf16 %v656_v16, %v655_v2  ;;  %v874_v29 = vld [vmem:[#allocation2 + $0x59] sm:$0xff] }
  0xdc   : > { %v639_v21 = vpop.f32.mrf.mxu2  ;;  %v812_v30 = vld [vmem:[#allocation2 + $0x58] sm:$0xff]  ;;  %v904_v36 = vpack.c.bf16 %v874_v29, %v873_v33 }
  0xdd   : > { %12776 = vst [vmem:[#allocation14_spill] sm:$0xff] %v9180_v19  ;;  %v640_v22 = vadd.f32 %v9097_v35, %v639_v21  ;;  %v842_v37 = vpack.c.bf16 %v812_v30, %v811_v34  ;;  %v1563_v46 = vld [vmem:[#allocation2 + $0x5a] sm:$0xff] }
  0xde   : > { %v592_v23 = vpop.f32.mrf.mxu0  ;;  %v1594_v53 = vpack.c.bf16 %v1563_v46, %v1562_v51 }
  0xdf   : > { %v593_v25 = vadd.f32 %v9097_v35, %v592_v23  ;;  %v676_v27 = vmax.f32 %v640_v22, 0.0 }
  0xe1   : > { %v657_v31 = vmax.f32 %v593_v25, 0.0  ;;  %8235 = vmatmul.msk.bf16.gmra.mxu0 %vm679_vm2, %v1593_v26  ;;  %798 = vst.msk [vmem:[#allocation2 + $0x117] sm:$0xff] %vm679_vm2, %v676_v27  ;;  %v9186_v32 = vpack.c.bf16 %v676_v27, %v675_v14 }
  0xe2   : > { %v875_v61 = vld [vmem:[#allocation2 + $0x61] sm:$0xff] }
  0xe3   : > { %12777 = vst [vmem:[#allocation15_spill] sm:$0xff] %v9186_v32  ;;  %v813_v62 = vld [vmem:[#allocation2 + $0x60] sm:$0xff] }
  0xe4   : > { %779 = vst.msk [vmem:[#allocation2 + $0x6d] sm:$0xff] %vm679_vm2, %v657_v31  ;;  %v642_v38 = vpop.f32.mrf.mxu2  ;;  %v1564_v16 = vld [vmem:[#allocation2 + $0x62] sm:$0xff] }
  0xe5   : > { %8135 = vmatmul.msk.bf16.gmra.mxu1 %vm679_vm2, %v904_v36  ;;  %v643_v39 = vadd.f32 %v9097_v35, %v642_v38 }
  0xe6   : > { %8169 = vmatmul.msk.bf16.gmra.mxu2 %vm679_vm2, %v842_v37  ;;  %v594_v40 = vpop.f32.mrf.mxu0 }
  0xe7   : > { %v595_v42 = vadd.f32 %v9097_v35, %v594_v40  ;;  %v677_v43 = vmax.f32 %v643_v39, 0.0 }
  0xe8   : > { %v835_v32 = vld [vmem:[#allocation2 + $0x110] sm:$0xff]  ;;  %v836_v3 = vld [vmem:[#allocation2 + $0x118] sm:$0xff] }
  0xe9   : > { %v658_v44 = vmax.f32 %v595_v42, 0.0  ;;  %799 = vst.msk [vmem:[#allocation2 + $0x121] sm:$0xff] %vm679_vm2, %v677_v43 }
  0xeb   : > { %780 = vst.msk [vmem:[#allocation2 + $0x75] sm:$0xff] %vm679_vm2, %v658_v44  ;;  %v9195_v45 = vpack.c.bf16 %v658_v44, %v657_v31  ;;  %v876_v57 = vld [vmem:[#allocation2 + $0x69] sm:$0xff] }
  0xec   : > { %v644_v48 = vpop.f32.mrf.mxu2  ;;  %v814_v58 = vld [vmem:[#allocation2 + $0x68] sm:$0xff]  ;;  %v905_v63 = vpack.c.bf16 %v876_v57, %v875_v61 }
  0xed   : > { %12778 = vst [vmem:[#allocation16_spill] sm:$0xff] %v9195_v45  ;;  %v645_v49 = vadd.f32 %v9097_v35, %v644_v48  ;;  %v843_v0 = vpack.c.bf16 %v814_v58, %v813_v62  ;;  %v1565_v13 = vld [vmem:[#allocation2 + $0x6a] sm:$0xff]  ;;  %v9229_v58 = vpop.f32.mrf.mxu1 }
  0xee   : > { %v597_v50 = vpop.f32.mrf.mxu0  ;;  %v1595_v20 = vpack.c.bf16 %v1565_v13, %v1564_v16 }
  0xef   : > { %v598_v52 = vadd.f32 %v9097_v35, %v597_v50  ;;  %v678_v55 = vmax.f32 %v645_v49, 0.0 }
  0xf0   : > { %v1314_v18 = vld [vmem:[#allocation2 + $0x11a] sm:$0xff] }
  0xf1   : > { %v659_v59 = vmax.f32 %v598_v52, 0.0  ;;  %8236 = vmatmul.msk.bf16.gmra.mxu0 %vm679_vm2, %v1594_v53  ;;  %800 = vst.msk [vmem:[#allocation2 + $0x129] sm:$0xff] %vm679_vm2, %v678_v55  ;;  %v9201_v60 = vpack.c.bf16 %v678_v55, %v677_v43 }
  0xf2   : > { %v1293_v9 = vld [vmem:[#allocation2 + $0x72] sm:$0xff] }
  0xf3   : > { %12779 = vst [vmem:[#allocation17_spill] sm:$0xff] %v9201_v60  ;;  %v877_v24 = vld [vmem:[#allocation2 + $0x71] sm:$0xff] }
  0xf4   : > { %781 = vst.msk [vmem:[#allocation2 + $0x7f] sm:$0xff] %vm679_vm2, %v659_v59  ;;  %v1189_v2 = vpop.f32.mrf.mxu2  ;;  %v815_v25 = vld [vmem:[#allocation2 + $0x70] sm:$0xff] }
  0xf5   : > { %8136 = vmatmul.msk.bf16.gmra.mxu1 %vm679_vm2, %v905_v63  ;;  %v9206_v5 = vadd.f32 %v1189_v2, %v1012_v1 }
  0xf6   : > { %8170 = vmatmul.msk.bf16.gmra.mxu2 %vm679_vm2, %v843_v0  ;;  %v599_v6 = vpop.f32.mrf.mxu0 }
  0xf7   : > { %v600_v7 = vadd.f32 %v9097_v35, %v599_v6 }
  0xf8   : > { %v1588_v56 = vld [vmem:[#allocation2 + $0x122] sm:$0xff] }
  0xf9   : > { %v660_v8 = vmax.f32 %v600_v7, 0.0 }
  0xfb   : > { %v1294_v10 = vld [vmem:[#allocation2 + $0x7a] sm:$0xff]  ;;  %782 = vst.msk [vmem:[#allocation2 + $0x87] sm:$0xff] %vm679_vm2, %v660_v8  ;;  %v9210_v11 = vpack.c.bf16 %v660_v8, %v659_v59 }
  0xfc   : > { %v1322_v12 = vpack.c.bf16 %v1294_v10, %v1293_v9  ;;  %v878_v21 = vld [vmem:[#allocation2 + $0x79] sm:$0xff]  ;;  %v9236_v0 = vpop.f32.mrf.mxu2 }
  0xfd   : > { %12780 = vst [vmem:[#allocation18_spill] sm:$0xff] %v9210_v11  ;;  %v816_v22 = vld [vmem:[#allocation2 + $0x78] sm:$0xff]  ;;  %v906_v26 = vpack.c.bf16 %v878_v21, %v877_v24  ;;  %v1283_v11 = vld [vmem:[#allocation2 + $0x22] sm:$0xff] }
  0xfe   : > { %8205 = vmatmul.msk.bf16.vlgmr.msra.gmra.mxu3 %vm679_vm2, %v1322_v12  ;;  %v602_v14 = vpop.f32.mrf.mxu0  ;;  %v844_v27 = vpack.c.bf16 %v816_v22, %v815_v25 }
  0xff   : > { %v603_v17 = vadd.f32 %v9097_v35, %v602_v14 }
 0x101   : > { %v661_v23 = vmax.f32 %v603_v17, 0.0  ;;  %8237 = vmatmul.msk.bf16.gmra.mxu0 %vm679_vm2, %v1595_v20 }
 0x102   : > { %v1295_v33 = vld [vmem:[#allocation2 + $0x82] sm:$0xff] }
 0x103   : > { %783 = vst.msk [vmem:[#allocation2 + $0x91] sm:$0xff] %vm679_vm2, %v661_v23  ;;  %v879_v40 = vld [vmem:[#allocation2 + $0x81] sm:$0xff]  ;;  %v880_v42 = vld [vmem:[#allocation2 + $0x89] sm:$0xff] }
 0x104   : > { %v817_v43 = vld [vmem:[#allocation2 + $0x80] sm:$0xff]  ;;  %v818_v44 = vld [vmem:[#allocation2 + $0x88] sm:$0xff]  ;;  %v907_v48 = vpack.c.bf16 %v880_v42, %v879_v40 }
 0x105   : > { %8137 = vmatmul.msk.bf16.gmra.mxu1 %vm679_vm2, %v906_v26  ;;  %v845_v49 = vpack.c.bf16 %v818_v44, %v817_v43 }
 0x106   : > { %8171 = vmatmul.msk.bf16.gmra.mxu2 %vm679_vm2, %v844_v27  ;;  %v604_v29 = vpop.f32.mrf.mxu0 }
 0x107   : > { %v605_v30 = vadd.f32 %v9097_v35, %v604_v29 }
 0x109   : > { %v662_v31 = vmax.f32 %v605_v30, 0.0 }
 0x10a   : > { %v1296_v34 = vld [vmem:[#allocation2 + $0x8a] sm:$0xff] }
 0x10b   : > { %784 = vst.msk [vmem:[#allocation2 + $0x99] sm:$0xff] %vm679_vm2, %v662_v31  ;;  %v9220_v36 = vpack.c.bf16 %v662_v31, %v661_v23  ;;  %v1323_v37 = vpack.c.bf16 %v1296_v34, %v1295_v33  ;;  %v881_v63 = vld [vmem:[#allocation2 + $0x91] sm:$0xff] }
 0x10c   : > { %v819_v2 = vld [vmem:[#allocation2 + $0x90] sm:$0xff] }
 0x10d   : > { %12781 = vst [vmem:[#allocation19_spill] sm:$0xff] %v9220_v36 }
 0x10e   : > { %8206 = vmatmul.msk.bf16.gmra.mxu3 %vm679_vm2, %v1323_v37  ;;  %v607_v38 = vpop.f32.mrf.mxu0 }
 0x10f   : > { %v608_v39 = vadd.f32 %v9097_v35, %v607_v38 }
 0x111   : > { %v663_v46 = vmax.f32 %v608_v39, 0.0  ;;  %8238 = vmatmul.msk.bf16.gmra.mxu0 %vm679_vm2, %v1322_v12 }
 0x112   : > { %v1297_v51 = vld [vmem:[#allocation2 + $0x92] sm:$0xff]  ;;  %v1298_v52 = vld [vmem:[#allocation2 + $0x9a] sm:$0xff] }
 0x113   : > { %785 = vst.msk [vmem:[#allocation2 + $0xa3] sm:$0xff] %vm679_vm2, %v663_v46  ;;  %v1324_v57 = vpack.c.bf16 %v1298_v52, %v1297_v51  ;;  %v882_v1 = vld [vmem:[#allocation2 + $0x99] sm:$0xff] }
 0x114   : > { %v820_v6 = vld [vmem:[#allocation2 + $0x98] sm:$0xff]  ;;  %v908_v9 = vpack.c.bf16 %v882_v1, %v881_v63 }
 0x115   : > { %8138 = vmatmul.msk.bf16.gmra.mxu1 %vm679_vm2, %v907_v48  ;;  %v846_v10 = vpack.c.bf16 %v820_v6, %v819_v2  ;;  %v1304_v6 = vld [vmem:[#allocation2 + $0xca] sm:$0xff] }
 0x116   : > { %8172 = vmatmul.msk.bf16.gmra.mxu2 %vm679_vm2, %v845_v49  ;;  %v609_v50 = vpop.f32.mrf.mxu0 }
 0x117   : > { %v610_v53 = vadd.f32 %v9097_v35, %v609_v50 }
 0x119   : > { %v664_v55 = vmax.f32 %v610_v53, 0.0 }
 0x11a   : > { %v1299_v13 = vld [vmem:[#allocation2 + $0xa2] sm:$0xff] }
 0x11b   : > { %786 = vst.msk [vmem:[#allocation2 + $0xab] sm:$0xff] %vm679_vm2, %v664_v55  ;;  %v9232_v59 = vpack.c.bf16 %v664_v55, %v663_v46  ;;  %v883_v27 = vld [vmem:[#allocation2 + $0xa1] sm:$0xff] }
 0x11c   : > { %v821_v33 = vld [vmem:[#allocation2 + $0xa0] sm:$0xff] }
 0x11d   : > { %12782 = vst [vmem:[#allocation20_spill] sm:$0xff] %v9232_v59 }
 0x11e   : > { %8207 = vmatmul.msk.bf16.gmra.mxu3 %vm679_vm2, %v1324_v57  ;;  %v612_v61 = vpop.f32.mrf.mxu0 }
 0x11f   : > { %v613_v62 = vadd.f32 %v9097_v35, %v612_v61 }
 0x121   : > { %v665_v7 = vmax.f32 %v613_v62, 0.0  ;;  %8239 = vmatmul.msk.bf16.gmra.mxu0 %vm679_vm2, %v1323_v37 }
 0x122   : > { %v1017_v8 = vpop.f32.mrf.mxu1  ;;  %v1300_v14 = vld [vmem:[#allocation2 + $0xaa] sm:$0xff] }
 0x123   : > { %787 = vst.msk [vmem:[#allocation2 + $0xb5] sm:$0xff] %vm679_vm2, %v665_v7  ;;  %v1325_v22 = vpack.c.bf16 %v1300_v14, %v1299_v13  ;;  %v884_v29 = vld [vmem:[#allocation2 + $0xa9] sm:$0xff] }
 0x124   : > { %v822_v30 = vld [vmem:[#allocation2 + $0xa8] sm:$0xff]  ;;  %v909_v34 = vpack.c.bf16 %v884_v29, %v883_v27 }
 0x125   : > { %8139 = vmatmul.msk.bf16.gmra.mxu1 %vm679_vm2, %v908_v9  ;;  %v847_v37 = vpack.c.bf16 %v822_v30, %v821_v33  ;;  %v1305_v30 = vld [vmem:[#allocation2 + $0xd2] sm:$0xff] }
 0x126   : > { %8173 = vmatmul.msk.bf16.gmra.mxu2 %vm679_vm2, %v846_v10  ;;  %v614_v12 = vpop.f32.mrf.mxu0 }
 0x127   : > { %v615_v16 = vadd.f32 %v9097_v35, %v614_v12  ;;  %v888_v12 = vld [vmem:[#allocation2 + $0xc9] sm:$0xff] }
 0x129   : > { %v1194_v17 = vpop.f32.mrf.mxu2  ;;  %v666_v20 = vmax.f32 %v615_v16, 0.0 }
 0x12a   : > { %v9243_v21 = vadd.f32 %v1194_v17, %v1017_v8  ;;  %v1019_v23 = vpop.f32.mrf.mxu1  ;;  %v1301_v44 = vld [vmem:[#allocation2 + $0xb2] sm:$0xff]  ;;  %v826_v17 = vld [vmem:[#allocation2 + $0xc8] sm:$0xff] }
 0x12b   : > { %788 = vst.msk [vmem:[#allocation2 + $0xbd] sm:$0xff] %vm679_vm2, %v666_v20  ;;  %v9246_v24 = vpack.c.bf16 %v666_v20, %v665_v7  ;;  %v885_v55 = vld [vmem:[#allocation2 + $0xb1] sm:$0xff] }
 0x12d   : > { %12783 = vst [vmem:[#allocation21_spill] sm:$0xff] %v9246_v24  ;;  %v1589_v24 = vld [vmem:[#allocation2 + $0x12a] sm:$0xff] }
 0x12e   : > { %8208 = vmatmul.msk.bf16.gmra.mxu3 %vm679_vm2, %v1325_v22  ;;  %v9249_v25 = vpop.f32.mrf.mxu0 }
 0x131   : > { %v1196_v26 = vpop.f32.mrf.mxu2  ;;  %8240 = vmatmul.msk.bf16.gmra.mxu0 %vm679_vm2, %v1324_v57  ;;  %v823_v57 = vld [vmem:[#allocation2 + $0xb0] sm:$0xff] }
 0x132   : > { %v9251_v31 = vadd.f32 %v1196_v26, %v1019_v23  ;;  %v1022_v35 = vpop.f32.mrf.mxu1  ;;  %v1302_v40 = vld [vmem:[#allocation2 + $0xba] sm:$0xff]  ;;  %v1303_v2 = vld [vmem:[#allocation2 + $0xc2] sm:$0xff] }
 0x133   : > { %v1326_v46 = vpack.c.bf16 %v1302_v40, %v1301_v44  ;;  %v886_v50 = vld [vmem:[#allocation2 + $0xb9] sm:$0xff]  ;;  %v1327_v9 = vpack.c.bf16 %v1304_v6, %v1303_v2  ;;  %v887_v14 = vld [vmem:[#allocation2 + $0xc1] sm:$0xff]  ;;  %v889_v40 = vld [vmem:[#allocation2 + $0xd1] sm:$0xff] }
 0x134   : > { %v824_v51 = vld [vmem:[#allocation2 + $0xb8] sm:$0xff]  ;;  %v910_v61 = vpack.c.bf16 %v886_v50, %v885_v55  ;;  %v825_v16 = vld [vmem:[#allocation2 + $0xc0] sm:$0xff]  ;;  %v911_v23 = vpack.c.bf16 %v888_v12, %v887_v14  ;;  %v892_v14 = vld [vmem:[#allocation2 + $0xe9] sm:$0xff] }
 0x135   : > { %8140 = vmatmul.msk.bf16.gmra.mxu1 %vm679_vm2, %v909_v34  ;;  %v848_v62 = vpack.c.bf16 %v824_v51, %v823_v57  ;;  %v849_v26 = vpack.c.bf16 %v826_v17, %v825_v16  ;;  %v890_v44 = vld [vmem:[#allocation2 + $0xd9] sm:$0xff]  ;;  %v830_v17 = vld [vmem:[#allocation2 + $0xe8] sm:$0xff] }
 0x136   : > { %8174 = vmatmul.msk.bf16.gmra.mxu2 %vm679_vm2, %v847_v37  ;;  %v9256_v38 = vpop.f32.mrf.mxu0  ;;  %v829_v16 = vld [vmem:[#allocation2 + $0xe0] sm:$0xff] }
 0x139   : > { %v1199_v39 = vpop.f32.mrf.mxu2 }
 0x13a   : > { %v9258_v42 = vadd.f32 %v1199_v39, %v1022_v35  ;;  %v1024_v43 = vpop.f32.mrf.mxu1  ;;  %v1306_v35 = vld [vmem:[#allocation2 + $0xda] sm:$0xff] }
 0x13b   : > { %v1328_v37 = vpack.c.bf16 %v1306_v35, %v1305_v30 }
 0x13e   : > { %8209 = vmatmul.msk.bf16.gmra.mxu3 %vm679_vm2, %v1326_v46  ;;  %v9261_v48 = vpop.f32.mrf.mxu0 }
 0x141   : > { %v1201_v49 = vpop.f32.mrf.mxu2  ;;  %8241 = vmatmul.msk.bf16.gmra.mxu0 %vm679_vm2, %v1325_v22 }
 0x142   : > { %v9263_v52 = vadd.f32 %v1201_v49, %v1024_v43  ;;  %v1027_v53 = vpop.f32.mrf.mxu1  ;;  %v828_v49 = vld [vmem:[#allocation2 + $0xd8] sm:$0xff] }
 0x145   : > { %8141 = vmatmul.msk.bf16.gmra.mxu1 %vm679_vm2, %v910_v61 }
 0x146   : > { %8175 = vmatmul.msk.bf16.gmra.mxu2 %vm679_vm2, %v848_v62  ;;  %v9268_v63 = vpop.f32.mrf.mxu0  ;;  %v1307_v62 = vld [vmem:[#allocation2 + $0xe2] sm:$0xff] }
 0x149   : > { %v1204_v1 = vpop.f32.mrf.mxu2 }
 0x14a   : > { %v9270_v7 = vadd.f32 %v1204_v1, %v1027_v53  ;;  %v1029_v8 = vpop.f32.mrf.mxu1  ;;  %v912_v53 = vpack.c.bf16 %v890_v44, %v889_v40  ;;  %v1308_v1 = vld [vmem:[#allocation2 + $0xea] sm:$0xff]  ;;  %v1310_v40 = vld [vmem:[#allocation2 + $0xfa] sm:$0xff] }
 0x14e   : > { %8210 = vmatmul.msk.bf16.gmra.mxu3 %vm679_vm2, %v1327_v9  ;;  %v9273_v10 = vpop.f32.mrf.mxu0 }
 0x151   : > { %v1206_v13 = vpop.f32.mrf.mxu2  ;;  %8242 = vmatmul.msk.bf16.gmra.mxu0 %vm679_vm2, %v1326_v46  ;;  %v827_v46 = vld [vmem:[#allocation2 + $0xd0] sm:$0xff] }
 0x152   : > { %v9275_v20 = vadd.f32 %v1206_v13, %v1029_v8  ;;  %v1032_v22 = vpop.f32.mrf.mxu1  ;;  %v850_v55 = vpack.c.bf16 %v828_v49, %v827_v46  ;;  %v1329_v8 = vpack.c.bf16 %v1308_v1, %v1307_v62  ;;  %v831_v62 = vld [vmem:[#allocation2 + $0xf0] sm:$0xff]  ;;  %v832_v1 = vld [vmem:[#allocation2 + $0xf8] sm:$0xff] }
 0x155   : > { %8142 = vmatmul.msk.bf16.gmra.mxu1 %vm679_vm2, %v911_v23 }
 0x156   : > { %8176 = vmatmul.msk.bf16.gmra.mxu2 %vm679_vm2, %v849_v26  ;;  %v9280_v27 = vpop.f32.mrf.mxu0 }
 0x159   : > { %v1209_v29 = vpop.f32.mrf.mxu2 }
 0x15a   : > { %v9282_v33 = vadd.f32 %v1209_v29, %v1032_v22  ;;  %v1034_v34 = vpop.f32.mrf.mxu1  ;;  %v851_v29 = vpack.c.bf16 %v830_v17, %v829_v16  ;;  %v852_v16 = vpack.c.bf16 %v832_v1, %v831_v62  ;;  %v8793_v17 = vld [vmem:[%s12740_s3 + $0xb8] sm:$0xff]  ;;  %v8791_v62 = vld [vmem:[%s12740_s3 + $0xa8] sm:$0xff] }
 0x15b   : > { %2248 = vmatpush.bf16.msra.mxu2 %v8793_v17  ;;  %v833_v17 = vld [vmem:[#allocation2 + $0x100] sm:$0xff] }
 0x15e   : > { %8211 = vmatmul.msk.bf16.gmra.mxu3 %vm679_vm2, %v1328_v37  ;;  %v9285_v39 = vpop.f32.mrf.mxu0 }
 0x161   : > { %v1211_v43 = vpop.f32.mrf.mxu2  ;;  %8243 = vmatmul.msk.bf16.gmra.mxu0 %vm679_vm2, %v1327_v9  ;;  %v891_v9 = vld [vmem:[#allocation2 + $0xe1] sm:$0xff] }
 0x162   : > { %v9287_v50 = vadd.f32 %v1211_v43, %v1034_v34  ;;  %v1037_v51 = vpop.f32.mrf.mxu1  ;;  %v913_v26 = vpack.c.bf16 %v892_v14, %v891_v9  ;;  %v1309_v34 = vld [vmem:[#allocation2 + $0xf2] sm:$0xff] }
 0x163   : > { %v1330_v46 = vpack.c.bf16 %v1310_v40, %v1309_v34  ;;  %v8796_v9 = vld [vmem:[%s12740_s3 + $0xd0] sm:$0xff] }
 0x164   : > { %v1312_v34 = vld [vmem:[#allocation2 + $0x10a] sm:$0xff] }
 0x165   : > { %8143 = vmatmul.msk.bf16.gmra.mxu1 %vm679_vm2, %v912_v53 }
 0x166   : > { %8177 = vmatmul.msk.bf16.gmra.mxu2 %vm679_vm2, %v850_v55  ;;  %v9292_v57 = vpop.f32.mrf.mxu0 }
 0x169   : > { %v1214_v61 = vpop.f32.mrf.mxu2 }
 0x16a   : > { %v9294_v2 = vadd.f32 %v1214_v61, %v1037_v51  ;;  %v1039_v6 = vpop.f32.mrf.mxu1  ;;  %v893_v51 = vld [vmem:[#allocation2 + $0xf1] sm:$0xff]  ;;  %v894_v61 = vld [vmem:[#allocation2 + $0xf9] sm:$0xff] }
 0x16b   : > { %v914_v14 = vpack.c.bf16 %v894_v61, %v893_v51 }
 0x16e   : > { %8212 = vmatmul.msk.bf16.gmra.mxu3 %vm679_vm2, %v1329_v8  ;;  %v9297_v12 = vpop.f32.mrf.mxu0 }
 0x171   : > { %v1216_v13 = vpop.f32.mrf.mxu2  ;;  %8244 = vmatmul.msk.bf16.gmra.mxu0 %vm679_vm2, %v1328_v37  ;;  %v8797_v37 = vld [vmem:[%s12740_s3 + $0xd8] sm:$0xff] }
 0x172   : > { %v9299_v22 = vadd.f32 %v1216_v13, %v1039_v6  ;;  %v1042_v23 = vpop.f32.mrf.mxu1  ;;  %2523 = vmatpush.bf16.msrb.mxu3 %v8797_v37  ;;  %v8794_v37 = vld [vmem:[%s12740_s3 + $0xc0] sm:$0xff] }
 0x175   : > { %8144 = vmatmul.msk.bf16.gmra.mxu1 %vm679_vm2, %v913_v26 }
 0x176   : > { %8178 = vmatmul.msk.bf16.gmra.mxu2 %vm679_vm2, %v851_v29  ;;  %v9304_v30 = vpop.f32.mrf.mxu0  ;;  %2524 = vmatpush.bf16.msrb.mxu3 %v8796_v9  ;;  %v895_v9 = vld [vmem:[#allocation2 + $0x101] sm:$0xff] }
 0x179   : > { %v1219_v35 = vpop.f32.mrf.mxu2 }
 0x17a   : > { %v9306_v43 = vadd.f32 %v1219_v35, %v1042_v23  ;;  %v1044_v44 = vpop.f32.mrf.mxu1  ;;  %v1311_v35 = vld [vmem:[#allocation2 + $0x102] sm:$0xff] }
 0x17e   : > { %8213 = vmatmul.msk.bf16.gmra.mxu3 %vm679_vm2, %v1330_v46  ;;  %v9312_v49 = vpop.f32.mrf.mxu0 }
 0x181   : > { %v1221_v53 = vpop.f32.mrf.mxu2  ;;  %v1463_v55 = vpop.f32.mrf.mxu3  ;;  %8245 = vmatmul.msk.bf16.gmra.mxu0 %vm679_vm2, %v1329_v8  ;;  %v8795_v8 = vld [vmem:[%s12740_s3 + $0xc8] sm:$0xff] }
 0x182   : > { %v9314_v6 = vadd.f32 %v1221_v53, %v1044_v44  ;;  %v1047_v13 = vpop.f32.mrf.mxu1  ;;  %2525 = vmatpush.bf16.msrb.mxu3 %v8795_v8  ;;  %v8792_v44 = vld [vmem:[%s12740_s3 + $0xb0] sm:$0xff]  ;;  %v1331_v53 = vpack.c.bf16 %v1312_v34, %v1311_v35  ;;  %v834_v8 = vld [vmem:[#allocation2 + $0x108] sm:$0xff] }
 0x183   : > { %2249 = vmatpush.bf16.msra.mxu2 %v8792_v44 }
 0x185   : > { %8145 = vmatmul.msk.bf16.gmra.mxu1 %vm679_vm2, %v914_v14 }
 0x186   : > { %8179 = vmatmul.msk.bf16.gmra.mxu2 %vm679_vm2, %v852_v16  ;;  %v9328_v23 = vpop.f32.mrf.mxu0  ;;  %2526 = vmatpush.bf16.msrb.mxu3 %v8794_v37  ;;  %v896_v16 = vld [vmem:[#allocation2 + $0x109] sm:$0xff]  ;;  %v8789_v37 = vld [vmem:[%s12740_s3 + $0x98] sm:$0xff] }
 0x187   : > { %2250 = vmatpush.bf16.msra.mxu2 %v8791_v62  ;;  %v915_v34 = vpack.c.bf16 %v896_v16, %v895_v9  ;;  %1973 = vmatpush.bf16.msra.mxu1 %v8789_v37 }
 0x189   : > { %v1224_v26 = vpop.f32.mrf.mxu2  ;;  %v1465_v29 = vpop.f32.mrf.mxu3 }
 0x18a   : > { %v1225_v40 = vadd.f32 %v1224_v26, %v1047_v13  ;;  %v1049_v51 = vpop.f32.mrf.mxu1 }
 0x18c   : > { %v1532_v61 = vadd.f32 %v1463_v55, %v1225_v40  ;;  %v8790_v55 = vld [vmem:[%s12740_s3 + $0xa0] sm:$0xff]  ;;  %v853_v40 = vpack.c.bf16 %v834_v8, %v833_v17 }
 0x18d   : > { %2251 = vmatpush.bf16.msra.mxu2 %v8790_v55 }
 0x18e   : > { %8214 = vmatmul.msk.bf16.gmra.mxu3 %vm679_vm2, %v1331_v53  ;;  %v9340_v1 = vpop.f32.mrf.mxu0 }
 0x191   : > { %v1226_v13 = vpop.f32.mrf.mxu2  ;;  %v1468_v14 = vpop.f32.mrf.mxu3  ;;  %8246 = vmatmul.msk.bf16.gmra.mxu0 %vm679_vm2, %v1330_v46 }
 0x192   : > { %v1227_v26 = vadd.f32 %v1226_v13, %v1049_v51  ;;  %v1052_v35 = vpop.f32.mrf.mxu1  ;;  %v1313_v13 = vld [vmem:[#allocation2 + $0x112] sm:$0xff] }
 0x193   : > { %v1332_v16 = vpack.c.bf16 %v1314_v18, %v1313_v13 }
 0x194   : > { %v1533_v44 = vadd.f32 %v1465_v29, %v1227_v26  ;;  %v897_v26 = vld [vmem:[#allocation2 + $0x111] sm:$0xff] }
 0x195   : > { %8146 = vmatmul.msk.bf16.gmra.mxu1 %vm679_vm2, %v915_v34 }
 0x196   : > { %8180 = vmatmul.msk.bf16.gmra.mxu2 %vm679_vm2, %v853_v40  ;;  %v9351_v51 = vpop.f32.mrf.mxu0  ;;  %v898_v40 = vld [vmem:[#allocation2 + $0x119] sm:$0xff] }
 0x199   : > { %v1229_v46 = vpop.f32.mrf.mxu2  ;;  %v1470_v62 = vpop.f32.mrf.mxu3 }
 0x19a   : > { %v1230_v60 = vadd.f32 %v1229_v46, %v1052_v35  ;;  %v1054_v9 = vpop.f32.mrf.mxu1  ;;  %v8801_v35 = vld [vmem:[%s12740_s3 + $0xf8] sm:$0xff] }
 0x19b   : > { %2798 = vmatpush.bf16.msra.mxu0 %v8801_v35  ;;  %v1279_v35 = vld [vmem:[#allocation2 + $0x2] sm:$0xff] }
 0x19c   : > { %v1534_v29 = vadd.f32 %v1468_v14, %v1230_v60  ;;  %v916_v60 = vpack.c.bf16 %v898_v40, %v897_v26  ;;  %v854_v14 = vpack.c.bf16 %v836_v3, %v835_v32  ;;  %v8799_v3 = vld [vmem:[%s12740_s3 + $0xe8] sm:$0xff] }
 0x19e   : > { %8215 = vmatmul.msk.bf16.gmra.mxu3 %vm679_vm2, %v1332_v16  ;;  %v1738_v17 = vpop.f32.mrf.mxu0 }
 0x19f   : > { %v9354_v8 = vadd.f32 %v1738_v17, %v1532_v61  ;;  %v8800_v61 = vld [vmem:[%s12740_s3 + $0xf0] sm:$0xff] }
 0x1a0   : > { %2799 = vmatpush.bf16.msra.mxu0 %v8800_v61 }
 0x1a1   : > { %v1231_v55 = vpop.f32.mrf.mxu2  ;;  %v1473_v34 = vpop.f32.mrf.mxu3  ;;  %8247 = vmatmul.msk.bf16.gmra.mxu0 %vm679_vm2, %v1331_v53 }
 0x1a2   : > { %v1232_v37 = vadd.f32 %v1231_v55, %v1054_v9  ;;  %v1057_v18 = vpop.f32.mrf.mxu1  ;;  %v2380_v55 = vld [vmem:[#allocation2 + $0x2c] sm:$0xff] }
 0x1a4   : > { %v1535_v46 = vadd.f32 %v1470_v62, %v1232_v37  ;;  %v2379_v62 = vld [vmem:[#allocation2 + $0x24] sm:$0xff]  ;;  %2800 = vmatpush.bf16.msra.mxu0 %v8799_v3 }
 0x1a5   : > { %8147 = vmatmul.msk.bf16.gmra.mxu1 %vm679_vm2, %v916_v60  ;;  %v2415_v26 = vpack.c.bf16 %v2380_v55, %v2379_v62  ;;  %v1280_v60 = vld [vmem:[#allocation2 + $0xa] sm:$0xff] }
 0x1a6   : > { %8181 = vmatmul.msk.bf16.gmra.mxu2 %vm679_vm2, %v854_v14  ;;  %v1740_v13 = vpop.f32.mrf.mxu0 }
 0x1a7   : > { %v9365_v9 = vadd.f32 %v1740_v13, %v1533_v44  ;;  %v8798_v44 = vld [vmem:[%s12740_s3 + $0xe0] sm:$0xff]  ;;  %v2104_v13 = vld [vmem:[#allocation2 + $0x14] sm:$0xff] }
 0x1a8   : > { %2801 = vmatpush.bf16.msra.mxu0 %v8798_v44 }
 0x1a9   : > { %v1234_v53 = vpop.f32.mrf.mxu2  ;;  %v1475_v17 = vpop.f32.mrf.mxu3 }
 0x1aa   : > { %v1235_v41 = vadd.f32 %v1234_v53, %v1057_v18  ;;  %v1059_v32 = vpop.f32.mrf.mxu1  ;;  %v2105_v53 = vld [vmem:[#allocation2 + $0x1c] sm:$0xff] }
 0x1ab   : > { %v2140_v3 = vpack.c.bf16 %v2105_v53, %v2104_v13 }
 0x1ac   : > { %v1536_v40 = vadd.f32 %v1473_v34, %v1235_v41  ;;  %v1315_v41 = vpack.c.bf16 %v1280_v60, %v1279_v35  ;;  %v8788_v34 = vld [vmem:[%s12740_s3 + $0x90] sm:$0xff] }
 0x1ad   : > { %1974 = vmatpush.bf16.msra.mxu1 %v8788_v34  ;;  %v2381_v60 = vld [vmem:[#allocation2 + $0x34] sm:$0xff] }
 0x1ae   : > { %8334 = vmatmul.msk.bf16.vlgmr.msrb.gmra.mxu3 %vm679_vm2, %v2415_v26  ;;  %v1743_v37 = vpop.f32.mrf.mxu0 }
 0x1af   : > { %v9374_v14 = vadd.f32 %v1743_v37, %v1534_v29 }
 0x1b1   : > { %v1236_v18 = vpop.f32.mrf.mxu2  ;;  %v1478_v61 = vpop.f32.mrf.mxu3  ;;  %8248 = vmatmul.msk.bf16.gmra.mxu0 %vm679_vm2, %v1332_v16 }
 0x1b2   : > { %v1237_v15 = vadd.f32 %v1236_v18, %v1059_v32  ;;  %v1062_v55 = vpop.f32.mrf.mxu1  ;;  %v2382_v18 = vld [vmem:[#allocation2 + $0x3c] sm:$0xff] }
 0x1b3   : > { %v2416_v59 = vpack.c.bf16 %v2382_v18, %v2381_v60 }
 0x1b4   : > { %v1537_v62 = vadd.f32 %v1475_v17, %v1237_v15  ;;  %v1607_v15 = vpack.c.bf16 %v1589_v24, %v1588_v56 }
 0x1b5   : > { %8198 = vmatmul.msk.bf16.vlgmr.msrb.gmra.mxu1 %vm679_vm2, %v1315_v41 }
 0x1b6   : > { %8300 = vmatmul.msk.bf16.vlgmr.msra.gmra.mxu2 %vm679_vm2, %v2140_v3  ;;  %v1745_v29 = vpop.f32.mrf.mxu0 }
 0x1b7   : > { %v9382_v44 = vadd.f32 %v1745_v29, %v1535_v46  ;;  %v1282_v46 = vld [vmem:[#allocation2 + $0x1a] sm:$0xff] }
 0x1b9   : > { %v1239_v37 = vpop.f32.mrf.mxu2  ;;  %v1480_v32 = vpop.f32.mrf.mxu3 }
 0x1ba   : > { %v1240_v16 = vadd.f32 %v1239_v37, %v1062_v55  ;;  %v1064_v35 = vpop.f32.mrf.mxu1  ;;  %v1281_v55 = vld [vmem:[#allocation2 + $0x12] sm:$0xff] }
 0x1bb   : > { %v1316_v29 = vpack.c.bf16 %v1282_v46, %v1281_v55  ;;  %v2654_v46 = vld [vmem:[#allocation2 + $0x25] sm:$0xff] }
 0x1bc   : > { %v1538_v36 = vadd.f32 %v1478_v61, %v1240_v16 }
 0x1be   : > { %8335 = vmatmul.msk.bf16.gmra.mxu3 %vm679_vm2, %v2416_v59  ;;  %v1748_v17 = vpop.f32.mrf.mxu0 }
 0x1bf   : > { %v9385_v13 = vadd.f32 %v1748_v17, %v1536_v40  ;;  %v2384_v40 = vld [vmem:[#allocation2 + $0x4c] sm:$0xff]  ;;  %v2383_v17 = vld [vmem:[#allocation2 + $0x44] sm:$0xff] }
 0x1c1   : > { %v1241_v53 = vpop.f32.mrf.mxu2  ;;  %v1483_v41 = vpop.f32.mrf.mxu3  ;;  %8249 = vmatmul.msk.bf16.gmra.mxu0 %vm679_vm2, %v1607_v15  ;;  %v2417_v15 = vpack.c.bf16 %v2384_v40, %v2383_v17 }
 0x1c2   : > { %v1242_v34 = vadd.f32 %v1241_v53, %v1064_v35  ;;  %v1067_v3 = vpop.f32.mrf.mxu1  ;;  %v8787_v35 = vld [vmem:[%s12740_s3 + $0x88] sm:$0xff] }
 0x1c3   : > { %1975 = vmatpush.bf16.msra.mxu1 %v8787_v35  ;;  %v2386_v35 = vld [vmem:[#allocation2 + $0x5c] sm:$0xff] }
 0x1c4   : > { %v1539_v37 = vadd.f32 %v1480_v32, %v1242_v34  ;;  %v2655_v32 = vld [vmem:[#allocation2 + $0x2d] sm:$0xff] }
 0x1c5   : > { %8199 = vmatmul.msk.bf16.gmra.mxu1 %vm679_vm2, %v1316_v29  ;;  %v2690_v34 = vpack.c.bf16 %v2655_v32, %v2654_v46  ;;  %v2385_v46 = vld [vmem:[#allocation2 + $0x54] sm:$0xff] }
 0x1c6   : > { %8301 = vmatmul.msk.bf16.gmra.mxu2 %vm679_vm2, %v2415_v26  ;;  %v1750_v61 = vpop.f32.mrf.mxu0 }
 0x1c7   : > { %v9390_v18 = vadd.f32 %v1750_v61, %v1537_v62 }
 0x1c9   : > { %v1244_v56 = vpop.f32.mrf.mxu2  ;;  %v1485_v24 = vpop.f32.mrf.mxu3 }
 0x1ca   : > { %v1245_v16 = vadd.f32 %v1244_v56, %v1067_v3  ;;  %v1069_v60 = vpop.f32.mrf.mxu1  ;;  %v1284_v3 = vld [vmem:[#allocation2 + $0x2a] sm:$0xff] }
 0x1cb   : > { %v1317_v45 = vpack.c.bf16 %v1284_v3, %v1283_v11 }
 0x1cc   : > { %v1540_v53 = vadd.f32 %v1483_v41, %v1245_v16 }
 0x1ce   : > { %8336 = vmatmul.msk.bf16.gmra.mxu3 %vm679_vm2, %v2417_v15  ;;  %v1753_v26 = vpop.f32.mrf.mxu0 }
 0x1cf   : > { %v9396_v62 = vadd.f32 %v1753_v26, %v1538_v36 }
 0x1d1   : > { %v1246_v55 = vpop.f32.mrf.mxu2  ;;  %v1488_v29 = vpop.f32.mrf.mxu3  ;;  %8368 = vmatmul.msk.bf16.vlgmr.msra.gmra.mxu0 %vm679_vm2, %v2690_v34  ;;  %v2657_v34 = vld [vmem:[#allocation2 + $0x3d] sm:$0xff] }
 0x1d2   : > { %v1247_v61 = vadd.f32 %v1246_v55, %v1069_v60  ;;  %v1072_v56 = vpop.f32.mrf.mxu1  ;;  %v2418_v60 = vpack.c.bf16 %v2386_v35, %v2385_v46  ;;  %v2388_v46 = vld [vmem:[#allocation2 + $0x6c] sm:$0xff] }
 0x1d4   : > { %v1541_v40 = vadd.f32 %v1485_v24, %v1247_v61  ;;  %v2656_v24 = vld [vmem:[#allocation2 + $0x35] sm:$0xff] }
 0x1d5   : > { %8200 = vmatmul.msk.bf16.gmra.mxu1 %vm679_vm2, %v1317_v45  ;;  %v2691_v45 = vpack.c.bf16 %v2657_v34, %v2656_v24  ;;  %v2387_v24 = vld [vmem:[#allocation2 + $0x64] sm:$0xff] }
 0x1d6   : > { %8302 = vmatmul.msk.bf16.gmra.mxu2 %vm679_vm2, %v2416_v59  ;;  %v1755_v41 = vpop.f32.mrf.mxu0 }
 0x1d7   : > { %v9401_v16 = vadd.f32 %v1755_v41, %v1539_v37  ;;  %v1286_v37 = vld [vmem:[#allocation2 + $0x3a] sm:$0xff] }
 0x1d9   : > { %v1249_v36 = vpop.f32.mrf.mxu2  ;;  %v1490_v17 = vpop.f32.mrf.mxu3 }
 0x1da   : > { %v1250_v32 = vadd.f32 %v1249_v36, %v1072_v56  ;;  %v1074_v26 = vpop.f32.mrf.mxu1  ;;  %v1285_v56 = vld [vmem:[#allocation2 + $0x32] sm:$0xff] }
 0x1db   : > { %v1318_v36 = vpack.c.bf16 %v1286_v37, %v1285_v56  ;;  %v2658_v37 = vld [vmem:[#allocation2 + $0x45] sm:$0xff] }
 0x1dc   : > { %v1542_v55 = vadd.f32 %v1488_v29, %v1250_v32 }
 0x1de   : > { %8337 = vmatmul.msk.bf16.gmra.mxu3 %vm679_vm2, %v2418_v60  ;;  %v1758_v11 = vpop.f32.mrf.mxu0 }
 0x1df   : > { %v9404_v3 = vadd.f32 %v1758_v11, %v1540_v53 }
 0x1e1   : > { %v1251_v59 = vpop.f32.mrf.mxu2  ;;  %v1493_v61 = vpop.f32.mrf.mxu3  ;;  %8369 = vmatmul.msk.bf16.gmra.mxu0 %vm679_vm2, %v2691_v45  ;;  %v2419_v45 = vpack.c.bf16 %v2388_v46, %v2387_v24  ;;  %v2390_v24 = vld [vmem:[#allocation2 + $0x7c] sm:$0xff] }
 0x1e2   : > { %v1252_v41 = vadd.f32 %v1251_v59, %v1074_v26  ;;  %v1077_v19 = vpop.f32.mrf.mxu1  ;;  %v8786_v26 = vld [vmem:[%s12740_s3 + $0x80] sm:$0xff] }
 0x1e3   : > { %1976 = vmatpush.bf16.msra.mxu1 %v8786_v26 }
 0x1e4   : > { %v1543_v54 = vadd.f32 %v1490_v17, %v1252_v41  ;;  %v2659_v17 = vld [vmem:[#allocation2 + $0x4d] sm:$0xff] }
 0x1e5   : > { %8201 = vmatmul.msk.bf16.gmra.mxu1 %vm679_vm2, %v1318_v36  ;;  %v2692_v41 = vpack.c.bf16 %v2659_v17, %v2658_v37  ;;  %v2389_v37 = vld [vmem:[#allocation2 + $0x74] sm:$0xff] }
 0x1e6   : > { %8303 = vmatmul.msk.bf16.gmra.mxu2 %vm679_vm2, %v2417_v15  ;;  %v1760_v29 = vpop.f32.mrf.mxu0 }
 0x1e7   : > { %v9409_v35 = vadd.f32 %v1760_v29, %v1541_v40 }
 0x1e9   : > { %v1254_v53 = vpop.f32.mrf.mxu2  ;;  %v1495_v32 = vpop.f32.mrf.mxu3 }
 0x1ea   : > { %v1255_v34 = vadd.f32 %v1254_v53, %v1077_v19  ;;  %v1079_v11 = vpop.f32.mrf.mxu1  ;;  %v1288_v19 = vld [vmem:[#allocation2 + $0x4a] sm:$0xff] }
 0x1eb   : > { %v1319_v4 = vpack.c.bf16 %v1288_v19, %v1287_v28 }
 0x1ec   : > { %v1544_v59 = vadd.f32 %v1493_v61, %v1255_v34 }
 0x1ee   : > { %8338 = vmatmul.msk.bf16.gmra.mxu3 %vm679_vm2, %v2419_v45  ;;  %v1763_v15 = vpop.f32.mrf.mxu0 }
 0x1ef   : > { %v9415_v40 = vadd.f32 %v1763_v15, %v1542_v55 }
 0x1f1   : > { %v1256_v56 = vpop.f32.mrf.mxu2  ;;  %v1498_v36 = vpop.f32.mrf.mxu3  ;;  %8370 = vmatmul.msk.bf16.gmra.mxu0 %vm679_vm2, %v2692_v41  ;;  %v2661_v41 = vld [vmem:[#allocation2 + $0x5d] sm:$0xff] }
 0x1f2   : > { %v1257_v29 = vadd.f32 %v1256_v56, %v1079_v11  ;;  %v1082_v53 = vpop.f32.mrf.mxu1  ;;  %v2420_v11 = vpack.c.bf16 %v2390_v24, %v2389_v37 }
 0x1f4   : > { %v1545_v46 = vadd.f32 %v1495_v32, %v1257_v29  ;;  %v2660_v32 = vld [vmem:[#allocation2 + $0x55] sm:$0xff] }
 0x1f5   : > { %8202 = vmatmul.msk.bf16.gmra.mxu1 %vm679_vm2, %v1319_v4  ;;  %v2693_v4 = vpack.c.bf16 %v2661_v41, %v2660_v32  ;;  %v2391_v32 = vld [vmem:[#allocation2 + $0x84] sm:$0xff] }
 0x1f6   : > { %8304 = vmatmul.msk.bf16.gmra.mxu2 %vm679_vm2, %v2418_v60  ;;  %v1765_v61 = vpop.f32.mrf.mxu0 }
 0x1f7   : > { %v9420_v34 = vadd.f32 %v1765_v61, %v1543_v54  ;;  %v1290_v54 = vld [vmem:[#allocation2 + $0x5a] sm:$0xff] }
 0x1f9   : > { %12784 = vst [vmem:[#allocation22_spill] sm:$0xff] %v9420_v34  ;;  %v1259_v55 = vpop.f32.mrf.mxu2  ;;  %v1500_v26 = vpop.f32.mrf.mxu3 }
 0x1fa   : > { %v1260_v17 = vadd.f32 %v1259_v55, %v1082_v53  ;;  %v1084_v15 = vpop.f32.mrf.mxu1  ;;  %v1289_v53 = vld [vmem:[#allocation2 + $0x52] sm:$0xff] }
 0x1fb   : > { %v1320_v55 = vpack.c.bf16 %v1290_v54, %v1289_v53  ;;  %v2662_v54 = vld [vmem:[#allocation2 + $0x65] sm:$0xff] }
 0x1fc   : > { %v1546_v56 = vadd.f32 %v1498_v36, %v1260_v17 }
 0x1fe   : > { %8339 = vmatmul.msk.bf16.gmra.mxu3 %vm679_vm2, %v2420_v11  ;;  %v1768_v28 = vpop.f32.mrf.mxu0 }
 0x1ff   : > { %v9423_v19 = vadd.f32 %v1768_v28, %v1544_v59  ;;  %v8805_v59 = vld [vmem:[%s12740_s3 + $0x118] sm:$0xff] }
 0x200   : > { %3073 = vmatpush.bf16.msrb.mxu1 %v8805_v59 }
 0x201   : > { %12785 = vst [vmem:[#allocation23_spill] sm:$0xff] %v9423_v19  ;;  %v1261_v60 = vpop.f32.mrf.mxu2  ;;  %v1503_v29 = vpop.f32.mrf.mxu3  ;;  %8371 = vmatmul.msk.bf16.gmra.mxu0 %vm679_vm2, %v2693_v4 }
 0x202   : > { %v1262_v61 = vadd.f32 %v1261_v60, %v1084_v15  ;;  %v1087_v47 = vpop.f32.mrf.mxu1  ;;  %v2392_v15 = vld [vmem:[#allocation2 + $0x8c] sm:$0xff] }
 0x203   : > { %v2421_v4 = vpack.c.bf16 %v2392_v15, %v2391_v32  ;;  %v2663_v60 = vld [vmem:[#allocation2 + $0x6d] sm:$0xff]  ;;  %v2394_v32 = vld [vmem:[#allocation2 + $0x9c] sm:$0xff] }
 0x204   : > { %v1547_v34 = vadd.f32 %v1500_v26, %v1262_v61  ;;  %v2694_v53 = vpack.c.bf16 %v2663_v60, %v2662_v54 }
 0x205   : > { %8203 = vmatmul.msk.bf16.gmra.mxu1 %vm679_vm2, %v1320_v55 }
 0x206   : > { %8305 = vmatmul.msk.bf16.gmra.mxu2 %vm679_vm2, %v2419_v45  ;;  %v1770_v36 = vpop.f32.mrf.mxu0 }
 0x207   : > { %v9431_v24 = vadd.f32 %v1770_v36, %v1545_v46  ;;  %v1292_v46 = vld [vmem:[#allocation2 + $0x6a] sm:$0xff] }
 0x209   : > { %12786 = vst [vmem:[#allocation24_spill] sm:$0xff] %v9431_v24  ;;  %v1264_v17 = vpop.f32.mrf.mxu2  ;;  %v1505_v41 = vpop.f32.mrf.mxu3 }
 0x20a   : > { %v1265_v37 = vadd.f32 %v1264_v17, %v1087_v47  ;;  %v1089_v28 = vpop.f32.mrf.mxu1  ;;  %v1291_v47 = vld [vmem:[#allocation2 + $0x62] sm:$0xff] }
 0x20b   : > { %v1321_v17 = vpack.c.bf16 %v1292_v46, %v1291_v47  ;;  %v2664_v46 = vld [vmem:[#allocation2 + $0x75] sm:$0xff] }
 0x20c   : > { %v1548_v26 = vadd.f32 %v1503_v29, %v1265_v37  ;;  %v2393_v37 = vld [vmem:[#allocation2 + $0x94] sm:$0xff] }
 0x20e   : > { %8340 = vmatmul.msk.bf16.gmra.mxu3 %vm679_vm2, %v2421_v4  ;;  %v1773_v45 = vpop.f32.mrf.mxu0 }
 0x20f   : > { %v9434_v61 = vadd.f32 %v1773_v45, %v1546_v56 }
 0x211   : > { %v1266_v55 = vpop.f32.mrf.mxu2  ;;  %8372 = vmatmul.msk.bf16.gmra.mxu0 %vm679_vm2, %v2694_v53  ;;  %v1508_v19 = vpop.f32.mrf.mxu3  ;;  %v2665_v53 = vld [vmem:[#allocation2 + $0x7d] sm:$0xff] }
 0x212   : > { %v1267_v36 = vadd.f32 %v1266_v55, %v1089_v28  ;;  %v1092_v59 = vpop.f32.mrf.mxu1  ;;  %v2422_v28 = vpack.c.bf16 %v2394_v32, %v2393_v37  ;;  %v2695_v47 = vpack.c.bf16 %v2665_v53, %v2664_v46  ;;  %v2396_v53 = vld [vmem:[#allocation2 + $0xac] sm:$0xff] }
 0x214   : > { %v1549_v24 = vadd.f32 %v1505_v41, %v1267_v36 }
 0x215   : > { %8204 = vmatmul.msk.bf16.gmra.mxu1 %vm679_vm2, %v1321_v17  ;;  %v1830_v17 = vld [vmem:[#allocation2 + $0x1b] sm:$0xff] }
 0x216   : > { %8306 = vmatmul.msk.bf16.gmra.mxu2 %vm679_vm2, %v2420_v11  ;;  %v1775_v29 = vpop.f32.mrf.mxu0 }
 0x217   : > { %v9439_v15 = vadd.f32 %v1775_v29, %v1547_v34 }
 0x219   : > { %12787 = vst [vmem:[#allocation25_spill] sm:$0xff] %v9439_v15  ;;  %v1269_v56 = vpop.f32.mrf.mxu2  ;;  %v1510_v55 = vpop.f32.mrf.mxu3  ;;  %v1829_v15 = vld [vmem:[#allocation2 + $0x13] sm:$0xff] }
 0x21a   : > { %v1270_v60 = vadd.f32 %v1269_v56, %v1092_v59  ;;  %v1094_v45 = vpop.f32.mrf.mxu1  ;;  %v1865_v59 = vpack.c.bf16 %v1830_v17, %v1829_v15 }
 0x21c   : > { %v1550_v54 = vadd.f32 %v1508_v19, %v1270_v60  ;;  %v2395_v60 = vld [vmem:[#allocation2 + $0xa4] sm:$0xff] }
 0x21e   : > { %8341 = vmatmul.msk.bf16.gmra.mxu3 %vm679_vm2, %v2422_v28  ;;  %v1778_v41 = vpop.f32.mrf.mxu0 }
 0x21f   : > { %v9442_v36 = vadd.f32 %v1778_v41, %v1548_v26 }
 0x221   : > { %12788 = vst [vmem:[#allocation26_spill] sm:$0xff] %v9442_v36  ;;  %v1271_v11 = vpop.f32.mrf.mxu2  ;;  %8373 = vmatmul.msk.bf16.gmra.mxu0 %vm679_vm2, %v2695_v47  ;;  %v1513_v32 = vpop.f32.mrf.mxu3  ;;  %v2667_v47 = vld [vmem:[#allocation2 + $0x8d] sm:$0xff]  ;;  %v1831_v36 = vld [vmem:[#allocation2 + $0x23] sm:$0xff] }
 0x222   : > { %v1272_v34 = vadd.f32 %v1271_v11, %v1094_v45  ;;  %v1097_v29 = vpop.f32.mrf.mxu1  ;;  %v2423_v45 = vpack.c.bf16 %v2396_v53, %v2395_v60  ;;  %v2397_v53 = vld [vmem:[#allocation2 + $0xb4] sm:$0xff] }
 0x224   : > { %v1551_v56 = vadd.f32 %v1510_v55, %v1272_v34  ;;  %v2666_v55 = vld [vmem:[#allocation2 + $0x85] sm:$0xff] }
 0x225   : > { %8266 = vmatmul.msk.bf16.vlgmr.msra.gmra.mxu1 %vm679_vm2, %v1865_v59  ;;  %v2696_v34 = vpack.c.bf16 %v2667_v47, %v2666_v55  ;;  %v1832_v59 = vld [vmem:[#allocation2 + $0x2b] sm:$0xff]  ;;  %v2669_v55 = vld [vmem:[#allocation2 + $0x9d] sm:$0xff] }
 0x226   : > { %8307 = vmatmul.msk.bf16.gmra.mxu2 %vm679_vm2, %v2421_v4  ;;  %v1780_v19 = vpop.f32.mrf.mxu0 }
 0x227   : > { %v9447_v37 = vadd.f32 %v1780_v19, %v1549_v24 }
 0x229   : > { %12789 = vst [vmem:[#allocation27_spill] sm:$0xff] %v9447_v37  ;;  %v1274_v26 = vpop.f32.mrf.mxu2  ;;  %v1515_v19 = vpop.f32.mrf.mxu3 }
 0x22a   : > { %v1275_v41 = vadd.f32 %v1274_v26, %v1097_v29  ;;  %v1099_v46 = vpop.f32.mrf.mxu1 }
 0x22c   : > { %v1552_v11 = vadd.f32 %v1513_v32, %v1275_v41  ;;  %v1866_v32 = vpack.c.bf16 %v1832_v59, %v1831_v36  ;;  %v2398_v41 = vld [vmem:[#allocation2 + $0xbc] sm:$0xff] }
 0x22d   : > { %v2424_v47 = vpack.c.bf16 %v2398_v41, %v2397_v53 }
 0x22e   : > { %8342 = vmatmul.msk.bf16.gmra.mxu3 %vm679_vm2, %v2423_v45  ;;  %v1783_v15 = vpop.f32.mrf.mxu0 }
 0x22f   : > { %v9450_v17 = vadd.f32 %v1783_v15, %v1550_v54  ;;  %v2668_v15 = vld [vmem:[#allocation2 + $0x95] sm:$0xff] }
 0x230   : > { %v2697_v36 = vpack.c.bf16 %v2669_v55, %v2668_v15  ;;  %v2670_v15 = vld [vmem:[#allocation2 + $0xa5] sm:$0xff]  ;;  %v2671_v55 = vld [vmem:[#allocation2 + $0xad] sm:$0xff] }
 0x231   : > { %12790 = vst [vmem:[#allocation28_spill] sm:$0xff] %v9450_v17  ;;  %v1276_v4 = vpop.f32.mrf.mxu2  ;;  %8374 = vmatmul.msk.bf16.gmra.mxu0 %vm679_vm2, %v2696_v34  ;;  %v1834_v34 = vld [vmem:[#allocation2 + $0x3b] sm:$0xff] }
 0x232   : > { %v1277_v24 = vadd.f32 %v1276_v4, %v1099_v46  ;;  %v1428_v37 = vpop.f32.mrf.mxu1  ;;  %v1833_v4 = vld [vmem:[#allocation2 + $0x33] sm:$0xff] }
 0x233   : > { %v9454_v29 = vadd.f32 %v1428_v37, %v9206_v5  ;;  %v1867_v59 = vpack.c.bf16 %v1834_v34, %v1833_v4  ;;  %v9481_v34 = vpop.f32.mrf.mxu3 }
 0x234   : > { %v1553_v26 = vadd.f32 %v1515_v19, %v1277_v24  ;;  %12794 = vst [vmem:[#allocation32_spill] sm:$0xff] %v9481_v34 }
 0x235   : > { %8267 = vmatmul.msk.bf16.gmra.mxu1 %vm679_vm2, %v1866_v32  ;;  %v2399_v32 = vld [vmem:[#allocation2 + $0xc4] sm:$0xff] }
 0x236   : > { %8308 = vmatmul.msk.bf16.gmra.mxu2 %vm679_vm2, %v2422_v28  ;;  %v1785_v54 = vpop.f32.mrf.mxu0 }
 0x237   : > { %v9458_v60 = vadd.f32 %v1785_v54, %v1551_v56 }
 0x239   : > { %12791 = vst [vmem:[#allocation29_spill] sm:$0xff] %v9458_v60  ;;  %v9488_v4 = vpop.f32.mrf.mxu2  ;;  %v1839_v60 = vld [vmem:[#allocation2 + $0x63] sm:$0xff] }
 0x23a   : > { %v9460_v46 = vpop.f32.mrf.mxu1 }
 0x23e   : > { %8343 = vmatmul.msk.bf16.gmra.mxu3 %vm679_vm2, %v2424_v47  ;;  %v1788_v5 = vpop.f32.mrf.mxu0 }
 0x23f   : > { %v9463_v37 = vadd.f32 %v1788_v5, %v1552_v11  ;;  %v2400_v11 = vld [vmem:[#allocation2 + $0xcc] sm:$0xff]  ;;  %v2698_v5 = vpack.c.bf16 %v2671_v55, %v2670_v15  ;;  %v2672_v15 = vld [vmem:[#allocation2 + $0xb5] sm:$0xff]  ;;  %v2673_v55 = vld [vmem:[#allocation2 + $0xbd] sm:$0xff] }
 0x240   : > { %v2425_v41 = vpack.c.bf16 %v2400_v11, %v2399_v32 }
 0x241   : > { %12792 = vst [vmem:[#allocation30_spill] sm:$0xff] %v9463_v37  ;;  %8375 = vmatmul.msk.bf16.gmra.mxu0 %vm679_vm2, %v2697_v36  ;;  %v1835_v36 = vld [vmem:[#allocation2 + $0x43] sm:$0xff] }
 0x242   : > { %v1433_v28 = vpop.f32.mrf.mxu1 }
 0x243   : > { %v9467_v56 = vadd.f32 %v1433_v28, %v9243_v21  ;;  %v8804_v21 = vld [vmem:[%s12740_s3 + $0x110] sm:$0xff] }
 0x244   : > { %3074 = vmatpush.bf16.msrb.mxu1 %v8804_v21  ;;  %v9493_v21 = vpop.f32.mrf.mxu3 }
 0x245   : > { %8268 = vmatmul.msk.bf16.gmra.mxu1 %vm679_vm2, %v1867_v59  ;;  %v2401_v59 = vld [vmem:[#allocation2 + $0xd4] sm:$0xff]  ;;  %12795 = vst [vmem:[#allocation33_spill] sm:$0xff] %v9493_v21 }
 0x246   : > { %8309 = vmatmul.msk.bf16.gmra.mxu2 %vm679_vm2, %v2423_v45  ;;  %v1790_v24 = vpop.f32.mrf.mxu0  ;;  %v1836_v45 = vld [vmem:[#allocation2 + $0x4b] sm:$0xff] }
 0x247   : > { %v9471_v19 = vadd.f32 %v1790_v24, %v1553_v26  ;;  %v1868_v28 = vpack.c.bf16 %v1836_v45, %v1835_v36  ;;  %v2402_v24 = vld [vmem:[#allocation2 + $0xdc] sm:$0xff]  ;;  %v9496_v45 = vpop.f32.mrf.mxu2 }
 0x249   : > { %12793 = vst [vmem:[#allocation31_spill] sm:$0xff] %v9471_v19 }
 0x24a   : > { %v1435_v54 = vpop.f32.mrf.mxu1 }
 0x24b   : > { %v9474_v53 = vadd.f32 %v1435_v54, %v9251_v31  ;;  %v2426_v54 = vpack.c.bf16 %v2402_v24, %v2401_v59  ;;  %v2403_v24 = vld [vmem:[#allocation2 + $0xe4] sm:$0xff] }
 0x24c   : > { %v9506_v59 = vpop.f32.mrf.mxu3 }
 0x24d   : > { %12797 = vst [vmem:[#allocation35_spill] sm:$0xff] %v9506_v59 }
 0x24e   : > { %8344 = vmatmul.msk.bf16.gmra.mxu3 %vm679_vm2, %v2425_v41 }
 0x251   : > { %8376 = vmatmul.msk.bf16.gmra.mxu0 %vm679_vm2, %v2698_v5  ;;  %v1838_v5 = vld [vmem:[#allocation2 + $0x5b] sm:$0xff] }
 0x252   : > { %v1438_v26 = vpop.f32.mrf.mxu1 }
 0x253   : > { %v9484_v31 = vadd.f32 %v1438_v26, %v9258_v42  ;;  %v2699_v42 = vpack.c.bf16 %v2673_v55, %v2672_v15  ;;  %v1837_v26 = vld [vmem:[#allocation2 + $0x53] sm:$0xff]  ;;  %v9508_v55 = vpop.f32.mrf.mxu2 }
 0x255   : > { %8269 = vmatmul.msk.bf16.gmra.mxu1 %vm679_vm2, %v1868_v28  ;;  %v9502_v28 = vpop.f32.mrf.mxu0 }
 0x256   : > { %8310 = vmatmul.msk.bf16.gmra.mxu2 %vm679_vm2, %v2424_v47  ;;  %12796 = vst [vmem:[#allocation34_spill] sm:$0xff] %v9502_v28 }
 0x25a   : > { %v1440_v32 = vpop.f32.mrf.mxu1 }
 0x25b   : > { %v9491_v11 = vadd.f32 %v1440_v32, %v9263_v52  ;;  %v1869_v52 = vpack.c.bf16 %v1838_v5, %v1837_v26  ;;  %v2404_v32 = vld [vmem:[#allocation2 + $0xec] sm:$0xff] }
 0x25c   : > { %v2427_v19 = vpack.c.bf16 %v2404_v32, %v2403_v24  ;;  %v2405_v32 = vld [vmem:[#allocation2 + $0xf4] sm:$0xff] }
 0x25d   : > { %v9514_v5 = vpop.f32.mrf.mxu0 }
 0x25e   : > { %8345 = vmatmul.msk.bf16.gmra.mxu3 %vm679_vm2, %v2426_v54  ;;  %12798 = vst [vmem:[#allocation36_spill] sm:$0xff] %v9514_v5 }
 0x261   : > { %8377 = vmatmul.msk.bf16.gmra.mxu0 %vm679_vm2, %v2699_v42 }
 0x262   : > { %v1443_v47 = vpop.f32.mrf.mxu1 }
 0x263   : > { %v9500_v36 = vadd.f32 %v1443_v47, %v9270_v7  ;;  %v2674_v7 = vld [vmem:[#allocation2 + $0xc5] sm:$0xff]  ;;  %v2675_v47 = vld [vmem:[#allocation2 + $0xcd] sm:$0xff] }
 0x264   : > { %v2700_v26 = vpack.c.bf16 %v2675_v47, %v2674_v7  ;;  %v2406_v7 = vld [vmem:[#allocation2 + $0xfc] sm:$0xff] }
 0x265   : > { %8270 = vmatmul.msk.bf16.gmra.mxu1 %vm679_vm2, %v1869_v52  ;;  %v1840_v52 = vld [vmem:[#allocation2 + $0x6b] sm:$0xff]  ;;  %v9526_v24 = vpop.f32.mrf.mxu0  ;;  %v2428_v28 = vpack.c.bf16 %v2406_v7, %v2405_v32 }
 0x266   : > { %8311 = vmatmul.msk.bf16.gmra.mxu2 %vm679_vm2, %v2425_v41  ;;  %v9516_v41 = vpop.f32.mrf.mxu3  ;;  %12800 = vst [vmem:[#allocation38_spill] sm:$0xff] %v9526_v24  ;;  %v2407_v32 = vld [vmem:[#allocation2 + $0x104] sm:$0xff]  ;;  %v2408_v7 = vld [vmem:[#allocation2 + $0x10c] sm:$0xff] }
 0x267   : > { %12799 = vst [vmem:[#allocation37_spill] sm:$0xff] %v9516_v41  ;;  %v1841_v41 = vld [vmem:[#allocation2 + $0x73] sm:$0xff] }
 0x26a   : > { %v1445_v15 = vpop.f32.mrf.mxu1 }
 0x26b   : > { %v9511_v42 = vadd.f32 %v1445_v15, %v9275_v20  ;;  %v1870_v20 = vpack.c.bf16 %v1840_v52, %v1839_v60  ;;  %v9522_v15 = vpop.f32.mrf.mxu2 }
 0x26e   : > { %8346 = vmatmul.msk.bf16.gmra.mxu3 %vm679_vm2, %v2427_v19  ;;  %v9528_v5 = vpop.f32.mrf.mxu3 }
 0x26f   : > { %12801 = vst [vmem:[#allocation39_spill] sm:$0xff] %v9528_v5 }
 0x271   : > { %8378 = vmatmul.msk.bf16.gmra.mxu0 %vm679_vm2, %v2700_v26 }
 0x272   : > { %v1448_v37 = vpop.f32.mrf.mxu1 }
 0x273   : > { %v9520_v17 = vadd.f32 %v1448_v37, %v9282_v33  ;;  %v2676_v33 = vld [vmem:[#allocation2 + $0xd5] sm:$0xff]  ;;  %v2677_v37 = vld [vmem:[#allocation2 + $0xdd] sm:$0xff]  ;;  %v9534_v60 = vpop.f32.mrf.mxu2 }
 0x274   : > { %v2701_v52 = vpack.c.bf16 %v2677_v37, %v2676_v33 }
 0x275   : > { %8271 = vmatmul.msk.bf16.gmra.mxu1 %vm679_vm2, %v1870_v20  ;;  %v1842_v20 = vld [vmem:[#allocation2 + $0x7b] sm:$0xff] }
 0x276   : > { %8312 = vmatmul.msk.bf16.gmra.mxu2 %vm679_vm2, %v2426_v54  ;;  %v9537_v54 = vpop.f32.mrf.mxu0 }
 0x277   : > { %12802 = vst [vmem:[#allocation40_spill] sm:$0xff] %v9537_v54  ;;  %v2429_v54 = vpack.c.bf16 %v2408_v7, %v2407_v32 }
 0x27a   : > { %v1450_v47 = vpop.f32.mrf.mxu1 }
 0x27b   : > { %v9531_v26 = vadd.f32 %v1450_v47, %v9287_v50  ;;  %v1871_v50 = vpack.c.bf16 %v1842_v20, %v1841_v41  ;;  %v9542_v47 = vpop.f32.mrf.mxu3  ;;  %v9546_v33 = vpop.f32.mrf.mxu2  ;;  %v8807_v41 = vld [vmem:[%s12742_s5 + $0x8] sm:$0xff] }
 0x27c   : > { %12803 = vst [vmem:[#allocation41_spill] sm:$0xff] %v9542_v47  ;;  %5074 = vmatpush.bf16.msra.mxu3 %v8807_v41  ;;  %v2409_v41 = vld [vmem:[#allocation2 + $0x114] sm:$0xff] }
 0x27e   : > { %8347 = vmatmul.msk.bf16.gmra.mxu3 %vm679_vm2, %v2428_v28  ;;  %v9551_v59 = vpop.f32.mrf.mxu0 }
 0x27f   : > { %12804 = vst [vmem:[#allocation42_spill] sm:$0xff] %v9551_v59 }
 0x281   : > { %8379 = vmatmul.msk.bf16.gmra.mxu0 %vm679_vm2, %v2701_v52 }
 0x282   : > { %v1453_v24 = vpop.f32.mrf.mxu1 }
 0x283   : > { %v9540_v5 = vadd.f32 %v1453_v24, %v9294_v2  ;;  %v2678_v2 = vld [vmem:[#allocation2 + $0xe5] sm:$0xff]  ;;  %v2679_v24 = vld [vmem:[#allocation2 + $0xed] sm:$0xff]  ;;  %v9560_v32 = vpop.f32.mrf.mxu2 }
 0x284   : > { %v2702_v20 = vpack.c.bf16 %v2679_v24, %v2678_v2  ;;  %v8803_v2 = vld [vmem:[%s12740_s3 + $0x108] sm:$0xff] }
 0x285   : > { %8272 = vmatmul.msk.bf16.gmra.mxu1 %vm679_vm2, %v1871_v50  ;;  %v1844_v50 = vld [vmem:[#allocation2 + $0x8b] sm:$0xff] }
 0x286   : > { %8313 = vmatmul.msk.bf16.gmra.mxu2 %vm679_vm2, %v2427_v19  ;;  %v9557_v19 = vpop.f32.mrf.mxu3  ;;  %v9570_v24 = vpop.f32.mrf.mxu0  ;;  %3075 = vmatpush.bf16.msrb.mxu1 %v8803_v2  ;;  %v1846_v2 = vld [vmem:[#allocation2 + $0x9b] sm:$0xff] }
 0x287   : > { %12805 = vst [vmem:[#allocation43_spill] sm:$0xff] %v9557_v19 }
 0x288   : > { %12806 = vst [vmem:[#allocation44_spill] sm:$0xff] %v9570_v24  ;;  %v1845_v24 = vld [vmem:[#allocation2 + $0x93] sm:$0xff] }
 0x28a   : > { %v1455_v37 = vpop.f32.mrf.mxu1 }
 0x28b   : > { %v9549_v52 = vadd.f32 %v1455_v37, %v9299_v22  ;;  %v1843_v37 = vld [vmem:[#allocation2 + $0x83] sm:$0xff] }
 0x28c   : > { %v1872_v59 = vpack.c.bf16 %v1844_v50, %v1843_v37  ;;  %v9577_v37 = vpop.f32.mrf.mxu2 }
 0x28e   : > { %8348 = vmatmul.msk.bf16.gmra.mxu3 %vm679_vm2, %v2429_v54  ;;  %v9572_v19 = vpop.f32.mrf.mxu3  ;;  %v9580_v21 = vpop.f32.mrf.mxu0 }
 0x28f   : > { %12807 = vst [vmem:[#allocation45_spill] sm:$0xff] %v9572_v19  ;;  %v1793_v19 = vadd.f32 %v9249_v25, %v9454_v29 }
 0x290   : > { %12808 = vst [vmem:[#allocation46_spill] sm:$0xff] %v9580_v21  ;;  %v2412_v21 = vld [vmem:[#allocation2 + $0x12c] sm:$0xff] }
 0x291   : > { %8380 = vmatmul.msk.bf16.gmra.mxu0 %vm679_vm2, %v2702_v20  ;;  %v2410_v20 = vld [vmem:[#allocation2 + $0x11c] sm:$0xff] }
 0x292   : > { %v1458_v22 = vpop.f32.mrf.mxu1  ;;  %v2430_v50 = vpack.c.bf16 %v2410_v20, %v2409_v41  ;;  %v1873_v20 = vpack.c.bf16 %v1846_v2, %v1845_v24  ;;  %v2683_v24 = vld [vmem:[#allocation2 + $0x10d] sm:$0xff] }
 0x293   : > { %v9563_v7 = vadd.f32 %v1458_v22, %v9306_v43  ;;  %v2680_v22 = vld [vmem:[#allocation2 + $0xf5] sm:$0xff] }
 0x295   : > { %8273 = vmatmul.msk.bf16.gmra.mxu1 %vm679_vm2, %v1872_v59  ;;  %v2681_v59 = vld [vmem:[#allocation2 + $0xfd] sm:$0xff] }
 0x296   : > { %8314 = vmatmul.msk.bf16.gmra.mxu2 %vm679_vm2, %v2428_v28  ;;  %v2703_v28 = vpack.c.bf16 %v2681_v59, %v2680_v22  ;;  %v9594_v59 = vpop.f32.mrf.mxu2  ;;  %v9597_v29 = vpop.f32.mrf.mxu0 }
 0x29a   : > { %v1460_v47 = vpop.f32.mrf.mxu1 }
 0x29b   : > { %v9575_v43 = vadd.f32 %v1460_v47, %v9314_v6  ;;  %v1192_v6 = vadd.f32 %v9236_v0, %v9229_v58  ;;  %v9587_v47 = vpop.f32.mrf.mxu3 }
 0x29d   : > { %v1519_v22 = vadd.f32 %v9460_v46, %v1192_v6  ;;  %v1848_v6 = vld [vmem:[#allocation2 + $0xab] sm:$0xff] }
 0x29e   : > { %8349 = vmatmul.msk.bf16.gmra.mxu3 %vm679_vm2, %v2430_v50 }
 0x29f   : > { %v1794_v25 = vadd.f32 %v9256_v38, %v1519_v22  ;;  %v1795_v38 = vadd.f32 %v9261_v48, %v9467_v56  ;;  %v2685_v48 = vld [vmem:[#allocation2 + $0x11d] sm:$0xff] }
 0x2a1   : > { %8381 = vmatmul.msk.bf16.gmra.mxu0 %vm679_vm2, %v2703_v28  ;;  %v2411_v28 = vld [vmem:[#allocation2 + $0x124] sm:$0xff] }
 0x2a2   : > { %v1978_v34 = vpop.f32.mrf.mxu1 }
 0x2a3   : > { %v9589_v41 = vadd.f32 %v1978_v34, %v1793_v19  ;;  %v2431_v34 = vpack.c.bf16 %v2412_v21, %v2411_v28  ;;  %v2682_v19 = vld [vmem:[#allocation2 + $0x105] sm:$0xff]  ;;  %v9601_v2 = vpop.f32.mrf.mxu3  ;;  %v9611_v28 = vpop.f32.mrf.mxu0 }
 0x2a4   : > { %12809 = vst [vmem:[#allocation47_spill] sm:$0xff] %v9601_v2  ;;  %v2704_v46 = vpack.c.bf16 %v2683_v24, %v2682_v19  ;;  %v2684_v2 = vld [vmem:[#allocation2 + $0x115] sm:$0xff] }
 0x2a5   : > { %8274 = vmatmul.msk.bf16.gmra.mxu1 %vm679_vm2, %v1873_v20  ;;  %v9604_v20 = vpop.f32.mrf.mxu2 }
 0x2a6   : > { %8315 = vmatmul.msk.bf16.gmra.mxu2 %vm679_vm2, %v2429_v54  ;;  %v1847_v54 = vld [vmem:[#allocation2 + $0xa3] sm:$0xff] }
 0x2a7   : > { %v1874_v21 = vpack.c.bf16 %v1848_v6, %v1847_v54  ;;  %v1849_v54 = vld [vmem:[#allocation2 + $0xb3] sm:$0xff]  ;;  %v1850_v6 = vld [vmem:[#allocation2 + $0xbb] sm:$0xff] }
 0x2aa   : > { %v1980_v58 = vpop.f32.mrf.mxu1 }
 0x2ab   : > { %v9599_v0 = vadd.f32 %v1980_v58, %v1794_v25  ;;  %v1796_v58 = vadd.f32 %v9268_v63, %v9474_v53  ;;  %v9621_v56 = vpop.f32.mrf.mxu0  ;;  %v1875_v63 = vpack.c.bf16 %v1850_v6, %v1849_v54  ;;  %v1851_v6 = vld [vmem:[#allocation2 + $0xc3] sm:$0xff] }
 0x2ac   : > { %12810 = vst [vmem:[#allocation48_spill] sm:$0xff] %v9621_v56 }
 0x2ad   : > { %v9617_v24 = vpop.f32.mrf.mxu2 }
 0x2ae   : > { %8350 = vmatmul.msk.bf16.gmra.mxu3 %vm679_vm2, %v2431_v34 }
 0x2b1   : > { %8382 = vmatmul.msk.bf16.gmra.mxu0 %vm679_vm2, %v2704_v46 }
 0x2b2   : > { %v1983_v22 = vpop.f32.mrf.mxu1 }
 0x2b3   : > { %v9609_v25 = vadd.f32 %v1983_v22, %v1795_v38  ;;  %v2705_v38 = vpack.c.bf16 %v2685_v48, %v2684_v2  ;;  %v9634_v2 = vpop.f32.mrf.mxu0 }
 0x2b4   : > { %12811 = vst [vmem:[#allocation49_spill] sm:$0xff] %v9634_v2 }
 0x2b5   : > { %8275 = vmatmul.msk.bf16.gmra.mxu1 %vm679_vm2, %v1874_v21  ;;  %v9628_v53 = vpop.f32.mrf.mxu2 }
 0x2b6   : > { %8316 = vmatmul.msk.bf16.gmra.mxu2 %vm679_vm2, %v2430_v50  ;;  %v1797_v50 = vadd.f32 %v9273_v10, %v9484_v31  ;;  %v2686_v10 = vld [vmem:[#allocation2 + $0x125] sm:$0xff]  ;;  %v2687_v31 = vld [vmem:[#allocation2 + $0x12d] sm:$0xff] }
 0x2ba   : > { %v1985_v19 = vpop.f32.mrf.mxu1 }
 0x2bb   : > { %v9619_v46 = vadd.f32 %v1985_v19, %v1796_v58  ;;  %v9632_v58 = vpop.f32.mrf.mxu3  ;;  %v1798_v19 = vadd.f32 %v9280_v27, %v9491_v11  ;;  %v9648_v27 = vpop.f32.mrf.mxu0 }
 0x2bc   : > { %12812 = vst [vmem:[#allocation50_spill] sm:$0xff] %v9648_v27 }
 0x2c1   : > { %8383 = vmatmul.msk.bf16.gmra.mxu0 %vm679_vm2, %v2705_v38 }
 0x2c2   : > { %v1988_v22 = vpop.f32.mrf.mxu1 }
 0x2c3   : > { %v9626_v21 = vadd.f32 %v1988_v22, %v1797_v50  ;;  %v2706_v50 = vpack.c.bf16 %v2687_v31, %v2686_v10  ;;  %v9640_v54 = vpop.f32.mrf.mxu3  ;;  %v1852_v22 = vld [vmem:[#allocation2 + $0xcb] sm:$0xff]  ;;  %v9653_v10 = vpop.f32.mrf.mxu2  ;;  %v1800_v31 = vadd.f32 %v9292_v57, %v9511_v42 }
 0x2c5   : > { %8276 = vmatmul.msk.bf16.gmra.mxu1 %vm679_vm2, %v1875_v63  ;;  %v1799_v63 = vadd.f32 %v9285_v39, %v9500_v36  ;;  %v9661_v39 = vpop.f32.mrf.mxu0  ;;  %v8802_v36 = vld [vmem:[%s12740_s3 + $0x100] sm:$0xff] }
 0x2c6   : > { %8317 = vmatmul.msk.bf16.gmra.mxu2 %vm679_vm2, %v2431_v34  ;;  %v8809_v34 = vld [vmem:[%s12742_s5 + $0x18] sm:$0xff]  ;;  %12813 = vst [vmem:[#allocation51_spill] sm:$0xff] %v9661_v39  ;;  %3076 = vmatpush.bf16.msrb.mxu1 %v8802_v36 }
 0x2c7   : > { %4909 = vmatpush.bf16.msrb.mxu2 %v8809_v34  ;;  %v1801_v34 = vadd.f32 %v9297_v12, %v9520_v17 }
 0x2ca   : > { %v1990_v48 = vpop.f32.mrf.mxu1 }
 0x2cb   : > { %v9638_v38 = vadd.f32 %v1990_v48, %v1798_v19  ;;  %v1876_v48 = vpack.c.bf16 %v1852_v22, %v1851_v6  ;;  %v9657_v2 = vpop.f32.mrf.mxu3  ;;  %v1853_v6 = vld [vmem:[#allocation2 + $0xd3] sm:$0xff]  ;;  %v1854_v22 = vld [vmem:[#allocation2 + $0xdb] sm:$0xff] }
 0x2d1   : > { %8384 = vmatmul.msk.bf16.gmra.mxu0 %vm679_vm2, %v2706_v50 }
 0x2d2   : > { %v1993_v11 = vpop.f32.mrf.mxu1 }
 0x2d3   : > { %v9650_v19 = vadd.f32 %v1993_v11, %v1799_v63  ;;  %v9668_v63 = vpop.f32.mrf.mxu2  ;;  %v1877_v11 = vpack.c.bf16 %v1854_v22, %v1853_v6  ;;  %v1856_v6 = vld [vmem:[#allocation2 + $0xeb] sm:$0xff]  ;;  %v1803_v22 = vadd.f32 %v9312_v49, %v9540_v5  ;;  %v1857_v49 = vld [vmem:[#allocation2 + $0xf3] sm:$0xff]  ;;  %v1858_v5 = vld [vmem:[#allocation2 + $0xfb] sm:$0xff] }
 0x2d5   : > { %8277 = vmatmul.msk.bf16.gmra.mxu1 %vm679_vm2, %v1876_v48  ;;  %v9672_v48 = vpop.f32.mrf.mxu3 }
 0x2d6   : > { %12814 = vst [vmem:[#allocation52_spill] sm:$0xff] %v9672_v48 }
 0x2da   : > { %v1995_v50 = vpop.f32.mrf.mxu1 }
 0x2db   : > { %v9659_v56 = vadd.f32 %v1995_v50, %v1800_v31  ;;  %v9675_v31 = vpop.f32.mrf.mxu0  ;;  %v1802_v50 = vadd.f32 %v9304_v30, %v9531_v26  ;;  %v9681_v27 = vpop.f32.mrf.mxu2 }
 0x2dc   : > { %12815 = vst [vmem:[#allocation53_spill] sm:$0xff] %v9675_v31 }
 0x2dd   : > { %v9683_v12 = vpop.f32.mrf.mxu3 }
 0x2de   : > { %12816 = vst [vmem:[#allocation54_spill] sm:$0xff] %v9683_v12 }
 0x2e2   : > { %v1998_v57 = vpop.f32.mrf.mxu1 }
 0x2e3   : > { %v9670_v42 = vadd.f32 %v1998_v57, %v1801_v34  ;;  %v9685_v17 = vpop.f32.mrf.mxu0  ;;  %v1855_v34 = vld [vmem:[#allocation2 + $0xe3] sm:$0xff]  ;;  %v9692_v30 = vpop.f32.mrf.mxu2 }
 0x2e4   : > { %12817 = vst [vmem:[#allocation55_spill] sm:$0xff] %v9685_v17  ;;  %v1878_v31 = vpack.c.bf16 %v1856_v6, %v1855_v34  ;;  %v1805_v34 = vadd.f32 %v9340_v1, %v9563_v7  ;;  %v1859_v7 = vld [vmem:[#allocation2 + $0x103] sm:$0xff] }
 0x2e5   : > { %8278 = vmatmul.msk.bf16.gmra.mxu1 %vm679_vm2, %v1877_v11  ;;  %v9694_v26 = vpop.f32.mrf.mxu3 }
 0x2e6   : > { %12818 = vst [vmem:[#allocation56_spill] sm:$0xff] %v9694_v26 }
 0x2ea   : > { %v2000_v36 = vpop.f32.mrf.mxu1 }
 0x2eb   : > { %v9679_v39 = vadd.f32 %v2000_v36, %v1802_v50  ;;  %v1804_v50 = vadd.f32 %v9328_v23, %v9549_v52  ;;  %v9698_v36 = vpop.f32.mrf.mxu0  ;;  %v9702_v48 = vpop.f32.mrf.mxu2  ;;  %v1806_v23 = vadd.f32 %v9351_v51, %v9575_v43 }
 0x2ec   : > { %12819 = vst [vmem:[#allocation57_spill] sm:$0xff] %v9698_v36 }
 0x2f2   : > { %v2003_v57 = vpop.f32.mrf.mxu1 }
 0x2f3   : > { %v9689_v11 = vadd.f32 %v2003_v57, %v1803_v22  ;;  %v1879_v57 = vpack.c.bf16 %v1858_v5, %v1857_v49  ;;  %v9710_v26 = vpop.f32.mrf.mxu0  ;;  %v9715_v52 = vpop.f32.mrf.mxu2 }
 0x2f4   : > { %12821 = vst [vmem:[#allocation59_spill] sm:$0xff] %v9710_v26  ;;  %v2414_v26 = vld [vmem:[#allocation2 + $0x13c] sm:$0xff] }
 0x2f5   : > { %8279 = vmatmul.msk.bf16.gmra.mxu1 %vm679_vm2, %v1878_v31  ;;  %v9706_v31 = vpop.f32.mrf.mxu3 }
 0x2f6   : > { %12820 = vst [vmem:[#allocation58_spill] sm:$0xff] %v9706_v31 }
 0x2fa   : > { %v2005_v17 = vpop.f32.mrf.mxu1 }
 0x2fb   : > { %v9700_v12 = vadd.f32 %v2005_v17, %v1804_v50  ;;  %v9721_v1 = vpop.f32.mrf.mxu0  ;;  %v9726_v31 = vpop.f32.mrf.mxu2 }
 0x2fc   : > { %12823 = vst [vmem:[#allocation61_spill] sm:$0xff] %v9721_v1 }
 0x2fd   : > { %v9719_v36 = vpop.f32.mrf.mxu3  ;;  %12824 = vst [vmem:[#allocation62_spill] sm:$0xff] %v9726_v31 }
 0x2fe   : > { %12822 = vst [vmem:[#allocation60_spill] sm:$0xff] %v9719_v36 }
 0x302   : > { %v2008_v6 = vpop.f32.mrf.mxu1 }
 0x303   : > { %v9708_v22 = vadd.f32 %v2008_v6, %v1805_v34  ;;  %v1860_v34 = vld [vmem:[#allocation2 + $0x10b] sm:$0xff] }
 0x304   : > { %v1880_v5 = vpack.c.bf16 %v1860_v34, %v1859_v7  ;;  %v8806_v34 = vld [vmem:[%s12742_s5] sm:$0xff] }
 0x305   : > { %8280 = vmatmul.msk.bf16.gmra.mxu1 %vm679_vm2, %v1879_v57  ;;  %v2413_v57 = vld [vmem:[#allocation2 + $0x134] sm:$0xff]  ;;  %v9729_v43 = vpop.f32.mrf.mxu3  ;;  %5075 = vmatpush.bf16.msra.mxu3 %v8806_v34 }
 0x306   : > { %v2432_v51 = vpack.c.bf16 %v2414_v26, %v2413_v57  ;;  %12825 = vst [vmem:[#allocation63_spill] sm:$0xff] %v9729_v43  ;;  %v9740_v26 = vpop.f32.mrf.mxu2  ;;  %v1861_v57 = vld [vmem:[#allocation2 + $0x113] sm:$0xff] }
 0x307   : > { %12827 = vst [vmem:[#allocation65_spill] sm:$0xff] %v9740_v26  ;;  %v1864_v26 = vld [vmem:[#allocation2 + $0x12b] sm:$0xff] }
 0x308   : > { %8351 = vmatmul.msk.bf16.gmra.mxu3 %vm679_vm2, %v2432_v51  ;;  %v1862_v51 = vld [vmem:[#allocation2 + $0x11b] sm:$0xff] }
 0x30a   : > { %v2010_v17 = vpop.f32.mrf.mxu1 }
 0x30b   : > { %v9717_v50 = vadd.f32 %v2010_v17, %v1806_v23  ;;  %v9732_v23 = vpop.f32.mrf.mxu0 }
 0x30c   : > { %12826 = vst [vmem:[#allocation64_spill] sm:$0xff] %v9732_v23 }
 0x312   : > { %v2013_v6 = vpop.f32.mrf.mxu1 }
 0x313   : > { %v9724_v49 = vadd.f32 %v2013_v6, %v9354_v8  ;;  %v2688_v8 = vld [vmem:[#allocation2 + $0x135] sm:$0xff]  ;;  %v2689_v6 = vld [vmem:[#allocation2 + $0x13d] sm:$0xff]  ;;  %v9745_v23 = vpop.f32.mrf.mxu0 }
 0x314   : > { %v2707_v7 = vpack.c.bf16 %v2689_v6, %v2688_v8  ;;  %12829 = vst [vmem:[#allocation67_spill] sm:$0xff] %v9745_v23  ;;  %v1881_v8 = vpack.c.bf16 %v1862_v51, %v1861_v57  ;;  %v9751_v6 = vpop.f32.mrf.mxu2 }
 0x315   : > { %8281 = vmatmul.msk.bf16.gmra.mxu1 %vm679_vm2, %v1880_v5  ;;  %v9743_v5 = vpop.f32.mrf.mxu3  ;;  %12830 = vst [vmem:[#allocation68_spill] sm:$0xff] %v9751_v6  ;;  %v2347_v6 = vadd.f32 %v9534_v60, %v9626_v21  ;;  %v2349_v60 = vadd.f32 %v9560_v32, %v9650_v19  ;;  %v8811_v21 = vld [vmem:[%s12742_s5 + $0x28] sm:$0xff]  ;;  %v12887_v32 = vld [vmem:[#allocation32_spill] sm:$0xff] }
 0x316   : > { %8385 = vmatmul.msk.bf16.gmra.mxu0 %vm679_vm2, %v2707_v7  ;;  %12828 = vst [vmem:[#allocation66_spill] sm:$0xff] %v9743_v5  ;;  %v1863_v5 = vld [vmem:[#allocation2 + $0x123] sm:$0xff] }
 0x317   : > { %v1882_v57 = vpack.c.bf16 %v1864_v26, %v1863_v5  ;;  %5297 = vmatpush.bf16.msrb.mxu0 %v8811_v21  ;;  %v12904_v21 = vld [vmem:[#allocation40_spill] sm:$0xff] }
 0x31a   : > { %v2015_v17 = vpop.f32.mrf.mxu1 }
 0x31b   : > { %v9735_v1 = vadd.f32 %v2015_v17, %v9365_v9  ;;  %v9758_v34 = vpop.f32.mrf.mxu0 }
 0x31c   : > { %12832 = vst [vmem:[#allocation70_spill] sm:$0xff] %v9758_v34  ;;  %v9760_v23 = vpop.f32.mrf.mxu2 }
 0x31d   : > { %v9753_v43 = vpop.f32.mrf.mxu3  ;;  %12833 = vst [vmem:[#allocation71_spill] sm:$0xff] %v9760_v23  ;;  %v2929_v23 = vld [vmem:[#allocation2 + $0x26] sm:$0xff] }
 0x31e   : > { %12831 = vst [vmem:[#allocation69_spill] sm:$0xff] %v9753_v43 }
 0x322   : > { %v2018_v9 = vpop.f32.mrf.mxu1 }
 0x323   : > { %v9748_v17 = vadd.f32 %v2018_v9, %v9374_v14  ;;  %v9768_v9 = vpop.f32.mrf.mxu0 }
 0x324   : > { %12835 = vst [vmem:[#allocation73_spill] sm:$0xff] %v9768_v9 }
 0x325   : > { %8282 = vmatmul.msk.bf16.gmra.mxu1 %vm679_vm2, %v1881_v8  ;;  %v9765_v51 = vpop.f32.mrf.mxu3 }
 0x326   : > { %12834 = vst [vmem:[#allocation72_spill] sm:$0xff] %v9765_v51  ;;  %v2932_v51 = vld [vmem:[#allocation2 + $0x3e] sm:$0xff] }
 0x32a   : > { %v2020_v36 = vpop.f32.mrf.mxu1 }
 0x32b   : > { %v9756_v7 = vadd.f32 %v2020_v36, %v9382_v44  ;;  %v9773_v36 = vpop.f32.mrf.mxu2  ;;  %v9777_v43 = vpop.f32.mrf.mxu0 }
 0x32c   : > { %12836 = vst [vmem:[#allocation74_spill] sm:$0xff] %v9773_v36 }
 0x32d   : > { %v9775_v34 = vpop.f32.mrf.mxu3  ;;  %12838 = vst [vmem:[#allocation76_spill] sm:$0xff] %v9777_v43 }
 0x32e   : > { %12837 = vst [vmem:[#allocation75_spill] sm:$0xff] %v9775_v34 }
 0x332   : > { %v2023_v31 = vpop.f32.mrf.mxu1 }
 0x333   : > { %v9763_v14 = vadd.f32 %v2023_v31, %v9385_v13  ;;  %v2930_v13 = vld [vmem:[#allocation2 + $0x2e] sm:$0xff] }
 0x334   : > { %v2965_v5 = vpack.c.bf16 %v2930_v13, %v2929_v23 }
 0x335   : > { %8283 = vmatmul.msk.bf16.gmra.mxu1 %vm679_vm2, %v1882_v57  ;;  %v9783_v57 = vpop.f32.mrf.mxu2  ;;  %v9785_v9 = vpop.f32.mrf.mxu3 }
 0x336   : > { %12840 = vst [vmem:[#allocation78_spill] sm:$0xff] %v9783_v57 }
 0x337   : > { %12841 = vst [vmem:[#allocation79_spill] sm:$0xff] %v9785_v9 }
 0x33a   : > { %v2025_v8 = vpop.f32.mrf.mxu1 }
 0x33b   : > { %v9771_v44 = vadd.f32 %v2025_v8, %v9390_v18  ;;  %v9787_v18 = vpop.f32.mrf.mxu0 }
 0x33c   : > { %12842 = vst [vmem:[#allocation80_spill] sm:$0xff] %v9787_v18 }
 0x33d   : > { %v9792_v43 = vpop.f32.mrf.mxu2  ;;  %v9794_v36 = vpop.f32.mrf.mxu3 }
 0x33e   : > { %12844 = vst [vmem:[#allocation82_spill] sm:$0xff] %v9792_v43 }
 0x33f   : > { %12845 = vst [vmem:[#allocation83_spill] sm:$0xff] %v9794_v36  ;;  %v8808_v36 = vld [vmem:[%s12742_s5 + $0x10] sm:$0xff] }
 0x340   : > { %4910 = vmatpush.bf16.msrb.mxu2 %v8808_v36 }
 0x342   : > { %v2028_v31 = vpop.f32.mrf.mxu1 }
 0x343   : > { %v9780_v26 = vadd.f32 %v2028_v31, %v9396_v62  ;;  %v2931_v31 = vld [vmem:[#allocation2 + $0x36] sm:$0xff] }
 0x344   : > { %v2966_v13 = vpack.c.bf16 %v2932_v51, %v2931_v31 }
 0x345   : > { %12839 = vst [vmem:[#allocation77_spill] sm:$0xff] %v9780_v26  ;;  %8402 = vmatmul.msk.bf16.vlgmr.msrb.gmra.mxu1 %vm679_vm2, %v2965_v5  ;;  %v9799_v5 = vpop.f32.mrf.mxu0  ;;  %v9802_v18 = vpop.f32.mrf.mxu2  ;;  %v2348_v26 = vadd.f32 %v9546_v33, %v9638_v38  ;;  %v2350_v33 = vadd.f32 %v9577_v37, %v9659_v56  ;;  %v12888_v37 = vld [vmem:[#allocation33_spill] sm:$0xff]  ;;  %v9938_v38 = vld [vmem:[#allocation2 + $0x116] sm:$0xff] }
 0x346   : > { %12847 = vst [vmem:[#allocation85_spill] sm:$0xff] %v9799_v5 }
 0x347   : > { %12848 = vst [vmem:[#allocation86_spill] sm:$0xff] %v9802_v18  ;;  %v12856_v18 = vld [vmem:[#allocation22_spill] sm:$0xff] }
 0x348   : > { %12889 = vst [vmem:[#allocation32_spill] sm:$0xff] %v9938_v38  ;;  %v12905_v38 = vld [vmem:[#allocation42_spill] sm:$0xff] }
 0x34a   : > { %v2030_v8 = vpop.f32.mrf.mxu1 }
 0x34b   : > { %v9790_v34 = vadd.f32 %v2030_v8, %v9401_v16  ;;  %v9807_v8 = vpop.f32.mrf.mxu3 }
 0x34c   : > { %12850 = vst [vmem:[#allocation88_spill] sm:$0xff] %v9807_v8 }
 0x34d   : > { %12843 = vst [vmem:[#allocation81_spill] sm:$0xff] %v9790_v34  ;;  %v9812_v43 = vpop.f32.mrf.mxu0  ;;  %v9817_v5 = vpop.f32.mrf.mxu2  ;;  %v2346_v34 = vadd.f32 %v9522_v15, %v9619_v46  ;;  %v9909_v46 = vld [vmem:[#allocation2 + $0xe6] sm:$0xff]  ;;  %v9926_v15 = vld [vmem:[#allocation2 + $0xfe] sm:$0xff] }
 0x34e   : > { %12851 = vst [vmem:[#allocation89_spill] sm:$0xff] %v9812_v43 }
 0x34f   : > { %12853 = vst [vmem:[#allocation91_spill] sm:$0xff] %v9817_v5 }
 0x350   : > { %12884 = vst [vmem:[#allocation114_spill] sm:$0xff] %v9909_v46 }
 0x352   : > { %v2033_v62 = vpop.f32.mrf.mxu1 }
 0x353   : > { %v9797_v23 = vadd.f32 %v2033_v62, %v9404_v3  ;;  %v2934_v3 = vld [vmem:[#allocation2 + $0x4e] sm:$0xff]  ;;  %v2933_v62 = vld [vmem:[#allocation2 + $0x46] sm:$0xff] }
 0x355   : > { %12846 = vst [vmem:[#allocation84_spill] sm:$0xff] %v9797_v23  ;;  %8403 = vmatmul.msk.bf16.gmra.mxu1 %vm679_vm2, %v2966_v13  ;;  %v2967_v13 = vpack.c.bf16 %v2934_v3, %v2933_v62  ;;  %v9827_v36 = vpop.f32.mrf.mxu2  ;;  %v12861_v62 = vld [vmem:[#allocation23_spill] sm:$0xff]  ;;  %v2937_v23 = vld [vmem:[#allocation2 + $0x66] sm:$0xff] }
 0x356   : > { %12858 = vst [vmem:[#allocation94_spill] sm:$0xff] %v9827_v36 }
 0x35a   : > { %v2035_v9 = vpop.f32.mrf.mxu1 }
 0x35b   : > { %v9805_v16 = vadd.f32 %v2035_v9, %v9409_v35  ;;  %v9820_v35 = vpop.f32.mrf.mxu3  ;;  %v9822_v9 = vpop.f32.mrf.mxu0 }
 0x35c   : > { %12854 = vst [vmem:[#allocation92_spill] sm:$0xff] %v9820_v35 }
 0x35d   : > { %12849 = vst [vmem:[#allocation87_spill] sm:$0xff] %v9805_v16  ;;  %v2936_v16 = vld [vmem:[#allocation2 + $0x5e] sm:$0xff] }
 0x35e   : > { %12855 = vst [vmem:[#allocation93_spill] sm:$0xff] %v9822_v9  ;;  %v9837_v9 = vpop.f32.mrf.mxu2 }
 0x35f   : > { %12863 = vst [vmem:[#allocation97_spill] sm:$0xff] %v9837_v9  ;;  %v9880_v9 = vld [vmem:[#allocation2 + $0xb6] sm:$0xff] }
 0x360   : > { %12876 = vst [vmem:[#allocation108_spill] sm:$0xff] %v9880_v9  ;;  %v9940_v9 = vld [vmem:[#allocation2 + $0x11e] sm:$0xff] }
 0x361   : > { %12890 = vst [vmem:[#allocation33_spill] sm:$0xff] %v9940_v9 }
 0x362   : > { %v2038_v51 = vpop.f32.mrf.mxu1 }
 0x363   : > { %v9815_v31 = vadd.f32 %v2038_v51, %v9415_v40  ;;  %v9829_v43 = vpop.f32.mrf.mxu3  ;;  %v9831_v40 = vpop.f32.mrf.mxu0  ;;  %v2935_v51 = vld [vmem:[#allocation2 + $0x56] sm:$0xff] }
 0x364   : > { %12859 = vst [vmem:[#allocation95_spill] sm:$0xff] %v9829_v43 }
 0x365   : > { %12852 = vst [vmem:[#allocation90_spill] sm:$0xff] %v9815_v31  ;;  %8404 = vmatmul.msk.bf16.gmra.mxu1 %vm679_vm2, %v2967_v13  ;;  %v2968_v13 = vpack.c.bf16 %v2936_v16, %v2935_v51 }
 0x366   : > { %12860 = vst [vmem:[#allocation96_spill] sm:$0xff] %v9831_v40  ;;  %v9846_v40 = vpop.f32.mrf.mxu2 }
 0x367   : > { %12868 = vst [vmem:[#allocation100_spill] sm:$0xff] %v9846_v40  ;;  %v9864_v40 = vld [vmem:[#allocation2 + $0x96] sm:$0xff] }
 0x368   : > { %12872 = vst [vmem:[#allocation104_spill] sm:$0xff] %v9864_v40  ;;  %v12897_v40 = vld [vmem:[#allocation41_spill] sm:$0xff] }
 0x36a   : > { %v2040_v8 = vpop.f32.mrf.mxu1 }
 0x36b   : > { %v9825_v57 = vadd.f32 %v2040_v8, %v12856_v18  ;;  %v9839_v35 = vpop.f32.mrf.mxu3  ;;  %v12865_v8 = vld [vmem:[#allocation24_spill] sm:$0xff]  ;;  %v9844_v43 = vpop.f32.mrf.mxu0 }
 0x36c   : > { %12864 = vst [vmem:[#allocation98_spill] sm:$0xff] %v9839_v35  ;;  %v9866_v35 = vld [vmem:[#allocation2 + $0x9e] sm:$0xff] }
 0x36d   : > { %12857 = vst [vmem:[#allocation22_spill] sm:$0xff] %v9825_v57  ;;  %v2938_v57 = vld [vmem:[#allocation2 + $0x6e] sm:$0xff] }
 0x36e   : > { %12867 = vst [vmem:[#allocation99_spill] sm:$0xff] %v9844_v43  ;;  %v2969_v16 = vpack.c.bf16 %v2938_v57, %v2937_v23  ;;  %v9862_v43 = vld [vmem:[#allocation2 + $0x8e] sm:$0xff]  ;;  %v9872_v23 = vld [vmem:[#allocation2 + $0xc6] sm:$0xff] }
 0x36f   : > { %v9870_v57 = vld [vmem:[#allocation2 + $0xae] sm:$0xff]  ;;  %12875 = vst [vmem:[#allocation107_spill] sm:$0xff] %v9872_v23  ;;  %v12891_v23 = vld [vmem:[#allocation35_spill] sm:$0xff] }
 0x370   : > { %12874 = vst [vmem:[#allocation106_spill] sm:$0xff] %v9870_v57  ;;  %v9936_v57 = vld [vmem:[#allocation2 + $0x10e] sm:$0xff] }
 0x372   : > { %v2043_v3 = vpop.f32.mrf.mxu1 }
 0x373   : > { %v9834_v5 = vadd.f32 %v2043_v3, %v12861_v62  ;;  %v9851_v51 = vpop.f32.mrf.mxu3  ;;  %v9854_v62 = vpop.f32.mrf.mxu0 }
 0x374   : > { %12870 = vst [vmem:[#allocation102_spill] sm:$0xff] %v9851_v51  ;;  %v9897_v51 = vld [vmem:[#allocation2 + $0xde] sm:$0xff] }
 0x375   : > { %12862 = vst [vmem:[#allocation23_spill] sm:$0xff] %v9834_v5  ;;  %8405 = vmatmul.msk.bf16.gmra.mxu1 %vm679_vm2, %v2968_v13  ;;  %v9856_v13 = vld [vmem:[#allocation2 + $0x76] sm:$0xff]  ;;  %v2345_v5 = vadd.f32 %v9508_v55, %v9609_v25  ;;  %v9903_v55 = vpop.f32.mrf.mxu2  ;;  %v2351_v25 = vadd.f32 %v9594_v59, %v9670_v42  ;;  %v2623_v59 = vadd.f32 %v12897_v40, %v2348_v26  ;;  %v12901_v26 = vld [vmem:[#allocation36_spill] sm:$0xff] }
 0x376   : > { %12871 = vst [vmem:[#allocation103_spill] sm:$0xff] %v9854_v62 }
 0x377   : > { %12882 = vst [vmem:[#allocation112_spill] sm:$0xff] %v9897_v51  ;;  %v12896_v51 = vld [vmem:[#allocation39_spill] sm:$0xff] }
 0x378   : > { %12883 = vst [vmem:[#allocation113_spill] sm:$0xff] %v9903_v55 }
 0x37a   : > { %v2045_v18 = vpop.f32.mrf.mxu1 }
 0x37b   : > { %v9842_v36 = vadd.f32 %v2045_v18, %v12865_v8  ;;  %v9858_v18 = vld [vmem:[#allocation2 + $0x7e] sm:$0xff]  ;;  %v9860_v8 = vld [vmem:[#allocation2 + $0x86] sm:$0xff]  ;;  %v9930_v55 = vpop.f32.mrf.mxu3 }
 0x37c   : > { %12886 = vst [vmem:[#allocation116_spill] sm:$0xff] %v9930_v55  ;;  %v2620_v55 = vadd.f32 %v12891_v23, %v2345_v5  ;;  %v12898_v5 = vld [vmem:[#allocation43_spill] sm:$0xff] }
 0x37d   : > { %12866 = vst [vmem:[#allocation24_spill] sm:$0xff] %v9842_v36  ;;  %v9884_v36 = vld [vmem:[#allocation2 + $0xce] sm:$0xff] }
 0x37e   : > { %12878 = vst [vmem:[#allocation110_spill] sm:$0xff] %v9884_v36  ;;  %v12892_v36 = vld [vmem:[#allocation37_spill] sm:$0xff] }
 0x382   : > { %v2048_v31 = vpop.f32.mrf.mxu1 }
 0x383   : > { %v9849_v3 = vadd.f32 %v2048_v31, %v9434_v61  ;;  %v9868_v61 = vld [vmem:[#allocation2 + $0xa6] sm:$0xff]  ;;  %v2343_v31 = vadd.f32 %v9488_v4, %v9589_v41 }
 0x384   : > { %12873 = vst [vmem:[#allocation105_spill] sm:$0xff] %v9868_v61  ;;  %v12879_v4 = vld [vmem:[#allocation25_spill] sm:$0xff]  ;;  %v9952_v61 = vpop.f32.mrf.mxu0 }
 0x385   : > { %12869 = vst [vmem:[#allocation101_spill] sm:$0xff] %v9849_v3  ;;  %8406 = vmatmul.msk.bf16.gmra.mxu1 %vm679_vm2, %v2969_v16  ;;  %v2344_v16 = vadd.f32 %v9496_v45, %v9599_v0  ;;  %v9882_v3 = vld [vmem:[#allocation2 + $0xbe] sm:$0xff]  ;;  %v9895_v0 = vld [vmem:[#allocation2 + $0xd6] sm:$0xff]  ;;  %v9928_v45 = vld [vmem:[#allocation2 + $0x106] sm:$0xff]  ;;  %v2618_v19 = vadd.f32 %v12887_v32, %v2343_v31  ;;  %v2621_v31 = vadd.f32 %v12892_v36, %v2346_v34 }
 0x386   : > { %12877 = vst [vmem:[#allocation109_spill] sm:$0xff] %v9882_v3  ;;  %v9948_v32 = vld [vmem:[#allocation2 + $0x126] sm:$0xff]  ;;  %v2622_v3 = vadd.f32 %v12896_v51, %v2347_v6  ;;  %v2624_v34 = vadd.f32 %v12898_v5, %v2349_v60  ;;  %v12902_v60 = vld [vmem:[#allocation26_spill] sm:$0xff] }
 0x387   : > { %12881 = vst [vmem:[#allocation111_spill] sm:$0xff] %v9895_v0  ;;  %v2619_v56 = vadd.f32 %v12888_v37, %v2344_v16  ;;  %v9950_v37 = vld [vmem:[#allocation2 + $0x12e] sm:$0xff]  ;;  %v9982_v16 = vadd.f32 %v12904_v21, %v2621_v31  ;;  %v12907_v31 = vpack.c.bf16 %v9858_v18, %v9856_v13  ;;  %v2356_v13 = vadd.f32 %v9668_v63, %v9717_v50 }
 0x388   : > { %12885 = vst [vmem:[#allocation115_spill] sm:$0xff] %v9928_v45  ;;  %v12899_v36 = vld [vmem:[#allocation45_spill] sm:$0xff]  ;;  %v12903_v5 = vld [vmem:[#allocation38_spill] sm:$0xff]  ;;  %v2357_v18 = vadd.f32 %v9681_v27, %v9724_v49  ;;  %v2358_v27 = vadd.f32 %v9692_v30, %v9735_v1  ;;  %v12911_v1 = vld [vmem:[#allocation52_spill] sm:$0xff] }
 0x389   : > { %12893 = vst [vmem:[#allocation35_spill] sm:$0xff] %v9948_v32  ;;  %v2625_v23 = vadd.f32 %v12899_v36, %v2350_v33  ;;  %v9971_v40 = vadd.f32 %v12901_v26, %v2619_v56  ;;  %v9979_v36 = vadd.f32 %v12903_v5, %v2620_v55  ;;  %v9987_v56 = vadd.f32 %v12905_v38, %v2622_v3  ;;  %v12906_v26 = vld [vmem:[#allocation44_spill] sm:$0xff] }
 0x38a   : > { %v2050_v62 = vpop.f32.mrf.mxu1  ;;  %12894 = vst [vmem:[#allocation37_spill] sm:$0xff] %v9950_v37  ;;  %v9990_v9 = vadd.f32 %v12906_v26, %v2623_v59  ;;  %v2353_v55 = vadd.f32 %v9617_v24, %v9689_v11  ;;  %v2354_v38 = vadd.f32 %v9628_v53, %v9700_v12  ;;  %v10008_v59 = vpop.f32.mrf.mxu2  ;;  %v2355_v11 = vadd.f32 %v9653_v10, %v9708_v22  ;;  %v12909_v10 = vld [vmem:[#allocation47_spill] sm:$0xff] }
 0x38b   : > { %v9891_v41 = vadd.f32 %v2050_v62, %v12879_v4  ;;  %v9911_v62 = vld [vmem:[#allocation2 + $0xee] sm:$0xff]  ;;  %v9913_v4 = vld [vmem:[#allocation2 + $0xf6] sm:$0xff]  ;;  %12895 = vst [vmem:[#allocation117_spill] sm:$0xff] %v9952_v61  ;;  %v10004_v3 = vadd.f32 %v9597_v29, %v2625_v23  ;;  %v12764_v23 = vmov 0  }
 0x38c   : > { %v2628_v63 = vadd.f32 %v9632_v58, %v2353_v55  ;;  %v10031_v50 = vpop.f32.mrf.mxu0  ;;  %v2629_v5 = vadd.f32 %v9640_v54, %v2354_v38  ;;  %v2630_v58 = vadd.f32 %v9657_v2, %v2355_v11  ;;  %v12913_v55 = vmov 0.0   ;;  %v12914_v38 = vld [vmem:[#allocation48_spill] sm:$0xff]  ;;  %v12951_v37 = vld [vmem:[#allocation75_spill] sm:$0xff] }
 0x38d   : > { %12880 = vst [vmem:[#allocation25_spill] sm:$0xff] %v9891_v41  ;;  %v3280_v41 = vlaneseq  ;;  %v2360_v2 = vadd.f32 %v9715_v52, %v9756_v7  ;;  %v12920_v52 = vld [vmem:[#allocation62_spill] sm:$0xff] }
 0x38e   : > { %727 = vst.msk [vmem:[#allocation3 + $0x10] sm:$0xff] %vm724_vm5, %v12913_v55  ;;  %v2361_v7 = vadd.f32 %v12920_v52, %v9763_v14  ;;  %v12935_v52 = vld [vmem:[#allocation28_spill] sm:$0xff] }
 0x38f   : > { %v9954_v0 = vshrl.u32 %v3280_v41, 7  ;;  %v12900_v41 = vld [vmem:[#allocation34_spill] sm:$0xff]  ;;  %728 = vst.msk [vmem:[#allocation3 + $0x18] sm:$0xff] %vm724_vm5, %v12913_v55 }
 0x390   : > { %v9967_v46 = vadd.f32 %v12900_v41, %v2618_v19  ;;  %v2626_v19 = vadd.f32 %v9587_v47, %v2351_v25  ;;  %v12908_v47 = vld [vmem:[#allocation46_spill] sm:$0xff]  ;;  %725 = vst.msk [vmem:[#allocation3] sm:$0xff] %vm724_vm5, %v12913_v55 }
 0x391   : > { %v3320_v6 = vand.u32 65535, %v9954_v0  ;;  %v3321_v41 = vshrl.u32 %v9954_v0, 16  ;;  %v10001_v25 = vadd.f32 %v12908_v47, %v2624_v34  ;;  %v10021_v34 = vpop.f32.mrf.mxu3  ;;  %v10038_v26 = vadd.s32 8, %v9954_v0  ;;  %726 = vst.msk [vmem:[#allocation3 + $0x8] sm:$0xff] %vm724_vm5, %v12913_v55 }
 0x392   : > { %v2053_v61 = vpop.f32.mrf.mxu1  ;;  %v10019_v29 = vadd.f32 %v9611_v28, %v2626_v19  ;;  %v2359_v28 = vadd.f32 %v9702_v48, %v9748_v17  ;;  %v12910_v19 = vld [vmem:[#allocation27_spill] sm:$0xff]  ;;  %v2631_v48 = vadd.f32 %v12911_v1, %v2356_v13  ;;  %v12912_v17 = vld [vmem:[#allocation54_spill] sm:$0xff]  ;;  %v12916_v13 = vld [vmem:[#allocation56_spill] sm:$0xff]  ;;  %729 = vst.msk [vmem:[#allocation3 + $0x20] sm:$0xff] %vm724_vm5, %v12913_v55 }
 0x393   : > { %v9976_v33 = vadd.f32 %v2053_v61, %v12902_v60  ;;  %v3324_v42 = vmul.u32 58254, %v3320_v6  ;;  %v2352_v61 = vadd.f32 %v9604_v20, %v9679_v39  ;;  %v3323_v20 = vmul.u32 14564, %v3320_v6  ;;  %730 = vst.msk [vmem:[#allocation3 + $0x28] sm:$0xff] %vm724_vm5, %v12913_v55 }
 0x394   : > { %v10010_v39 = vmul.u32 14564, %v3321_v41  ;;  %v3326_v53 = vmul.u32 58254, %v3321_v41  ;;  %v3349_v47 = vand.u32 65535, %v10038_v26  ;;  %v10109_v51 = vpop.f32.mrf.mxu0  ;;  %731 = vst.msk [vmem:[#allocation3 + $0x30] sm:$0xff] %vm724_vm5, %v12913_v55 }
 0x395   : > { %8407 = vmatmul.msk.bf16.gmra.mxu1 %vm679_vm2, %v12907_v31  ;;  %v3327_v24 = vshll.u32 %v3324_v42, 16  ;;  %v2627_v22 = vadd.f32 %v12909_v10, %v2352_v61  ;;  %v2632_v61 = vadd.f32 %v12912_v17, %v2357_v18  ;;  %v3328_v54 = vshrl.u32 %v3324_v42, 16  ;;  %12939 = vst [vmem:[#allocation38_spill] sm:$0xff] %v10109_v51 }
 0x396   : > { %v3329_v12 = vshll.u32 %v10010_v39, 16  ;;  %v2633_v18 = vadd.f32 %v12916_v13, %v2358_v27  ;;  %v3350_v42 = vshrl.u32 %v10038_v26, 16  ;;  %v12922_v27 = vld [vmem:[#allocation53_spill] sm:$0xff]  ;;  %732 = vst.msk [vmem:[#allocation3 + $0x38] sm:$0xff] %vm724_vm5, %v12913_v55 }
 0x397   : > { %vm3331_vm3 = vc.u32 %v3323_v20, %v3327_v24  ;;  %v3333_v6 = vadd.s32 %v3327_v24, %v3323_v20  ;;  %v10048_v20 = vadd.f32 %v12914_v38, %v2627_v22  ;;  %v12915_v24 = vld [vmem:[#allocation49_spill] sm:$0xff]  ;;  %v12919_v22 = vld [vmem:[#allocation51_spill] sm:$0xff]  ;;  %733 = vst.msk [vmem:[#allocation3 + $0x40] sm:$0xff] %vm724_vm5, %v12913_v55 }
 0x398   : > { %v3332_v21 = vsel %vm3331_vm3, 1, %v12764_v23  ;;  %v10055_v11 = vadd.f32 %v12915_v24, %v2628_v63  ;;  %v3330_v63 = vshrl.u32 %v10010_v39, 16  ;;  %v10083_v1 = vmul.u32 14564, %v3350_v42  ;;  %v12927_v39 = vld [vmem:[#allocation65_spill] sm:$0xff]  ;;  %734 = vst.msk [vmem:[#allocation3 + $0x48] sm:$0xff] %vm724_vm5, %v12913_v55 }
 0x399   : > { %v3334_v60 = vadd.s32 %v3332_v21, %v3326_v53  ;;  %vm3335_vm4 = vc.u32 %v3333_v6, %v3329_v12  ;;  %v12917_v53 = vld [vmem:[#allocation58_spill] sm:$0xff]  ;;  %v10060_v21 = vmul.u32 58254, %v3349_v47  ;;  %v10086_v17 = vpop.f32.mrf.mxu3  ;;  %v2362_v38 = vadd.f32 %v12927_v39, %v9771_v44  ;;  %v12937_v39 = vld [vmem:[#allocation81_spill] sm:$0xff]  ;;  %735 = vst.msk [vmem:[#allocation3 + $0x50] sm:$0xff] %vm724_vm5, %v12913_v55 }
 0x39a   : > { %v2055_v49 = vpop.f32.mrf.mxu1  ;;  %v3336_v30 = vsel %vm3335_vm4, 1, %v12764_v23  ;;  %v2634_v12 = vadd.f32 %v12917_v53, %v2359_v28  ;;  %v12918_v6 = vld [vmem:[#allocation50_spill] sm:$0xff]  ;;  %v10076_v28 = vadd.f32 %v12922_v27, %v2631_v48  ;;  %12926 = vst [vmem:[#allocation45_spill] sm:$0xff] %v10086_v17  ;;  %v12928_v48 = vld [vmem:[#allocation57_spill] sm:$0xff]  ;;  %v3355_v44 = vmul.u32 58254, %v3350_v42 }
 0x39b   : > { %v10035_v41 = vadd.f32 %v2055_v49, %v12910_v19  ;;  %v3338_v31 = vadd.s32 %v3336_v30, %v3334_v60  ;;  %v10063_v10 = vadd.f32 %v12918_v6, %v2629_v5  ;;  %v10066_v49 = vadd.f32 %v12919_v22, %v2630_v58  ;;  %v10070_v60 = vpop.f32.mrf.mxu2  ;;  %v12924_v19 = vld [vmem:[#allocation55_spill] sm:$0xff]  ;;  %v12933_v53 = vld [vmem:[#allocation77_spill] sm:$0xff]  ;;  %v12934_v6 = vld [vmem:[#allocation68_spill] sm:$0xff]  ;;  %736 = vst.msk [vmem:[#allocation3 + $0x58] sm:$0xff] %vm724_vm5, %v12913_v55 }
 0x39c   : > { %12921 = vst [vmem:[#allocation39_spill] sm:$0xff] %v10070_v60  ;;  %v10079_v30 = vadd.f32 %v12924_v19, %v2632_v61  ;;  %v3352_v58 = vmul.u32 14564, %v3349_v47  ;;  %v3356_v14 = vshll.u32 %v10060_v21, 16  ;;  %v10093_v61 = vadd.f32 %v12928_v48, %v2633_v18  ;;  %v12932_v47 = vld [vmem:[#allocation60_spill] sm:$0xff]  ;;  %v12938_v18 = vld [vmem:[#allocation71_spill] sm:$0xff] }
 0x39d   : > { %12923 = vst [vmem:[#allocation41_spill] sm:$0xff] %v10076_v28  ;;  %v3339_v5 = vadd.s32 %v3338_v31, %v3328_v54  ;;  %v12930_v54 = vld [vmem:[#allocation59_spill] sm:$0xff]  ;;  %v2635_v13 = vadd.f32 %v12932_v47, %v2360_v2  ;;  %v2363_v22 = vadd.f32 %v12934_v6, %v12933_v53  ;;  %v3358_v19 = vshll.u32 %v10083_v1, 16 }
 0x39e   : > { %12925 = vst [vmem:[#allocation43_spill] sm:$0xff] %v10079_v30  ;;  %v10096_v31 = vadd.f32 %v12930_v54, %v2634_v12  ;;  %v2364_v48 = vadd.f32 %v12938_v18, %v12937_v39  ;;  %vm3360_vm6 = vc.u32 %v3352_v58, %v3356_v14  ;;  %v3362_v2 = vadd.s32 %v3356_v14, %v3352_v58  ;;  %v12941_v54 = vld [vmem:[#allocation74_spill] sm:$0xff] }
 0x39f   : > { %12929 = vst [vmem:[#allocation34_spill] sm:$0xff] %v10093_v61  ;;  %v10114_v12 = vadd.s32 16, %v9954_v0  ;;  %v12942_v42 = vpack.c.bf16 %v9862_v43, %v9860_v8  ;;  %v3340_v53 = vadd.s32 %v3339_v5, %v3330_v63  ;;  %v3361_v6 = vsel %vm3360_vm6, 1, %v12764_v23  ;;  %v12944_v18 = vld [vmem:[#allocation66_spill] sm:$0xff]  ;;  %v4721_v43 = vld [vmem:[#allocation3] sm:$0xff] }
 0x3a0   : > { %12931 = vst [vmem:[#allocation36_spill] sm:$0xff] %v10096_v31  ;;  %v3363_v58 = vadd.s32 %v3361_v6, %v3355_v44  ;;  %vm3364_vm7 = vc.u32 %v3362_v2, %v3358_v19  ;;  %v3357_v8 = vshrl.u32 %v10060_v21, 16  ;;  %v4779_v44 = vld [vmem:[#allocation3 + $0x1] sm:$0xff]  ;;  %v4780_v19 = vld [vmem:[#allocation3 + $0x9] sm:$0xff] }
 0x3a1   : > { %v3378_v14 = vand.u32 65535, %v10114_v12  ;;  %v3365_v63 = vsel %vm3364_vm7, 1, %v12764_v23  ;;  %v3379_v5 = vshrl.u32 %v10114_v12, 16  ;;  %v4722_v2 = vld [vmem:[#allocation3 + $0x8] sm:$0xff]  ;;  %v12946_v6 = vld [vmem:[#allocation61_spill] sm:$0xff]  ;;  %v3341_v32 = vshrl.u32 %v3340_v53, 4 }
 0x3a2   : > { %v2058_v24 = vpop.f32.mrf.mxu1  ;;  %v4815_v23 = vpack.c.bf16 %v4780_v19, %v4779_v44  ;;  %737 = vst.msk [vmem:[#allocation3 + $0x60] sm:$0xff] %vm724_vm5, %v12913_v55  ;;  %v3359_v53 = vshrl.u32 %v10083_v1, 16  ;;  %v12953_v19 = vld [vmem:[#allocation29_spill] sm:$0xff] }
 0x3a3   : > { %v10102_v27 = vadd.f32 %v2058_v24, %v12935_v52  ;;  %v12940_v24 = vld [vmem:[#allocation84_spill] sm:$0xff]  ;;  %v12943_v52 = vld [vmem:[#allocation63_spill] sm:$0xff]  ;;  %v10150_v61 = vpop.f32.mrf.mxu2  ;;  %v3381_v44 = vmul.u32 14564, %v3378_v14  ;;  %738 = vst.msk [vmem:[#allocation3 + $0x68] sm:$0xff] %vm724_vm5, %v12913_v55  ;;  %v3384_v1 = vmul.u32 58254, %v3379_v5 }
 0x3a4   : > { %v2365_v47 = vadd.f32 %v12941_v54, %v12940_v24  ;;  %v2636_v39 = vadd.f32 %v12943_v52, %v2361_v7  ;;  %v2637_v24 = vadd.f32 %v12944_v18, %v2362_v38  ;;  %v12945_v7 = vld [vmem:[#allocation69_spill] sm:$0xff]  ;;  %v10138_v38 = vmul.u32 58254, %v3378_v14  ;;  %v12948_v18 = vld [vmem:[#allocation72_spill] sm:$0xff]  ;;  %12952 = vst [vmem:[#allocation44_spill] sm:$0xff] %v10150_v61  ;;  %8428 = vmatmul.msk.bf16.vlgmr.msrb.gmra.mxu2 %vm724_vm5, %v4815_v23 }
 0x3a5   : > { %12936 = vst [vmem:[#allocation26_spill] sm:$0xff] %v10102_v27  ;;  %8408 = vmatmul.msk.bf16.gmra.mxu1 %vm679_vm2, %v12942_v42  ;;  %v2638_v54 = vadd.f32 %v12945_v7, %v2363_v22  ;;  %v3367_v42 = vadd.s32 %v3365_v63, %v3363_v58  ;;  %v10141_v52 = vadd.f32 %v12946_v6, %v2635_v13  ;;  %v12949_v22 = vld [vmem:[#allocation64_spill] sm:$0xff]  ;;  %v10179_v23 = vadd.s32 24, %v9954_v0 }
 0x3a6   : > { %v2639_v21 = vadd.f32 %v12948_v18, %v2364_v48  ;;  %v10147_v7 = vadd.f32 %v12949_v22, %v2636_v39  ;;  %v2640_v31 = vadd.f32 %v12951_v37, %v2365_v47  ;;  %v4757_v13 = vpack.c.bf16 %v4722_v2, %v4721_v43  ;;  %v8810_v48 = vld [vmem:[%s12742_s5 + $0x20] sm:$0xff]  ;;  %v12955_v47 = vld [vmem:[#allocation67_spill] sm:$0xff]  ;;  %v12957_v2 = vld [vmem:[#allocation70_spill] sm:$0xff]  ;;  %v10172_v18 = vpop.f32.mrf.mxu3  ;;  %739 = vst.msk [vmem:[#allocation3 + $0x70] sm:$0xff] %vm724_vm5, %v12913_v55 }
 0x3a7   : > { %12947 = vst [vmem:[#allocation40_spill] sm:$0xff] %v10141_v52  ;;  %v3368_v63 = vadd.s32 %v3367_v42, %v3357_v8  ;;  %v10164_v37 = vmul.u32 14564, %v3379_v5  ;;  %v10167_v43 = vadd.f32 %v12955_v47, %v2637_v24  ;;  %v10170_v6 = vadd.f32 %v12957_v2, %v2638_v54  ;;  %5298 = vmatpush.bf16.msrb.mxu0 %v8810_v48  ;;  %v12960_v8 = vld [vmem:[#allocation73_spill] sm:$0xff]  ;;  %v12962_v42 = vld [vmem:[#allocation87_spill] sm:$0xff]  ;;  %v12963_v54 = vld [vmem:[#allocation78_spill] sm:$0xff]  ;;  %v10192_v5 = vpop.f32.mrf.mxu0 }
 0x3a8   : > { %12950 = vst [vmem:[#allocation42_spill] sm:$0xff] %v10147_v7  ;;  %8454 = vmatmul.msk.bf16.vlgmr.msra.gmra.mxu3 %vm724_vm5, %v4757_v13  ;;  %v3385_v14 = vshll.u32 %v10138_v38, 16  ;;  %v10182_v24 = vadd.f32 %v12960_v8, %v2639_v21  ;;  %v2366_v22 = vadd.f32 %v12963_v54, %v12962_v42  ;;  %v12964_v13 = vld [vmem:[#allocation76_spill] sm:$0xff]  ;;  %v3407_v2 = vand.u32 65535, %v10179_v23  ;;  %v12967_v8 = vld [vmem:[#allocation90_spill] sm:$0xff] }
 0x3a9   : > { %12956 = vst [vmem:[#allocation47_spill] sm:$0xff] %v10167_v43  ;;  %v10190_v48 = vadd.f32 %v12964_v13, %v2640_v31  ;;  %v3369_v47 = vadd.s32 %v3368_v63, %v3359_v53  ;;  %v12969_v54 = vld [vmem:[#allocation22_spill] sm:$0xff]  ;;  %v5167_v31 = vld [vmem:[#allocation3 + $0x2] sm:$0xff]  ;;  %v5168_v13 = vld [vmem:[#allocation3 + $0xa] sm:$0xff]  ;;  %v3408_v7 = vshrl.u32 %v10179_v23, 16  ;;  %v3386_v63 = vshrl.u32 %v10138_v38, 16 }
 0x3aa   : > { %v2060_v58 = vpop.f32.mrf.mxu1  ;;  %12958 = vst [vmem:[#allocation27_spill] sm:$0xff] %v10170_v6  ;;  %vm3389_vm8 = vc.u32 %v3381_v44, %v3385_v14  ;;  %v3391_v21 = vadd.s32 %v3385_v14, %v3381_v44  ;;  %v5203_v53 = vpack.c.bf16 %v5168_v13, %v5167_v31  ;;  %v8817_v38 = vld [vmem:[%s12742_s5 + $0x58] sm:$0xff] }
 0x3ab   : > { %v10159_v39 = vadd.f32 %v2060_v58, %v12953_v19  ;;  %12959 = vst [vmem:[#allocation52_spill] sm:$0xff] %v10172_v18  ;;  %v3342_v58 = vmul.u32 18, %v3341_v32  ;;  %v3387_v19 = vshll.u32 %v10164_v37, 16  ;;  %v12968_v32 = vld [vmem:[#allocation82_spill] sm:$0xff]  ;;  %v3370_v52 = vshrl.u32 %v3369_v47, 4  ;;  %v2338_v13 = vpop.f32.mrf.mxu2  ;;  %6074 = vmatpush.bf16.msrb.mxu3 %v8817_v38 }
 0x3ac   : > { %12961 = vst [vmem:[#allocation54_spill] sm:$0xff] %v10182_v24  ;;  %v2367_v42 = vadd.f32 %v12968_v32, %v12967_v8  ;;  %v12970_v24 = vld [vmem:[#allocation86_spill] sm:$0xff]  ;;  %v3410_v8 = vmul.u32 14564, %v3407_v2  ;;  %v3411_v32 = vmul.u32 58254, %v3407_v2  ;;  %8480 = vmatmul.msk.bf16.vlgmr.msrb.gmra.mxu0 %vm724_vm5, %v5203_v53  ;;  %v3413_v2 = vmul.u32 58254, %v3408_v7 }
 0x3ad   : > { %12954 = vst [vmem:[#allocation46_spill] sm:$0xff] %v10159_v39  ;;  %v2368_v6 = vadd.f32 %v12970_v24, %v12969_v54  ;;  %vm3393_vm9 = vc.u32 %v3391_v21, %v3387_v19  ;;  %v10209_v14 = vsub.s32 %v9954_v0, %v3342_v58  ;;  %v10221_v58 = vmul.u32 14564, %v3408_v7  ;;  %v12972_v19 = vld [vmem:[#allocation30_spill] sm:$0xff]  ;;  %v13019_v39 = vld [vmem:[#allocation100_spill] sm:$0xff] }
 0x3ae   : > { %740 = vst.msk [vmem:[#allocation3 + $0x78] sm:$0xff] %vm724_vm5, %v12913_v55  ;;  %v3414_v31 = vshll.u32 %v3411_v32, 16  ;;  %v10227_v47 = vadd.s32 32, %v9954_v0  ;;  %v2613_v53 = vpop.f32.mrf.mxu3 }
 0x3af   : > { %12965 = vst [vmem:[#allocation48_spill] sm:$0xff] %v10190_v48  ;;  %v12971_v48 = vmov 0   ;;  %v3416_v30 = vshll.u32 %v10221_v58, 16  ;;  %v2888_v17 = vpop.f32.mrf.mxu0  ;;  %vm4361_vm11 = vcmp.ne.s32.totalorder %v10209_v14, 0  ;;  %vm4397_vm13 = vcmp.lt.s32.totalorder %v10209_v14, 0 }
 0x3b0   : > { %12966 = vst [vmem:[#allocation49_spill] sm:$0xff] %v10192_v5  ;;  %v3390_v43 = vsel %vm3389_vm8, 1, %v12971_v48  ;;  %v3394_v24 = vsel %vm3393_vm9, 1, %v12971_v48  ;;  %v12974_v5 = vld [vmem:[#allocation83_spill] sm:$0xff]  ;;  %vm3418_vm10 = vc.u32 %v3410_v8, %v3414_v31  ;;  %v3420_v18 = vadd.s32 %v3414_v31, %v3410_v8  ;;  %vm10281_vm14 = vmand %vm4397_vm13, %vm4361_vm11 }
 0x3b1   : > { %741 = vst.msk [vmem:[#allocation3 + $0x80] sm:$0xff] %vm724_vm5, %v12913_v55  ;;  %v3392_v44 = vadd.s32 %v3390_v43, %v3384_v1  ;;  %v3388_v43 = vshrl.u32 %v10164_v37, 16  ;;  %v2642_v51 = vadd.f32 %v12974_v5, %v2367_v42  ;;  %v3419_v5 = vsel %vm3418_vm10, 1, %v12971_v48 }
 0x3b2   : > { %742 = vst.msk [vmem:[#allocation3 + $0x88] sm:$0xff] %vm724_vm5, %v12913_v55  ;;  %v2063_v54 = vpop.f32.mrf.mxu1  ;;  %v3436_v42 = vand.u32 65535, %v10227_v47  ;;  %v3415_v8 = vshrl.u32 %v3411_v32, 16  ;;  %vm3422_vm12 = vc.u32 %v3420_v18, %v3416_v30  ;;  %v3417_v30 = vshrl.u32 %v10221_v58, 16 }
 0x3b3   : > { %743 = vst.msk [vmem:[#allocation3 + $0x90] sm:$0xff] %vm724_vm5, %v12913_v55  ;;  %v3396_v1 = vadd.s32 %v3394_v24, %v3392_v44  ;;  %v2102_v21 = vadd.f32 %v2063_v54, %v12972_v19  ;;  %v12973_v44 = vld [vmem:[#allocation79_spill] sm:$0xff]  ;;  %v12975_v54 = vld [vmem:[#allocation104_spill] sm:$0xff] }
 0x3b4   : > { %744 = vst.msk [vmem:[#allocation3 + $0x98] sm:$0xff] %vm724_vm5, %v12913_v55  ;;  %v2641_v24 = vadd.f32 %v12973_v44, %v2366_v22  ;;  %v12976_v19 = vpack.c.bf16 %v9866_v35, %v12975_v54  ;;  %v12977_v35 = vld [vmem:[#allocation88_spill] sm:$0xff]  ;;  %v3440_v31 = vmul.u32 58254, %v3436_v42  ;;  %v10268_v54 = vadd.s32 40, %v9954_v0 }
 0x3b5   : > { %745 = vst.msk [vmem:[#allocation3 + $0xa0] sm:$0xff] %vm724_vm5, %v12913_v55  ;;  %v3397_v37 = vadd.s32 %v3396_v1, %v3386_v63  ;;  %v2377_v7 = vadd.f32 %v2338_v13, %v2102_v21  ;;  %v2643_v63 = vadd.f32 %v12977_v35, %v2368_v6  ;;  %v3371_v1 = vmul.u32 18, %v3370_v52 }
 0x3b6   : > { %746 = vst.msk [vmem:[#allocation3 + $0xa8] sm:$0xff] %vm724_vm5, %v12913_v55  ;;  %8409 = vmatmul.msk.bf16.gmra.mxu1 %vm679_vm2, %v12976_v19  ;;  %v3421_v21 = vadd.s32 %v3419_v5, %v3413_v2  ;;  %v3443_v2 = vshll.u32 %v3440_v31, 16  ;;  %v12981_v19 = vld [vmem:[#allocation80_spill] sm:$0xff] }
 0x3b7   : > { %747 = vst.msk [vmem:[#allocation3 + $0xb0] sm:$0xff] %vm724_vm5, %v12913_v55  ;;  %v3398_v22 = vadd.s32 %v3397_v37, %v3388_v43  ;;  %v2652_v38 = vadd.f32 %v2613_v53, %v2377_v7  ;;  %v3437_v43 = vshrl.u32 %v10227_v47, 16  ;;  %v3423_v53 = vsel %vm3422_vm12, 1, %v12971_v48 }
 0x3b8   : > { %748 = vst.msk [vmem:[#allocation3 + $0xb8] sm:$0xff] %vm724_vm5, %v12913_v55  ;;  %v3439_v37 = vmul.u32 14564, %v3436_v42  ;;  %v3425_v52 = vadd.s32 %v3423_v53, %v3421_v21  ;;  %v10271_v7 = vadd.f32 %v12981_v19, %v2641_v24  ;;  %v10288_v24 = vsub.s32 %v10038_v26, %v3371_v1  ;;  %v12985_v53 = vld [vmem:[#allocation85_spill] sm:$0xff]  ;;  %v12989_v19 = vld [vmem:[#allocation23_spill] sm:$0xff]  ;;  %v12991_v26 = vld [vmem:[#allocation24_spill] sm:$0xff] }
 0x3b9   : > { %749 = vst.msk [vmem:[#allocation3 + $0xc0] sm:$0xff] %vm724_vm5, %v12913_v55  ;;  %v10251_v13 = vadd.f32 %v2888_v17, %v2652_v38  ;;  %v3399_v6 = vshrl.u32 %v3398_v22, 4  ;;  %v10260_v18 = vmul.u32 14564, %v3437_v43  ;;  %v12979_v17 = vld [vmem:[#allocation31_spill] sm:$0xff]  ;;  %v4469_v22 = vadd.s32 18, %v10209_v14  ;;  %v12992_v1 = vld [vmem:[#allocation94_spill] sm:$0xff] }
 0x3ba   : > { %750 = vst.msk [vmem:[#allocation3 + $0xc8] sm:$0xff] %vm724_vm5, %v12913_v55  ;;  %v2065_v44 = vpop.f32.mrf.mxu1  ;;  %v3426_v58 = vadd.s32 %v3425_v52, %v3415_v8  ;;  %v3442_v5 = vmul.u32 58254, %v3437_v43  ;;  %vm3447_vm15 = vc.u32 %v3439_v37, %v3443_v2  ;;  %v3449_v21 = vadd.s32 %v3443_v2, %v3439_v37  ;;  %v12987_v52 = vld [vmem:[#allocation89_spill] sm:$0xff]  ;;  %v10315_v2 = vld [vmem:[%s12741_s4] ss:$0 sm:$0xff] }
 0x3bb   : > { %751 = vst.msk [vmem:[#allocation3 + $0xd0] sm:$0xff] %vm724_vm5, %v12913_v55  ;;  %v10263_v32 = vadd.f32 %v2065_v44, %v12979_v17  ;;  %v3445_v42 = vshll.u32 %v10260_v18, 16  ;;  %v3400_v38 = vmul.u32 18, %v3399_v6  ;;  %v3465_v43 = vand.u32 65535, %v10268_v54 }
 0x3bc   : > { %12978 = vst [vmem:[#allocation56_spill] sm:$0xff] %v10251_v13  ;;  %v3427_v8 = vadd.s32 %v3426_v58, %v3417_v30  ;;  %v10294_v44 = vadd.f32 %v12985_v53, %v2642_v51  ;;  %v10297_v17 = vadd.f32 %v12987_v52, %v2643_v63  ;;  %v12990_v13 = vld [vmem:[#allocation91_spill] sm:$0xff]  ;;  %v2370_v6 = vadd.f32 %v12992_v1, %v12991_v26 }
 0x3bd   : > { %752 = vst.msk [vmem:[#allocation3 + $0xd8] sm:$0xff] %vm724_vm5, %v12913_v55  ;;  %v3448_v37 = vsel %vm3447_vm15, 1, %v12971_v48  ;;  %vm3451_vm0 = vc.u32 %v3449_v21, %v3445_v42  ;;  %v4505_v51 = vsel %vm10281_vm14, %v4469_v22, %v10209_v14  ;;  %v3444_v63 = vshrl.u32 %v3440_v31, 16 }
 0x3be   : > { %753 = vst.msk [vmem:[#allocation3 + $0xe0] sm:$0xff] %vm724_vm5, %v12913_v55  ;;  %v3450_v30 = vadd.s32 %v3448_v37, %v3442_v5  ;;  %vm4362_vm3 = vcmp.ne.s32.totalorder %v10288_v24, 0  ;;  %vm4398_vm4 = vcmp.lt.s32.totalorder %v10288_v24, 0  ;;  %v10322_v14 = vsub.s32 %v10114_v12, %v3400_v38 }
 0x3bf   : > { %12980 = vst [vmem:[#allocation58_spill] sm:$0xff] %v10263_v32  ;;  %v2369_v32 = vadd.f32 %v12990_v13, %v12989_v19  ;;  %v3452_v13 = vsel %vm3451_vm0, 1, %v12971_v48  ;;  %v3466_v31 = vshrl.u32 %v10268_v54, 16  ;;  %v3428_v58 = vshrl.u32 %v3427_v8, 4  ;;  %v12993_v8 = vld [vmem:[#allocation92_spill] sm:$0xff]  ;;  %vm10360_vm7 = vmand %vm4398_vm4, %vm4362_vm3 }
 0x3c0   : > { %754 = vst.msk [vmem:[#allocation3 + $0xe8] sm:$0xff] %vm724_vm5, %v12913_v55  ;;  %v3446_v5 = vshrl.u32 %v10260_v18, 16  ;;  %v3454_v42 = vadd.s32 %v3452_v13, %v3450_v30  ;;  %v3469_v35 = vmul.u32 58254, %v3465_v43  ;;  %v3468_v53 = vmul.u32 14564, %v3465_v43  ;;  %v12994_v18 = vld [vmem:[#allocation95_spill] sm:$0xff]  ;;  %v12997_v43 = vld [vmem:[#allocation106_spill] sm:$0xff] }
 0x3c1   : > { %12982 = vst [vmem:[#allocation50_spill] sm:$0xff] %v10271_v7  ;;  %v3470_v52 = vmul.u32 14564, %v3466_v31  ;;  %v10332_v12 = vadd.s32 48, %v9954_v0  ;;  %v10337_v26 = vadd.f32 %v12993_v8, %v2369_v32  ;;  %v10340_v1 = vadd.f32 %v12994_v18, %v2370_v6  ;;  %v12998_v30 = vld [vmem:[#allocation105_spill] sm:$0xff] }
 0x3c2   : > { %755 = vst.msk [vmem:[#allocation3 + $0xf0] sm:$0xff] %vm724_vm5, %v12913_v55  ;;  %v3078_v22 = vpop.f32.mrf.mxu1  ;;  %v3455_v38 = vadd.s32 %v3454_v42, %v3444_v63  ;;  %v3472_v19 = vshll.u32 %v3469_v35, 16  ;;  %vm10343_vm6 = vcmp.lt.s32.totalorder %v4505_v51, 16  ;;  %v12999_v13 = vpack.c.bf16 %v12997_v43, %v12998_v30 }
 0x3c3   : > { %756 = vst.msk [vmem:[#allocation3 + $0xf8] sm:$0xff] %vm724_vm5, %v12913_v55  ;;  %v3168_v21 = vadd.f32 %v3078_v22, %v9967_v46  ;;  %v4470_v32 = vadd.s32 18, %v10288_v24  ;;  %v3471_v63 = vmul.u32 58254, %v3466_v31  ;;  %vm4363_vm8 = vcmp.ne.s32.totalorder %v10322_v14, 0 }
 0x3c4   : > { %757 = vst.msk [vmem:[#allocation3 + $0x100] sm:$0xff] %vm724_vm5, %v12913_v55  ;;  %v3429_v51 = vmul.u32 18, %v3428_v58  ;;  %v3456_v22 = vadd.s32 %v3455_v38, %v3446_v5  ;;  %v3474_v42 = vshll.u32 %v3470_v52, 16  ;;  %vm3476_vm9 = vc.u32 %v3468_v53, %v3472_v19 }
 0x3c5   : > { %12986 = vst [vmem:[#allocation51_spill] sm:$0xff] %v10294_v44  ;;  %v3208_v46 = vadd.f32 %v10315_v2, %v3168_v21  ;;  %v3478_v8 = vadd.s32 %v3472_v19, %v3468_v53  ;;  %v3494_v31 = vand.u32 65535, %v10332_v12  ;;  %vm4399_vm10 = vcmp.lt.s32.totalorder %v10322_v14, 0 }
 0x3c6   : > { %12988 = vst [vmem:[#allocation62_spill] sm:$0xff] %v10297_v17  ;;  %8410 = vmatmul.msk.bf16.gmra.mxu1 %vm679_vm2, %v12999_v13  ;;  %v3477_v18 = vsel %vm3476_vm9, 1, %v12971_v48  ;;  %v3495_v43 = vshrl.u32 %v10332_v12, 16  ;;  %v4506_v58 = vsel %vm10360_vm7, %v4470_v32, %v10288_v24  ;;  %v4471_v5 = vadd.s32 18, %v10322_v14  ;;  %vm10385_vm12 = vmand %vm4399_vm10, %vm4363_vm8 }
 0x3c7   : > { %758 = vst.msk [vmem:[#allocation3 + $0x108] sm:$0xff] %vm724_vm5, %v12913_v55  ;;  %v3244_v21 = vmax.f32 %v3208_v46, 0.0  ;;  %v3479_v53 = vadd.s32 %v3477_v18, %v3471_v63  ;;  %v10378_v19 = vsub.s32 %v10179_v23, %v3429_v51  ;;  %v3473_v13 = vshrl.u32 %v3469_v35, 16  ;;  %v13005_v23 = vld [vmem:[#allocation97_spill] sm:$0xff] }
 0x3c8   : > { %759 = vst.msk [vmem:[#allocation3 + $0x110] sm:$0xff] %vm724_vm5, %v12913_v55  ;;  %vm3480_vm11 = vc.u32 %v3478_v8, %v3474_v42  ;;  %v3497_v63 = vmul.u32 14564, %v3494_v31  ;;  %v3498_v6 = vmul.u32 58254, %v3494_v31  ;;  %v3475_v35 = vshrl.u32 %v3470_v52, 16 }
 0x3c9   : > { %760 = vst.msk [vmem:[#allocation3 + $0x118] sm:$0xff] %vm724_vm5, %v12913_v55  ;;  %v4649_v30 = vsel %vm10343_vm6, %v3244_v21, 0.0  ;;  %v3481_v32 = vsel %vm3480_vm11, 1, %v12971_v48  ;;  %vm4542_vm13 = vcmp.lt.s32.totalorder %v4506_v58, 16  ;;  %vm4364_vm14 = vcmp.ne.s32.totalorder %v10378_v19, 0 }
 0x3ca   : > { %761 = vst.msk [vmem:[#allocation3 + $0x120] sm:$0xff] %vm724_vm5, %v12913_v55  ;;  %v3080_v38 = vpop.f32.mrf.mxu1  ;;  %v3483_v42 = vadd.s32 %v3481_v32, %v3479_v53  ;;  %v3501_v18 = vshll.u32 %v3498_v6, 16  ;;  %vm4400_vm0 = vcmp.lt.s32.totalorder %v10378_v19, 0  ;;  %vm7060_vm8 = vcmask 523266  }
 0x3cb   : > { %762 = vst.msk [vmem:[#allocation3 + $0x128] sm:$0xff] %vm724_vm5, %v12913_v55  ;;  %v3169_v37 = vadd.f32 %v3080_v38, %v9971_v40  ;;  %v10402_v38 = vadd.s32 56, %v9954_v0  ;;  %vm10418_vm7 = vmand %vm4400_vm0, %vm4364_vm14  ;;  %vm7063_vm14 = vcmask 517120   ;;  %vm7070_vm0 = vcmask 523268  }
 0x3cc   : > { %763 = vst.msk [vmem:[#allocation3 + $0x130] sm:$0xff] %vm724_vm5, %v12913_v55  ;;  %v3484_v31 = vadd.s32 %v3483_v42, %v3473_v13  ;;  %vm3505_vm15 = vc.u32 %v3497_v63, %v3501_v18  ;;  %v3507_v53 = vadd.s32 %v3501_v18, %v3497_v63  ;;  %v3502_v13 = vshrl.u32 %v3498_v6, 16  ;;  %v13008_v18 = vld [vmem:[#allocation109_spill] sm:$0xff] }
 0x3cd   : > { %764 = vst.msk [vmem:[#allocation3 + $0x138] sm:$0xff] %vm724_vm5, %v12913_v55  ;;  %v3209_v40 = vadd.f32 %v10315_v2, %v3169_v37  ;;  %v3523_v37 = vand.u32 65535, %v10402_v38 }
 0x3ce   : > { %765 = vst.msk [vmem:[#allocation3 + $0x140] sm:$0xff] %vm724_vm5, %v12913_v55  ;;  %v3457_v55 = vshrl.u32 %v3456_v22, 4  ;;  %v13004_v22 = vld [vmem:[#allocation101_spill] sm:$0xff] }
 0x3cf   : > { %7056 = vst.msk [vmem:[#allocation4] sm:$0xff] %vm679_vm2, %v3244_v21  ;;  %v10392_v51 = vadd.f32 %v13005_v23, %v13004_v22  ;;  %v3499_v21 = vmul.u32 14564, %v3495_v43  ;;  %v3245_v22 = vmax.f32 %v3209_v40, 0.0  ;;  %v10424_v40 = vmul.u32 58254, %v3523_v37 }
 0x3d0   : > { %4685 = vst.msk [vmem:[#allocation3 + $0x13] sm:$0xff] %vm724_vm5, %v4649_v30  ;;  %v3458_v46 = vmul.u32 18, %v3457_v55  ;;  %v3500_v55 = vmul.u32 58254, %v3495_v43  ;;  %v4507_v30 = vsel %vm10385_vm12, %v4471_v5, %v10322_v14  ;;  %v3506_v43 = vsel %vm3505_vm15, 1, %v12971_v48 }
 0x3d1   : > { %v3503_v52 = vshll.u32 %v3499_v21, 16  ;;  %v4650_v58 = vsel %vm4542_vm13, %v3245_v22, 0.0  ;;  %7057 = vst.msk [vmem:[#allocation4 + $0x8] sm:$0xff] %vm679_vm2, %v3245_v22  ;;  %v4472_v14 = vadd.s32 18, %v10378_v19  ;;  %v3504_v42 = vshrl.u32 %v3499_v21, 16 }
 0x3d2   : > { %v10396_v8 = vsub.s32 %v10227_v47, %v3458_v46  ;;  %v3485_v47 = vadd.s32 %v3484_v31, %v3475_v35  ;;  %v3508_v5 = vadd.s32 %v3506_v43, %v3500_v55  ;;  %4686 = vst.msk [vmem:[#allocation3 + $0x1b] sm:$0xff] %vm724_vm5, %v4650_v58  ;;  %v3083_v46 = vpop.f32.mrf.mxu1  ;;  %v3524_v35 = vshrl.u32 %v10402_v38, 16  ;;  %v13009_v31 = vld [vmem:[#allocation108_spill] sm:$0xff] }
 0x3d3   : > { %vm3509_vm6 = vc.u32 %v3507_v53, %v3503_v52  ;;  %v3170_v24 = vadd.f32 %v3083_v46, %v9979_v36  ;;  %v10427_v55 = vadd.s32 64, %v9954_v0  ;;  %v13010_v22 = vpack.c.bf16 %v13008_v18, %v13009_v31 }
 0x3d4   : > { %vm4365_vm3 = vcmp.ne.s32.totalorder %v10396_v8, 0  ;;  %vm4401_vm4 = vcmp.lt.s32.totalorder %v10396_v8, 0  ;;  %v3486_v63 = vshrl.u32 %v3485_v47, 4  ;;  %v3510_v23 = vsel %vm3509_vm6, 1, %v12971_v48 }
 0x3d5   : > { %v3512_v6 = vadd.s32 %v3510_v23, %v3508_v5  ;;  %v3210_v36 = vadd.f32 %v10315_v2, %v3170_v24  ;;  %v3526_v52 = vmul.u32 14564, %v3523_v37  ;;  %v10434_v47 = vmul.u32 14564, %v3524_v35  ;;  %vm10448_vm10 = vmand %vm4401_vm4, %vm4365_vm3 }
 0x3d6   : > { %8411 = vmatmul.msk.bf16.gmra.mxu1 %vm679_vm2, %v13010_v22  ;;  %vm10436_vm9 = vcmp.lt.s32.totalorder %v4507_v30, 16  ;;  %v4508_v21 = vsel %vm10418_vm7, %v4472_v14, %v10378_v19  ;;  %v3530_v58 = vshll.u32 %v10424_v40, 16  ;;  %v4473_v30 = vadd.s32 18, %v10396_v8 }
 0x3d7   : > { %v3513_v53 = vadd.s32 %v3512_v6, %v3502_v13  ;;  %v3246_v5 = vmax.f32 %v3210_v36, 0.0  ;;  %v3487_v37 = vmul.u32 18, %v3486_v63  ;;  %v3529_v24 = vmul.u32 58254, %v3524_v35  ;;  %v4781_v23 = vld [vmem:[#allocation3 + $0x11] sm:$0xff] }
 0x3d8   : > { %v4723_v18 = vld [vmem:[#allocation3 + $0x10] sm:$0xff]  ;;  %v3532_v14 = vshll.u32 %v10434_v47, 16  ;;  %v3552_v13 = vand.u32 65535, %v10427_v55  ;;  %v3553_v6 = vshrl.u32 %v10427_v55, 16  ;;  %vm10459_vm11 = vc.u32 %v3526_v52, %v3530_v58  ;;  %v13024_v63 = vld [vmem:[#allocation110_spill] sm:$0xff] }
 0x3d9   : > { %v5169_v32 = vld [vmem:[#allocation3 + $0x12] sm:$0xff]  ;;  %v3514_v19 = vadd.s32 %v3513_v53, %v3504_v42  ;;  %v4651_v36 = vsel %vm10436_vm9, %v3246_v5, 0.0  ;;  %7061 = vst.msk [vmem:[#allocation4 + $0xe] sm:$0xfc] %vm7060_vm8, %v3246_v5  ;;  %v5170_v17 = vld [vmem:[#allocation3 + $0x1a] sm:$0xff]  ;;  %v3536_v35 = vadd.s32 %v3530_v58, %v3526_v52  ;;  %vm10473_vm12 = vcmp.lt.s32.totalorder %v4508_v21, 16 }
 0x3da   : > { %v4782_v31 = vld [vmem:[#allocation3 + $0x19] sm:$0xff]  ;;  %4687 = vst.msk [vmem:[#allocation3 + $0x23] sm:$0xff] %vm724_vm5, %v4651_v36  ;;  %v3085_v44 = vpop.f32.mrf.mxu1  ;;  %v5204_v28 = vpack.c.bf16 %v5170_v17, %v5169_v32  ;;  %v13018_v5 = vld [vmem:[#allocation25_spill] sm:$0xff]  ;;  %v10483_v17 = vsub.s32 %v10268_v54, %v3487_v37  ;;  %v10507_v37 = vadd.s32 72, %v9954_v0  ;;  %vm722_vm7 = vcmask 521216  }
 0x3db   : > { %v4724_v22 = vld [vmem:[#allocation3 + $0x18] sm:$0xff]  ;;  %v4816_v7 = vpack.c.bf16 %v4782_v31, %v4781_v23  ;;  %v3515_v61 = vshrl.u32 %v3514_v19, 4  ;;  %v10470_v60 = vadd.f32 %v13019_v39, %v13018_v5  ;;  %v3171_v27 = vadd.f32 %v3085_v44, %v9982_v16 }
 0x3dc   : > { %v13017_v42 = vld [vmem:[#allocation98_spill] sm:$0xff]  ;;  %v4758_v43 = vpack.c.bf16 %v4724_v22, %v4723_v18  ;;  %v3531_v39 = vshrl.u32 %v10424_v40, 16  ;;  %v3535_v16 = vsel %vm10459_vm11, 1, %v12971_v48  ;;  %8481 = vmatmul.msk.bf16.gmra.mxu0 %vm724_vm5, %v5204_v28  ;;  %vm3538_vm13 = vc.u32 %v3536_v35, %v3532_v14  ;;  %v13025_v35 = vld [vmem:[#allocation107_spill] sm:$0xff] }
 0x3dd   : > { %v10465_v53 = vadd.f32 %v13017_v42, %v10392_v51  ;;  %v4509_v51 = vsel %vm10448_vm10, %v4473_v30, %v10396_v8  ;;  %8429 = vmatmul.msk.bf16.gmra.mxu2 %vm724_vm5, %v4816_v7  ;;  %v3516_v52 = vmul.u32 18, %v3515_v61  ;;  %v3211_v44 = vadd.f32 %v10315_v2, %v3171_v27 }
 0x3de   : > { %8455 = vmatmul.msk.bf16.gmra.mxu3 %vm724_vm5, %v4758_v43  ;;  %v3537_v21 = vadd.s32 %v3535_v16, %v3529_v24  ;;  %v3555_v8 = vmul.u32 14564, %v3552_v13  ;;  %v3539_v54 = vsel %vm3538_vm13, 1, %v12971_v48  ;;  %v10495_v61 = vmul.u32 58254, %v3552_v13 }
 0x3df   : > { %v10492_v7 = vsub.s32 %v10332_v12, %v3516_v52  ;;  %v10497_v40 = vmul.u32 14564, %v3553_v6  ;;  %v3247_v58 = vmax.f32 %v3211_v44, 0.0  ;;  %vm10499_vm15 = vcmp.lt.s32.totalorder %v4509_v51, 16 }
 0x3e0   : > { %v3533_v28 = vshrl.u32 %v10434_v47, 16  ;;  %v3541_v27 = vadd.s32 %v3539_v54, %v3537_v21  ;;  %vm4366_vm3 = vcmp.ne.s32.totalorder %v10483_v17, 0  ;;  %v3558_v30 = vmul.u32 58254, %v3553_v6 }
 0x3e1   : > { %v3559_v12 = vshll.u32 %v10495_v61, 16  ;;  %v4652_v24 = vsel %vm10473_vm12, %v3247_v58, 0.0  ;;  %7062 = vst.msk [vmem:[#allocation4 + $0x16] sm:$0xff] %vm679_vm2, %v3247_v58  ;;  %vm4402_vm4 = vcmp.lt.s32.totalorder %v10483_v17, 0  ;;  %v10514_v23 = vadd.s32 18, %v10483_v17  ;;  %v4783_v21 = vld [vmem:[#allocation3 + $0x21] sm:$0xff] }
 0x3e2   : > { %v3542_v47 = vadd.s32 %v3541_v27, %v3531_v39  ;;  %4688 = vst.msk [vmem:[#allocation3 + $0x2b] sm:$0xff] %vm724_vm5, %v4652_v24  ;;  %v3088_v18 = vpop.f32.mrf.mxu1  ;;  %vm4367_vm6 = vcmp.ne.s32.totalorder %v10492_v7, 0  ;;  %v3561_v32 = vshll.u32 %v10497_v40, 16  ;;  %vm4403_vm10 = vcmp.lt.s32.totalorder %v10492_v7, 0  ;;  %vm10535_vm11 = vmand %vm4402_vm4, %vm4366_vm3  ;;  %v4725_v58 = vld [vmem:[#allocation3 + $0x20] sm:$0xff] }
 0x3e3   : > { %vm3563_vm9 = vc.u32 %v3555_v8, %v3559_v12  ;;  %v3172_v45 = vadd.f32 %v3088_v18, %v9987_v56  ;;  %v4475_v13 = vadd.s32 18, %v10492_v7  ;;  %v3565_v6 = vadd.s32 %v3559_v12, %v3555_v8  ;;  %vm10550_vm13 = vmand %vm4403_vm10, %vm4367_vm6 }
 0x3e4   : > { %v3543_v19 = vadd.s32 %v3542_v47, %v3533_v28  ;;  %v3564_v14 = vsel %vm3563_vm9, 1, %v12971_v48  ;;  %v3581_v31 = vand.u32 65535, %v10507_v37  ;;  %v13026_v42 = vpack.c.bf16 %v13024_v63, %v13025_v35  ;;  %v5171_v28 = vld [vmem:[#allocation3 + $0x22] sm:$0xff] }
 0x3e5   : > { %v3566_v36 = vadd.s32 %v3564_v14, %v3558_v30  ;;  %v3212_v22 = vadd.f32 %v10315_v2, %v3172_v45  ;;  %v3560_v56 = vshrl.u32 %v10495_v61, 16  ;;  %v3582_v5 = vshrl.u32 %v10507_v37, 16  ;;  %v13031_v14 = vld [vmem:[#allocation93_spill] sm:$0xff] }
 0x3e6   : > { %8412 = vmatmul.msk.bf16.gmra.mxu1 %vm679_vm2, %v13026_v42  ;;  %v3544_v43 = vshrl.u32 %v3543_v19, 4  ;;  %v3562_v52 = vshrl.u32 %v10497_v40, 16  ;;  %vm3567_vm12 = vc.u32 %v3565_v6, %v3561_v32  ;;  %v10540_v39 = vmul.u32 58254, %v3581_v31 }
 0x3e7   : > { %v10543_v16 = vadd.s32 80, %v9954_v0  ;;  %v3248_v44 = vmax.f32 %v3212_v22, 0.0  ;;  %v3568_v54 = vsel %vm3567_vm12, 1, %v12971_v48  ;;  %v3584_v61 = vmul.u32 14564, %v3581_v31 }
 0x3e8   : > { %v3545_v8 = vmul.u32 18, %v3544_v43  ;;  %v3570_v27 = vadd.s32 %v3568_v54, %v3566_v36  ;;  %v10554_v30 = vmul.u32 14564, %v3582_v5  ;;  %v3587_v12 = vmul.u32 58254, %v3582_v5  ;;  %v13032_v36 = vld [vmem:[#allocation96_spill] sm:$0xff] }
 0x3e9   : > { %v3588_v24 = vshll.u32 %v10540_v39, 16  ;;  %v4653_v47 = vsel %vm10499_vm15, %v3248_v44, 0.0  ;;  %7064 = vst.msk [vmem:[#allocation4 + $0x1e] sm:$0x3] %vm7063_vm14, %v3248_v44  ;;  %v4510_v18 = vsel %vm10535_vm11, %v10514_v23, %v10483_v17  ;;  %v4784_v32 = vld [vmem:[#allocation3 + $0x29] sm:$0xff]  ;;  %v10566_v6 = vadd.f32 %v13031_v14, %v10337_v26 }
 0x3ea   : > { %v4726_v45 = vld [vmem:[#allocation3 + $0x28] sm:$0xff]  ;;  %v10570_v31 = vadd.f32 %v13032_v36, %v10340_v1  ;;  %4689 = vst.msk [vmem:[#allocation3 + $0x33] sm:$0xff] %vm724_vm5, %v4653_v47  ;;  %v3090_v46 = vpop.f32.mrf.mxu1  ;;  %v4817_v22 = vpack.c.bf16 %v4784_v32, %v4783_v21  ;;  %v3571_v42 = vadd.s32 %v3570_v27, %v3560_v56  ;;  %v4511_v26 = vsel %vm10550_vm13, %v4475_v13, %v10492_v7  ;;  %v13033_v1 = vld [vmem:[#allocation99_spill] sm:$0xff] }
 0x3eb   : > { %v5172_v19 = vld [vmem:[#allocation3 + $0x2a] sm:$0xff]  ;;  %v4759_v63 = vpack.c.bf16 %v4726_v45, %v4725_v58  ;;  %7071 = vst.msk [vmem:[#allocation4 + $0x1c] sm:$0xf0] %vm7070_vm0, %v3248_v44  ;;  %v3173_v17 = vadd.f32 %v3090_v46, %v9990_v9  ;;  %v10579_v23 = vsub.s32 %v10402_v38, %v3545_v8  ;;  %v10583_v43 = vadd.f32 %v13033_v1, %v10465_v53  ;;  %v13034_v9 = vld [vmem:[#allocation102_spill] sm:$0xff] }
 0x3ec   : > { %v5205_v35 = vpack.c.bf16 %v5172_v19, %v5171_v28  ;;  %v3572_v56 = vadd.s32 %v3571_v42, %v3562_v52  ;;  %v3590_v5 = vshll.u32 %v10554_v30, 16  ;;  %vm3592_vm15 = vc.u32 %v3584_v61, %v3588_v24  ;;  %v8815_v45 = vld [vmem:[%s12742_s5 + $0x48] sm:$0xff]  ;;  %v8813_v52 = vld [vmem:[%s12742_s5 + $0x38] sm:$0xff] }
 0x3ed   : > { %8430 = vmatmul.msk.bf16.gmra.mxu2 %vm724_vm5, %v4817_v22  ;;  %v10590_v51 = vadd.f32 %v13034_v9, %v10470_v60  ;;  %v3213_v7 = vadd.f32 %v10315_v2, %v3173_v17  ;;  %vm10593_vm3 = vcmp.lt.s32.totalorder %v4510_v18, 16  ;;  %v3593_v53 = vsel %vm3592_vm15, 1, %v12971_v48  ;;  %v13039_v17 = vld [vmem:[#allocation112_spill] sm:$0xff]  ;;  %5556 = vmatpush.bf16.msra.mxu1 %v8813_v52  ;;  %v13053_v52 = vld [vmem:[#allocation114_spill] sm:$0xff] }
 0x3ee   : > { %8456 = vmatmul.msk.bf16.gmra.mxu3 %vm724_vm5, %v4759_v63  ;;  %8482 = vmatmul.msk.bf16.gmra.mxu0 %vm724_vm5, %v5205_v35  ;;  %v3594_v13 = vadd.s32 %v3588_v24, %v3584_v61  ;;  %vm10599_vm4 = vcmp.lt.s32.totalorder %v4511_v26, 16  ;;  %vm7073_vm6 = vcmask 519168   ;;  %v3573_v44 = vshrl.u32 %v3572_v56, 4  ;;  %v13040_v26 = vld [vmem:[#allocation111_spill] sm:$0xff] }
 0x3ef   : > { %v3589_v60 = vshrl.u32 %v10540_v39, 16  ;;  %v3595_v21 = vadd.s32 %v3593_v53, %v3587_v12  ;;  %v3610_v8 = vand.u32 65535, %v10543_v16  ;;  %v3249_v54 = vmax.f32 %v3213_v7, 0.0  ;;  %5815 = vmatpush.bf16.msra.mxu2 %v8815_v45 }
 0x3f0   : > { %vm4368_vm9 = vcmp.ne.s32.totalorder %v10579_v23, 0  ;;  %vm3596_vm10 = vc.u32 %v3594_v13, %v3590_v5  ;;  %v3611_v58 = vshrl.u32 %v10543_v16, 16  ;;  %vm7080_vm11 = vcmask 523270  }
 0x3f1   : > { %v3574_v28 = vmul.u32 18, %v3573_v44  ;;  %v3597_v61 = vsel %vm3596_vm10, 1, %v12971_v48  ;;  %v3613_v40 = vmul.u32 14564, %v3610_v8  ;;  %v3614_v27 = vmul.u32 58254, %v3610_v8  ;;  %7072 = vst.msk [vmem:[#allocation4 + $0x24] sm:$0xff] %vm679_vm2, %v3249_v54  ;;  %v4785_v44 = vld [vmem:[#allocation3 + $0x31] sm:$0xff] }
 0x3f2   : > { %v4654_v24 = vsel %vm10593_vm3, %v3249_v54, 0.0  ;;  %v3591_v39 = vshrl.u32 %v10554_v30, 16  ;;  %v3599_v12 = vadd.s32 %v3597_v61, %v3595_v21  ;;  %v10612_v47 = vmul.u32 14564, %v3611_v58  ;;  %v3093_v18 = vpop.f32.mrf.mxu1  ;;  %v4727_v21 = vld [vmem:[#allocation3 + $0x30] sm:$0xff] }
 0x3f3   : > { %4690 = vst.msk [vmem:[#allocation3 + $0x3b] sm:$0xff] %vm724_vm5, %v4654_v24  ;;  %v10616_v32 = vsub.s32 %v10427_v55, %v3574_v28  ;;  %v3616_v19 = vmul.u32 58254, %v3611_v58  ;;  %v3617_v14 = vshll.u32 %v3614_v27, 16  ;;  %v10622_v36 = vadd.s32 88, %v9954_v0  ;;  %v5173_v8 = vld [vmem:[#allocation3 + $0x32] sm:$0xff] }
 0x3f4   : > { %v3174_v30 = vadd.f32 %v3093_v18, %v10001_v25  ;;  %vm4404_vm12 = vcmp.lt.s32.totalorder %v10579_v23, 0  ;;  %v3600_v46 = vadd.s32 %v3599_v12, %v3589_v60  ;;  %v3619_v22 = vshll.u32 %v10612_v47, 16 }
 0x3f5   : > { %v4476_v63 = vadd.s32 18, %v10579_v23  ;;  %v3618_v55 = vshrl.u32 %v3614_v27, 16  ;;  %v3620_v35 = vshrl.u32 %v10612_v47, 16  ;;  %vm3621_vm13 = vc.u32 %v3613_v40, %v3617_v14  ;;  %vm10637_vm15 = vmand %vm4404_vm12, %vm4368_vm9 }
 0x3f6   : > { %v3214_v42 = vadd.f32 %v10315_v2, %v3174_v30  ;;  %v13041_v1 = vpack.c.bf16 %v13039_v17, %v13040_v26  ;;  %v3601_v25 = vadd.s32 %v3600_v46, %v3591_v39  ;;  %v3622_v56 = vsel %vm3621_vm13, 1, %v12971_v48 }
 0x3f7   : > { %v3623_v5 = vadd.s32 %v3617_v14, %v3613_v40  ;;  %vm4369_vm3 = vcmp.ne.s32.totalorder %v10616_v32, 0  ;;  %v3624_v7 = vadd.s32 %v3622_v56, %v3616_v19  ;;  %v3639_v38 = vand.u32 65535, %v10622_v36  ;;  %v13044_v40 = vld [vmem:[#allocation113_spill] sm:$0xff] }
 0x3f8   : > { %8413 = vmatmul.msk.bf16.gmra.mxu1 %vm679_vm2, %v13041_v1  ;;  %v3640_v53 = vshrl.u32 %v10622_v36, 16  ;;  %v3250_v13 = vmax.f32 %v3214_v42, 0.0  ;;  %vm4405_vm10 = vcmp.lt.s32.totalorder %v10616_v32, 0  ;;  %v3602_v60 = vshrl.u32 %v3601_v25, 4 }
 0x3f9   : > { %vm3625_vm13 = vc.u32 %v3623_v5, %v3619_v22  ;;  %v3642_v58 = vmul.u32 14564, %v3639_v38  ;;  %v10646_v28 = vmul.u32 58254, %v3639_v38  ;;  %v10652_v27 = vadd.f32 %v13044_v40, %v9976_v33  ;;  %vm10682_vm9 = vmand %vm4405_vm10, %vm4369_vm3 }
 0x3fa   : > { %v3626_v54 = vsel %vm3625_vm13, 1, %v12971_v48  ;;  %v10648_v61 = vmul.u32 14564, %v3640_v53  ;;  %v4655_v24 = vsel %vm10599_vm4, %v3250_v13, 0.0  ;;  %7074 = vst.msk [vmem:[#allocation4 + $0x2c] sm:$0xf] %vm7073_vm6, %v3250_v13  ;;  %v4512_v39 = vsel %vm10637_vm15, %v4476_v63, %v10579_v23  ;;  %v4786_v12 = vld [vmem:[#allocation3 + $0x39] sm:$0xff]  ;;  %v3095_v19 = vpop.f32.mrf.mxu1 }
 0x3fb   : > { %v4728_v47 = vld [vmem:[#allocation3 + $0x38] sm:$0xff]  ;;  %v3628_v45 = vadd.s32 %v3626_v54, %v3624_v7  ;;  %4691 = vst.msk [vmem:[#allocation3 + $0x43] sm:$0xff] %vm724_vm5, %v4655_v24  ;;  %v4818_v14 = vpack.c.bf16 %v4786_v12, %v4785_v44  ;;  %v3603_v46 = vmul.u32 18, %v3602_v60  ;;  %v3175_v22 = vadd.f32 %v3095_v19, %v10004_v3 }
 0x3fc   : > { %v5174_v18 = vld [vmem:[#allocation3 + $0x3a] sm:$0xff]  ;;  %v4760_v30 = vpack.c.bf16 %v4728_v47, %v4727_v21  ;;  %7081 = vst.msk [vmem:[#allocation4 + $0x2a] sm:$0xc0] %vm7080_vm11, %v3250_v13  ;;  %v3645_v63 = vmul.u32 58254, %v3640_v53  ;;  %v3646_v42 = vshll.u32 %v10646_v28, 16  ;;  %vm10667_vm4 = vcmp.lt.s32.totalorder %v4512_v39, 16 }
 0x3fd   : > { %v5206_v33 = vpack.c.bf16 %v5174_v18, %v5173_v8  ;;  %v3629_v23 = vadd.s32 %v3628_v45, %v3618_v55  ;;  %8431 = vmatmul.msk.bf16.gmra.mxu2 %vm724_vm5, %v4818_v14  ;;  %v4477_v26 = vadd.s32 18, %v10616_v32  ;;  %v3604_v1 = vsub.s32 %v10507_v37, %v3603_v46 }
 0x3fe   : > { %8457 = vmatmul.msk.bf16.gmra.mxu3 %vm724_vm5, %v4760_v30  ;;  %v3648_v25 = vshll.u32 %v10648_v61, 16  ;;  %v3215_v3 = vadd.f32 %v10315_v2, %v3175_v22  ;;  %vm3650_vm12 = vc.u32 %v3642_v58, %v3646_v42  ;;  %v10687_v5 = vadd.s32 96, %v9954_v0 }
 0x3ff   : > { %8483 = vmatmul.msk.bf16.gmra.mxu0 %vm724_vm5, %v5206_v33  ;;  %v3630_v56 = vadd.s32 %v3629_v23, %v3620_v35  ;;  %vm4370_vm15 = vcmp.ne.s32.totalorder %v3604_v1, 0  ;;  %vm4406_vm13 = vcmp.lt.s32.totalorder %v3604_v1, 0  ;;  %v4478_v37 = vadd.s32 18, %v3604_v1 }
 0x400   : > { %v3651_v9 = vsel %vm3650_vm12, 1, %v12971_v48  ;;  %v3251_v7 = vmax.f32 %v3215_v3, 0.0  ;;  %v3652_v53 = vadd.s32 %v3646_v42, %v3642_v58  ;;  %v4513_v44 = vsel %vm10682_vm9, %v4477_v26, %v10616_v32  ;;  %vm10693_vm3 = vmand %vm4406_vm13, %vm4370_vm15 }
 0x401   : > { %v3631_v38 = vshrl.u32 %v3630_v56, 4  ;;  %v3653_v13 = vadd.s32 %v3651_v9, %v3645_v63  ;;  %v3647_v60 = vshrl.u32 %v10646_v28, 16  ;;  %v3668_v21 = vand.u32 65535, %v10687_v5 }
 0x402   : > { %v3669_v8 = vshrl.u32 %v10687_v5, 16  ;;  %v4656_v54 = vsel %vm10667_vm4, %v3251_v7, 0.0  ;;  %7082 = vst.msk [vmem:[#allocation4 + $0x32] sm:$0xff] %vm679_vm2, %v3251_v7  ;;  %v3649_v58 = vshrl.u32 %v10648_v61, 16  ;;  %vm3654_vm10 = vc.u32 %v3652_v53, %v3648_v25  ;;  %v3098_v40 = vpop.f32.mrf.mxu1  ;;  %v4787_v26 = vld [vmem:[#allocation3 + $0x41] sm:$0xff] }
 0x403   : > { %v10705_v32 = vadd.s32 104, %v9954_v0  ;;  %4692 = vst.msk [vmem:[#allocation3 + $0x4b] sm:$0xff] %vm724_vm5, %v4656_v54  ;;  %v3632_v24 = vmul.u32 18, %v3631_v38  ;;  %v3655_v28 = vsel %vm3654_vm10, 1, %v12971_v48  ;;  %v3671_v39 = vmul.u32 14564, %v3668_v21  ;;  %v4729_v3 = vld [vmem:[#allocation3 + $0x40] sm:$0xff] }
 0x404   : > { %v3672_v12 = vmul.u32 58254, %v3668_v21  ;;  %v3176_v47 = vadd.f32 %v3098_v40, %v10019_v29  ;;  %v4514_v18 = vsel %vm10693_vm3, %v4478_v37, %v3604_v1  ;;  %v3657_v45 = vadd.s32 %v3655_v28, %v3653_v13  ;;  %v5175_v55 = vld [vmem:[#allocation3 + $0x42] sm:$0xff] }
 0x405   : > { %v10712_v19 = vmul.u32 14564, %v3669_v8  ;;  %vm10714_vm4 = vcmp.lt.s32.totalorder %v4513_v44, 16  ;;  %v10719_v14 = vsub.s32 %v10543_v16, %v3632_v24  ;;  %v3674_v30 = vmul.u32 58254, %v3669_v8  ;;  %v13060_v8 = vld [vmem:[#allocation116_spill] sm:$0xff] }
 0x406   : > { %v3675_v33 = vshll.u32 %v3672_v12, 16  ;;  %v3216_v46 = vadd.f32 %v10315_v2, %v3176_v47  ;;  %v13054_v29 = vpack.c.bf16 %v9911_v62, %v13053_v52  ;;  %v3658_v22 = vadd.s32 %v3657_v45, %v3647_v60  ;;  %v13059_v60 = vld [vmem:[#allocation103_spill] sm:$0xff] }
 0x407   : > { %v3676_v23 = vshrl.u32 %v3672_v12, 16  ;;  %v3677_v63 = vshll.u32 %v10712_v19, 16  ;;  %vm10727_vm9 = vcmp.lt.s32.totalorder %v4514_v18, 16  ;;  %vm4371_vm12 = vcmp.ne.s32.totalorder %v10719_v14, 0 }
 0x408   : > { %8414 = vmatmul.msk.bf16.gmra.mxu1 %vm679_vm2, %v13054_v29  ;;  %vm4407_vm15 = vcmp.lt.s32.totalorder %v10719_v14, 0  ;;  %vm3679_vm13 = vc.u32 %v3671_v39, %v3675_v33  ;;  %v3697_v16 = vand.u32 65535, %v10705_v32  ;;  %v3252_v17 = vmax.f32 %v3216_v46, 0.0 }
 0x409   : > { %v3659_v62 = vadd.s32 %v3658_v22, %v3649_v58  ;;  %v3680_v1 = vsel %vm3679_vm13, 1, %v12971_v48  ;;  %v3681_v25 = vadd.s32 %v3675_v33, %v3671_v39  ;;  %vm10735_vm3 = vmand %vm4407_vm15, %vm4371_vm12  ;;  %v10740_v37 = vadd.s32 18, %v10719_v14 }
 0x40a   : > { %v3678_v9 = vshrl.u32 %v10712_v19, 16  ;;  %v3682_v7 = vadd.s32 %v3680_v1, %v3674_v30  ;;  %v3698_v38 = vshrl.u32 %v10705_v32, 16  ;;  %v4657_v53 = vsel %vm10714_vm4, %v3252_v17, 0.0  ;;  %7083 = vst.msk [vmem:[#allocation4 + $0x3a] sm:$0x3f] %vm722_vm7, %v3252_v17  ;;  %v4788_v13 = vld [vmem:[#allocation3 + $0x49] sm:$0xff]  ;;  %v3100_v58 = vpop.f32.mrf.mxu1 }
 0x40b   : > { %v4730_v44 = vld [vmem:[#allocation3 + $0x48] sm:$0xff]  ;;  %vm3683_vm10 = vc.u32 %v3681_v25, %v3677_v63  ;;  %v10749_v21 = vadd.f32 %v13059_v60, %v10590_v51  ;;  %v10753_v54 = vadd.f32 %v13060_v8, %v10652_v27  ;;  %4693 = vst.msk [vmem:[#allocation3 + $0x53] sm:$0xff] %vm724_vm5, %v4657_v53  ;;  %v4819_v40 = vpack.c.bf16 %v4788_v13, %v4787_v26 }
 0x40c   : > { %v5176_v35 = vld [vmem:[#allocation3 + $0x4a] sm:$0xff]  ;;  %v4761_v24 = vpack.c.bf16 %v4730_v44, %v4729_v3  ;;  %v3700_v39 = vmul.u32 14564, %v3697_v16  ;;  %v3177_v12 = vadd.f32 %v3100_v58, %v10048_v20  ;;  %v3660_v47 = vshrl.u32 %v3659_v62, 4 }
 0x40d   : > { %v5207_v28 = vpack.c.bf16 %v5176_v35, %v5175_v55  ;;  %v3684_v18 = vsel %vm3683_vm10, 1, %v12971_v48  ;;  %v3701_v45 = vmul.u32 58254, %v3697_v16  ;;  %8432 = vmatmul.msk.bf16.gmra.mxu2 %vm724_vm5, %v4819_v40  ;;  %v4515_v51 = vsel %vm10735_vm3, %v10740_v37, %v10719_v14 }
 0x40e   : > { %8458 = vmatmul.msk.bf16.gmra.mxu3 %vm724_vm5, %v4761_v24  ;;  %v3686_v27 = vadd.s32 %v3684_v18, %v3682_v7  ;;  %v3702_v19 = vmul.u32 14564, %v3698_v38  ;;  %v10765_v61 = vadd.s32 112, %v9954_v0  ;;  %v3217_v20 = vadd.f32 %v10315_v2, %v3177_v12 }
 0x40f   : > { %8484 = vmatmul.msk.bf16.gmra.mxu0 %vm724_vm5, %v5207_v28  ;;  %v3661_v30 = vmul.u32 18, %v3660_v47  ;;  %v3703_v33 = vmul.u32 58254, %v3698_v38  ;;  %v3704_v46 = vshll.u32 %v3701_v45, 16  ;;  %v3705_v29 = vshrl.u32 %v3701_v45, 16 }
 0x410   : > { %v3687_v52 = vadd.s32 %v3686_v27, %v3676_v23  ;;  %v3706_v22 = vshll.u32 %v3702_v19, 16  ;;  %v3726_v63 = vand.u32 65535, %v10765_v61  ;;  %v3253_v16 = vmax.f32 %v3217_v20, 0.0 }
 0x411   : > { %v3662_v14 = vsub.s32 %v10622_v36, %v3661_v30  ;;  %vm3708_vm4 = vc.u32 %v3700_v39, %v3704_v46  ;;  %v3710_v17 = vadd.s32 %v3704_v46, %v3700_v39  ;;  %v3727_v1 = vshrl.u32 %v10765_v61, 16 }
 0x412   : > { %v3688_v26 = vadd.s32 %v3687_v52, %v3678_v9  ;;  %v3709_v62 = vsel %vm3708_vm4, 1, %v12971_v48  ;;  %v3729_v25 = vmul.u32 14564, %v3726_v63  ;;  %v4658_v3 = vsel %vm10727_vm9, %v3253_v16, 0.0  ;;  %7088 = vst.msk [vmem:[#allocation4 + $0x40] sm:$0xff] %vm679_vm2, %v3253_v16  ;;  %v3103_v55 = vpop.f32.mrf.mxu1  ;;  %v4789_v18 = vld [vmem:[#allocation3 + $0x51] sm:$0xff] }
 0x413   : > { %vm4372_vm12 = vcmp.ne.s32.totalorder %v3662_v14, 0  ;;  %vm4408_vm15 = vcmp.lt.s32.totalorder %v3662_v14, 0  ;;  %v4480_v23 = vadd.s32 18, %v3662_v14  ;;  %4694 = vst.msk [vmem:[#allocation3 + $0x5b] sm:$0xff] %vm724_vm5, %v4658_v3  ;;  %v3711_v37 = vadd.s32 %v3709_v62, %v3703_v33  ;;  %v4731_v45 = vld [vmem:[#allocation3 + $0x50] sm:$0xff] }
 0x414   : > { %vm10777_vm13 = vmand %vm4408_vm15, %vm4372_vm12  ;;  %v3689_v56 = vshrl.u32 %v3688_v26, 4  ;;  %vm3712_vm3 = vc.u32 %v3710_v17, %v3706_v22  ;;  %v10781_v9 = vmul.u32 58254, %v3726_v63  ;;  %v3178_v42 = vadd.f32 %v3103_v55, %v10055_v11 }
 0x415   : > { %v4516_v7 = vsel %vm10777_vm13, %v4480_v23, %v3662_v14  ;;  %v3713_v38 = vsel %vm3712_vm3, 1, %v12971_v48  ;;  %v10787_v53 = vmul.u32 14564, %v3727_v1  ;;  %v2374_v13 = vadd.f32 %v10008_v59, %v10035_v41 }
 0x416   : > { %v3690_v44 = vmul.u32 18, %v3689_v56  ;;  %v3707_v35 = vshrl.u32 %v3702_v19, 16  ;;  %v3715_v60 = vadd.s32 %v3713_v38, %v3711_v37  ;;  %v3218_v8 = vadd.f32 %v10315_v2, %v3178_v42 }
 0x417   : > { %vm10792_vm9 = vcmp.lt.s32.totalorder %v4515_v51, 16  ;;  %v13065_v11 = vpack.c.bf16 %v9926_v15, %v9913_v4  ;;  %v3733_v40 = vshll.u32 %v10781_v9, 16  ;;  %v3735_v24 = vshll.u32 %v10787_v53, 16  ;;  %v5177_v51 = vld [vmem:[#allocation3 + $0x52] sm:$0xff] }
 0x418   : > { %vm10802_vm10 = vcmp.lt.s32.totalorder %v4516_v7, 16  ;;  %v10807_v41 = vsub.s32 %v10687_v5, %v3690_v44  ;;  %v3716_v28 = vadd.s32 %v3715_v60, %v3705_v29  ;;  %v3732_v39 = vmul.u32 58254, %v3727_v1 }
 0x419   : > { %8415 = vmatmul.msk.bf16.gmra.mxu1 %vm679_vm2, %v13065_v11  ;;  %v10810_v12 = vadd.s32 120, %v9954_v0  ;;  %v3254_v47 = vmax.f32 %v3218_v8, 0.0  ;;  %vm3737_vm4 = vc.u32 %v3729_v25, %v3733_v40  ;;  %v3739_v15 = vadd.s32 %v3733_v40, %v3729_v25  ;;  %v13072_v11 = vld [vmem:[#allocation117_spill] sm:$0xff] }
 0x41a   : > { %v10813_v4 = vadd.s32 128, %v9954_v0  ;;  %vm4373_vm12 = vcmp.ne.s32.totalorder %v10807_v41, 0  ;;  %vm4409_vm15 = vcmp.lt.s32.totalorder %v10807_v41, 0  ;;  %v4481_v5 = vadd.s32 18, %v10807_v41  ;;  %v4790_v20 = vld [vmem:[#allocation3 + $0x59] sm:$0xff]  ;;  %v3105_v29 = vpop.f32.mrf.mxu1 }
 0x41b   : > { %v3717_v27 = vadd.s32 %v3716_v28, %v3707_v35  ;;  %v4659_v19 = vsel %vm10792_vm9, %v3254_v47, 0.0  ;;  %7089 = vst.msk [vmem:[#allocation4 + $0x48] sm:$0xff] %vm679_vm2, %v3254_v47  ;;  %v4732_v30 = vld [vmem:[#allocation3 + $0x58] sm:$0xff]  ;;  %v3738_v46 = vsel %vm3737_vm4, 1, %v12971_v48  ;;  %vm3741_vm13 = vc.u32 %v3739_v15, %v3735_v24  ;;  %vm10828_vm3 = vmand %vm4409_vm15, %vm4373_vm12 }
 0x41c   : > { %v5178_v33 = vld [vmem:[#allocation3 + $0x5a] sm:$0xff]  ;;  %v2649_v52 = vadd.f32 %v10021_v34, %v2374_v13  ;;  %4695 = vst.msk [vmem:[#allocation3 + $0x63] sm:$0xff] %vm724_vm5, %v4659_v19  ;;  %v4820_v22 = vpack.c.bf16 %v4790_v20, %v4789_v18  ;;  %v4762_v63 = vpack.c.bf16 %v4732_v30, %v4731_v45  ;;  %v3179_v26 = vadd.f32 %v3105_v29, %v10063_v10 }
 0x41d   : > { %v5208_v16 = vpack.c.bf16 %v5178_v33, %v5177_v51  ;;  %v3718_v17 = vshrl.u32 %v3717_v27, 4  ;;  %v3734_v62 = vshrl.u32 %v10781_v9, 16  ;;  %v3740_v34 = vadd.s32 %v3738_v46, %v3732_v39  ;;  %v10884_v27 = vld [vmem:[%s12741_s4] ss:$0 sm:$0xff] }
 0x41e   : > { %v3742_v1 = vsel %vm3741_vm13, 1, %v12971_v48  ;;  %8433 = vmatmul.msk.bf16.gmra.mxu2 %vm724_vm5, %v4820_v22  ;;  %8459 = vmatmul.msk.bf16.gmra.mxu3 %vm724_vm5, %v4762_v63  ;;  %v3736_v3 = vshrl.u32 %v10787_v53, 16  ;;  %v3755_v23 = vand.u32 65535, %v10810_v12  ;;  %v3756_v55 = vshrl.u32 %v10810_v12, 16  ;;  %v10901_v63 = vpop.f32.mrf.mxu2 }
 0x41f   : > { %v3719_v25 = vmul.u32 18, %v3718_v17  ;;  %v3219_v36 = vadd.f32 %v10315_v2, %v3179_v26  ;;  %8485 = vmatmul.msk.bf16.gmra.mxu0 %vm724_vm5, %v5208_v16  ;;  %v4517_v10 = vsel %vm10828_vm3, %v4481_v5, %v10807_v41  ;;  %v3744_v56 = vadd.s32 %v3742_v1, %v3740_v34 }
 0x420   : > { %v3784_v37 = vand.u32 65535, %v10813_v4  ;;  %v3758_v42 = vmul.u32 14564, %v3755_v23  ;;  %v10847_v7 = vmul.u32 58254, %v3755_v23  ;;  %v10849_v38 = vmul.u32 14564, %v3756_v55 }
 0x421   : > { %v3720_v9 = vsub.s32 %v10705_v32, %v3719_v25  ;;  %v3255_v53 = vmax.f32 %v3219_v36, 0.0  ;;  %v3745_v13 = vadd.s32 %v3744_v56, %v3734_v62  ;;  %v3761_v44 = vmul.u32 58254, %v3756_v55  ;;  %v13081_v36 = vld [vmem:[#allocation26_spill] sm:$0xff]  ;;  %v13085_v32 = vld [vmem:[#allocation41_spill] sm:$0xff] }
 0x422   : > { %v3785_v2 = vshrl.u32 %v10813_v4, 16  ;;  %v3762_v60 = vshll.u32 %v10847_v7, 16  ;;  %v10862_v40 = vadd.f32 %v13072_v11, %v10753_v54  ;;  %v10865_v24 = vadd.f32 %v10031_v50, %v2649_v52  ;;  %v3108_v41 = vpop.f32.mrf.mxu1 }
 0x423   : > { %vm4374_vm9 = vcmp.ne.s32.totalorder %v3720_v9, 0  ;;  %vm4410_vm4 = vcmp.lt.s32.totalorder %v3720_v9, 0  ;;  %v4482_v35 = vadd.s32 18, %v3720_v9  ;;  %v4660_v8 = vsel %vm10802_vm10, %v3255_v53, 0.0  ;;  %7092 = vst.msk [vmem:[#allocation4 + $0x4e] sm:$0xfc] %vm7060_vm8, %v3255_v53 }
 0x424   : > { %vm10856_vm12 = vmand %vm4410_vm4, %vm4374_vm9  ;;  %v3746_v58 = vadd.s32 %v3745_v13, %v3736_v3  ;;  %4696 = vst.msk [vmem:[#allocation3 + $0x6b] sm:$0xff] %vm724_vm5, %v4660_v8  ;;  %vm10868_vm15 = vcmp.lt.s32.totalorder %v4517_v10, 16  ;;  %v3764_v28 = vshll.u32 %v10849_v38, 16  ;;  %vm3766_vm10 = vc.u32 %v3758_v42, %v3762_v60  ;;  %v4791_v62 = vld [vmem:[#allocation3 + $0x61] sm:$0xff] }
 0x425   : > { %v3787_v39 = vmul.u32 14564, %v3784_v37  ;;  %v3180_v47 = vadd.f32 %v3108_v41, %v10066_v49  ;;  %v4518_v54 = vsel %vm10856_vm12, %v4482_v35, %v3720_v9  ;;  %v3767_v50 = vsel %vm3766_vm10, 1, %v12971_v48  ;;  %v13075_v49 = vld [vmem:[#allocation115_spill] sm:$0xff] }
 0x426   : > { %v3747_v15 = vshrl.u32 %v3746_v58, 4  ;;  %v3768_v18 = vadd.s32 %v3762_v60, %v3758_v42  ;;  %v3769_v45 = vadd.s32 %v3767_v50, %v3761_v44  ;;  %v10877_v51 = vmul.u32 58254, %v3784_v37  ;;  %v4733_v34 = vld [vmem:[#allocation3 + $0x60] sm:$0xff]  ;;  %v13083_v37 = vld [vmem:[#allocation46_spill] sm:$0xff]  ;;  %v10918_v42 = vpop.f32.mrf.mxu0 }
 0x427   : > { %v10879_v5 = vmul.u32 14564, %v3785_v2  ;;  %v3220_v19 = vadd.f32 %v10884_v27, %v3180_v47  ;;  %v13076_v20 = vpack.c.bf16 %v9936_v57, %v13075_v49  ;;  %v3763_v33 = vshrl.u32 %v10847_v7, 16  ;;  %v10903_v57 = vpop.f32.mrf.mxu3  ;;  %v5179_v1 = vld [vmem:[#allocation3 + $0x62] sm:$0xff] }
 0x428   : > { %v3748_v30 = vmul.u32 18, %v3747_v15  ;;  %v10893_v46 = vadd.s32 136, %v9954_v0  ;;  %vm10895_vm13 = vcmp.lt.s32.totalorder %v4518_v54, 16  ;;  %v3765_v29 = vshrl.u32 %v10849_v38, 16  ;;  %v13082_v10 = vld [vmem:[#allocation39_spill] sm:$0xff] }
 0x429   : > { %8416 = vmatmul.msk.bf16.gmra.mxu1 %vm679_vm2, %v13076_v20  ;;  %vm3770_vm3 = vc.u32 %v3768_v18, %v3764_v28  ;;  %v3791_v22 = vshll.u32 %v10877_v51, 16  ;;  %v3256_v16 = vmax.f32 %v3220_v19, 0.0  ;;  %v3790_v26 = vmul.u32 58254, %v3785_v2 }
 0x42a   : > { %v10906_v14 = vsub.s32 %v10765_v61, %v3748_v30  ;;  %v3771_v17 = vsel %vm3770_vm3, 1, %v12971_v48  ;;  %v3793_v3 = vshll.u32 %v10879_v5, 16  ;;  %v2375_v56 = vadd.f32 %v13082_v10, %v13081_v36  ;;  %v13084_v61 = vld [vmem:[#allocation44_spill] sm:$0xff]  ;;  %v3110_v2 = vpop.f32.mrf.mxu1 }
 0x42b   : > { %v3773_v25 = vadd.s32 %v3771_v17, %v3769_v45  ;;  %vm10910_vm9 = vc.u32 %v3787_v39, %v3791_v22  ;;  %v3797_v55 = vadd.s32 %v3791_v22, %v3787_v39  ;;  %v2376_v9 = vadd.f32 %v13084_v61, %v13083_v37  ;;  %7093 = vst.msk [vmem:[#allocation4 + $0x56] sm:$0xff] %vm679_vm2, %v3256_v16  ;;  %v4792_v38 = vld [vmem:[#allocation3 + $0x69] sm:$0xff] }
 0x42c   : > { %v4661_v7 = vsel %vm10868_vm15, %v3256_v16, 0.0  ;;  %v4734_v53 = vld [vmem:[#allocation3 + $0x68] sm:$0xff]  ;;  %v3813_v44 = vand.u32 65535, %v10893_v46  ;;  %v4821_v35 = vpack.c.bf16 %v4792_v38, %v4791_v62  ;;  %vm4375_vm4 = vcmp.ne.s32.totalorder %v10906_v14, 0  ;;  %v13088_v16 = vld [vmem:[#allocation45_spill] sm:$0xff] }
 0x42d   : > { %v5180_v13 = vld [vmem:[#allocation3 + $0x6a] sm:$0xff]  ;;  %4697 = vst.msk [vmem:[#allocation3 + $0x73] sm:$0xff] %vm724_vm5, %v4661_v7  ;;  %v4763_v60 = vpack.c.bf16 %v4734_v53, %v4733_v34  ;;  %v3181_v58 = vadd.f32 %v3110_v2, %v13085_v32  ;;  %vm4411_vm12 = vcmp.lt.s32.totalorder %v10906_v14, 0  ;;  %v3774_v11 = vadd.s32 %v3773_v25, %v3763_v33  ;;  %v4912_v33 = vpop.f32.mrf.mxu2  ;;  %v13090_v7 = vld [vmem:[#allocation43_spill] sm:$0xff] }
 0x42e   : > { %v5209_v8 = vpack.c.bf16 %v5180_v13, %v5179_v1  ;;  %v3796_v41 = vsel %vm10910_vm9, 1, %v12971_v48  ;;  %8434 = vmatmul.msk.bf16.gmra.mxu2 %vm724_vm5, %v4821_v35  ;;  %v3792_v59 = vshrl.u32 %v10877_v51, 16  ;;  %vm3799_vm15 = vc.u32 %v3797_v55, %v3793_v3  ;;  %vm10941_vm10 = vmand %vm4411_vm12, %vm4375_vm4  ;;  %v5300_v23 = vpop.f32.mrf.mxu0  ;;  %v13089_v55 = vld [vmem:[#allocation52_spill] sm:$0xff] }
 0x42f   : > { %8460 = vmatmul.msk.bf16.gmra.mxu3 %vm724_vm5, %v4763_v60  ;;  %v3798_v28 = vadd.s32 %v3796_v41, %v3790_v26  ;;  %v3814_v39 = vshrl.u32 %v10893_v46, 16  ;;  %v3221_v47 = vadd.f32 %v10884_v27, %v3181_v58  ;;  %v4483_v54 = vadd.s32 18, %v10906_v14  ;;  %v5077_v22 = vpop.f32.mrf.mxu3  ;;  %v13091_v60 = vld [vmem:[#allocation33_spill] sm:$0xff] }
 0x430   : > { %8486 = vmatmul.msk.bf16.gmra.mxu0 %vm724_vm5, %v5209_v8  ;;  %v3775_v15 = vadd.s32 %v3774_v11, %v3765_v29  ;;  %v3800_v50 = vsel %vm3799_vm15, 1, %v12971_v48  ;;  %v3794_v45 = vshrl.u32 %v10879_v5, 16  ;;  %v10946_v19 = vmul.u32 58254, %v3813_v44  ;;  %v13092_v8 = vld [vmem:[#allocation32_spill] sm:$0xff] }
 0x431   : > { %v3802_v51 = vadd.s32 %v3800_v50, %v3798_v28  ;;  %v10948_v49 = vmul.u32 14564, %v3814_v39  ;;  %v3257_v20 = vmax.f32 %v3221_v47, 0.0  ;;  %v3816_v29 = vmul.u32 14564, %v3813_v44 }
 0x432   : > { %v3776_v30 = vshrl.u32 %v3775_v15, 4  ;;  %v2650_v17 = vadd.f32 %v13088_v16, %v2375_v56  ;;  %v5078_v62 = vadd.f32 %v5077_v22, %v4912_v33  ;;  %v3820_v34 = vshll.u32 %v10946_v19, 16  ;;  %v10995_v15 = vld [vmem:[#allocation3 + $0x1a] sm:$0xff] }
 0x433   : > { %v3803_v26 = vadd.s32 %v3802_v51, %v3792_v59  ;;  %v10953_v1 = vadd.s32 144, %v9954_v0  ;;  %v4662_v5 = vsel %vm10895_vm13, %v3257_v20, 0.0  ;;  %7094 = vst.msk [vmem:[#allocation4 + $0x5e] sm:$0x3] %vm7063_vm14, %v3257_v20  ;;  %v4519_v25 = vsel %vm10941_vm10, %v4483_v54, %v10906_v14  ;;  %v3113_v10 = vpop.f32.mrf.mxu1 }
 0x434   : > { %v3777_v3 = vmul.u32 18, %v3776_v30  ;;  %v10962_v36 = vadd.f32 %v13089_v55, %v2376_v9  ;;  %4698 = vst.msk [vmem:[#allocation3 + $0x7b] sm:$0xff] %vm724_vm5, %v4662_v5  ;;  %v10965_v37 = vadd.f32 %v5300_v23, %v5078_v62  ;;  %v3819_v61 = vmul.u32 58254, %v3814_v39  ;;  %v4793_v50 = vld [vmem:[#allocation3 + $0x71] sm:$0xff] }
 0x435   : > { %v3804_v56 = vadd.s32 %v3803_v26, %v3794_v45  ;;  %v3822_v52 = vshll.u32 %v10948_v49, 16  ;;  %7098 = vst.msk [vmem:[#allocation4 + $0x5c] sm:$0xf0] %vm7070_vm0, %v3257_v20  ;;  %v3182_v38 = vadd.f32 %v3113_v10, %v13090_v7  ;;  %vm3824_vm13 = vc.u32 %v3816_v29, %v3820_v34  ;;  %v4735_v18 = vld [vmem:[#allocation3 + $0x70] sm:$0xff]  ;;  %v13098_v62 = vld [vmem:[#allocation38_spill] sm:$0xff] }
 0x436   : > { %v10971_v14 = vsub.s32 %v10810_v12, %v3777_v3  ;;  %v3826_v53 = vadd.s32 %v3820_v34, %v3816_v29  ;;  %v3825_v13 = vsel %vm3824_vm13, 1, %v12971_v48  ;;  %v3842_v44 = vand.u32 65535, %v10953_v1  ;;  %v5181_v45 = vld [vmem:[#allocation3 + $0x72] sm:$0xff]  ;;  %v11012_v23 = vld [vmem:[#allocation3 + $0x2a] sm:$0xff] }
 0x437   : > { %v3805_v9 = vshrl.u32 %v3804_v56, 4  ;;  %v3843_v2 = vshrl.u32 %v10953_v1, 16  ;;  %v3222_v35 = vadd.f32 %v10884_v27, %v3182_v38  ;;  %v13093_v32 = vpack.c.bf16 %v13091_v60, %v13092_v8  ;;  %v13099_v55 = vld [vmem:[#allocation34_spill] sm:$0xff] }
 0x438   : > { %vm4376_vm3 = vcmp.ne.s32.totalorder %v10971_v14, 0  ;;  %vm4412_vm9 = vcmp.lt.s32.totalorder %v10971_v14, 0  ;;  %v4484_v12 = vadd.s32 18, %v10971_v14  ;;  %vm10984_vm4 = vcmp.lt.s32.totalorder %v4519_v25, 16  ;;  %v11037_v8 = vld [vmem:[#allocation3 + $0x3a] sm:$0xff] }
 0x439   : > { %8417 = vmatmul.msk.bf16.gmra.mxu1 %vm679_vm2, %v13093_v32  ;;  %vm10988_vm12 = vmand %vm4412_vm9, %vm4376_vm3  ;;  %v3806_v41 = vmul.u32 18, %v3805_v9  ;;  %v3827_v59 = vadd.s32 %v3825_v13, %v3819_v61  ;;  %vm3828_vm15 = vc.u32 %v3826_v53, %v3822_v52  ;;  %v3258_v28 = vmax.f32 %v3222_v35, 0.0  ;;  %v11015_v52 = vld [vmem:[#allocation3 + $0x12] sm:$0xff]  ;;  %v11026_v53 = vld [vmem:[#allocation3 + $0x22] sm:$0xff] }
 0x43a   : > { %v3821_v39 = vshrl.u32 %v10946_v19, 16  ;;  %v3823_v47 = vshrl.u32 %v10948_v49, 16  ;;  %v3829_v54 = vsel %vm3828_vm15, 1, %v12971_v48  ;;  %v3845_v30 = vmul.u32 14564, %v3842_v44  ;;  %v13102_v9 = vld [vmem:[#allocation49_spill] sm:$0xff] }
 0x43b   : > { %v3807_v51 = vsub.s32 %v10813_v4, %v3806_v41  ;;  %v3831_v20 = vadd.s32 %v3829_v54, %v3827_v59  ;;  %v10998_v33 = vmul.u32 58254, %v3842_v44  ;;  %v4663_v22 = vsel %vm10984_vm4, %v3258_v28, 0.0  ;;  %7099 = vst.msk [vmem:[#allocation4 + $0x64] sm:$0xff] %vm679_vm2, %v3258_v28  ;;  %v4794_v49 = vld [vmem:[#allocation3 + $0x79] sm:$0xff]  ;;  %v3115_v34 = vpop.f32.mrf.mxu1  ;;  %v11039_v32 = vld [vmem:[#allocation3 + $0x4a] sm:$0xff] }
 0x43c   : > { %v4520_v19 = vsel %vm10988_vm12, %v4484_v12, %v10971_v14  ;;  %v4736_v29 = vld [vmem:[#allocation3 + $0x78] sm:$0xff]  ;;  %v11006_v26 = vmul.u32 14564, %v3843_v2  ;;  %v11009_v4 = vadd.f32 %v13098_v62, %v2650_v17  ;;  %4699 = vst.msk [vmem:[#allocation3 + $0x83] sm:$0xff] %vm724_vm5, %v4663_v22  ;;  %v4822_v5 = vpack.c.bf16 %v4794_v49, %v4793_v50 }
 0x43d   : > { %v5182_v16 = vld [vmem:[#allocation3 + $0x7a] sm:$0xff]  ;;  %v4764_v25 = vpack.c.bf16 %v4736_v29, %v4735_v18  ;;  %vm4377_vm10 = vcmp.ne.s32.totalorder %v3807_v51, 0  ;;  %v3183_v10 = vadd.f32 %v3115_v34, %v13099_v55  ;;  %vm4413_vm13 = vcmp.lt.s32.totalorder %v3807_v51, 0  ;;  %v13107_v34 = vld [vmem:[#allocation36_spill] sm:$0xff] }
 0x43e   : > { %v5210_v3 = vpack.c.bf16 %v5182_v16, %v5181_v45  ;;  %v4485_v56 = vadd.s32 18, %v3807_v51  ;;  %v3832_v61 = vadd.s32 %v3831_v20, %v3821_v39  ;;  %8435 = vmatmul.msk.bf16.gmra.mxu2 %vm724_vm5, %v4822_v5  ;;  %vm11019_vm3 = vmand %vm4413_vm13, %vm4377_vm10  ;;  %v3848_v7 = vmul.u32 58254, %v3843_v2  ;;  %v11051_v39 = vld [vmem:[#allocation3 + $0x32] sm:$0xff] }
 0x43f   : > { %8461 = vmatmul.msk.bf16.gmra.mxu3 %vm724_vm5, %v4764_v25  ;;  %v3849_v38 = vshll.u32 %v10998_v33, 16  ;;  %v5462_v14 = vpack.c.bf16 %v10995_v15, %v11015_v52  ;;  %v11030_v13 = vadd.f32 %v13102_v9, %v10962_v36  ;;  %v3223_v44 = vadd.f32 %v10884_v27, %v3183_v10  ;;  %v8816_v16 = vld [vmem:[%s12742_s5 + $0x50] sm:$0xff] }
 0x440   : > { %8487 = vmatmul.msk.bf16.gmra.mxu0 %vm724_vm5, %v5210_v3  ;;  %v3833_v35 = vadd.s32 %v3832_v61, %v3823_v47  ;;  %v3851_v60 = vshll.u32 %v11006_v26, 16  ;;  %vm11041_vm9 = vcmp.lt.s32.totalorder %v4520_v19, 16  ;;  %v4521_v36 = vsel %vm11019_vm3, %v4485_v56, %v3807_v51  ;;  %v11053_v47 = vld [vmem:[#allocation3 + $0x42] sm:$0xff]  ;;  %6075 = vmatpush.bf16.msrb.mxu3 %v8816_v16 }
 0x441   : > { %vm3853_vm4 = vc.u32 %v3845_v30, %v3849_v38  ;;  %v3855_v58 = vadd.s32 %v3849_v38, %v3845_v30  ;;  %v3259_v11 = vmax.f32 %v3223_v44, 0.0  ;;  %v11049_v28 = vadd.s32 152, %v9954_v0  ;;  %v13109_v38 = vld [vmem:[#allocation35_spill] sm:$0xff] }
 0x442   : > { %v3834_v41 = vshrl.u32 %v3833_v35, 4  ;;  %v3854_v59 = vsel %vm3853_vm4, 1, %v12971_v48  ;;  %vm11062_vm15 = vcmp.lt.s32.totalorder %v4521_v36, 16  ;;  %v3850_v30 = vshrl.u32 %v10998_v33, 16 }
 0x443   : > { %v3856_v54 = vadd.s32 %v3854_v59, %v3848_v7  ;;  %vm3857_vm12 = vc.u32 %v3855_v58, %v3851_v60  ;;  %v4664_v45 = vsel %vm11041_vm9, %v3259_v11, 0.0  ;;  %7100 = vst.msk [vmem:[#allocation4 + $0x6c] sm:$0xf] %vm7073_vm6, %v3259_v11  ;;  %v3118_v22 = vpop.f32.mrf.mxu1  ;;  %v3871_v49 = vand.u32 65535, %v11049_v28  ;;  %v13108_v7 = vld [vmem:[#allocation37_spill] sm:$0xff]  ;;  %v11099_v60 = vld [vmem:[#allocation2 + $0x13e] sm:$0xff] }
 0x444   : > { %v3835_v20 = vmul.u32 18, %v3834_v41  ;;  %4700 = vst.msk [vmem:[#allocation3 + $0x8b] sm:$0xff] %vm724_vm5, %v4664_v45  ;;  %v3858_v19 = vsel %vm3857_vm12, 1, %v12971_v48  ;;  %v3872_v29 = vshrl.u32 %v11049_v28, 16  ;;  %v11075_v62 = vadd.s32 160, %v9954_v0 }
 0x445   : > { %7104 = vst.msk [vmem:[#allocation4 + $0x6a] sm:$0xc0] %vm7080_vm11, %v3259_v11  ;;  %v3184_v33 = vadd.f32 %v3118_v22, %v13107_v34  ;;  %v3852_v25 = vshrl.u32 %v11006_v26, 16  ;;  %v3860_v3 = vadd.s32 %v3858_v19, %v3856_v54  ;;  %v3874_v55 = vmul.u32 14564, %v3871_v49  ;;  %v11093_v26 = vld [vmem:[#allocation2 + $0x136] sm:$0xff] }
 0x446   : > { %v3836_v5 = vsub.s32 %v10893_v46, %v3835_v20  ;;  %v11081_v10 = vmul.u32 58254, %v3871_v49  ;;  %v11083_v56 = vmul.u32 14564, %v3872_v29  ;;  %v11086_v61 = vadd.s32 168, %v9954_v0  ;;  %v8812_v11 = vld [vmem:[%s12742_s5 + $0x30] sm:$0xff]  ;;  %v4795_v20 = vld [vmem:[#allocation3 + $0x81] sm:$0xff] }
 0x447   : > { %v3224_v17 = vadd.f32 %v10884_v27, %v3184_v33  ;;  %v13110_v9 = vpack.c.bf16 %v13108_v7, %v13109_v38  ;;  %v3861_v35 = vadd.s32 %v3860_v3, %v3850_v30  ;;  %v3877_v12 = vmul.u32 58254, %v3872_v29  ;;  %v4737_v30 = vld [vmem:[#allocation3 + $0x80] sm:$0xff]  ;;  %5557 = vmatpush.bf16.msra.mxu1 %v8812_v11 }
 0x448   : > { %vm4378_vm10 = vcmp.ne.s32.totalorder %v3836_v5, 0  ;;  %vm4414_vm13 = vcmp.lt.s32.totalorder %v3836_v5, 0  ;;  %v4486_v46 = vadd.s32 18, %v3836_v5  ;;  %v3878_v36 = vshll.u32 %v11081_v10, 16  ;;  %v5183_v22 = vld [vmem:[#allocation3 + $0x82] sm:$0xff] }
 0x449   : > { %8418 = vmatmul.msk.bf16.gmra.mxu1 %vm679_vm2, %v13110_v9  ;;  %vm11095_vm3 = vmand %vm4414_vm13, %vm4378_vm10  ;;  %v3900_v58 = vand.u32 65535, %v11075_v62  ;;  %v3260_v41 = vmax.f32 %v3224_v17, 0.0  ;;  %v3879_v59 = vshrl.u32 %v11081_v10, 16  ;;  %v3880_v54 = vshll.u32 %v11083_v56, 16  ;;  %v13113_v9 = vld [vmem:[#allocation40_spill] sm:$0xff] }
 0x44a   : > { %v3881_v45 = vshrl.u32 %v11083_v56, 16  ;;  %v3862_v19 = vadd.s32 %v3861_v35, %v3852_v25  ;;  %vm3882_vm9 = vc.u32 %v3874_v55, %v3878_v36  ;;  %v3884_v49 = vadd.s32 %v3878_v36, %v3874_v55 }
 0x44b   : > { %v3901_v29 = vshrl.u32 %v11075_v62, 16  ;;  %v4665_v16 = vsel %vm11062_vm15, %v3260_v41, 0.0  ;;  %7105 = vst.msk [vmem:[#allocation4 + $0x72] sm:$0xff] %vm679_vm2, %v3260_v41  ;;  %v4522_v34 = vsel %vm11095_vm3, %v4486_v46, %v3836_v5  ;;  %v4796_v33 = vld [vmem:[#allocation3 + $0x89] sm:$0xff]  ;;  %v2982_v56 = vpack.c.bf16 %v11099_v60, %v11093_v26  ;;  %v3120_v55 = vpop.f32.mrf.mxu1  ;;  %v13128_v41 = vld [vmem:[#allocation47_spill] sm:$0xff] }
 0x44c   : > { %v4738_v3 = vld [vmem:[#allocation3 + $0x88] sm:$0xff]  ;;  %v3883_v25 = vsel %vm3882_vm9, 1, %v12971_v48  ;;  %4701 = vst.msk [vmem:[#allocation3 + $0x93] sm:$0xff] %vm724_vm5, %v4665_v16  ;;  %v4823_v17 = vpack.c.bf16 %v4796_v33, %v4795_v20  ;;  %v3863_v38 = vshrl.u32 %v3862_v19, 4  ;;  %v3185_v35 = vadd.f32 %v3120_v55, %v13113_v9  ;;  %v13119_v9 = vld [vmem:[#allocation42_spill] sm:$0xff] }
 0x44d   : > { %v5184_v10 = vld [vmem:[#allocation3 + $0x8a] sm:$0xff]  ;;  %v4765_v7 = vpack.c.bf16 %v4738_v3, %v4737_v30  ;;  %v3885_v36 = vadd.s32 %v3883_v25, %v3877_v12  ;;  %vm3886_vm4 = vc.u32 %v3884_v49, %v3880_v54  ;;  %v3903_v5 = vmul.u32 14564, %v3900_v58 }
 0x44e   : > { %v5211_v51 = vpack.c.bf16 %v5184_v10, %v5183_v22  ;;  %8436 = vmatmul.msk.bf16.gmra.mxu2 %vm724_vm5, %v4823_v17  ;;  %v3864_v46 = vmul.u32 18, %v3863_v38  ;;  %v3887_v26 = vsel %vm3886_vm4, 1, %v12971_v48  ;;  %v3904_v44 = vmul.u32 58254, %v3900_v58 }
 0x44f   : > { %8462 = vmatmul.msk.bf16.gmra.mxu3 %vm724_vm5, %v4765_v7  ;;  %v11123_v60 = vmul.u32 14564, %v3901_v29  ;;  %v3225_v11 = vadd.f32 %v10884_v27, %v3185_v35  ;;  %vm11126_vm12 = vcmp.lt.s32.totalorder %v4522_v34, 16  ;;  %v3889_v12 = vadd.s32 %v3887_v26, %v3885_v36  ;;  %v11135_v34 = vpop.f32.mrf.mxu0 }
 0x450   : > { %8488 = vmatmul.msk.bf16.gmra.mxu0 %vm724_vm5, %v5211_v51  ;;  %v3906_v54 = vmul.u32 58254, %v3901_v29  ;;  %v3865_v20 = vsub.s32 %v10953_v1, %v3864_v46  ;;  %v3907_v30 = vshll.u32 %v3904_v44, 16  ;;  %v3908_v22 = vshrl.u32 %v3904_v44, 16  ;;  %13116 = vst [vmem:[#allocation53_spill] sm:$0xff] %v11135_v34 }
 0x451   : > { %v3929_v19 = vand.u32 65535, %v11086_v61  ;;  %v3261_v49 = vmax.f32 %v3225_v11, 0.0  ;;  %v3890_v58 = vadd.s32 %v3889_v12, %v3879_v59  ;;  %v3909_v16 = vshll.u32 %v11123_v60, 16 }
 0x452   : > { %v3930_v33 = vshrl.u32 %v11086_v61, 16  ;;  %vm4379_vm15 = vcmp.ne.s32.totalorder %v3865_v20, 0  ;;  %vm4415_vm10 = vcmp.lt.s32.totalorder %v3865_v20, 0  ;;  %v4487_v3 = vadd.s32 18, %v3865_v20 }
 0x453   : > { %vm3911_vm13 = vc.u32 %v3903_v5, %v3907_v30  ;;  %v4666_v29 = vsel %vm11126_vm12, %v3261_v49, 0.0  ;;  %7106 = vst.msk [vmem:[#allocation4 + $0x7a] sm:$0x3f] %vm722_vm7, %v3261_v49  ;;  %vm11140_vm3 = vmand %vm4415_vm10, %vm4379_vm15  ;;  %v3891_v59 = vadd.s32 %v3890_v58, %v3881_v45  ;;  %v3913_v25 = vadd.s32 %v3907_v30, %v3903_v5  ;;  %v3123_v55 = vpop.f32.mrf.mxu1  ;;  %v11166_v49 = vpop.f32.mrf.mxu3  ;;  %v5185_v1 = vld [vmem:[#allocation3 + $0x92] sm:$0xff] }
 0x454   : > { %v3912_v10 = vsel %vm3911_vm13, 1, %v12971_v48  ;;  %4702 = vst.msk [vmem:[#allocation3 + $0x9b] sm:$0xff] %vm724_vm5, %v4666_v29  ;;  %v4523_v17 = vsel %vm11140_vm3, %v4487_v3, %v3865_v20  ;;  %v3932_v51 = vmul.u32 14564, %v3929_v19  ;;  %v11148_v38 = vmul.u32 58254, %v3929_v19  ;;  %v11164_v19 = vpop.f32.mrf.mxu2  ;;  %v4797_v29 = vld [vmem:[#allocation3 + $0x91] sm:$0xff] }
 0x455   : > { %v3914_v7 = vadd.s32 %v3912_v10, %v3906_v54  ;;  %v3186_v35 = vadd.f32 %v3123_v55, %v13119_v9  ;;  %v3892_v36 = vshrl.u32 %v3891_v59, 4  ;;  %v3910_v46 = vshrl.u32 %v11123_v60, 16  ;;  %13122 = vst [vmem:[#allocation55_spill] sm:$0xff] %v11164_v19 }
 0x456   : > { %vm3915_vm9 = vc.u32 %v3913_v25, %v3909_v16  ;;  %v11153_v26 = vmul.u32 14564, %v3930_v33  ;;  %v3935_v5 = vmul.u32 58254, %v3930_v33  ;;  %v3936_v44 = vshll.u32 %v11148_v38, 16  ;;  %13123 = vst [vmem:[#allocation65_spill] sm:$0xff] %v11166_v49 }
 0x457   : > { %v3916_v45 = vsel %vm3915_vm9, 1, %v12971_v48  ;;  %v3226_v11 = vadd.f32 %v10884_v27, %v3186_v35  ;;  %vm11157_vm4 = vcmp.lt.s32.totalorder %v4523_v17, 16  ;;  %v3893_v12 = vmul.u32 18, %v3892_v36  ;;  %v11180_v17 = vld [vmem:[#allocation3 + $0x5a] sm:$0xff] }
 0x458   : > { %v3918_v54 = vadd.s32 %v3916_v45, %v3914_v7  ;;  %v3937_v60 = vshrl.u32 %v11148_v38, 16  ;;  %v3938_v20 = vshll.u32 %v11153_v26, 16  ;;  %vm3940_vm12 = vc.u32 %v3932_v51, %v3936_v44 }
 0x459   : > { %8419 = vmatmul.msk.bf16.gmra.mxu1 %vm679_vm2, %v2982_v56  ;;  %v3942_v30 = vadd.s32 %v3936_v44, %v3932_v51  ;;  %v3262_v58 = vmax.f32 %v3226_v11, 0.0  ;;  %v3894_v16 = vsub.s32 %v11049_v28, %v3893_v12  ;;  %v3941_v3 = vsel %vm3940_vm12, 1, %v12971_v48  ;;  %v4739_v56 = vld [vmem:[#allocation3 + $0x90] sm:$0xff]  ;;  %v11186_v51 = vpop.f32.mrf.mxu0 }
 0x45a   : > { %v3919_v33 = vadd.s32 %v3918_v54, %v3908_v22  ;;  %v3943_v59 = vadd.s32 %v3941_v3, %v3935_v5  ;;  %v11175_v25 = vadd.s32 176, %v9954_v0  ;;  %v11178_v55 = vadd.s32 184, %v9954_v0 }
 0x45b   : > { %vm11170_vm15 = vc.u32 %v3942_v30, %v3938_v20  ;;  %v4667_v28 = vsel %vm11157_vm4, %v3262_v58, 0.0  ;;  %7110 = vst.msk [vmem:[#allocation4 + $0x80] sm:$0xff] %vm679_vm2, %v3262_v58  ;;  %vm4380_vm10 = vcmp.ne.s32.totalorder %v3894_v16, 0  ;;  %vm4416_vm13 = vcmp.lt.s32.totalorder %v3894_v16, 0  ;;  %v4798_v7 = vld [vmem:[#allocation3 + $0x99] sm:$0xff]  ;;  %v3125_v38 = vpop.f32.mrf.mxu1 }
 0x45c   : > { %v4488_v22 = vadd.s32 18, %v3894_v16  ;;  %4703 = vst.msk [vmem:[#allocation3 + $0xa3] sm:$0xff] %vm724_vm5, %v4667_v28  ;;  %vm11188_vm3 = vmand %vm4416_vm13, %vm4380_vm10  ;;  %v4824_v35 = vpack.c.bf16 %v4798_v7, %v4797_v29  ;;  %v4740_v36 = vld [vmem:[#allocation3 + $0x98] sm:$0xff]  ;;  %v3920_v5 = vadd.s32 %v3919_v33, %v3910_v46  ;;  %v3945_v44 = vsel %vm11170_vm15, 1, %v12971_v48 }
 0x45d   : > { %v5186_v45 = vld [vmem:[#allocation3 + $0x9a] sm:$0xff]  ;;  %v3958_v11 = vand.u32 65535, %v11175_v25  ;;  %v3187_v12 = vadd.f32 %v3125_v38, %v13128_v41  ;;  %v4766_v20 = vpack.c.bf16 %v4740_v36, %v4739_v56  ;;  %v3939_v3 = vshrl.u32 %v11153_v26, 16  ;;  %v11202_v33 = vld [vmem:[#allocation3 + $0x52] sm:$0xff] }
 0x45e   : > { %v4524_v54 = vsel %vm11188_vm3, %v4488_v22, %v3894_v16  ;;  %v5212_v30 = vpack.c.bf16 %v5186_v45, %v5185_v1  ;;  %8437 = vmatmul.msk.bf16.gmra.mxu2 %vm724_vm5, %v4824_v35  ;;  %v3921_v58 = vshrl.u32 %v3920_v5, 4  ;;  %v3947_v29 = vadd.s32 %v3945_v44, %v3943_v59 }
 0x45f   : > { %v3959_v46 = vshrl.u32 %v11175_v25, 16  ;;  %v3227_v10 = vadd.f32 %v10884_v27, %v3187_v12  ;;  %8463 = vmatmul.msk.bf16.gmra.mxu3 %vm724_vm5, %v4766_v20  ;;  %v3961_v28 = vmul.u32 14564, %v3958_v11  ;;  %v11207_v16 = vmul.u32 58254, %v3958_v11 }
 0x460   : > { %8489 = vmatmul.msk.bf16.gmra.mxu0 %vm724_vm5, %v5212_v30  ;;  %vm4560_vm9 = vcmp.lt.s32.totalorder %v4524_v54, 16  ;;  %v3922_v1 = vmul.u32 18, %v3921_v58  ;;  %v3948_v26 = vadd.s32 %v3947_v29, %v3937_v60  ;;  %v4917_v7 = vpop.f32.mrf.mxu2  ;;  %v3987_v36 = vand.u32 65535, %v11178_v55 }
 0x461   : > { %v11211_v59 = vmul.u32 14564, %v3959_v46  ;;  %v3263_v22 = vmax.f32 %v3227_v10, 0.0  ;;  %v5082_v38 = vpop.f32.mrf.mxu3  ;;  %v3964_v9 = vmul.u32 58254, %v3959_v46  ;;  %v3965_v35 = vshll.u32 %v11207_v16, 16  ;;  %v11222_v54 = vpop.f32.mrf.mxu0 }
 0x462   : > { %v11215_v45 = vadd.f32 %v5082_v38, %v4917_v7  ;;  %v3923_v5 = vsub.s32 %v11075_v62, %v3922_v1  ;;  %v3949_v44 = vadd.s32 %v3948_v26, %v3939_v3  ;;  %v3988_v12 = vshrl.u32 %v11178_v55, 16  ;;  %v13129_v62 = vld [vmem:[#allocation27_spill] sm:$0xff] }
 0x463   : > { %v3967_v11 = vshll.u32 %v11211_v59, 16  ;;  %v4668_v41 = vsel %vm4560_vm9, %v3263_v22, 0.0  ;;  %7111 = vst.msk [vmem:[#allocation4 + $0x88] sm:$0xff] %vm679_vm2, %v3263_v22  ;;  %vm3969_vm4 = vc.u32 %v3961_v28, %v3965_v35  ;;  %v3971_v60 = vadd.s32 %v3965_v35, %v3961_v28  ;;  %v3128_v20 = vpop.f32.mrf.mxu1 }
 0x464   : > { %4704 = vst.msk [vmem:[#allocation3 + $0xab] sm:$0xff] %vm724_vm5, %v4668_v41  ;;  %vm4381_vm12 = vcmp.ne.s32.totalorder %v3923_v5, 0  ;;  %vm4417_vm15 = vcmp.lt.s32.totalorder %v3923_v5, 0  ;;  %v4489_v30 = vadd.s32 18, %v3923_v5  ;;  %v3950_v58 = vshrl.u32 %v3949_v44, 4 }
 0x465   : > { %v3188_v3 = vadd.f32 %v3128_v20, %v13129_v62  ;;  %vm4453_vm10 = vmand %vm4417_vm15, %vm4381_vm12  ;;  %v3966_v29 = vshrl.u32 %v11207_v16, 16  ;;  %v3970_v46 = vsel %vm3969_vm4, 1, %v12971_v48  ;;  %vm3973_vm13 = vc.u32 %v3971_v60, %v3967_v11  ;;  %v5187_v16 = vld [vmem:[#allocation3 + $0xa2] sm:$0xff] }
 0x466   : > { %v4525_v10 = vsel %vm4453_vm10, %v4489_v30, %v3923_v5  ;;  %v3951_v28 = vmul.u32 18, %v3950_v58  ;;  %v3972_v1 = vadd.s32 %v3970_v46, %v3964_v9  ;;  %v3974_v26 = vsel %vm3973_vm13, 1, %v12971_v48  ;;  %v4799_v30 = vld [vmem:[#allocation3 + $0xa1] sm:$0xff] }
 0x467   : > { %v3228_v22 = vadd.f32 %v10884_v27, %v3188_v3  ;;  %v3990_v7 = vmul.u32 14564, %v3987_v36  ;;  %v11233_v38 = vmul.u32 58254, %v3987_v36  ;;  %v11235_v35 = vmul.u32 14564, %v3988_v12  ;;  %v4741_v58 = vld [vmem:[#allocation3 + $0xa0] sm:$0xff] }
 0x468   : > { %vm11237_vm3 = vcmp.lt.s32.totalorder %v4525_v10, 16  ;;  %v3952_v9 = vsub.s32 %v11086_v61, %v3951_v28  ;;  %v3968_v5 = vshrl.u32 %v11211_v59, 16  ;;  %v3976_v44 = vadd.s32 %v3974_v26, %v3972_v1  ;;  %v4919_v41 = vpop.f32.mrf.mxu2 }
 0x469   : > { %8506 = vmatmul.msk.bf16.vlgmr.msra.gmra.mxu1 %vm724_vm5, %v5462_v14  ;;  %v3264_v11 = vmax.f32 %v3228_v22, 0.0  ;;  %v5084_v60 = vpop.f32.mrf.mxu3  ;;  %v3993_v15 = vmul.u32 58254, %v3988_v12  ;;  %v3994_v52 = vshll.u32 %v11233_v38, 16  ;;  %v11245_v14 = vadd.s32 192, %v9954_v0 }
 0x46a   : > { %v11247_v36 = vadd.f32 %v5084_v60, %v4919_v41  ;;  %vm4382_vm9 = vcmp.ne.s32.totalorder %v3952_v9, 0  ;;  %vm4418_vm4 = vcmp.lt.s32.totalorder %v3952_v9, 0  ;;  %v4490_v20 = vadd.s32 18, %v3952_v9  ;;  %v13134_v60 = vld [vmem:[#allocation54_spill] sm:$0xff] }
 0x46b   : > { %v4669_v61 = vsel %vm11237_vm3, %v3264_v11, 0.0  ;;  %7114 = vst.msk [vmem:[#allocation4 + $0x8e] sm:$0xfc] %vm7060_vm8, %v3264_v11  ;;  %vm11252_vm12 = vmand %vm4418_vm4, %vm4382_vm9  ;;  %v4800_v12 = vld [vmem:[#allocation3 + $0xa9] sm:$0xff]  ;;  %v3977_v3 = vadd.s32 %v3976_v44, %v3966_v29  ;;  %v3996_v46 = vshll.u32 %v11235_v35, 16  ;;  %vm3998_vm15 = vc.u32 %v3990_v7, %v3994_v52  ;;  %v11258_v10 = vpop.f32.mrf.mxu0  ;;  %v3130_v28 = vpop.f32.mrf.mxu1 }
 0x46c   : > { %v4742_v62 = vld [vmem:[#allocation3 + $0xa8] sm:$0xff]  ;;  %4705 = vst.msk [vmem:[#allocation3 + $0xb3] sm:$0xff] %vm724_vm5, %v4669_v61  ;;  %v4526_v1 = vsel %vm11252_vm12, %v4490_v20, %v3952_v9  ;;  %v4825_v26 = vpack.c.bf16 %v4800_v12, %v4799_v30  ;;  %v3999_v41 = vsel %vm3998_vm15, 1, %v12971_v48  ;;  %v3189_v56 = vadd.f32 %v3130_v28, %v13134_v60 }
 0x46d   : > { %v4767_v22 = vpack.c.bf16 %v4742_v62, %v4741_v58  ;;  %v5188_v11 = vld [vmem:[#allocation3 + $0xaa] sm:$0xff]  ;;  %v3978_v44 = vadd.s32 %v3977_v3, %v3968_v5  ;;  %v3995_v18 = vshrl.u32 %v11233_v38, 16  ;;  %v4000_v61 = vadd.s32 %v3994_v52, %v3990_v7 }
 0x46e   : > { %v5213_v29 = vpack.c.bf16 %v5188_v11, %v5187_v16  ;;  %8438 = vmatmul.msk.bf16.gmra.mxu2 %vm724_vm5, %v4825_v26  ;;  %v4001_v50 = vadd.s32 %v3999_v41, %v3993_v15  ;;  %v4016_v2 = vand.u32 65535, %v11245_v14  ;;  %v4017_v9 = vshrl.u32 %v11245_v14, 16 }
 0x46f   : > { %v3229_v20 = vadd.f32 %v10884_v27, %v3189_v56  ;;  %vm11269_vm10 = vcmp.lt.s32.totalorder %v4526_v1, 16  ;;  %8464 = vmatmul.msk.bf16.gmra.mxu3 %vm724_vm5, %v4767_v22  ;;  %v3979_v5 = vshrl.u32 %v3978_v44, 4  ;;  %v3997_v38 = vshrl.u32 %v11235_v35, 16  ;;  %v13137_v44 = vld [vmem:[#allocation48_spill] sm:$0xff] }
 0x470   : > { %8490 = vmatmul.msk.bf16.gmra.mxu0 %vm724_vm5, %v5213_v29  ;;  %vm4002_vm13 = vc.u32 %v4000_v61, %v3996_v46  ;;  %v4019_v7 = vmul.u32 14564, %v4016_v2  ;;  %v11276_v15 = vmul.u32 58254, %v4016_v2  ;;  %v11278_v52 = vmul.u32 14564, %v4017_v9  ;;  %v4922_v59 = vpop.f32.mrf.mxu2 }
 0x471   : > { %v3265_v58 = vmax.f32 %v3229_v20, 0.0  ;;  %v5087_v56 = vpop.f32.mrf.mxu3  ;;  %v3980_v12 = vmul.u32 18, %v3979_v5  ;;  %v4003_v62 = vsel %vm4002_vm13, 1, %v12971_v48  ;;  %v11282_v3 = vadd.s32 200, %v9954_v0 }
 0x472   : > { %v11284_v28 = vadd.f32 %v5087_v56, %v4922_v59  ;;  %v4005_v1 = vadd.s32 %v4003_v62, %v4001_v50  ;;  %v4023_v35 = vshll.u32 %v11276_v15, 16  ;;  %v11288_v46 = vadd.s32 208, %v9954_v0  ;;  %v11314_v62 = vld [vmem:[#allocation3 + $0x6a] sm:$0xff] }
 0x473   : > { %v4670_v2 = vsel %vm11269_vm10, %v3265_v58, 0.0  ;;  %7115 = vst.msk [vmem:[#allocation4 + $0x96] sm:$0xff] %vm679_vm2, %v3265_v58  ;;  %v3981_v26 = vsub.s32 %v11175_v25, %v3980_v12  ;;  %v4022_v22 = vmul.u32 58254, %v4017_v9  ;;  %v4025_v16 = vshll.u32 %v11278_v52, 16  ;;  %v11296_v11 = vpop.f32.mrf.mxu0 }
 0x474   : > { %4706 = vst.msk [vmem:[#allocation3 + $0xbb] sm:$0xff] %vm724_vm5, %v4670_v2  ;;  %v4006_v41 = vadd.s32 %v4005_v1, %v3995_v18  ;;  %v4024_v60 = vshrl.u32 %v11276_v15, 16  ;;  %vm4027_vm3 = vc.u32 %v4019_v7, %v4023_v35  ;;  %v4029_v29 = vadd.s32 %v4023_v35, %v4019_v7 }
 0x475   : > { %v3133_v50 = vpop.f32.mrf.mxu1  ;;  %vm4383_vm9 = vcmp.ne.s32.totalorder %v3981_v26, 0  ;;  %vm4419_vm4 = vcmp.lt.s32.totalorder %v3981_v26, 0  ;;  %v4491_v20 = vadd.s32 18, %v3981_v26  ;;  %v4028_v9 = vsel %vm4027_vm3, 1, %v12971_v48 }
 0x476   : > { %v3190_v61 = vadd.f32 %v3133_v50, %v13137_v44  ;;  %vm4455_vm12 = vmand %vm4419_vm4, %vm4383_vm9  ;;  %v4007_v25 = vadd.s32 %v4006_v41, %v3997_v38  ;;  %vm4031_vm15 = vc.u32 %v4029_v29, %v4025_v16  ;;  %v4045_v30 = vand.u32 65535, %v11282_v3  ;;  %v4801_v41 = vld [vmem:[#allocation3 + $0xb1] sm:$0xff] }
 0x477   : > { %v4527_v58 = vsel %vm4455_vm12, %v4491_v20, %v3981_v26  ;;  %v13138_v18 = vpack.c.bf16 %v11012_v23, %v11026_v53  ;;  %v4030_v7 = vadd.s32 %v4028_v9, %v4022_v22  ;;  %v4032_v15 = vsel %vm4031_vm15, 1, %v12971_v48  ;;  %v11318_v22 = vld [vmem:[#allocation3 + $0x62] sm:$0xff]  ;;  %v4743_v29 = vld [vmem:[#allocation3 + $0xb0] sm:$0xff] }
 0x478   : > { %v3230_v5 = vadd.f32 %v10884_v27, %v3190_v61  ;;  %vm11308_vm10 = vcmp.lt.s32.totalorder %v4527_v58, 16  ;;  %v4008_v38 = vshrl.u32 %v4007_v25, 4  ;;  %v4026_v56 = vshrl.u32 %v11278_v52, 16  ;;  %v4924_v35 = vpop.f32.mrf.mxu2  ;;  %v5189_v44 = vld [vmem:[#allocation3 + $0xb2] sm:$0xff] }
 0x479   : > { %8507 = vmatmul.msk.bf16.gmra.mxu1 %vm724_vm5, %v13138_v18  ;;  %v4046_v12 = vshrl.u32 %v11282_v3, 16  ;;  %v5089_v2 = vpop.f32.mrf.mxu3  ;;  %v4034_v23 = vadd.s32 %v4032_v15, %v4030_v7  ;;  %v4048_v53 = vmul.u32 14564, %v4045_v30  ;;  %v11316_v26 = vmul.u32 58254, %v4045_v30 }
 0x47a   : > { %v3266_v1 = vmax.f32 %v3230_v5, 0.0  ;;  %v11320_v16 = vadd.f32 %v5089_v2, %v4924_v35  ;;  %v4009_v50 = vmul.u32 18, %v4008_v38  ;;  %v4074_v61 = vand.u32 65535, %v11288_v46 }
 0x47b   : > { %v11322_v52 = vmul.u32 14564, %v4046_v12  ;;  %v4802_v25 = vld [vmem:[#allocation3 + $0xb9] sm:$0xff]  ;;  %v4035_v5 = vadd.s32 %v4034_v23, %v4024_v60  ;;  %v11332_v18 = vadd.f32 %v11186_v51, %v11215_v45  ;;  %v4051_v58 = vmul.u32 58254, %v4046_v12 }
 0x47c   : > { %v4671_v20 = vsel %vm11308_vm10, %v3266_v1, 0.0  ;;  %7116 = vst.msk [vmem:[#allocation4 + $0x9e] sm:$0x3] %vm7063_vm14, %v3266_v1  ;;  %v4744_v9 = vld [vmem:[#allocation3 + $0xb8] sm:$0xff]  ;;  %v11335_v7 = vpop.f32.mrf.mxu0  ;;  %v4010_v59 = vsub.s32 %v11178_v55, %v4009_v50  ;;  %v4826_v38 = vpack.c.bf16 %v4802_v25, %v4801_v41  ;;  %v4052_v49 = vshll.u32 %v11316_v26, 16 }
 0x47d   : > { %v5190_v30 = vld [vmem:[#allocation3 + $0xba] sm:$0xff]  ;;  %4707 = vst.msk [vmem:[#allocation3 + $0xc3] sm:$0xff] %vm724_vm5, %v4671_v20  ;;  %v3135_v15 = vpop.f32.mrf.mxu1  ;;  %v4768_v35 = vpack.c.bf16 %v4744_v9, %v4743_v29  ;;  %v4036_v34 = vadd.s32 %v4035_v5, %v4026_v56  ;;  %v4054_v45 = vshll.u32 %v11322_v52, 16  ;;  %v4053_v56 = vshrl.u32 %v11316_v26, 16 }
 0x47e   : > { %v5214_v2 = vpack.c.bf16 %v5190_v30, %v5189_v44  ;;  %7120 = vst.msk [vmem:[#allocation4 + $0x9c] sm:$0xf0] %vm7070_vm0, %v3266_v1  ;;  %v13141_v60 = vld [vmem:[#allocation50_spill] sm:$0xff]  ;;  %vm4384_vm13 = vcmp.ne.s32.totalorder %v4010_v59, 0  ;;  %vm4420_vm3 = vcmp.lt.s32.totalorder %v4010_v59, 0  ;;  %v4492_v51 = vadd.s32 18, %v4010_v59  ;;  %8439 = vmatmul.msk.bf16.gmra.mxu2 %vm724_vm5, %v4826_v38 }
 0x47f   : > { %v3191_v23 = vadd.f32 %v3135_v15, %v13141_v60  ;;  %vm4456_vm9 = vmand %vm4420_vm3, %vm4384_vm13  ;;  %8465 = vmatmul.msk.bf16.gmra.mxu3 %vm724_vm5, %v4768_v35  ;;  %v4037_v1 = vshrl.u32 %v4036_v34, 4  ;;  %vm4056_vm4 = vc.u32 %v4048_v53, %v4052_v49  ;;  %v4058_v41 = vadd.s32 %v4052_v49, %v4048_v53  ;;  %v13142_v60 = vld [vmem:[#allocation51_spill] sm:$0xff] }
 0x480   : > { %8491 = vmatmul.msk.bf16.gmra.mxu0 %vm724_vm5, %v5214_v2  ;;  %v4528_v12 = vsel %vm4456_vm9, %v4492_v51, %v4010_v59  ;;  %v4057_v50 = vsel %vm4056_vm4, 1, %v12971_v48  ;;  %v4075_v29 = vshrl.u32 %v11288_v46, 16  ;;  %v4927_v20 = vpop.f32.mrf.mxu2  ;;  %v4055_v5 = vshrl.u32 %v11322_v52, 16 }
 0x481   : > { %v3231_v55 = vadd.f32 %v10884_v27, %v3191_v23  ;;  %vm4564_vm12 = vcmp.lt.s32.totalorder %v4528_v12, 16  ;;  %v5092_v25 = vpop.f32.mrf.mxu3  ;;  %v4038_v27 = vmul.u32 18, %v4037_v1  ;;  %v4059_v9 = vadd.s32 %v4057_v50, %v4051_v58  ;;  %v11370_v1 = vld [vmem:[%s12741_s4] ss:$0 sm:$0xff] }
 0x482   : > { %v11349_v30 = vadd.f32 %v5092_v25, %v4927_v20  ;;  %vm4060_vm15 = vc.u32 %v4058_v41, %v4054_v45  ;;  %v11352_v34 = vmul.u32 58254, %v4074_v61  ;;  %v4077_v15 = vmul.u32 14564, %v4074_v61 }
 0x483   : > { %v3267_v44 = vmax.f32 %v3231_v55, 0.0  ;;  %v4039_v49 = vsub.s32 %v11245_v14, %v4038_v27  ;;  %v4061_v53 = vsel %vm4060_vm15, 1, %v12971_v48  ;;  %v11360_v35 = vmul.u32 14564, %v4075_v29 }
 0x484   : > { %v11358_v59 = vpop.f32.mrf.mxu0  ;;  %v4063_v38 = vadd.s32 %v4061_v53, %v4059_v9  ;;  %v4080_v52 = vmul.u32 58254, %v4075_v29  ;;  %v4081_v2 = vshll.u32 %v11352_v34, 16  ;;  %v4082_v61 = vshrl.u32 %v11352_v34, 16  ;;  %v4803_v53 = vld [vmem:[#allocation3 + $0xc1] sm:$0xff] }
 0x485   : > { %v4672_v26 = vsel %vm4564_vm12, %v3267_v44, 0.0  ;;  %7121 = vst.msk [vmem:[#allocation4 + $0xa4] sm:$0xff] %vm679_vm2, %v3267_v44  ;;  %v3138_v58 = vpop.f32.mrf.mxu1  ;;  %vm4385_vm10 = vcmp.ne.s32.totalorder %v4039_v49, 0  ;;  %vm4421_vm13 = vcmp.lt.s32.totalorder %v4039_v49, 0  ;;  %v4493_v51 = vadd.s32 18, %v4039_v49 }
 0x486   : > { %4708 = vst.msk [vmem:[#allocation3 + $0xcb] sm:$0xff] %vm724_vm5, %v4672_v26  ;;  %v3192_v23 = vadd.f32 %v3138_v58, %v13142_v60  ;;  %vm4457_vm3 = vmand %vm4421_vm13, %vm4385_vm10  ;;  %v4064_v14 = vadd.s32 %v4063_v38, %v4053_v56  ;;  %v4083_v45 = vshll.u32 %v11360_v35, 16  ;;  %v4084_v55 = vshrl.u32 %v11360_v35, 16  ;;  %v5191_v58 = vld [vmem:[#allocation3 + $0xc2] sm:$0xff] }
 0x487   : > { %v4529_v50 = vsel %vm4457_vm3, %v4493_v51, %v4039_v49  ;;  %v13143_v41 = vpack.c.bf16 %v11037_v8, %v11051_v39  ;;  %vm4085_vm9 = vc.u32 %v4077_v15, %v4081_v2  ;;  %v4087_v56 = vadd.s32 %v4081_v2, %v4077_v15  ;;  %v8814_v8 = vld [vmem:[%s12742_s5 + $0x40] sm:$0xff]  ;;  %v4745_v15 = vld [vmem:[#allocation3 + $0xc0] sm:$0xff] }
 0x488   : > { %v3232_v12 = vadd.f32 %v11370_v1, %v3192_v23  ;;  %vm11377_vm4 = vcmp.lt.s32.totalorder %v4529_v50, 16  ;;  %v4065_v44 = vadd.s32 %v4064_v14, %v4055_v5  ;;  %v4086_v20 = vsel %vm4085_vm9, 1, %v12971_v48  ;;  %v4929_v9 = vpop.f32.mrf.mxu2  ;;  %5816 = vmatpush.bf16.msra.mxu2 %v8814_v8 }
 0x489   : > { %8508 = vmatmul.msk.bf16.gmra.mxu1 %vm724_vm5, %v13143_v41  ;;  %v11383_v25 = vadd.s32 216, %v9954_v0  ;;  %v5094_v34 = vpop.f32.mrf.mxu3  ;;  %v4088_v26 = vadd.s32 %v4086_v20, %v4080_v52  ;;  %vm4089_vm12 = vc.u32 %v4087_v56, %v4083_v45  ;;  %v11389_v39 = vadd.s32 224, %v9954_v0  ;;  %v13146_v20 = vld [vmem:[#allocation62_spill] sm:$0xff] }
 0x48a   : > { %v3268_v27 = vmax.f32 %v3232_v12, 0.0  ;;  %v11391_v49 = vadd.f32 %v5094_v34, %v4929_v9  ;;  %v4066_v5 = vshrl.u32 %v4065_v44, 4  ;;  %v4090_v38 = vsel %vm4089_vm12, 1, %v12971_v48 }
 0x48b   : > { %v4103_v35 = vand.u32 65535, %v11383_v25  ;;  %v4092_v51 = vadd.s32 %v4090_v38, %v4088_v26  ;;  %v11400_v14 = vadd.f32 %v11222_v54, %v11247_v36  ;;  %v11404_v45 = vadd.f32 %v11258_v10, %v11284_v28 }
 0x48c   : > { %v4673_v52 = vsel %vm11377_vm4, %v3268_v27, 0.0  ;;  %7122 = vst.msk [vmem:[#allocation4 + $0xac] sm:$0xf] %vm7073_vm6, %v3268_v27  ;;  %v11407_v12 = vpop.f32.mrf.mxu0  ;;  %v4067_v41 = vmul.u32 18, %v4066_v5  ;;  %v4104_v54 = vshrl.u32 %v11383_v25, 16  ;;  %v4132_v26 = vand.u32 65535, %v11389_v39 }
 0x48d   : > { %v4804_v2 = vld [vmem:[#allocation3 + $0xc9] sm:$0xff]  ;;  %4709 = vst.msk [vmem:[#allocation3 + $0xd3] sm:$0xff] %vm724_vm5, %v4673_v52  ;;  %v3140_v50 = vpop.f32.mrf.mxu1  ;;  %v4093_v34 = vadd.s32 %v4092_v51, %v4082_v61  ;;  %v4106_v36 = vmul.u32 14564, %v4103_v35  ;;  %v11414_v28 = vmul.u32 58254, %v4103_v35  ;;  %v4133_v8 = vshrl.u32 %v11389_v39, 16 }
 0x48e   : > { %v4746_v60 = vld [vmem:[#allocation3 + $0xc8] sm:$0xff]  ;;  %v4827_v56 = vpack.c.bf16 %v4804_v2, %v4803_v53  ;;  %7126 = vst.msk [vmem:[#allocation4 + $0xaa] sm:$0xc0] %vm7080_vm11, %v3268_v27  ;;  %v3193_v9 = vadd.f32 %v3140_v50, %v13146_v20  ;;  %v4068_v10 = vsub.s32 %v11282_v3, %v4067_v41  ;;  %v11421_v27 = vmul.u32 14564, %v4104_v54 }
 0x48f   : > { %v5192_v23 = vld [vmem:[#allocation3 + $0xca] sm:$0xff]  ;;  %v4769_v29 = vpack.c.bf16 %v4746_v60, %v4745_v15  ;;  %v4094_v61 = vadd.s32 %v4093_v34, %v4084_v55  ;;  %v4109_v53 = vmul.u32 58254, %v4104_v54  ;;  %v4110_v15 = vshll.u32 %v11414_v28, 16 }
 0x490   : > { %v5215_v44 = vpack.c.bf16 %v5192_v23, %v5191_v58  ;;  %8440 = vmatmul.msk.bf16.gmra.mxu2 %vm724_vm5, %v4827_v56  ;;  %v3233_v5 = vadd.f32 %v11370_v1, %v3193_v9  ;;  %vm4386_vm15 = vcmp.ne.s32.totalorder %v4068_v10, 0  ;;  %vm4422_vm10 = vcmp.lt.s32.totalorder %v4068_v10, 0  ;;  %v4932_v38 = vpop.f32.mrf.mxu2 }
 0x491   : > { %8466 = vmatmul.msk.bf16.gmra.mxu3 %vm724_vm5, %v4769_v29  ;;  %v4494_v3 = vadd.s32 18, %v4068_v10  ;;  %vm4458_vm13 = vmand %vm4422_vm10, %vm4386_vm15  ;;  %v5097_v35 = vpop.f32.mrf.mxu3  ;;  %v4095_v52 = vshrl.u32 %v4094_v61, 4  ;;  %v4111_v2 = vshrl.u32 %v11414_v28, 16  ;;  %v4112_v60 = vshll.u32 %v11421_v27, 16 }
 0x492   : > { %8492 = vmatmul.msk.bf16.gmra.mxu0 %vm724_vm5, %v5215_v44  ;;  %v3269_v58 = vmax.f32 %v3233_v5, 0.0  ;;  %v11426_v51 = vadd.f32 %v5097_v35, %v4932_v38  ;;  %v4113_v55 = vshrl.u32 %v11421_v27, 16  ;;  %vm4114_vm3 = vc.u32 %v4106_v36, %v4110_v15 }
 0x493   : > { %v4530_v23 = vsel %vm4458_vm13, %v4494_v3, %v4068_v10  ;;  %v4096_v50 = vmul.u32 18, %v4095_v52  ;;  %v4115_v41 = vsel %vm4114_vm3, 1, %v12971_v48  ;;  %v4116_v56 = vadd.s32 %v4110_v15, %v4106_v36 }
 0x494   : > { %vm4566_vm9 = vcmp.lt.s32.totalorder %v4530_v23, 16  ;;  %7127 = vst.msk [vmem:[#allocation4 + $0xb2] sm:$0xff] %vm679_vm2, %v3269_v58  ;;  %v11431_v44 = vpop.f32.mrf.mxu0  ;;  %v4117_v9 = vadd.s32 %v4115_v41, %v4109_v53  ;;  %v4135_v34 = vmul.u32 14564, %v4132_v26  ;;  %v11433_v54 = vmul.u32 58254, %v4132_v26  ;;  %v4805_v41 = vld [vmem:[#allocation3 + $0xd1] sm:$0xff] }
 0x495   : > { %v4674_v29 = vsel %vm4566_vm9, %v3269_v58, 0.0  ;;  %v4097_v28 = vsub.s32 %v11288_v46, %v4096_v50  ;;  %vm4118_vm4 = vc.u32 %v4116_v56, %v4112_v60  ;;  %v11438_v5 = vmul.u32 14564, %v4133_v8  ;;  %v11451_v50 = vld [vmem:[#allocation3 + $0x7a] sm:$0xff]  ;;  %v4747_v56 = vld [vmem:[#allocation3 + $0xd0] sm:$0xff] }
 0x496   : > { %v3143_v20 = vpop.f32.mrf.mxu1  ;;  %4710 = vst.msk [vmem:[#allocation3 + $0xdb] sm:$0xff] %vm724_vm5, %v4674_v29  ;;  %v4119_v61 = vsel %vm4118_vm4, 1, %v12971_v48  ;;  %v4138_v36 = vmul.u32 58254, %v4133_v8  ;;  %v4139_v27 = vshll.u32 %v11433_v54, 16  ;;  %v4140_v3 = vshrl.u32 %v11433_v54, 16  ;;  %v5193_v54 = vld [vmem:[#allocation3 + $0xd2] sm:$0xff] }
 0x497   : > { %v3194_v10 = vadd.f32 %v3143_v20, %v10566_v6  ;;  %vm4387_vm12 = vcmp.ne.s32.totalorder %v4097_v28, 0  ;;  %vm4423_vm15 = vcmp.lt.s32.totalorder %v4097_v28, 0  ;;  %v4495_v26 = vadd.s32 18, %v4097_v28  ;;  %v11455_v20 = vld [vmem:[#allocation3 + $0x72] sm:$0xff] }
 0x498   : > { %v13147_v6 = vpack.c.bf16 %v11039_v32, %v11053_v47  ;;  %vm4459_vm10 = vmand %vm4423_vm15, %vm4387_vm12  ;;  %v4121_v46 = vadd.s32 %v4119_v61, %v4117_v9  ;;  %v4141_v15 = vshll.u32 %v11438_v5, 16  ;;  %v4142_v8 = vshrl.u32 %v11438_v5, 16  ;;  %v4934_v35 = vpop.f32.mrf.mxu2 }
 0x499   : > { %v3234_v53 = vadd.f32 %v11370_v1, %v3194_v10  ;;  %vm4143_vm13 = vc.u32 %v4135_v34, %v4139_v27  ;;  %v4531_v38 = vsel %vm4459_vm10, %v4495_v26, %v4097_v28  ;;  %v5099_v52 = vpop.f32.mrf.mxu3  ;;  %v4145_v23 = vadd.s32 %v4139_v27, %v4135_v34 }
 0x49a   : > { %8509 = vmatmul.msk.bf16.gmra.mxu1 %vm724_vm5, %v13147_v6  ;;  %v4144_v60 = vsel %vm4143_vm13, 1, %v12971_v48  ;;  %vm4567_vm3 = vcmp.lt.s32.totalorder %v4531_v38, 16  ;;  %v11453_v32 = vadd.f32 %v5099_v52, %v4934_v35  ;;  %v4122_v47 = vadd.s32 %v4121_v46, %v4111_v2 }
 0x49b   : > { %v3270_v58 = vmax.f32 %v3234_v53, 0.0  ;;  %v4146_v29 = vadd.s32 %v4144_v60, %v4138_v36  ;;  %vm4147_vm9 = vc.u32 %v4145_v23, %v4141_v15  ;;  %v11459_v10 = vadd.s32 232, %v9954_v0 }
 0x49c   : > { %v11462_v34 = vadd.s32 240, %v9954_v0  ;;  %v11465_v28 = vpop.f32.mrf.mxu0  ;;  %v4123_v5 = vadd.s32 %v4122_v47, %v4113_v55  ;;  %v4148_v53 = vsel %vm4147_vm9, 1, %v12971_v48  ;;  %v11469_v26 = vadd.s32 248, %v9954_v0 }
 0x49d   : > { %v4675_v9 = vsel %vm4567_vm3, %v3270_v58, 0.0  ;;  %7128 = vst.msk [vmem:[#allocation4 + $0xba] sm:$0x3f] %vm722_vm7, %v3270_v58  ;;  %v4806_v61 = vld [vmem:[#allocation3 + $0xd9] sm:$0xff]  ;;  %v4150_v52 = vadd.s32 %v4148_v53, %v4146_v29  ;;  %v4161_v55 = vand.u32 65535, %v11459_v10  ;;  %v4162_v60 = vshrl.u32 %v11459_v10, 16 }
 0x49e   : > { %4711 = vst.msk [vmem:[#allocation3 + $0xe3] sm:$0xff] %vm724_vm5, %v4675_v9  ;;  %v3145_v2 = vpop.f32.mrf.mxu1  ;;  %v4748_v36 = vld [vmem:[#allocation3 + $0xd8] sm:$0xff]  ;;  %v4828_v15 = vpack.c.bf16 %v4806_v61, %v4805_v41  ;;  %v4124_v35 = vshrl.u32 %v4123_v5, 4  ;;  %v4190_v47 = vand.u32 65535, %v11462_v34  ;;  %v4191_v9 = vshrl.u32 %v11462_v34, 16 }
 0x49f   : > { %v5194_v27 = vld [vmem:[#allocation3 + $0xda] sm:$0xff]  ;;  %v3195_v46 = vadd.f32 %v3145_v2, %v10570_v31  ;;  %v4770_v58 = vpack.c.bf16 %v4748_v36, %v4747_v56  ;;  %v4151_v56 = vadd.s32 %v4150_v52, %v4140_v3  ;;  %v4164_v29 = vmul.u32 14564, %v4161_v55 }
 0x4a0   : > { %v5216_v38 = vpack.c.bf16 %v5194_v27, %v5193_v54  ;;  %8441 = vmatmul.msk.bf16.gmra.mxu2 %vm724_vm5, %v4828_v15  ;;  %v4125_v41 = vmul.u32 18, %v4124_v35  ;;  %v4165_v54 = vmul.u32 58254, %v4161_v55  ;;  %v4166_v36 = vmul.u32 14564, %v4162_v60 }
 0x4a1   : > { %v3235_v23 = vadd.f32 %v11370_v1, %v3195_v46  ;;  %8467 = vmatmul.msk.bf16.gmra.mxu3 %vm724_vm5, %v4770_v58  ;;  %v4937_v5 = vpop.f32.mrf.mxu2  ;;  %v5102_v61 = vpop.f32.mrf.mxu3  ;;  %v4167_v27 = vmul.u32 58254, %v4162_v60  ;;  %v4193_v53 = vmul.u32 14564, %v4190_v47  ;;  %v4152_v58 = vadd.s32 %v4151_v56, %v4142_v8 }
 0x4a2   : > { %8493 = vmatmul.msk.bf16.gmra.mxu0 %vm724_vm5, %v5216_v38  ;;  %v4126_v46 = vsub.s32 %v11383_v25, %v4125_v41  ;;  %v11484_v15 = vadd.f32 %v5102_v61, %v4937_v5  ;;  %v4168_v6 = vshll.u32 %v4165_v54, 16  ;;  %v4169_v35 = vshrl.u32 %v4165_v54, 16 }
 0x4a3   : > { %v3271_v2 = vmax.f32 %v3235_v23, 0.0  ;;  %v4170_v31 = vshll.u32 %v4166_v36, 16  ;;  %v4171_v38 = vshrl.u32 %v4166_v36, 16  ;;  %v11489_v3 = vadd.f32 %v11296_v11, %v11320_v16 }
 0x4a4   : > { %vm4388_vm4 = vcmp.ne.s32.totalorder %v4126_v46, 0  ;;  %vm4424_vm12 = vcmp.lt.s32.totalorder %v4126_v46, 0  ;;  %v4496_v52 = vadd.s32 18, %v4126_v46  ;;  %v11491_v55 = vpop.f32.mrf.mxu0  ;;  %v4153_v25 = vshrl.u32 %v4152_v58, 4 }
 0x4a5   : > { %7132 = vst.msk [vmem:[#allocation4 + $0xc0] sm:$0xff] %vm679_vm2, %v3271_v2  ;;  %vm4460_vm15 = vmand %vm4424_vm12, %vm4388_vm4  ;;  %vm4172_vm10 = vc.u32 %v4164_v29, %v4168_v6  ;;  %v4174_v23 = vadd.s32 %v4168_v6, %v4164_v29  ;;  %v11494_v41 = vmul.u32 58254, %v4190_v47  ;;  %v11497_v11 = vmul.u32 14564, %v4191_v9 }
 0x4a6   : > { %v3148_v60 = vpop.f32.mrf.mxu1  ;;  %v4532_v56 = vsel %vm4460_vm15, %v4496_v52, %v4126_v46  ;;  %v4154_v54 = vmul.u32 18, %v4153_v25  ;;  %v4173_v5 = vsel %vm4172_vm10, 1, %v12971_v48  ;;  %v13148_v61 = vpack.c.bf16 %v11180_v17, %v11202_v33 }
 0x4a7   : > { %v3196_v8 = vadd.f32 %v3148_v60, %v10583_v43  ;;  %vm4568_vm13 = vcmp.lt.s32.totalorder %v4532_v56, 16  ;;  %v4175_v36 = vadd.s32 %v4173_v5, %v4167_v27  ;;  %vm4176_vm3 = vc.u32 %v4174_v23, %v4170_v31 }
 0x4a8   : > { %v4676_v43 = vsel %vm4568_vm13, %v3271_v2, 0.0  ;;  %v4155_v6 = vsub.s32 %v11389_v39, %v4154_v54  ;;  %v4177_v47 = vsel %vm4176_vm3, 1, %v12971_v48  ;;  %v4196_v29 = vmul.u32 58254, %v4191_v9 }
 0x4a9   : > { %v3236_v16 = vadd.f32 %v11370_v1, %v3196_v8  ;;  %4712 = vst.msk [vmem:[#allocation3 + $0xeb] sm:$0xff] %vm724_vm5, %v4676_v43  ;;  %v4939_v58 = vpop.f32.mrf.mxu2  ;;  %v5104_v52 = vpop.f32.mrf.mxu3  ;;  %v4179_v60 = vadd.s32 %v4177_v47, %v4175_v36  ;;  %v4197_v25 = vshll.u32 %v11494_v41, 16  ;;  %v4198_v17 = vshrl.u32 %v11494_v41, 16 }
 0x4aa   : > { %8510 = vmatmul.msk.bf16.gmra.mxu1 %vm724_vm5, %v13148_v61  ;;  %vm4389_vm9 = vcmp.ne.s32.totalorder %v4155_v6, 0  ;;  %vm4425_vm4 = vcmp.lt.s32.totalorder %v4155_v6, 0  ;;  %v4497_v33 = vadd.s32 18, %v4155_v6  ;;  %v11509_v31 = vadd.f32 %v5104_v52, %v4939_v58  ;;  %v4807_v58 = vld [vmem:[#allocation3 + $0xe1] sm:$0xff] }
 0x4ab   : > { %v3272_v46 = vmax.f32 %v3236_v16, 0.0  ;;  %vm4461_vm12 = vmand %vm4425_vm4, %vm4389_vm9  ;;  %v4180_v39 = vadd.s32 %v4179_v60, %v4169_v35  ;;  %v4199_v9 = vshll.u32 %v11497_v11, 16  ;;  %v4200_v2 = vshrl.u32 %v11497_v11, 16  ;;  %v4749_v52 = vld [vmem:[#allocation3 + $0xe0] sm:$0xff] }
 0x4ac   : > { %vm4201_vm15 = vc.u32 %v4193_v53, %v4197_v25  ;;  %v4533_v27 = vsel %vm4461_vm12, %v4497_v33, %v4155_v6  ;;  %v4203_v56 = vadd.s32 %v4197_v25, %v4193_v53  ;;  %v4220_v54 = vshrl.u32 %v11469_v26, 16 }
 0x4ad   : > { %7133 = vst.msk [vmem:[#allocation4 + $0xc8] sm:$0xff] %vm679_vm2, %v3272_v46  ;;  %v11514_v8 = vpop.f32.mrf.mxu0  ;;  %v4202_v41 = vsel %vm4201_vm15, 1, %v12971_v48  ;;  %vm4569_vm10 = vcmp.lt.s32.totalorder %v4533_v27, 16  ;;  %v4181_v16 = vadd.s32 %v4180_v39, %v4171_v38  ;;  %v13150_v36 = vand.u32 65535, %v11469_v26 }
 0x4ae   : > { %13149 = vst [vmem:[#allocation57_spill] sm:$0xff] %v11514_v8  ;;  %v3150_v23 = vpop.f32.mrf.mxu1  ;;  %v4204_v61 = vadd.s32 %v4202_v41, %v4196_v29  ;;  %v4677_v35 = vsel %vm4569_vm10, %v3272_v46, 0.0  ;;  %vm4205_vm13 = vc.u32 %v4203_v56, %v4199_v9  ;;  %v11528_v38 = vmul.u32 14564, %v4220_v54 }
 0x4af   : > { %v3197_v5 = vadd.f32 %v3150_v23, %v10749_v21  ;;  %v4222_v11 = vmul.u32 14564, %v13150_v36  ;;  %v13151_v43 = vmov %v13150_v36  ;;  %4713 = vst.msk [vmem:[#allocation3 + $0xf3] sm:$0xff] %vm724_vm5, %v4677_v35  ;;  %v4182_v47 = vshrl.u32 %v4181_v16, 4 }
 0x4b0   : > { %v11523_v6 = vmul.u32 58254, %v13151_v43  ;;  %v4206_v21 = vsel %vm4205_vm13, 1, %v12971_v48  ;;  %v4808_v29 = vld [vmem:[#allocation3 + $0xe9] sm:$0xff]  ;;  %v4225_v33 = vmul.u32 58254, %v4220_v54  ;;  %v4228_v8 = vshll.u32 %v11528_v38, 16 }
 0x4b1   : > { %v3237_v53 = vadd.f32 %v11370_v1, %v3197_v5  ;;  %v4750_v46 = vld [vmem:[#allocation3 + $0xe8] sm:$0xff]  ;;  %v4208_v25 = vadd.s32 %v4206_v21, %v4204_v61  ;;  %v4183_v23 = vmul.u32 18, %v4182_v47  ;;  %v4829_v41 = vpack.c.bf16 %v4808_v29, %v4807_v58  ;;  %v4942_v16 = vpop.f32.mrf.mxu2 }
 0x4b2   : > { %v5196_v60 = vld [vmem:[#allocation3 + $0xea] sm:$0xff]  ;;  %v4226_v39 = vshll.u32 %v11523_v6, 16  ;;  %v4227_v9 = vshrl.u32 %v11523_v6, 16  ;;  %v4771_v56 = vpack.c.bf16 %v4750_v46, %v4749_v52  ;;  %v5195_v5 = vld [vmem:[#allocation3 + $0xe2] sm:$0xff]  ;;  %v5107_v35 = vpop.f32.mrf.mxu3  ;;  %v4229_v61 = vshrl.u32 %v11528_v38, 16 }
 0x4b3   : > { %v3273_v27 = vmax.f32 %v3237_v53, 0.0  ;;  %v11532_v36 = vpack.c.bf16 %v5196_v60, %v5195_v5  ;;  %v11534_v43 = vadd.f32 %v5107_v35, %v4942_v16  ;;  %v4209_v19 = vadd.s32 %v4208_v25, %v4198_v17  ;;  %8442 = vmatmul.msk.bf16.gmra.mxu2 %vm724_vm5, %v4829_v41 }
 0x4b4   : > { %v4184_v54 = vsub.s32 %v11459_v10, %v4183_v23  ;;  %8468 = vmatmul.msk.bf16.gmra.mxu3 %vm724_vm5, %v4771_v56  ;;  %vm4230_vm3 = vc.u32 %v4222_v11, %v4226_v39  ;;  %v11543_v6 = vadd.s32 256, %v9954_v0  ;;  %v4232_v58 = vadd.s32 %v4226_v39, %v4222_v11 }
 0x4b5   : > { %7136 = vst.msk [vmem:[#allocation4 + $0xce] sm:$0xfc] %vm7060_vm8, %v3273_v27  ;;  %8494 = vmatmul.msk.bf16.gmra.mxu0 %vm724_vm5, %v11532_v36  ;;  %v11547_v17 = vpop.f32.mrf.mxu0  ;;  %v4210_v47 = vadd.s32 %v4209_v19, %v4200_v2  ;;  %v4231_v10 = vsel %vm4230_vm3, 1, %v12971_v48  ;;  %v11551_v52 = vadd.s32 264, %v9954_v0  ;;  %v13152_v2 = vpack.c.bf16 %v11314_v62, %v11318_v22 }
 0x4b6   : > { %v3153_v53 = vpop.f32.mrf.mxu1  ;;  %vm4390_vm8 = vcmp.ne.s32.totalorder %v4184_v54, 0  ;;  %vm4426_vm9 = vcmp.lt.s32.totalorder %v4184_v54, 0  ;;  %v4498_v21 = vadd.s32 18, %v4184_v54  ;;  %v4233_v46 = vadd.s32 %v4231_v10, %v4225_v33 }
 0x4b7   : > { %v3198_v38 = vadd.f32 %v3153_v53, %v10862_v40  ;;  %vm4462_vm4 = vmand %vm4426_vm9, %vm4390_vm8  ;;  %v4211_v29 = vshrl.u32 %v4210_v47, 4  ;;  %vm4234_vm12 = vc.u32 %v4232_v58, %v4228_v8  ;;  %v4248_v60 = vand.u32 65535, %v11543_v6 }
 0x4b8   : > { %v4534_v25 = vsel %vm4462_vm4, %v4498_v21, %v4184_v54  ;;  %v4235_v11 = vsel %vm4234_vm12, 1, %v12971_v48  ;;  %v4249_v39 = vshrl.u32 %v11543_v6, 16  ;;  %v8819_v21 = vld [vmem:[%s12742_s5 + $0x68] sm:$0xff] }
 0x4b9   : > { %v3238_v19 = vadd.f32 %v11370_v1, %v3198_v38  ;;  %vm4570_vm15 = vcmp.lt.s32.totalorder %v4534_v25, 16  ;;  %v4212_v40 = vmul.u32 18, %v4211_v29  ;;  %v4237_v23 = vadd.s32 %v4235_v11, %v4233_v46  ;;  %v4944_v56 = vpop.f32.mrf.mxu2  ;;  %6333 = vmatpush.bf16.msra.mxu0 %v8819_v21 }
 0x4ba   : > { %8511 = vmatmul.msk.bf16.gmra.mxu1 %vm724_vm5, %v13152_v2  ;;  %v4251_v41 = vmul.u32 14564, %v4248_v60  ;;  %v4678_v33 = vsel %vm4570_vm15, %v3273_v27, 0.0  ;;  %v5109_v5 = vpop.f32.mrf.mxu3  ;;  %v4252_v16 = vmul.u32 58254, %v4248_v60  ;;  %v11562_v35 = vmul.u32 14564, %v4249_v39 }
 0x4bb   : > { %v3274_v8 = vmax.f32 %v3238_v19, 0.0  ;;  %4714 = vst.msk [vmem:[#allocation3 + $0xfb] sm:$0xff] %vm724_vm5, %v4678_v33  ;;  %v4213_v62 = vsub.s32 %v11462_v34, %v4212_v40  ;;  %v11566_v22 = vadd.f32 %v5109_v5, %v4944_v56  ;;  %v4238_v54 = vadd.s32 %v4237_v23, %v4227_v9  ;;  %v4809_v23 = vld [vmem:[#allocation3 + $0xf1] sm:$0xff] }
 0x4bc   : > { %v4254_v53 = vmul.u32 58254, %v4249_v39  ;;  %v4255_v47 = vshll.u32 %v4252_v16, 16  ;;  %v4256_v10 = vshrl.u32 %v4252_v16, 16  ;;  %v4257_v27 = vshll.u32 %v11562_v35, 16  ;;  %v5197_v5 = vld [vmem:[#allocation3 + $0xf2] sm:$0xff] }
 0x4bd   : > { %7137 = vst.msk [vmem:[#allocation4 + $0xd6] sm:$0xff] %vm679_vm2, %v3274_v8  ;;  %v4258_v58 = vshrl.u32 %v11562_v35, 16  ;;  %vm4391_vm10 = vcmp.ne.s32.totalorder %v4213_v62, 0  ;;  %vm4427_vm13 = vcmp.lt.s32.totalorder %v4213_v62, 0  ;;  %v4499_v38 = vadd.s32 18, %v4213_v62  ;;  %v11574_v34 = vpop.f32.mrf.mxu0 }
 0x4be   : > { %v3155_v29 = vpop.f32.mrf.mxu1  ;;  %v4239_v9 = vadd.s32 %v4238_v54, %v4229_v61  ;;  %vm4463_vm3 = vmand %vm4427_vm13, %vm4391_vm10  ;;  %vm4259_vm8 = vc.u32 %v4251_v41, %v4255_v47  ;;  %v4261_v60 = vadd.s32 %v4255_v47, %v4251_v41  ;;  %v4277_v25 = vand.u32 65535, %v11551_v52 }
 0x4bf   : > { %v3199_v46 = vadd.f32 %v3155_v29, %v10865_v24  ;;  %v4535_v19 = vsel %vm4463_vm3, %v4499_v38, %v4213_v62  ;;  %v4260_v11 = vsel %vm4259_vm8, 1, %v12971_v48  ;;  %v4278_v39 = vshrl.u32 %v11551_v52, 16  ;;  %v4751_v24 = vld [vmem:[#allocation3 + $0xf0] sm:$0xff] }
 0x4c0   : > { %v4240_v2 = vshrl.u32 %v4239_v9, 4  ;;  %vm4571_vm9 = vcmp.lt.s32.totalorder %v4535_v19, 16  ;;  %v4262_v33 = vadd.s32 %v4260_v11, %v4254_v53  ;;  %vm4263_vm4 = vc.u32 %v4261_v60, %v4257_v27 }
 0x4c1   : > { %v3239_v40 = vadd.f32 %v11370_v1, %v3199_v46  ;;  %v4679_v61 = vsel %vm4571_vm9, %v3274_v8, 0.0  ;;  %v4264_v41 = vsel %vm4263_vm4, 1, %v12971_v48  ;;  %v4280_v16 = vmul.u32 14564, %v4277_v25  ;;  %v4947_v21 = vpop.f32.mrf.mxu2 }
 0x4c2   : > { %v4241_v56 = vmul.u32 18, %v4240_v2  ;;  %4715 = vst.msk [vmem:[#allocation3 + $0x103] sm:$0xff] %vm724_vm5, %v4679_v61  ;;  %v4810_v62 = vld [vmem:[#allocation3 + $0xf9] sm:$0xff]  ;;  %v5112_v38 = vpop.f32.mrf.mxu3  ;;  %v4266_v29 = vadd.s32 %v4264_v41, %v4262_v33  ;;  %v4281_v9 = vmul.u32 58254, %v4277_v25  ;;  %v11585_v53 = vadd.f32 %v11335_v7, %v11349_v30 }
 0x4c3   : > { %v3275_v35 = vmax.f32 %v3239_v40, 0.0  ;;  %v4752_v54 = vld [vmem:[#allocation3 + $0xf8] sm:$0xff]  ;;  %v4830_v27 = vpack.c.bf16 %v4810_v62, %v4809_v23  ;;  %v11591_v19 = vadd.f32 %v5112_v38, %v4947_v21  ;;  %v4282_v11 = vmul.u32 14564, %v4278_v39  ;;  %v11610_v21 = vld [vmem:[#allocation3 + $0x8a] sm:$0xff] }
 0x4c4   : > { %v5198_v47 = vld [vmem:[#allocation3 + $0xfa] sm:$0xff]  ;;  %v4242_v8 = vsub.s32 %v11469_v26, %v4241_v56  ;;  %v4772_v46 = vpack.c.bf16 %v4752_v54, %v4751_v24  ;;  %v4267_v2 = vadd.s32 %v4266_v29, %v4256_v10  ;;  %v4283_v40 = vmul.u32 58254, %v4278_v39 }
 0x4c5   : > { %v11588_v60 = vpack.c.bf16 %v5198_v47, %v5197_v5  ;;  %7138 = vst.msk [vmem:[#allocation4 + $0xde] sm:$0x3] %vm7063_vm14, %v3275_v35  ;;  %8443 = vmatmul.msk.bf16.gmra.mxu2 %vm724_vm5, %v4830_v27  ;;  %v11596_v7 = vpop.f32.mrf.mxu0  ;;  %v4284_v26 = vshll.u32 %v4281_v9, 16  ;;  %v4285_v23 = vshrl.u32 %v4281_v9, 16  ;;  %v4286_v33 = vshll.u32 %v4282_v11, 16 }
 0x4c6   : > { %vm4392_vm12 = vcmp.ne.s32.totalorder %v4242_v8, 0  ;;  %vm4428_vm15 = vcmp.lt.s32.totalorder %v4242_v8, 0  ;;  %v4500_v25 = vadd.s32 18, %v4242_v8  ;;  %7142 = vst.msk [vmem:[#allocation4 + $0xdc] sm:$0xf0] %vm7070_vm0, %v3275_v35  ;;  %8469 = vmatmul.msk.bf16.gmra.mxu3 %vm724_vm5, %v4772_v46  ;;  %v3158_v30 = vpop.f32.mrf.mxu1  ;;  %v4268_v39 = vadd.s32 %v4267_v2, %v4258_v58  ;;  %v11621_v2 = vld [vmem:[#allocation3 + $0x82] sm:$0xff] }
 0x4c7   : > { %vm4464_vm10 = vmand %vm4428_vm15, %vm4392_vm12  ;;  %8495 = vmatmul.msk.bf16.gmra.mxu0 %vm724_vm5, %v11588_v60  ;;  %v3200_v10 = vadd.f32 %v3158_v30, %v11009_v4  ;;  %v4287_v56 = vshrl.u32 %v4282_v11, 16  ;;  %vm4288_vm14 = vc.u32 %v4280_v16, %v4284_v26  ;;  %v4290_v24 = vadd.s32 %v4284_v26, %v4280_v16  ;;  %v13154_v11 = vld [vmem:[#allocation58_spill] sm:$0xff] }
 0x4c8   : > { %v4536_v61 = vsel %vm4464_vm10, %v4500_v25, %v4242_v8  ;;  %v4269_v41 = vshrl.u32 %v4268_v39, 4  ;;  %v13153_v62 = vpack.c.bf16 %v11451_v50, %v11455_v20  ;;  %v4289_v54 = vsel %vm4288_vm14, 1, %v12971_v48 }
 0x4c9   : > { %vm4572_vm0 = vcmp.lt.s32.totalorder %v4536_v61, 16  ;;  %v3240_v5 = vadd.f32 %v11370_v1, %v3200_v10  ;;  %v4291_v4 = vadd.s32 %v4289_v54, %v4283_v40  ;;  %vm4292_vm13 = vc.u32 %v4290_v24, %v4286_v33  ;;  %v4949_v29 = vpop.f32.mrf.mxu2 }
 0x4ca   : > { %8512 = vmatmul.msk.bf16.gmra.mxu1 %vm724_vm5, %v13153_v62  ;;  %v4680_v47 = vsel %vm4572_vm0, %v3275_v35, 0.0  ;;  %v11608_v58 = vadd.s32 272, %v9954_v0  ;;  %v4270_v38 = vmul.u32 18, %v4269_v41  ;;  %v5114_v9 = vpop.f32.mrf.mxu3  ;;  %v4293_v50 = vsel %vm4292_vm13, 1, %v12971_v48 }
 0x4cb   : > { %4716 = vst.msk [vmem:[#allocation3 + $0x10b] sm:$0xff] %vm724_vm5, %v4680_v47  ;;  %v3276_v16 = vmax.f32 %v3240_v5, 0.0  ;;  %v11615_v20 = vadd.s32 280, %v9954_v0  ;;  %v11617_v8 = vadd.f32 %v5114_v9, %v4949_v29  ;;  %v4295_v35 = vadd.s32 %v4293_v50, %v4291_v4  ;;  %v8818_v5 = vld [vmem:[%s12742_s5 + $0x60] sm:$0xff]  ;;  %v4753_v29 = vld [vmem:[#allocation3 + $0x100] sm:$0xff] }
 0x4cc   : > { %v4306_v27 = vand.u32 65535, %v11608_v58  ;;  %v4307_v46 = vshrl.u32 %v11608_v58, 16  ;;  %v11625_v40 = vadd.f32 %v10901_v63, %v13154_v11  ;;  %v4271_v25 = vsub.s32 %v11543_v6, %v4270_v38  ;;  %v4811_v38 = vld [vmem:[#allocation3 + $0x101] sm:$0xff]  ;;  %6334 = vmatpush.bf16.msra.mxu0 %v8818_v5 }
 0x4cd   : > { %7143 = vst.msk [vmem:[#allocation4 + $0xe4] sm:$0xff] %vm679_vm2, %v3276_v16  ;;  %v4335_v30 = vand.u32 65535, %v11615_v20  ;;  %v11632_v26 = vpop.f32.mrf.mxu0  ;;  %v4296_v39 = vadd.s32 %v4295_v35, %v4285_v23  ;;  %v4336_v23 = vshrl.u32 %v11615_v20, 16 }
 0x4ce   : > { %13155 = vst [vmem:[#allocation59_spill] sm:$0xff] %v11632_v26  ;;  %v3160_v10 = vpop.f32.mrf.mxu1  ;;  %v4309_v33 = vmul.u32 14564, %v4306_v27  ;;  %v11634_v61 = vmul.u32 58254, %v4306_v27  ;;  %v11636_v24 = vmul.u32 14564, %v4307_v46  ;;  %vm4393_vm3 = vcmp.ne.s32.totalorder %v4271_v25, 0 }
 0x4cf   : > { %vm4429_vm8 = vcmp.lt.s32.totalorder %v4271_v25, 0  ;;  %v4501_v63 = vadd.s32 18, %v4271_v25  ;;  %v3201_v6 = vadd.f32 %v3160_v10, %v11030_v13  ;;  %v4297_v41 = vadd.s32 %v4296_v39, %v4287_v56 }
 0x4d0   : > { %vm4465_vm9 = vmand %vm4429_vm8, %vm4393_vm3  ;;  %v4312_v62 = vmul.u32 58254, %v4307_v46  ;;  %v4313_v54 = vshll.u32 %v11634_v61, 16  ;;  %v4314_v9 = vshrl.u32 %v11634_v61, 16  ;;  %v4315_v13 = vshll.u32 %v11636_v24, 16 }
 0x4d1   : > { %v4537_v47 = vsel %vm4465_vm9, %v4501_v63, %v4271_v25  ;;  %v3241_v4 = vadd.f32 %v11370_v1, %v3201_v6  ;;  %v4298_v50 = vshrl.u32 %v4297_v41, 4  ;;  %v5199_v63 = vld [vmem:[#allocation3 + $0x102] sm:$0xff]  ;;  %v4952_v6 = vpop.f32.mrf.mxu2 }
 0x4d2   : > { %vm4573_vm4 = vcmp.lt.s32.totalorder %v4537_v47, 16  ;;  %v4812_v35 = vld [vmem:[#allocation3 + $0x109] sm:$0xff]  ;;  %vm4317_vm12 = vc.u32 %v4309_v33, %v4313_v54  ;;  %v4319_v46 = vadd.s32 %v4313_v54, %v4309_v33  ;;  %v5117_v0 = vpop.f32.mrf.mxu3  ;;  %v4339_v33 = vmul.u32 58254, %v4335_v30 }
 0x4d3   : > { %v4754_v27 = vld [vmem:[#allocation3 + $0x108] sm:$0xff]  ;;  %v4681_v11 = vsel %vm4573_vm4, %v3276_v16, 0.0  ;;  %v3277_v10 = vmax.f32 %v3241_v4, 0.0  ;;  %v4831_v39 = vpack.c.bf16 %v4812_v35, %v4811_v38  ;;  %v4299_v61 = vmul.u32 18, %v4298_v50 }
 0x4d4   : > { %v5200_v56 = vld [vmem:[#allocation3 + $0x10a] sm:$0xff]  ;;  %v4773_v25 = vpack.c.bf16 %v4754_v27, %v4753_v29  ;;  %4717 = vst.msk [vmem:[#allocation3 + $0x113] sm:$0xff] %vm724_vm5, %v4681_v11  ;;  %v11650_v5 = vadd.f32 %v5117_v0, %v4952_v6  ;;  %v4318_v41 = vsel %vm4317_vm12, 1, %v12971_v48  ;;  %vm4321_vm15 = vc.u32 %v4319_v46, %v4315_v13  ;;  %v8833_v46 = vld [vmem:[%s12745_s8 + $0x18] sm:$0xff] }
 0x4d5   : > { %v11648_v26 = vpack.c.bf16 %v5200_v56, %v5199_v63  ;;  %7144 = vst.msk [vmem:[#allocation4 + $0xec] sm:$0xf] %vm7073_vm6, %v3277_v10  ;;  %v4320_v47 = vadd.s32 %v4318_v41, %v4312_v62  ;;  %v4338_v16 = vmul.u32 14564, %v4335_v30  ;;  %v4300_v54 = vsub.s32 %v11551_v52, %v4299_v61  ;;  %8444 = vmatmul.msk.bf16.gmra.mxu2 %vm724_vm5, %v4831_v39  ;;  %v11658_v4 = vpop.f32.mrf.mxu0  ;;  %v13156_v30 = vld [vmem:[#allocation56_spill] sm:$0xff] }
 0x4d6   : > { %7148 = vst.msk [vmem:[#allocation4 + $0xea] sm:$0xc0] %vm7080_vm11, %v3277_v10  ;;  %8470 = vmatmul.msk.bf16.gmra.mxu3 %vm724_vm5, %v4773_v25  ;;  %v3163_v0 = vpop.f32.mrf.mxu1  ;;  %v4316_v38 = vshrl.u32 %v11636_v24, 16  ;;  %v4322_v29 = vsel %vm4321_vm15, 1, %v12971_v48  ;;  %v4340_v50 = vmul.u32 14564, %v4336_v23  ;;  %v4341_v13 = vmul.u32 58254, %v4336_v23 }
 0x4d7   : > { %8496 = vmatmul.msk.bf16.gmra.mxu0 %vm724_vm5, %v11648_v26  ;;  %v3202_v62 = vadd.f32 %v3163_v0, %v13156_v30  ;;  %v4324_v52 = vadd.s32 %v4322_v29, %v4320_v47  ;;  %v4342_v35 = vshll.u32 %v4339_v33, 16  ;;  %vm4394_vm6 = vcmp.ne.s32.totalorder %v4300_v54, 0  ;;  %7314 = vmatpush.bf16.msra.mxu3 %v8833_v46 }
 0x4d8   : > { %vm4430_vm11 = vcmp.lt.s32.totalorder %v4300_v54, 0  ;;  %v4502_v27 = vadd.s32 18, %v4300_v54  ;;  %v4344_v56 = vshll.u32 %v4340_v50, 16  ;;  %v2653_v24 = vadd.f32 %v10903_v57, %v11625_v40 }
 0x4d9   : > { %vm4466_vm10 = vmand %vm4430_vm11, %vm4394_vm6  ;;  %v3242_v11 = vadd.f32 %v11370_v1, %v3202_v62  ;;  %v4325_v39 = vadd.s32 %v4324_v52, %v4314_v9  ;;  %v13157_v25 = vpack.c.bf16 %v11610_v21, %v11621_v2  ;;  %vm4346_vm14 = vc.u32 %v4338_v16, %v4342_v35  ;;  %v4954_v47 = vpop.f32.mrf.mxu2 }
 0x4da   : > { %v4538_v23 = vsel %vm4466_vm10, %v4502_v27, %v4300_v54  ;;  %v4347_v63 = vsel %vm4346_vm14, 1, %v12971_v48  ;;  %v4348_v6 = vadd.s32 %v4342_v35, %v4338_v16  ;;  %v5119_v57 = vpop.f32.mrf.mxu3  ;;  %v4343_v9 = vshrl.u32 %v4339_v33, 16  ;;  %v5443_v27 = vld [vmem:[#allocation3 + $0x9a] sm:$0xff] }
 0x4db   : > { %8513 = vmatmul.msk.bf16.gmra.mxu1 %vm724_vm5, %v13157_v25  ;;  %vm4574_vm0 = vcmp.lt.s32.totalorder %v4538_v23, 16  ;;  %v3278_v61 = vmax.f32 %v3242_v11, 0.0  ;;  %v4326_v41 = vadd.s32 %v4325_v39, %v4316_v38  ;;  %v4349_v40 = vadd.s32 %v4347_v63, %v4341_v13  ;;  %v4813_v46 = vld [vmem:[#allocation3 + $0x111] sm:$0xff] }
 0x4dc   : > { %v4682_v0 = vsel %vm4574_vm0, %v3277_v10, 0.0  ;;  %v11676_v29 = vadd.f32 %v5119_v57, %v4954_v47  ;;  %vm4350_vm13 = vc.u32 %v4348_v6, %v4344_v56  ;;  %v2928_v21 = vadd.f32 %v10918_v42, %v2653_v24  ;;  %v4755_v24 = vld [vmem:[#allocation3 + $0x110] sm:$0xff] }
 0x4dd   : > { %4718 = vst.msk [vmem:[#allocation3 + $0x11b] sm:$0xff] %vm724_vm5, %v4682_v0  ;;  %v4327_v2 = vshrl.u32 %v4326_v41, 4  ;;  %v4351_v54 = vsel %vm4350_vm13, 1, %v12971_v48  ;;  %v11682_v16 = vpop.f32.mrf.mxu0  ;;  %v4345_v30 = vshrl.u32 %v4340_v50, 16  ;;  %vm7435_vm11 = vcmask 785408  }
 0x4de   : > { %7149 = vst.msk [vmem:[#allocation4 + $0xf2] sm:$0xff] %vm679_vm2, %v3278_v61  ;;  %v3165_v38 = vpop.f32.mrf.mxu1  ;;  %v4353_v62 = vadd.s32 %v4351_v54, %v4349_v40  ;;  %vm7065_vm10 = vcmask 261122   ;;  %vm767_vm14 = vcmask 259072   ;;  %vm7068_vm0 = vcmask 254976  }
 0x4df   : > { %v4328_v52 = vmul.u32 18, %v4327_v2  ;;  %v3203_v10 = vadd.f32 %v3165_v38, %v2928_v21  ;;  %v5442_v21 = vld [vmem:[#allocation3 + $0x92] sm:$0xff]  ;;  %vm7075_vm13 = vcmask 261124  }
 0x4e0   : > { %v4354_v13 = vadd.s32 %v4353_v62, %v4343_v9  ;;  %v5470_v38 = vpack.c.bf16 %v5443_v27, %v5442_v21  ;;  %v6204_v27 = vld [vmem:[#allocation3 + $0x2c] sm:$0xff] }
 0x4e1   : > { %v4329_v33 = vsub.s32 %v11608_v58, %v4328_v52  ;;  %v3243_v35 = vadd.f32 %v11370_v1, %v3203_v10  ;;  %v4957_v11 = vpop.f32.mrf.mxu2  ;;  %v5201_v1 = vld [vmem:[#allocation3 + $0x112] sm:$0xff] }
 0x4e2   : > { %v4355_v42 = vadd.s32 %v4354_v13, %v4345_v30  ;;  %v5122_v23 = vpop.f32.mrf.mxu3 }
 0x4e3   : > { %vm4395_vm3 = vcmp.ne.s32.totalorder %v4329_v33, 0  ;;  %vm4431_vm8 = vcmp.lt.s32.totalorder %v4329_v33, 0  ;;  %v4503_v56 = vadd.s32 18, %v4329_v33  ;;  %v3279_v48 = vmax.f32 %v3243_v35, 0.0 }
 0x4e4   : > { %vm4467_vm9 = vmand %vm4431_vm8, %vm4395_vm3  ;;  %v4356_v39 = vshrl.u32 %v4355_v42, 4  ;;  %v4814_v50 = vld [vmem:[#allocation3 + $0x119] sm:$0xff]  ;;  %v11687_v47 = vadd.f32 %v5122_v23, %v4957_v11  ;;  %v6203_v23 = vld [vmem:[#allocation3 + $0x24] sm:$0xff]  ;;  %vm7078_vm3 = vcmask 257024   ;;  %vm7084_vm8 = vcmask 261126  }
 0x4e5   : > { %v4756_v25 = vld [vmem:[#allocation3 + $0x118] sm:$0xff]  ;;  %v4539_v63 = vsel %vm4467_vm9, %v4503_v56, %v4329_v33  ;;  %7150 = vst.msk [vmem:[#allocation4 + $0xfa] sm:$0x3f] %vm722_vm7, %v3279_v48  ;;  %v4832_v58 = vpack.c.bf16 %v4814_v50, %v4813_v46  ;;  %v11691_v0 = vpop.f32.mrf.mxu0 }
 0x4e6   : > { %v4774_v6 = vpack.c.bf16 %v4756_v25, %v4755_v24  ;;  %v5202_v41 = vld [vmem:[#allocation3 + $0x11a] sm:$0xff]  ;;  %vm4575_vm4 = vcmp.lt.s32.totalorder %v4539_v63, 16  ;;  %v4357_v57 = vmul.u32 18, %v4356_v39  ;;  %v5559_v9 = vpop.f32.mrf.mxu1  ;;  %v5445_v39 = vld [vmem:[#allocation3 + $0xaa] sm:$0xff] }
 0x4e7   : > { %v11689_v40 = vpack.c.bf16 %v5202_v41, %v5201_v1  ;;  %v4683_v2 = vsel %vm4575_vm4, %v3278_v61, 0.0  ;;  %8445 = vmatmul.msk.bf16.gmra.mxu2 %vm724_vm5, %v4832_v58  ;;  %v11696_v54 = vadd.f32 %v5559_v9, %v10965_v37  ;;  %v5945_v42 = vld [vmem:[#allocation3 + $0x1c] sm:$0xff]  ;;  %v5685_v46 = vld [vmem:[#allocation3 + $0x13] sm:$0xff] }
 0x4e8   : > { %8471 = vmatmul.msk.bf16.gmra.mxu3 %vm724_vm5, %v4774_v6  ;;  %4719 = vst.msk [vmem:[#allocation3 + $0x123] sm:$0xff] %vm724_vm5, %v4683_v2  ;;  %v4358_v30 = vsub.s32 %v11615_v20, %v4357_v57  ;;  %v5686_v20 = vld [vmem:[#allocation3 + $0x1b] sm:$0xff] }
 0x4e9   : > { %8497 = vmatmul.msk.bf16.gmra.mxu0 %vm724_vm5, %v11689_v40  ;;  %v4959_v62 = vpop.f32.mrf.mxu2  ;;  %v5944_v24 = vld [vmem:[#allocation3 + $0x14] sm:$0xff]  ;;  %v5721_v50 = vpack.c.bf16 %v5686_v20, %v5685_v46  ;;  %v5444_v1 = vld [vmem:[#allocation3 + $0xa2] sm:$0xff] }
 0x4ea   : > { %vm4396_vm7 = vcmp.ne.s32.totalorder %v4358_v30, 0  ;;  %vm4432_vm12 = vcmp.lt.s32.totalorder %v4358_v30, 0  ;;  %v4504_v61 = vadd.s32 18, %v4358_v30  ;;  %v5124_v10 = vpop.f32.mrf.mxu3  ;;  %v5980_v25 = vpack.c.bf16 %v5945_v42, %v5944_v24  ;;  %v5447_v20 = vld [vmem:[#allocation3 + $0xba] sm:$0xff] }
 0x4eb   : > { %8514 = vmatmul.msk.bf16.gmra.mxu1 %vm724_vm5, %v5470_v38  ;;  %vm4468_vm15 = vmand %vm4432_vm12, %vm4396_vm7  ;;  %v11703_v37 = vadd.f32 %v5124_v10, %v4959_v62  ;;  %v5471_v57 = vpack.c.bf16 %v5445_v39, %v5444_v1  ;;  %v5688_v62 = vld [vmem:[#allocation3 + $0x2b] sm:$0xff] }
 0x4ec   : > { %v4540_v52 = vsel %vm4468_vm15, %v4504_v61, %v4358_v30  ;;  %v5446_v39 = vld [vmem:[#allocation3 + $0xb2] sm:$0xff] }
 0x4ed   : > { %vm4576_vm6 = vcmp.lt.s32.totalorder %v4540_v52, 16  ;;  %v11705_v33 = vpop.f32.mrf.mxu0  ;;  %v6206_v52 = vld [vmem:[#allocation3 + $0x3c] sm:$0xff] }
 0x4ee   : > { %v4684_v13 = vsel %vm4576_vm6, %v3279_v48, 0.0  ;;  %v11707_v35 = vpop.f32.mrf.mxu1  ;;  %v6239_v48 = vpack.c.bf16 %v6204_v27, %v6203_v23  ;;  %v6205_v27 = vld [vmem:[#allocation3 + $0x34] sm:$0xff] }
 0x4ef   : > { %4720 = vst.msk [vmem:[#allocation3 + $0x12b] sm:$0xff] %vm724_vm5, %v4684_v13  ;;  %v6240_v46 = vpack.c.bf16 %v6206_v52, %v6205_v27  ;;  %v5449_v52 = vld [vmem:[#allocation3 + $0xca] sm:$0xff] }
 0x4f1   : > { %v4962_v56 = vpop.f32.mrf.mxu2 }
 0x4f2   : > { %v5127_v11 = vpop.f32.mrf.mxu3 }
 0x4f3   : > { %v11710_v63 = vadd.f32 %v5127_v11, %v4962_v56 }
 0x4f5   : > { %v11712_v58 = vpop.f32.mrf.mxu0 }
 0x4f6   : > { %v5564_v6 = vpop.f32.mrf.mxu1 }
 0x4f7   : > { %8532 = vmatmul.msk.bf16.vlgmr.msra.gmra.mxu2 %vm724_vm5, %v5721_v50  ;;  %v11717_v41 = vadd.f32 %v5564_v6, %v11332_v18  ;;  %v5687_v18 = vld [vmem:[#allocation3 + $0x23] sm:$0xff]  ;;  %v5472_v50 = vpack.c.bf16 %v5447_v20, %v5446_v39 }
 0x4f8   : > { %8558 = vmatmul.msk.bf16.vlgmr.msrb.gmra.mxu3 %vm724_vm5, %v5980_v25  ;;  %v5722_v42 = vpack.c.bf16 %v5688_v62, %v5687_v18  ;;  %v6207_v18 = vld [vmem:[#allocation3 + $0x44] sm:$0xff] }
 0x4f9   : > { %8584 = vmatmul.msk.bf16.vlgmr.msra.gmra.mxu0 %vm724_vm5, %v6239_v48  ;;  %v4964_v9 = vpop.f32.mrf.mxu2 }
 0x4fa   : > { %v5129_v21 = vpop.f32.mrf.mxu3 }
 0x4fb   : > { %8515 = vmatmul.msk.bf16.gmra.mxu1 %vm724_vm5, %v5471_v57  ;;  %v11721_v2 = vadd.f32 %v5129_v21, %v4964_v9  ;;  %v5690_v21 = vld [vmem:[#allocation3 + $0x3b] sm:$0xff] }
 0x4fd   : > { %v11723_v38 = vpop.f32.mrf.mxu0 }
 0x4fe   : > { %v5566_v30 = vpop.f32.mrf.mxu1 }
 0x4ff   : > { %v11726_v61 = vadd.f32 %v5566_v30, %v11400_v14 }
 0x501   : > { %v4967_v10 = vpop.f32.mrf.mxu2 }
 0x502   : > { %v5132_v13 = vpop.f32.mrf.mxu3 }
 0x503   : > { %v11728_v56 = vadd.f32 %v5132_v13, %v4967_v10 }
 0x505   : > { %v11730_v24 = vpop.f32.mrf.mxu0 }
 0x506   : > { %v5569_v11 = vpop.f32.mrf.mxu1 }
 0x507   : > { %8533 = vmatmul.msk.bf16.gmra.mxu2 %vm724_vm5, %v5722_v42  ;;  %v11735_v14 = vadd.f32 %v5569_v11, %v11404_v45  ;;  %v5689_v45 = vld [vmem:[#allocation3 + $0x33] sm:$0xff]  ;;  %v5448_v11 = vld [vmem:[#allocation3 + $0xc2] sm:$0xff] }
 0x508   : > { %8559 = vmatmul.msk.bf16.gmra.mxu3 %vm724_vm5, %v6239_v48  ;;  %v6208_v48 = vld [vmem:[#allocation3 + $0x4c] sm:$0xff]  ;;  %v5723_v10 = vpack.c.bf16 %v5690_v21, %v5689_v45  ;;  %v5473_v39 = vpack.c.bf16 %v5449_v52, %v5448_v11  ;;  %v5397_v21 = vadd.f32 %v11358_v59, %v11391_v49  ;;  %v6210_v52 = vld [vmem:[#allocation3 + $0x5c] sm:$0xff]  ;;  %v5398_v59 = vadd.f32 %v11407_v12, %v11426_v51 }
 0x509   : > { %8585 = vmatmul.msk.bf16.gmra.mxu0 %vm724_vm5, %v6240_v46  ;;  %v4969_v25 = vpop.f32.mrf.mxu2  ;;  %v6241_v20 = vpack.c.bf16 %v6208_v48, %v6207_v18  ;;  %v5451_v11 = vld [vmem:[#allocation3 + $0xda] sm:$0xff]  ;;  %v5399_v12 = vadd.f32 %v11431_v44, %v11453_v32 }
 0x50a   : > { %v5134_v23 = vpop.f32.mrf.mxu3 }
 0x50b   : > { %8516 = vmatmul.msk.bf16.gmra.mxu1 %vm724_vm5, %v5472_v50  ;;  %v11739_v6 = vadd.f32 %v5134_v23, %v4969_v25  ;;  %v8823_v50 = vld [vmem:[%s12742_s5 + $0x88] sm:$0xff]  ;;  %v8821_v23 = vld [vmem:[%s12742_s5 + $0x78] sm:$0xff] }
 0x50c   : > { %6851 = vmatpush.bf16.msrb.mxu2 %v8823_v50  ;;  %6592 = vmatpush.bf16.msrb.mxu1 %v8821_v23  ;;  %v6209_v50 = vld [vmem:[#allocation3 + $0x54] sm:$0xff] }
 0x50d   : > { %v6242_v49 = vpack.c.bf16 %v6210_v52, %v6209_v50 }
 0x50e   : > { %v5571_v57 = vpop.f32.mrf.mxu1 }
 0x50f   : > { %v11741_v1 = vpop.f32.mrf.mxu0  ;;  %v11744_v9 = vadd.f32 %v5571_v57, %v11489_v3 }
 0x513   : > { %v4972_v30 = vpop.f32.mrf.mxu2 }
 0x514   : > { %v5137_v62 = vpop.f32.mrf.mxu3 }
 0x515   : > { %v11746_v13 = vadd.f32 %v5137_v62, %v4972_v30  ;;  %v5692_v62 = vld [vmem:[#allocation3 + $0x4b] sm:$0xff] }
 0x517   : > { %v11748_v42 = vpop.f32.mrf.mxu0  ;;  %v5574_v27 = vpop.f32.mrf.mxu1  ;;  %8534 = vmatmul.msk.bf16.gmra.mxu2 %vm724_vm5, %v5723_v10  ;;  %v5691_v10 = vld [vmem:[#allocation3 + $0x43] sm:$0xff] }
 0x518   : > { %8560 = vmatmul.msk.bf16.gmra.mxu3 %vm724_vm5, %v6240_v46  ;;  %v11753_v3 = vadd.f32 %v5574_v27, %v11585_v53  ;;  %v8832_v53 = vld [vmem:[%s12745_s8 + $0x10] sm:$0xff] }
 0x519   : > { %8586 = vmatmul.msk.bf16.gmra.mxu0 %vm724_vm5, %v6241_v20  ;;  %7315 = vmatpush.bf16.msra.mxu3 %v8832_v53  ;;  %v5450_v53 = vld [vmem:[#allocation3 + $0xd2] sm:$0xff] }
 0x51b   : > { %8517 = vmatmul.msk.bf16.gmra.mxu1 %vm724_vm5, %v5473_v39  ;;  %v4974_v25 = vpop.f32.mrf.mxu2  ;;  %v5724_v39 = vpack.c.bf16 %v5692_v62, %v5691_v10 }
 0x51c   : > { %v5139_v46 = vpop.f32.mrf.mxu3 }
 0x51d   : > { %v11766_v57 = vadd.f32 %v5139_v46, %v4974_v25 }
 0x51f   : > { %v5576_v48 = vpop.f32.mrf.mxu1  ;;  %v11770_v30 = vpop.f32.mrf.mxu0 }
 0x520   : > { %v11772_v45 = vadd.f32 %v5576_v48, %v5397_v21  ;;  %v5474_v21 = vpack.c.bf16 %v5451_v11, %v5450_v53  ;;  %v6212_v11 = vld [vmem:[#allocation3 + $0x6c] sm:$0xff] }
 0x523   : > { %v4977_v18 = vpop.f32.mrf.mxu2 }
 0x524   : > { %v5142_v27 = vpop.f32.mrf.mxu3 }
 0x525   : > { %v11774_v25 = vadd.f32 %v5142_v27, %v4977_v18 }
 0x527   : > { %v5579_v23 = vpop.f32.mrf.mxu1  ;;  %8535 = vmatmul.msk.bf16.gmra.mxu2 %vm724_vm5, %v5724_v39  ;;  %v11783_v48 = vpop.f32.mrf.mxu0  ;;  %v5693_v39 = vld [vmem:[#allocation3 + $0x53] sm:$0xff] }
 0x528   : > { %8561 = vmatmul.msk.bf16.gmra.mxu3 %vm724_vm5, %v6241_v20  ;;  %v11780_v46 = vadd.f32 %v5579_v23, %v5398_v59  ;;  %v5694_v20 = vld [vmem:[#allocation3 + $0x5b] sm:$0xff]  ;;  %v6211_v59 = vld [vmem:[#allocation3 + $0x64] sm:$0xff]  ;;  %v5400_v23 = vadd.f32 %v11465_v28, %v11484_v15  ;;  %v5401_v28 = vadd.f32 %v11491_v55, %v11509_v31 }
 0x529   : > { %8587 = vmatmul.msk.bf16.gmra.mxu0 %vm724_vm5, %v6242_v49  ;;  %v5725_v50 = vpack.c.bf16 %v5694_v20, %v5693_v39  ;;  %v6243_v53 = vpack.c.bf16 %v6212_v11, %v6211_v59  ;;  %v5696_v39 = vld [vmem:[#allocation3 + $0x6b] sm:$0xff] }
 0x52b   : > { %8518 = vmatmul.msk.bf16.gmra.mxu1 %vm724_vm5, %v5474_v21  ;;  %v4979_v62 = vpop.f32.mrf.mxu2 }
 0x52c   : > { %v5144_v10 = vpop.f32.mrf.mxu3 }
 0x52d   : > { %v11786_v18 = vadd.f32 %v5144_v10, %v4979_v62 }
 0x52f   : > { %v5581_v51 = vpop.f32.mrf.mxu1 }
 0x530   : > { %v11790_v52 = vadd.f32 %v5581_v51, %v5399_v12 }
 0x532   : > { %v11792_v27 = vpop.f32.mrf.mxu0 }
 0x536   : > { %v4982_v32 = vpop.f32.mrf.mxu2 }
 0x537   : > { %v5584_v21 = vpop.f32.mrf.mxu1  ;;  %8536 = vmatmul.msk.bf16.gmra.mxu2 %vm724_vm5, %v5725_v50  ;;  %v5147_v62 = vpop.f32.mrf.mxu3  ;;  %v6214_v50 = vld [vmem:[#allocation3 + $0x7c] sm:$0xff] }
 0x538   : > { %8562 = vmatmul.msk.bf16.gmra.mxu3 %vm724_vm5, %v6242_v49  ;;  %v11798_v44 = vadd.f32 %v5584_v21, %v5400_v23  ;;  %v11801_v10 = vadd.f32 %v5147_v62, %v4982_v32  ;;  %v5695_v23 = vld [vmem:[#allocation3 + $0x63] sm:$0xff]  ;;  %v6213_v32 = vld [vmem:[#allocation3 + $0x74] sm:$0xff] }
 0x539   : > { %8588 = vmatmul.msk.bf16.gmra.mxu0 %vm724_vm5, %v6243_v53  ;;  %v5726_v21 = vpack.c.bf16 %v5696_v39, %v5695_v23  ;;  %v5698_v23 = vld [vmem:[#allocation3 + $0x7b] sm:$0xff] }
 0x53a   : > { %13158 = vst [vmem:[#allocation60_spill] sm:$0xff] %v11798_v44  ;;  %v11805_v12 = vpop.f32.mrf.mxu0 }
 0x53b   : > { %8519 = vmatmul.msk.bf16.gmra.mxu1 %vm724_vm5, %v11532_v36  ;;  %13159 = vst [vmem:[#allocation77_spill] sm:$0xff] %v11805_v12  ;;  %v13160_v36 = vld [vmem:[#allocation57_spill] sm:$0xff]  ;;  %v6244_v12 = vpack.c.bf16 %v6214_v50, %v6213_v32 }
 0x53c   : > { %v5402_v62 = vadd.f32 %v13160_v36, %v11534_v43  ;;  %v5403_v43 = vadd.f32 %v11547_v17, %v11566_v22  ;;  %v5697_v36 = vld [vmem:[#allocation3 + $0x73] sm:$0xff] }
 0x53e   : > { %v4984_v49 = vpop.f32.mrf.mxu2 }
 0x53f   : > { %v5586_v15 = vpop.f32.mrf.mxu1  ;;  %v5149_v20 = vpop.f32.mrf.mxu3 }
 0x540   : > { %v11809_v51 = vadd.f32 %v5586_v15, %v5401_v28  ;;  %v11811_v11 = vadd.f32 %v5149_v20, %v4984_v49 }
 0x544   : > { %v11813_v59 = vpop.f32.mrf.mxu0 }
 0x547   : > { %v5589_v44 = vpop.f32.mrf.mxu1  ;;  %8537 = vmatmul.msk.bf16.gmra.mxu2 %vm724_vm5, %v5726_v21  ;;  %v6216_v21 = vld [vmem:[#allocation3 + $0x8c] sm:$0xff] }
 0x548   : > { %8563 = vmatmul.msk.bf16.gmra.mxu3 %vm724_vm5, %v6243_v53  ;;  %v11819_v55 = vadd.f32 %v5589_v44, %v5402_v62  ;;  %v4987_v31 = vpop.f32.mrf.mxu2  ;;  %v6215_v62 = vld [vmem:[#allocation3 + $0x84] sm:$0xff] }
 0x549   : > { %8589 = vmatmul.msk.bf16.gmra.mxu0 %vm724_vm5, %v6244_v12  ;;  %v5152_v28 = vpop.f32.mrf.mxu3 }
 0x54a   : > { %v11824_v15 = vadd.f32 %v5152_v28, %v4987_v31  ;;  %v5404_v31 = vadd.f32 %v11574_v34, %v11591_v19  ;;  %v6245_v28 = vpack.c.bf16 %v6216_v21, %v6215_v62  ;;  %v5405_v34 = vadd.f32 %v11596_v7, %v11617_v8  ;;  %v5700_v21 = vld [vmem:[#allocation3 + $0x8b] sm:$0xff] }
 0x54b   : > { %8520 = vmatmul.msk.bf16.gmra.mxu1 %vm724_vm5, %v11588_v60  ;;  %v5727_v60 = vpack.c.bf16 %v5698_v23, %v5697_v36  ;;  %v6218_v36 = vld [vmem:[#allocation3 + $0x9c] sm:$0xff]  ;;  %v8831_v8 = vld [vmem:[%s12745_s8 + $0x8] sm:$0xff] }
 0x54c   : > { %v11826_v49 = vpop.f32.mrf.mxu0  ;;  %7316 = vmatpush.bf16.msra.mxu3 %v8831_v8 }
 0x54d   : > { %13161 = vst [vmem:[#allocation68_spill] sm:$0xff] %v11826_v49 }
 0x54f   : > { %v5591_v20 = vpop.f32.mrf.mxu1 }
 0x550   : > { %v11830_v39 = vadd.f32 %v5591_v20, %v5403_v43  ;;  %v4989_v53 = vpop.f32.mrf.mxu2 }
 0x551   : > { %v5154_v44 = vpop.f32.mrf.mxu3 }
 0x552   : > { %v11832_v50 = vadd.f32 %v5154_v44, %v4989_v53 }
 0x554   : > { %v11834_v32 = vpop.f32.mrf.mxu0 }
 0x557   : > { %8538 = vmatmul.msk.bf16.gmra.mxu2 %vm724_vm5, %v5727_v60  ;;  %v5699_v60 = vld [vmem:[#allocation3 + $0x83] sm:$0xff] }
 0x558   : > { %v5594_v49 = vpop.f32.mrf.mxu1  ;;  %8564 = vmatmul.msk.bf16.gmra.mxu3 %vm724_vm5, %v6244_v12  ;;  %v4992_v22 = vpop.f32.mrf.mxu2 }
 0x559   : > { %v11840_v17 = vadd.f32 %v5594_v49, %v5404_v31  ;;  %8590 = vmatmul.msk.bf16.gmra.mxu0 %vm724_vm5, %v6245_v28  ;;  %v5157_v43 = vpop.f32.mrf.mxu3  ;;  %v6217_v31 = vld [vmem:[#allocation3 + $0x94] sm:$0xff] }
 0x55a   : > { %v11845_v20 = vadd.f32 %v5157_v43, %v4992_v22  ;;  %v13164_v22 = vld [vmem:[#allocation59_spill] sm:$0xff] }
 0x55b   : > { %13162 = vst [vmem:[#allocation28_spill] sm:$0xff] %v11840_v17  ;;  %8521 = vmatmul.msk.bf16.gmra.mxu1 %vm724_vm5, %v11648_v26  ;;  %v5728_v26 = vpack.c.bf16 %v5700_v21, %v5699_v60  ;;  %v5406_v43 = vadd.f32 %v13164_v22, %v11650_v5  ;;  %v5702_v60 = vld [vmem:[#allocation3 + $0x9b] sm:$0xff]  ;;  %v5701_v22 = vld [vmem:[#allocation3 + $0x93] sm:$0xff] }
 0x55c   : > { %v11847_v53 = vpop.f32.mrf.mxu0 }
 0x55d   : > { %13163 = vst [vmem:[#allocation81_spill] sm:$0xff] %v11847_v53  ;;  %v6246_v53 = vpack.c.bf16 %v6218_v36, %v6217_v31  ;;  %v6220_v31 = vld [vmem:[#allocation3 + $0xac] sm:$0xff] }
 0x560   : > { %v5596_v19 = vpop.f32.mrf.mxu1  ;;  %v4994_v12 = vpop.f32.mrf.mxu2 }
 0x561   : > { %v11851_v44 = vadd.f32 %v5596_v19, %v5405_v34  ;;  %v5159_v49 = vpop.f32.mrf.mxu3 }
 0x562   : > { %v11853_v23 = vadd.f32 %v5159_v49, %v4994_v12 }
 0x566   : > { %v11855_v62 = vpop.f32.mrf.mxu0 }
 0x567   : > { %8539 = vmatmul.msk.bf16.gmra.mxu2 %vm724_vm5, %v5728_v26 }
 0x568   : > { %v5599_v17 = vpop.f32.mrf.mxu1  ;;  %8565 = vmatmul.msk.bf16.gmra.mxu3 %vm724_vm5, %v6245_v28  ;;  %v5407_v28 = vadd.f32 %v11658_v4, %v11676_v29  ;;  %v6219_v4 = vld [vmem:[#allocation3 + $0xa4] sm:$0xff]  ;;  %v5408_v29 = vadd.f32 %v11682_v16, %v11687_v47 }
 0x569   : > { %v11861_v7 = vadd.f32 %v5599_v17, %v5406_v43  ;;  %8591 = vmatmul.msk.bf16.gmra.mxu0 %vm724_vm5, %v6246_v53  ;;  %v8820_v17 = vld [vmem:[%s12742_s5 + $0x70] sm:$0xff]  ;;  %v5461_v43 = vld [vmem:[#allocation3 + $0x12a] sm:$0xff] }
 0x56a   : > { %v4997_v34 = vpop.f32.mrf.mxu2  ;;  %6593 = vmatpush.bf16.msrb.mxu1 %v8820_v17 }
 0x56b   : > { %8522 = vmatmul.msk.bf16.gmra.mxu1 %vm724_vm5, %v11689_v40  ;;  %v5162_v19 = vpop.f32.mrf.mxu3 }
 0x56c   : > { %v11869_v5 = vadd.f32 %v5162_v19, %v4997_v34  ;;  %v5729_v34 = vpack.c.bf16 %v5702_v60, %v5701_v22  ;;  %v6247_v19 = vpack.c.bf16 %v6220_v31, %v6219_v4  ;;  %v13168_v60 = vld [vmem:[#allocation55_spill] sm:$0xff]  ;;  %v13169_v22 = vld [vmem:[#allocation65_spill] sm:$0xff] }
 0x56e   : > { %v11871_v12 = vpop.f32.mrf.mxu0 }
 0x56f   : > { %13165 = vst [vmem:[#allocation71_spill] sm:$0xff] %v11871_v12 }
 0x570   : > { %v5601_v49 = vpop.f32.mrf.mxu1 }
 0x571   : > { %v11878_v21 = vadd.f32 %v5601_v49, %v5407_v28  ;;  %v5460_v28 = vld [vmem:[#allocation3 + $0x122] sm:$0xff] }
 0x572   : > { %v4999_v36 = vpop.f32.mrf.mxu2  ;;  %v5479_v49 = vpack.c.bf16 %v5461_v43, %v5460_v28  ;;  %v13171_v43 = vld [vmem:[#allocation53_spill] sm:$0xff] }
 0x573   : > { %v5164_v40 = vpop.f32.mrf.mxu3 }
 0x574   : > { %v11880_v26 = vadd.f32 %v5164_v40, %v4999_v36 }
 0x576   : > { %v11882_v8 = vpop.f32.mrf.mxu0 }
 0x577   : > { %13166 = vst [vmem:[#allocation84_spill] sm:$0xff] %v11882_v8  ;;  %8540 = vmatmul.msk.bf16.gmra.mxu2 %vm724_vm5, %v5729_v34  ;;  %v5080_v8 = vadd.f32 %v13169_v22, %v13168_v60  ;;  %v6222_v22 = vld [vmem:[#allocation3 + $0xbc] sm:$0xff] }
 0x578   : > { %v5604_v12 = vpop.f32.mrf.mxu1  ;;  %8566 = vmatmul.msk.bf16.gmra.mxu3 %vm724_vm5, %v6246_v53  ;;  %v5409_v53 = vadd.f32 %v11691_v0, %v11703_v37  ;;  %v6221_v0 = vld [vmem:[#allocation3 + $0xb4] sm:$0xff]  ;;  %v5410_v37 = vadd.f32 %v11705_v33, %v11710_v63  ;;  %v5411_v63 = vadd.f32 %v11712_v58, %v11721_v2  ;;  %v5412_v58 = vadd.f32 %v11723_v38, %v11728_v56 }
 0x579   : > { %v11888_v17 = vadd.f32 %v5604_v12, %v5408_v29  ;;  %8592 = vmatmul.msk.bf16.gmra.mxu0 %vm724_vm5, %v6247_v19  ;;  %v5391_v34 = vadd.f32 %v13171_v43, %v5080_v8  ;;  %v6248_v8 = vpack.c.bf16 %v6222_v22, %v6221_v0  ;;  %v5706_v22 = vld [vmem:[#allocation3 + $0xbb] sm:$0xff]  ;;  %v5705_v0 = vld [vmem:[#allocation3 + $0xb3] sm:$0xff]  ;;  %v5413_v56 = vadd.f32 %v11730_v24, %v11739_v6 }
 0x57a   : > { %v5818_v36 = vpop.f32.mrf.mxu2  ;;  %v5414_v24 = vadd.f32 %v11741_v1, %v11746_v13  ;;  %v5415_v13 = vadd.f32 %v11748_v42, %v11766_v57  ;;  %v5709_v42 = vld [vmem:[#allocation3 + $0xd3] sm:$0xff]  ;;  %v6469_v57 = vld [vmem:[#allocation3 + $0x5d] sm:$0xff] }
 0x57b   : > { %13167 = vst [vmem:[#allocation74_spill] sm:$0xff] %v11888_v17  ;;  %8523 = vmatmul.msk.bf16.gmra.mxu1 %vm724_vm5, %v5479_v49  ;;  %v6077_v40 = vpop.f32.mrf.mxu3  ;;  %v5908_v16 = vadd.f32 %v5818_v36, %v11696_v54  ;;  %v5650_v29 = vadd.f32 %v11707_v35, %v5391_v34  ;;  %v5704_v17 = vld [vmem:[#allocation3 + $0xab] sm:$0xff]  ;;  %v5703_v54 = vld [vmem:[#allocation3 + $0xa3] sm:$0xff] }
 0x57c   : > { %v6463_v36 = vld [vmem:[#allocation3 + $0x2d] sm:$0xff] }
 0x57d   : > { %v11895_v47 = vadd.f32 %v6077_v40, %v5908_v16 }
 0x57e   : > { %v11897_v31 = vpop.f32.mrf.mxu0 }
 0x57f   : > { %13170 = vst [vmem:[#allocation63_spill] sm:$0xff] %v11897_v31  ;;  %v5730_v31 = vpack.c.bf16 %v5704_v17, %v5703_v54 }
 0x580   : > { %v5606_v12 = vpop.f32.mrf.mxu1 }
 0x581   : > { %v11902_v4 = vadd.f32 %v5606_v12, %v5409_v53  ;;  %v6462_v12 = vld [vmem:[#allocation3 + $0x25] sm:$0xff] }
 0x582   : > { %v5820_v28 = vpop.f32.mrf.mxu2  ;;  %v6498_v43 = vpack.c.bf16 %v6463_v36, %v6462_v12  ;;  %v6224_v36 = vld [vmem:[#allocation3 + $0xcc] sm:$0xff]  ;;  %v5731_v12 = vpack.c.bf16 %v5706_v22, %v5705_v0 }
 0x583   : > { %v6079_v49 = vpop.f32.mrf.mxu3  ;;  %v5909_v60 = vadd.f32 %v5820_v28, %v5650_v29  ;;  %v5708_v0 = vld [vmem:[#allocation3 + $0xcb] sm:$0xff] }
 0x585   : > { %v11905_v40 = vadd.f32 %v6079_v49, %v5909_v60 }
 0x586   : > { %v11907_v16 = vpop.f32.mrf.mxu0 }
 0x587   : > { %8541 = vmatmul.msk.bf16.gmra.mxu2 %vm724_vm5, %v5730_v31 }
 0x588   : > { %v5609_v53 = vpop.f32.mrf.mxu1  ;;  %8567 = vmatmul.msk.bf16.gmra.mxu3 %vm724_vm5, %v6247_v19 }
 0x589   : > { %v11913_v35 = vadd.f32 %v5609_v53, %v5410_v37  ;;  %8593 = vmatmul.msk.bf16.gmra.mxu0 %vm724_vm5, %v6248_v8  ;;  %v6465_v37 = vld [vmem:[#allocation3 + $0x3d] sm:$0xff] }
 0x58a   : > { %v5823_v34 = vpop.f32.mrf.mxu2 }
 0x58b   : > { %8610 = vmatmul.msk.bf16.vlgmr.msrb.gmra.mxu1 %vm724_vm5, %v6498_v43  ;;  %v6082_v17 = vpop.f32.mrf.mxu3  ;;  %v5910_v29 = vadd.f32 %v5823_v34, %v11717_v41  ;;  %v6223_v43 = vld [vmem:[#allocation3 + $0xc4] sm:$0xff] }
 0x58c   : > { %v6249_v2 = vpack.c.bf16 %v6224_v36, %v6223_v43  ;;  %v5707_v43 = vld [vmem:[#allocation3 + $0xc3] sm:$0xff] }
 0x58d   : > { %v11918_v28 = vadd.f32 %v6082_v17, %v5910_v29  ;;  %v6464_v17 = vld [vmem:[#allocation3 + $0x35] sm:$0xff] }
 0x58e   : > { %v11920_v33 = vpop.f32.mrf.mxu0  ;;  %v6499_v29 = vpack.c.bf16 %v6465_v37, %v6464_v17  ;;  %v5732_v17 = vpack.c.bf16 %v5708_v0, %v5707_v43  ;;  %v8830_v0 = vld [vmem:[%s12745_s8] sm:$0xff] }
 0x58f   : > { %7317 = vmatpush.bf16.msra.mxu3 %v8830_v0 }
 0x590   : > { %v5611_v31 = vpop.f32.mrf.mxu1 }
 0x591   : > { %v11924_v19 = vadd.f32 %v5611_v31, %v5411_v63 }
 0x592   : > { %v5825_v49 = vpop.f32.mrf.mxu2 }
 0x593   : > { %v6084_v60 = vpop.f32.mrf.mxu3  ;;  %v5911_v54 = vadd.f32 %v5825_v49, %v11726_v61 }
 0x595   : > { %v11927_v53 = vadd.f32 %v6084_v60, %v5911_v54 }
 0x596   : > { %v11929_v41 = vpop.f32.mrf.mxu0 }
 0x597   : > { %8542 = vmatmul.msk.bf16.gmra.mxu2 %vm724_vm5, %v5731_v12  ;;  %v6226_v12 = vld [vmem:[#allocation3 + $0xdc] sm:$0xff] }
 0x598   : > { %v5614_v34 = vpop.f32.mrf.mxu1  ;;  %8568 = vmatmul.msk.bf16.gmra.mxu3 %vm724_vm5, %v6248_v8 }
 0x599   : > { %v11935_v61 = vadd.f32 %v5614_v34, %v5412_v58  ;;  %8594 = vmatmul.msk.bf16.gmra.mxu0 %vm724_vm5, %v6249_v2  ;;  %v6467_v58 = vld [vmem:[#allocation3 + $0x4d] sm:$0xff] }
 0x59a   : > { %v5828_v63 = vpop.f32.mrf.mxu2 }
 0x59b   : > { %8611 = vmatmul.msk.bf16.gmra.mxu1 %vm724_vm5, %v6499_v29  ;;  %v6087_v31 = vpop.f32.mrf.mxu3  ;;  %v5912_v49 = vadd.f32 %v5828_v63, %v11735_v14  ;;  %v6225_v29 = vld [vmem:[#allocation3 + $0xd4] sm:$0xff] }
 0x59c   : > { %v6250_v6 = vpack.c.bf16 %v6226_v12, %v6225_v29  ;;  %v6228_v29 = vld [vmem:[#allocation3 + $0xec] sm:$0xff] }
 0x59d   : > { %v11940_v60 = vadd.f32 %v6087_v31, %v5912_v49  ;;  %v6466_v31 = vld [vmem:[#allocation3 + $0x45] sm:$0xff] }
 0x59e   : > { %v11942_v38 = vpop.f32.mrf.mxu0  ;;  %v6500_v49 = vpack.c.bf16 %v6467_v58, %v6466_v31  ;;  %v5710_v58 = vld [vmem:[#allocation3 + $0xdb] sm:$0xff] }
 0x59f   : > { %v5733_v31 = vpack.c.bf16 %v5710_v58, %v5709_v42  ;;  %v5712_v42 = vld [vmem:[#allocation3 + $0xeb] sm:$0xff] }
 0x5a0   : > { %v5616_v22 = vpop.f32.mrf.mxu1 }
 0x5a1   : > { %v11946_v8 = vadd.f32 %v5616_v22, %v5413_v56 }
 0x5a2   : > { %v5830_v54 = vpop.f32.mrf.mxu2 }
 0x5a3   : > { %v6089_v36 = vpop.f32.mrf.mxu3  ;;  %v5913_v37 = vadd.f32 %v5830_v54, %v11744_v9 }
 0x5a5   : > { %v11949_v34 = vadd.f32 %v6089_v36, %v5913_v37 }
 0x5a6   : > { %v11951_v14 = vpop.f32.mrf.mxu0 }
 0x5a7   : > { %8543 = vmatmul.msk.bf16.gmra.mxu2 %vm724_vm5, %v5732_v17 }
 0x5a8   : > { %v5619_v63 = vpop.f32.mrf.mxu1  ;;  %8569 = vmatmul.msk.bf16.gmra.mxu3 %vm724_vm5, %v6249_v2  ;;  %v8822_v2 = vld [vmem:[%s12742_s5 + $0x80] sm:$0xff] }
 0x5a9   : > { %v11957_v9 = vadd.f32 %v5619_v63, %v5414_v24  ;;  %8595 = vmatmul.msk.bf16.gmra.mxu0 %vm724_vm5, %v6250_v6  ;;  %6852 = vmatpush.bf16.msrb.mxu2 %v8822_v2 }
 0x5aa   : > { %v5833_v56 = vpop.f32.mrf.mxu2 }
 0x5ab   : > { %8612 = vmatmul.msk.bf16.gmra.mxu1 %vm724_vm5, %v6500_v49  ;;  %v6092_v22 = vpop.f32.mrf.mxu3  ;;  %v5914_v54 = vadd.f32 %v5833_v56, %v11753_v3  ;;  %v6227_v49 = vld [vmem:[#allocation3 + $0xe4] sm:$0xff]  ;;  %v5416_v56 = vadd.f32 %v11770_v30, %v11774_v25  ;;  %v5417_v25 = vadd.f32 %v11783_v48, %v11786_v18  ;;  %v5418_v48 = vadd.f32 %v11792_v27, %v11801_v10  ;;  %v13173_v10 = vld [vmem:[#allocation77_spill] sm:$0xff] }
 0x5ad   : > { %v11962_v36 = vadd.f32 %v6092_v22, %v5914_v54  ;;  %v6251_v22 = vpack.c.bf16 %v6228_v29, %v6227_v49  ;;  %v5711_v49 = vld [vmem:[#allocation3 + $0xe3] sm:$0xff] }
 0x5ae   : > { %v11964_v1 = vpop.f32.mrf.mxu0 }
 0x5b0   : > { %v5621_v37 = vpop.f32.mrf.mxu1 }
 0x5b1   : > { %v11974_v12 = vadd.f32 %v5621_v37, %v5415_v13  ;;  %v6468_v13 = vld [vmem:[#allocation3 + $0x55] sm:$0xff] }
 0x5b2   : > { %v5835_v3 = vpop.f32.mrf.mxu2  ;;  %v6501_v2 = vpack.c.bf16 %v6469_v57, %v6468_v13  ;;  %v5734_v13 = vpack.c.bf16 %v5712_v42, %v5711_v49 }
 0x5b3   : > { %v6094_v43 = vpop.f32.mrf.mxu3  ;;  %v5915_v17 = vadd.f32 %v5835_v3, %v11772_v45 }
 0x5b5   : > { %v11977_v24 = vadd.f32 %v6094_v43, %v5915_v17 }
 0x5b6   : > { %v11979_v63 = vpop.f32.mrf.mxu0 }
 0x5b7   : > { %8544 = vmatmul.msk.bf16.gmra.mxu2 %vm724_vm5, %v5733_v31  ;;  %v6230_v31 = vld [vmem:[#allocation3 + $0xfc] sm:$0xff] }
 0x5b8   : > { %v5624_v54 = vpop.f32.mrf.mxu1  ;;  %8570 = vmatmul.msk.bf16.gmra.mxu3 %vm724_vm5, %v6250_v6 }
 0x5b9   : > { %v11985_v45 = vadd.f32 %v5624_v54, %v5416_v56  ;;  %8596 = vmatmul.msk.bf16.gmra.mxu0 %vm724_vm5, %v6251_v22  ;;  %v6471_v56 = vld [vmem:[#allocation3 + $0x6d] sm:$0xff] }
 0x5ba   : > { %v5838_v0 = vpop.f32.mrf.mxu2 }
 0x5bb   : > { %8613 = vmatmul.msk.bf16.gmra.mxu1 %vm724_vm5, %v6501_v2  ;;  %v6097_v37 = vpop.f32.mrf.mxu3  ;;  %v5916_v3 = vadd.f32 %v5838_v0, %v11780_v46  ;;  %v6229_v2 = vld [vmem:[#allocation3 + $0xf4] sm:$0xff] }
 0x5bc   : > { %v6252_v18 = vpack.c.bf16 %v6230_v31, %v6229_v2 }
 0x5bd   : > { %v11990_v43 = vadd.f32 %v6097_v37, %v5916_v3  ;;  %v6470_v37 = vld [vmem:[#allocation3 + $0x65] sm:$0xff] }
 0x5be   : > { %v11992_v30 = vpop.f32.mrf.mxu0  ;;  %v6502_v3 = vpack.c.bf16 %v6471_v56, %v6470_v37  ;;  %v6473_v37 = vld [vmem:[#allocation3 + $0x7d] sm:$0xff] }
 0x5c0   : > { %v5626_v58 = vpop.f32.mrf.mxu1 }
 0x5c1   : > { %v11996_v6 = vadd.f32 %v5626_v58, %v5417_v25 }
 0x5c2   : > { %v5840_v17 = vpop.f32.mrf.mxu2 }
 0x5c3   : > { %v6099_v29 = vpop.f32.mrf.mxu3  ;;  %v5917_v57 = vadd.f32 %v5840_v17, %v11790_v52  ;;  %v13172_v17 = vld [vmem:[#allocation60_spill] sm:$0xff] }
 0x5c5   : > { %v11999_v54 = vadd.f32 %v6099_v29, %v5917_v57  ;;  %v5419_v57 = vadd.f32 %v13173_v10, %v11811_v11  ;;  %v5420_v11 = vadd.f32 %v11813_v59, %v11824_v15  ;;  %v13175_v15 = vld [vmem:[#allocation68_spill] sm:$0xff] }
 0x5c6   : > { %v12001_v46 = vpop.f32.mrf.mxu0 }
 0x5c7   : > { %8545 = vmatmul.msk.bf16.gmra.mxu2 %vm724_vm5, %v5734_v13  ;;  %v5714_v13 = vld [vmem:[#allocation3 + $0xfb] sm:$0xff] }
 0x5c8   : > { %v5629_v0 = vpop.f32.mrf.mxu1  ;;  %8571 = vmatmul.msk.bf16.gmra.mxu3 %vm724_vm5, %v6251_v22 }
 0x5c9   : > { %v12007_v52 = vadd.f32 %v5629_v0, %v5418_v48  ;;  %8597 = vmatmul.msk.bf16.gmra.mxu0 %vm724_vm5, %v6252_v18  ;;  %v6232_v48 = vld [vmem:[#allocation3 + $0x10c] sm:$0xff] }
 0x5ca   : > { %v5843_v25 = vpop.f32.mrf.mxu2  ;;  %v5713_v0 = vld [vmem:[#allocation3 + $0xf3] sm:$0xff] }
 0x5cb   : > { %8614 = vmatmul.msk.bf16.gmra.mxu1 %vm724_vm5, %v6502_v3  ;;  %v6102_v58 = vpop.f32.mrf.mxu3  ;;  %v5918_v29 = vadd.f32 %v5843_v25, %v13172_v17  ;;  %v6231_v17 = vld [vmem:[#allocation3 + $0x104] sm:$0xff] }
 0x5cd   : > { %v12012_v42 = vadd.f32 %v6102_v58, %v5918_v29  ;;  %v5735_v58 = vpack.c.bf16 %v5714_v13, %v5713_v0  ;;  %v6253_v29 = vpack.c.bf16 %v6232_v48, %v6231_v17  ;;  %v5421_v48 = vadd.f32 %v13175_v15, %v11832_v50 }
 0x5ce   : > { %v12014_v27 = vpop.f32.mrf.mxu0  ;;  %v5422_v15 = vadd.f32 %v11834_v32, %v11845_v20  ;;  %v8827_v32 = vld [vmem:[%s12744_s7 + $0x18] sm:$0xff] }
 0x5d0   : > { %v5631_v31 = vpop.f32.mrf.mxu1 }
 0x5d1   : > { %v12018_v22 = vadd.f32 %v5631_v31, %v5419_v57  ;;  %v6472_v57 = vld [vmem:[#allocation3 + $0x75] sm:$0xff] }
 0x5d2   : > { %v5845_v49 = vpop.f32.mrf.mxu2  ;;  %v6503_v31 = vpack.c.bf16 %v6473_v37, %v6472_v57  ;;  %v5715_v57 = vld [vmem:[#allocation3 + $0x103] sm:$0xff] }
 0x5d3   : > { %v6104_v56 = vpop.f32.mrf.mxu3  ;;  %v5919_v2 = vadd.f32 %v5845_v49, %v11809_v51 }
 0x5d5   : > { %v12021_v3 = vadd.f32 %v6104_v56, %v5919_v2 }
 0x5d6   : > { %v12023_v25 = vpop.f32.mrf.mxu0 }
 0x5d7   : > { %8546 = vmatmul.msk.bf16.gmra.mxu2 %vm724_vm5, %v5735_v58 }
 0x5d8   : > { %v5634_v10 = vpop.f32.mrf.mxu1  ;;  %8572 = vmatmul.msk.bf16.gmra.mxu3 %vm724_vm5, %v6252_v18  ;;  %v8829_v18 = vld [vmem:[%s12744_s7 + $0x28] sm:$0xff] }
 0x5d9   : > { %v12029_v51 = vadd.f32 %v5634_v10, %v5420_v11  ;;  %8598 = vmatmul.msk.bf16.gmra.mxu0 %vm724_vm5, %v6253_v29  ;;  %v5716_v11 = vld [vmem:[#allocation3 + $0x10b] sm:$0xff]  ;;  %v6234_v10 = vld [vmem:[#allocation3 + $0x11c] sm:$0xff] }
 0x5da   : > { %v5848_v49 = vpop.f32.mrf.mxu2  ;;  %7486 = vmatpush.bf16.msrb.mxu0 %v8829_v18  ;;  %v5736_v50 = vpack.c.bf16 %v5716_v11, %v5715_v57  ;;  %v13177_v11 = vld [vmem:[#allocation28_spill] sm:$0xff] }
 0x5db   : > { %8615 = vmatmul.msk.bf16.gmra.mxu1 %vm724_vm5, %v6503_v31  ;;  %v6107_v56 = vpop.f32.mrf.mxu3  ;;  %v5920_v13 = vadd.f32 %v5848_v49, %v11819_v55  ;;  %v6475_v31 = vld [vmem:[#allocation3 + $0x8d] sm:$0xff] }
 0x5dd   : > { %v12034_v2 = vadd.f32 %v6107_v56, %v5920_v13  ;;  %v6233_v13 = vld [vmem:[#allocation3 + $0x114] sm:$0xff] }
 0x5de   : > { %v12036_v59 = vpop.f32.mrf.mxu0  ;;  %v6254_v18 = vpack.c.bf16 %v6234_v10, %v6233_v13 }
 0x5df   : > { %13174 = vst [vmem:[#allocation66_spill] sm:$0xff] %v12036_v59  ;;  %v6474_v59 = vld [vmem:[#allocation3 + $0x85] sm:$0xff] }
 0x5e0   : > { %v5636_v0 = vpop.f32.mrf.mxu1 }
 0x5e1   : > { %v12043_v37 = vadd.f32 %v5636_v0, %v5421_v48  ;;  %v8828_v48 = vld [vmem:[%s12744_s7 + $0x20] sm:$0xff] }
 0x5e2   : > { %v5850_v58 = vpop.f32.mrf.mxu2  ;;  %7487 = vmatpush.bf16.msrb.mxu0 %v8828_v48 }
 0x5e3   : > { %v6109_v17 = vpop.f32.mrf.mxu3  ;;  %v5921_v55 = vadd.f32 %v5850_v58, %v11830_v39  ;;  %v6504_v58 = vpack.c.bf16 %v6475_v31, %v6474_v59  ;;  %v8826_v31 = vld [vmem:[%s12744_s7 + $0x10] sm:$0xff] }
 0x5e5   : > { %v12046_v49 = vadd.f32 %v6109_v17, %v5921_v55 }
 0x5e6   : > { %v12048_v56 = vpop.f32.mrf.mxu0  ;;  %7488 = vmatpush.bf16.msrb.mxu0 %v8827_v32  ;;  %v5717_v32 = vld [vmem:[#allocation3 + $0x113] sm:$0xff] }
 0x5e7   : > { %13176 = vst [vmem:[#allocation69_spill] sm:$0xff] %v12048_v56  ;;  %8547 = vmatmul.msk.bf16.gmra.mxu2 %vm724_vm5, %v5736_v50 }
 0x5e8   : > { %v5639_v0 = vpop.f32.mrf.mxu1  ;;  %8573 = vmatmul.msk.bf16.gmra.mxu3 %vm724_vm5, %v6253_v29  ;;  %v13179_v29 = vld [vmem:[#allocation81_spill] sm:$0xff] }
 0x5e9   : > { %v12057_v39 = vadd.f32 %v5639_v0, %v5422_v15  ;;  %8599 = vmatmul.msk.bf16.gmra.mxu0 %vm724_vm5, %v6254_v18  ;;  %v5423_v59 = vadd.f32 %v13179_v29, %v11853_v23  ;;  %v8825_v15 = vld [vmem:[%s12744_s7 + $0x8] sm:$0xff] }
 0x5ea   : > { %v5853_v20 = vpop.f32.mrf.mxu2  ;;  %7489 = vmatpush.bf16.msrb.mxu0 %v8826_v31  ;;  %v6236_v23 = vld [vmem:[#allocation3 + $0x12c] sm:$0xff]  ;;  %v5424_v31 = vadd.f32 %v11855_v62, %v11869_v5 }
 0x5eb   : > { %8616 = vmatmul.msk.bf16.gmra.mxu1 %vm724_vm5, %v6504_v58  ;;  %v6112_v17 = vpop.f32.mrf.mxu3  ;;  %v5922_v55 = vadd.f32 %v5853_v20, %v13177_v11  ;;  %v5718_v58 = vld [vmem:[#allocation3 + $0x11b] sm:$0xff]  ;;  %v8835_v62 = vld [vmem:[%s12746_s9 + $0x8] sm:$0xff] }
 0x5ec   : > { %v6477_v11 = vld [vmem:[#allocation3 + $0x9d] sm:$0xff]  ;;  %7691 = vmatpush.bf16.msrb.mxu3 %v8835_v62 }
 0x5ed   : > { %v12065_v10 = vadd.f32 %v6112_v17, %v5922_v55  ;;  %v6235_v17 = vld [vmem:[#allocation3 + $0x124] sm:$0xff] }
 0x5ee   : > { %v12067_v57 = vpop.f32.mrf.mxu0  ;;  %7490 = vmatpush.bf16.msrb.mxu0 %v8825_v15  ;;  %v5719_v62 = vld [vmem:[#allocation3 + $0x123] sm:$0xff] }
 0x5ef   : > { %13178 = vst [vmem:[#allocation61_spill] sm:$0xff] %v12067_v57  ;;  %v6255_v57 = vpack.c.bf16 %v6236_v23, %v6235_v17 }
 0x5f0   : > { %v5641_v50 = vpop.f32.mrf.mxu1 }
 0x5f1   : > { %v12074_v13 = vadd.f32 %v5641_v50, %v5423_v59  ;;  %v5737_v59 = vpack.c.bf16 %v5718_v58, %v5717_v32  ;;  %v8824_v50 = vld [vmem:[%s12744_s7] sm:$0xff] }
 0x5f2   : > { %v5855_v48 = vpop.f32.mrf.mxu2  ;;  %7491 = vmatpush.bf16.msrb.mxu0 %v8824_v50  ;;  %v5720_v50 = vld [vmem:[#allocation3 + $0x12b] sm:$0xff] }
 0x5f3   : > { %v6114_v0 = vpop.f32.mrf.mxu3  ;;  %v5923_v20 = vadd.f32 %v5855_v48, %v11851_v44  ;;  %v6476_v44 = vld [vmem:[#allocation3 + $0x95] sm:$0xff] }
 0x5f5   : > { %v12080_v55 = vadd.f32 %v6114_v0, %v5923_v20  ;;  %v6505_v0 = vpack.c.bf16 %v6477_v11, %v6476_v44  ;;  %v6237_v11 = vld [vmem:[#allocation3 + $0x134] sm:$0xff] }
 0x5f6   : > { %v12082_v29 = vpop.f32.mrf.mxu0 }
 0x5f7   : > { %13180 = vst [vmem:[#allocation72_spill] sm:$0xff] %v12082_v29  ;;  %8548 = vmatmul.msk.bf16.gmra.mxu2 %vm724_vm5, %v5737_v59  ;;  %v6238_v59 = vld [vmem:[#allocation3 + $0x13c] sm:$0xff] }
 0x5f8   : > { %v5644_v56 = vpop.f32.mrf.mxu1  ;;  %8574 = vmatmul.msk.bf16.gmra.mxu3 %vm724_vm5, %v6254_v18  ;;  %v6256_v29 = vpack.c.bf16 %v6238_v59, %v6237_v11 }
 0x5f9   : > { %v12091_v48 = vadd.f32 %v5644_v56, %v5424_v31  ;;  %8600 = vmatmul.msk.bf16.gmra.mxu0 %vm724_vm5, %v6255_v57  ;;  %v13182_v56 = vld [vmem:[#allocation71_spill] sm:$0xff] }
 0x5fa   : > { %v5858_v5 = vpop.f32.mrf.mxu2  ;;  %v5425_v17 = vadd.f32 %v13182_v56, %v11880_v26  ;;  %v13184_v26 = vld [vmem:[#allocation84_spill] sm:$0xff] }
 0x5fb   : > { %8617 = vmatmul.msk.bf16.gmra.mxu1 %vm724_vm5, %v6505_v0  ;;  %v6117_v15 = vpop.f32.mrf.mxu3  ;;  %v5924_v58 = vadd.f32 %v5858_v5, %v11861_v7  ;;  %v6479_v7 = vld [vmem:[#allocation3 + $0xad] sm:$0xff]  ;;  %v6426_v56 = vadd.f32 %v13184_v26, %v11895_v47 }
 0x5fc   : > { %v6722_v26 = vld [vmem:[#allocation3 + $0x2e] sm:$0xff] }
 0x5fd   : > { %v12099_v20 = vadd.f32 %v6117_v15, %v5924_v58  ;;  %v5738_v58 = vpack.c.bf16 %v5720_v50, %v5719_v62 }
 0x5fe   : > { %v12101_v18 = vpop.f32.mrf.mxu0 }
 0x5ff   : > { %13181 = vst [vmem:[#allocation64_spill] sm:$0xff] %v12101_v18 }
 0x600   : > { %v5646_v23 = vpop.f32.mrf.mxu1 }
 0x601   : > { %v12105_v32 = vadd.f32 %v5646_v23, %v5425_v17  ;;  %v6478_v23 = vld [vmem:[#allocation3 + $0xa5] sm:$0xff] }
 0x602   : > { %v5860_v31 = vpop.f32.mrf.mxu2 }
 0x603   : > { %v6119_v44 = vpop.f32.mrf.mxu3  ;;  %v5925_v0 = vadd.f32 %v5860_v31, %v11878_v21  ;;  %v6506_v21 = vpack.c.bf16 %v6479_v7, %v6478_v23  ;;  %v13185_v31 = vld [vmem:[#allocation74_spill] sm:$0xff]  ;;  %v6721_v23 = vld [vmem:[#allocation3 + $0x26] sm:$0xff] }
 0x605   : > { %v12108_v5 = vadd.f32 %v6119_v44, %v5925_v0  ;;  %v13186_v0 = vld [vmem:[#allocation63_spill] sm:$0xff] }
 0x606   : > { %v12110_v15 = vpop.f32.mrf.mxu0  ;;  %v6427_v62 = vadd.f32 %v13186_v0, %v11905_v40  ;;  %v6428_v40 = vadd.f32 %v11907_v16, %v11918_v28  ;;  %v6429_v28 = vadd.f32 %v11920_v33, %v11927_v53  ;;  %v6430_v33 = vadd.f32 %v11929_v41, %v11940_v60 }
 0x607   : > { %13183 = vst [vmem:[#allocation75_spill] sm:$0xff] %v12110_v15  ;;  %8549 = vmatmul.msk.bf16.gmra.mxu2 %vm724_vm5, %v5738_v58  ;;  %v7182_v15 = vld [vmem:[#allocation4] sm:$0xff]  ;;  %v6431_v60 = vadd.f32 %v11942_v38, %v11949_v34  ;;  %v6432_v38 = vadd.f32 %v11951_v14, %v11962_v36  ;;  %v6433_v36 = vadd.f32 %v11964_v1, %v11977_v24 }
 0x608   : > { %v6595_v17 = vpop.f32.mrf.mxu1  ;;  %8575 = vmatmul.msk.bf16.gmra.mxu3 %vm724_vm5, %v6255_v57  ;;  %v6434_v1 = vadd.f32 %v11979_v63, %v11990_v43  ;;  %v6435_v43 = vadd.f32 %v11992_v30, %v11999_v54  ;;  %v6436_v30 = vadd.f32 %v12001_v46, %v12012_v42  ;;  %v6437_v42 = vadd.f32 %v12014_v27, %v12021_v3  ;;  %v13194_v3 = vld [vmem:[#allocation16_spill] sm:$0xff] }
 0x609   : > { %v12116_v18 = vadd.f32 %v6595_v17, %v6426_v56  ;;  %8601 = vmatmul.msk.bf16.gmra.mxu0 %vm724_vm5, %v6256_v29  ;;  %v7183_v29 = vld [vmem:[#allocation4 + $0x8] sm:$0xff] }
 0x60a   : > { %v5863_v11 = vpop.f32.mrf.mxu2 }
 0x60b   : > { %8618 = vmatmul.msk.bf16.gmra.mxu1 %vm724_vm5, %v6506_v21  ;;  %v6122_v59 = vpop.f32.mrf.mxu3  ;;  %v5926_v44 = vadd.f32 %v5863_v11, %v13185_v31  ;;  %v6757_v21 = vpack.c.bf16 %v6722_v26, %v6721_v23  ;;  %v6481_v11 = vld [vmem:[#allocation3 + $0xbd] sm:$0xff] }
 0x60c   : > { %v13187_v26 = vld [vmem:[#allocation6_spill] sm:$0xff] }
 0x60d   : > { %v12121_v50 = vadd.f32 %v6122_v59, %v5926_v44  ;;  %v7214_v44 = vpack.c.bf16 %v7183_v29, %v7182_v15 }
 0x60e   : > { %v12123_v47 = vpop.f32.mrf.mxu0 }
 0x610   : > { %v6597_v58 = vpop.f32.mrf.mxu1 }
 0x611   : > { %v12127_v57 = vadd.f32 %v6597_v58, %v6427_v62  ;;  %v6480_v62 = vld [vmem:[#allocation3 + $0xb5] sm:$0xff] }
 0x612   : > { %v5865_v7 = vpop.f32.mrf.mxu2  ;;  %v6507_v58 = vpack.c.bf16 %v6481_v11, %v6480_v62  ;;  %v6723_v62 = vld [vmem:[#allocation3 + $0x36] sm:$0xff] }
 0x613   : > { %v6124_v56 = vpop.f32.mrf.mxu3  ;;  %v5927_v17 = vadd.f32 %v5865_v7, %v11902_v4 }
 0x615   : > { %v12130_v59 = vadd.f32 %v6124_v56, %v5927_v17 }
 0x616   : > { %v12132_v31 = vpop.f32.mrf.mxu0 }
 0x617   : > { %8636 = vmatmul.msk.bf16.vlgmr.msrb.gmra.mxu2 %vm724_vm5, %v6757_v21 }
 0x618   : > { %v6600_v0 = vpop.f32.mrf.mxu1  ;;  %8670 = vmatmul.msk.bf16.vlgmr.msra.gmra.mxu3 %vm679_vm2, %v7214_v44  ;;  %v6724_v44 = vld [vmem:[#allocation3 + $0x3e] sm:$0xff] }
 0x619   : > { %v12138_v4 = vadd.f32 %v6600_v0, %v6428_v40  ;;  %8710 = vmatmul.msk.bf16.vlgmr.msrb.gmra.mxu0 %vm7435_vm11, %v13187_v26  ;;  %v7185_v40 = vld [vmem:[#allocation4 + $0x18] sm:$0xff] }
 0x61a   : > { %v5868_v7 = vpop.f32.mrf.mxu2  ;;  %v6483_v26 = vld [vmem:[#allocation3 + $0xcd] sm:$0xff] }
 0x61b   : > { %8619 = vmatmul.msk.bf16.gmra.mxu1 %vm724_vm5, %v6507_v58  ;;  %v6127_v15 = vpop.f32.mrf.mxu3  ;;  %v5928_v56 = vadd.f32 %v5868_v7, %v11913_v35  ;;  %v7184_v58 = vld [vmem:[#allocation4 + $0x10] sm:$0xff] }
 0x61d   : > { %v12144_v29 = vadd.f32 %v6127_v15, %v5928_v56  ;;  %v6758_v15 = vpack.c.bf16 %v6724_v44, %v6723_v62  ;;  %v7215_v56 = vpack.c.bf16 %v7185_v40, %v7184_v58 }
 0x61e   : > { %v12146_v16 = vpop.f32.mrf.mxu0 }
 0x620   : > { %v6602_v17 = vpop.f32.mrf.mxu1 }
 0x621   : > { %v12150_v23 = vadd.f32 %v6602_v17, %v6429_v28  ;;  %v6482_v28 = vld [vmem:[#allocation3 + $0xc5] sm:$0xff] }
 0x622   : > { %v5870_v21 = vpop.f32.mrf.mxu2 }
 0x623   : > { %v6129_v11 = vpop.f32.mrf.mxu3  ;;  %v5929_v0 = vadd.f32 %v5870_v21, %v11924_v19  ;;  %v6508_v19 = vpack.c.bf16 %v6483_v26, %v6482_v28  ;;  %v13188_v21 = vld [vmem:[#allocation8_spill] sm:$0xff] }
 0x624   : > { %v6725_v28 = vld [vmem:[#allocation3 + $0x46] sm:$0xff] }
 0x625   : > { %v12153_v35 = vadd.f32 %v6129_v11, %v5929_v0 }
 0x626   : > { %v12155_v7 = vpop.f32.mrf.mxu0 }
 0x627   : > { %8637 = vmatmul.msk.bf16.gmra.mxu2 %vm724_vm5, %v6758_v15 }
 0x628   : > { %v6605_v53 = vpop.f32.mrf.mxu1  ;;  %8671 = vmatmul.msk.bf16.gmra.mxu3 %vm679_vm2, %v7215_v56  ;;  %v6726_v56 = vld [vmem:[#allocation3 + $0x4e] sm:$0xff] }
 0x629   : > { %v12161_v17 = vadd.f32 %v6605_v53, %v6430_v33  ;;  %8711 = vmatmul.msk.bf16.gmra.mxu0 %vm7435_vm11, %v13188_v21  ;;  %v7187_v33 = vld [vmem:[#allocation4 + $0x28] sm:$0xff] }
 0x62a   : > { %v5873_v11 = vpop.f32.mrf.mxu2  ;;  %v6485_v21 = vld [vmem:[#allocation3 + $0xdd] sm:$0xff] }
 0x62b   : > { %8620 = vmatmul.msk.bf16.gmra.mxu1 %vm724_vm5, %v6508_v19  ;;  %v6132_v44 = vpop.f32.mrf.mxu3  ;;  %v5930_v40 = vadd.f32 %v5873_v11, %v11935_v61  ;;  %v7186_v19 = vld [vmem:[#allocation4 + $0x20] sm:$0xff] }
 0x62d   : > { %v12167_v0 = vadd.f32 %v6132_v44, %v5930_v40  ;;  %v6759_v44 = vpack.c.bf16 %v6726_v56, %v6725_v28  ;;  %v7216_v40 = vpack.c.bf16 %v7187_v33, %v7186_v19 }
 0x62e   : > { %v12169_v41 = vpop.f32.mrf.mxu0 }
 0x630   : > { %v6607_v62 = vpop.f32.mrf.mxu1 }
 0x631   : > { %v12173_v58 = vadd.f32 %v6607_v62, %v6431_v60  ;;  %v6484_v60 = vld [vmem:[#allocation3 + $0xd5] sm:$0xff] }
 0x632   : > { %v5875_v26 = vpop.f32.mrf.mxu2 }
 0x633   : > { %v6134_v15 = vpop.f32.mrf.mxu3  ;;  %v5931_v53 = vadd.f32 %v5875_v26, %v11946_v8  ;;  %v6509_v8 = vpack.c.bf16 %v6485_v21, %v6484_v60  ;;  %v13189_v26 = vld [vmem:[#allocation10_spill] sm:$0xff] }
 0x634   : > { %v6727_v60 = vld [vmem:[#allocation3 + $0x56] sm:$0xff] }
 0x635   : > { %v12176_v61 = vadd.f32 %v6134_v15, %v5931_v53 }
 0x636   : > { %v12178_v11 = vpop.f32.mrf.mxu0 }
 0x637   : > { %8638 = vmatmul.msk.bf16.gmra.mxu2 %vm724_vm5, %v6759_v44 }
 0x638   : > { %v6610_v34 = vpop.f32.mrf.mxu1  ;;  %8672 = vmatmul.msk.bf16.gmra.mxu3 %vm679_vm2, %v7216_v40  ;;  %v6728_v40 = vld [vmem:[#allocation3 + $0x5e] sm:$0xff] }
 0x639   : > { %v12184_v62 = vadd.f32 %v6610_v34, %v6432_v38  ;;  %8712 = vmatmul.msk.bf16.gmra.mxu0 %vm7435_vm11, %v13189_v26  ;;  %v7189_v38 = vld [vmem:[#allocation4 + $0x38] sm:$0xff] }
 0x63a   : > { %v5878_v15 = vpop.f32.mrf.mxu2  ;;  %v6487_v26 = vld [vmem:[#allocation3 + $0xed] sm:$0xff] }
 0x63b   : > { %8621 = vmatmul.msk.bf16.gmra.mxu1 %vm724_vm5, %v6509_v8  ;;  %v6137_v56 = vpop.f32.mrf.mxu3  ;;  %v5932_v33 = vadd.f32 %v5878_v15, %v11957_v9  ;;  %v7188_v8 = vld [vmem:[#allocation4 + $0x30] sm:$0xff] }
 0x63d   : > { %v12190_v53 = vadd.f32 %v6137_v56, %v5932_v33  ;;  %v6760_v56 = vpack.c.bf16 %v6728_v40, %v6727_v60  ;;  %v7217_v33 = vpack.c.bf16 %v7189_v38, %v7188_v8 }
 0x63e   : > { %v12192_v14 = vpop.f32.mrf.mxu0 }
 0x640   : > { %v6612_v28 = vpop.f32.mrf.mxu1 }
 0x641   : > { %v12196_v19 = vadd.f32 %v6612_v28, %v6433_v36  ;;  %v6486_v36 = vld [vmem:[#allocation3 + $0xe5] sm:$0xff] }
 0x642   : > { %v5880_v21 = vpop.f32.mrf.mxu2 }
 0x643   : > { %v6139_v44 = vpop.f32.mrf.mxu3  ;;  %v5933_v34 = vadd.f32 %v5880_v21, %v11974_v12  ;;  %v6510_v12 = vpack.c.bf16 %v6487_v26, %v6486_v36  ;;  %v13190_v21 = vld [vmem:[#allocation12_spill] sm:$0xff] }
 0x644   : > { %v6729_v36 = vld [vmem:[#allocation3 + $0x66] sm:$0xff] }
 0x645   : > { %v12199_v9 = vadd.f32 %v6139_v44, %v5933_v34 }
 0x646   : > { %v12201_v15 = vpop.f32.mrf.mxu0 }
 0x647   : > { %8639 = vmatmul.msk.bf16.gmra.mxu2 %vm724_vm5, %v6760_v56 }
 0x648   : > { %v6615_v24 = vpop.f32.mrf.mxu1  ;;  %8673 = vmatmul.msk.bf16.gmra.mxu3 %vm679_vm2, %v7217_v33  ;;  %v6730_v33 = vld [vmem:[#allocation3 + $0x6e] sm:$0xff] }
 0x649   : > { %v12207_v28 = vadd.f32 %v6615_v24, %v6434_v1  ;;  %8713 = vmatmul.msk.bf16.gmra.mxu0 %vm7435_vm11, %v13190_v21  ;;  %v7191_v1 = vld [vmem:[#allocation4 + $0x48] sm:$0xff] }
 0x64a   : > { %v5883_v44 = vpop.f32.mrf.mxu2  ;;  %v6489_v21 = vld [vmem:[#allocation3 + $0xfd] sm:$0xff] }
 0x64b   : > { %8622 = vmatmul.msk.bf16.gmra.mxu1 %vm724_vm5, %v6510_v12  ;;  %v6142_v40 = vpop.f32.mrf.mxu3  ;;  %v5934_v38 = vadd.f32 %v5883_v44, %v11985_v45  ;;  %v7190_v12 = vld [vmem:[#allocation4 + $0x40] sm:$0xff] }
 0x64d   : > { %v12213_v34 = vadd.f32 %v6142_v40, %v5934_v38  ;;  %v6761_v40 = vpack.c.bf16 %v6730_v33, %v6729_v36  ;;  %v7218_v38 = vpack.c.bf16 %v7191_v1, %v7190_v12 }
 0x64e   : > { %v12215_v63 = vpop.f32.mrf.mxu0 }
 0x650   : > { %v6617_v60 = vpop.f32.mrf.mxu1 }
 0x651   : > { %v12219_v8 = vadd.f32 %v6617_v60, %v6435_v43  ;;  %v6488_v43 = vld [vmem:[#allocation3 + $0xf5] sm:$0xff] }
 0x652   : > { %v5885_v26 = vpop.f32.mrf.mxu2 }
 0x653   : > { %v6144_v56 = vpop.f32.mrf.mxu3  ;;  %v5935_v24 = vadd.f32 %v5885_v26, %v11996_v6  ;;  %v6511_v6 = vpack.c.bf16 %v6489_v21, %v6488_v43  ;;  %v13191_v26 = vld [vmem:[#allocation14_spill] sm:$0xff] }
 0x654   : > { %v6731_v43 = vld [vmem:[#allocation3 + $0x76] sm:$0xff] }
 0x655   : > { %v12222_v45 = vadd.f32 %v6144_v56, %v5935_v24 }
 0x656   : > { %v12224_v44 = vpop.f32.mrf.mxu0 }
 0x657   : > { %8640 = vmatmul.msk.bf16.gmra.mxu2 %vm724_vm5, %v6761_v40 }
 0x658   : > { %v6620_v54 = vpop.f32.mrf.mxu1  ;;  %8674 = vmatmul.msk.bf16.gmra.mxu3 %vm679_vm2, %v7218_v38  ;;  %v6732_v38 = vld [vmem:[#allocation3 + $0x7e] sm:$0xff] }
 0x659   : > { %v12230_v60 = vadd.f32 %v6620_v54, %v6436_v30  ;;  %8714 = vmatmul.msk.bf16.gmra.mxu0 %vm7435_vm11, %v13191_v26  ;;  %v7193_v30 = vld [vmem:[#allocation4 + $0x58] sm:$0xff] }
 0x65a   : > { %v5888_v56 = vpop.f32.mrf.mxu2  ;;  %v6491_v26 = vld [vmem:[#allocation3 + $0x10d] sm:$0xff] }
 0x65b   : > { %8623 = vmatmul.msk.bf16.gmra.mxu1 %vm724_vm5, %v6511_v6  ;;  %v6147_v33 = vpop.f32.mrf.mxu3  ;;  %v5936_v1 = vadd.f32 %v5888_v56, %v12007_v52  ;;  %v7192_v6 = vld [vmem:[#allocation4 + $0x50] sm:$0xff] }
 0x65d   : > { %v12236_v24 = vadd.f32 %v6147_v33, %v5936_v1  ;;  %v6762_v33 = vpack.c.bf16 %v6732_v38, %v6731_v43  ;;  %v7219_v1 = vpack.c.bf16 %v7193_v30, %v7192_v6  ;;  %v7195_v43 = vld [vmem:[#allocation4 + $0x68] sm:$0xff] }
 0x65e   : > { %v12238_v46 = vpop.f32.mrf.mxu0 }
 0x65f   : > { %13192 = vst [vmem:[#allocation29_spill] sm:$0xff] %v12238_v46  ;;  %v6490_v46 = vld [vmem:[#allocation3 + $0x105] sm:$0xff] }
 0x660   : > { %v6622_v36 = vpop.f32.mrf.mxu1  ;;  %v6512_v27 = vpack.c.bf16 %v6491_v26, %v6490_v46  ;;  %v6733_v46 = vld [vmem:[#allocation3 + $0x86] sm:$0xff]  ;;  %v7194_v26 = vld [vmem:[#allocation4 + $0x60] sm:$0xff] }
 0x661   : > { %v12242_v12 = vadd.f32 %v6622_v36, %v6437_v42 }
 0x662   : > { %v5890_v21 = vpop.f32.mrf.mxu2 }
 0x663   : > { %v6149_v40 = vpop.f32.mrf.mxu3  ;;  %v5937_v54 = vadd.f32 %v5890_v21, %v12018_v22 }
 0x665   : > { %v12245_v52 = vadd.f32 %v6149_v40, %v5937_v54  ;;  %v6734_v54 = vld [vmem:[#allocation3 + $0x8e] sm:$0xff] }
 0x666   : > { %v12247_v56 = vpop.f32.mrf.mxu0 }
 0x667   : > { %13193 = vst [vmem:[#allocation67_spill] sm:$0xff] %v12247_v56  ;;  %8641 = vmatmul.msk.bf16.gmra.mxu2 %vm724_vm5, %v6762_v33  ;;  %v6493_v33 = vld [vmem:[#allocation3 + $0x11d] sm:$0xff]  ;;  %v7220_v56 = vpack.c.bf16 %v7195_v43, %v7194_v26  ;;  %v7197_v26 = vld [vmem:[#allocation4 + $0x78] sm:$0xff] }
 0x668   : > { %8675 = vmatmul.msk.bf16.gmra.mxu3 %vm679_vm2, %v7219_v1 }
 0x669   : > { %8715 = vmatmul.msk.bf16.gmra.mxu0 %vm7435_vm11, %v13194_v3  ;;  %v6763_v3 = vpack.c.bf16 %v6734_v54, %v6733_v46  ;;  %v6736_v46 = vld [vmem:[#allocation3 + $0x9e] sm:$0xff] }
 0x66a   : > { %v5893_v22 = vpop.f32.mrf.mxu2 }
 0x66b   : > { %8624 = vmatmul.msk.bf16.gmra.mxu1 %vm724_vm5, %v6512_v27  ;;  %v6152_v42 = vpop.f32.mrf.mxu3  ;;  %v5938_v36 = vadd.f32 %v5893_v22, %v12029_v51  ;;  %v6492_v51 = vld [vmem:[#allocation3 + $0x115] sm:$0xff] }
 0x66c   : > { %v6513_v22 = vpack.c.bf16 %v6493_v33, %v6492_v51  ;;  %v6735_v51 = vld [vmem:[#allocation3 + $0x96] sm:$0xff] }
 0x66d   : > { %v12255_v21 = vadd.f32 %v6152_v42, %v5938_v36  ;;  %v13197_v42 = vld [vmem:[#allocation18_spill] sm:$0xff] }
 0x66e   : > { %v12257_v40 = vpop.f32.mrf.mxu0 }
 0x66f   : > { %13195 = vst [vmem:[#allocation70_spill] sm:$0xff] %v12257_v40 }
 0x672   : > { %v5895_v38 = vpop.f32.mrf.mxu2 }
 0x673   : > { %v6154_v30 = vpop.f32.mrf.mxu3  ;;  %v5939_v6 = vadd.f32 %v5895_v38, %v12043_v37  ;;  %v8834_v37 = vld [vmem:[%s12746_s9] sm:$0xff] }
 0x674   : > { %7692 = vmatpush.bf16.msrb.mxu3 %v8834_v37  ;;  %v6764_v37 = vpack.c.bf16 %v6736_v46, %v6735_v51  ;;  %v7199_v46 = vld [vmem:[#allocation4 + $0x88] sm:$0xff]  ;;  %v6738_v51 = vld [vmem:[#allocation3 + $0xae] sm:$0xff] }
 0x675   : > { %v12260_v1 = vadd.f32 %v6154_v30, %v5939_v6 }
 0x676   : > { %v12262_v27 = vpop.f32.mrf.mxu0 }
 0x677   : > { %13196 = vst [vmem:[#allocation73_spill] sm:$0xff] %v12262_v27  ;;  %8642 = vmatmul.msk.bf16.gmra.mxu2 %vm724_vm5, %v6763_v3  ;;  %v7196_v3 = vld [vmem:[#allocation4 + $0x70] sm:$0xff] }
 0x678   : > { %8676 = vmatmul.msk.bf16.gmra.mxu3 %vm679_vm2, %v7220_v56  ;;  %v6495_v27 = vld [vmem:[#allocation3 + $0x12d] sm:$0xff] }
 0x679   : > { %8716 = vmatmul.msk.bf16.gmra.mxu0 %vm7435_vm11, %v13197_v42  ;;  %v6494_v42 = vld [vmem:[#allocation3 + $0x125] sm:$0xff] }
 0x67a   : > { %v5898_v36 = vpop.f32.mrf.mxu2 }
 0x67b   : > { %8625 = vmatmul.msk.bf16.gmra.mxu1 %vm724_vm5, %v6513_v22  ;;  %v6157_v38 = vpop.f32.mrf.mxu3  ;;  %v5940_v30 = vadd.f32 %v5898_v36, %v12057_v39  ;;  %v7221_v39 = vpack.c.bf16 %v7197_v26, %v7196_v3  ;;  %v6514_v36 = vpack.c.bf16 %v6495_v27, %v6494_v42  ;;  %v6737_v42 = vld [vmem:[#allocation3 + $0xa6] sm:$0xff] }
 0x67d   : > { %v12273_v54 = vadd.f32 %v6157_v38, %v5940_v30  ;;  %v13201_v38 = vld [vmem:[#allocation19_spill] sm:$0xff] }
 0x67e   : > { %v12275_v43 = vpop.f32.mrf.mxu0 }
 0x67f   : > { %13198 = vst [vmem:[#allocation87_spill] sm:$0xff] %v12275_v43  ;;  %v6765_v43 = vpack.c.bf16 %v6738_v51, %v6737_v42 }
 0x682   : > { %v5900_v56 = vpop.f32.mrf.mxu2 }
 0x683   : > { %v6159_v6 = vpop.f32.mrf.mxu3  ;;  %v5941_v33 = vadd.f32 %v5900_v56, %v12074_v13 }
 0x685   : > { %v12278_v22 = vadd.f32 %v6159_v6, %v5941_v33 }
 0x686   : > { %v12280_v40 = vpop.f32.mrf.mxu0 }
 0x687   : > { %13199 = vst [vmem:[#allocation78_spill] sm:$0xff] %v12278_v22  ;;  %8643 = vmatmul.msk.bf16.gmra.mxu2 %vm724_vm5, %v6764_v37  ;;  %v6496_v37 = vld [vmem:[#allocation3 + $0x135] sm:$0xff] }
 0x688   : > { %13200 = vst [vmem:[#allocation76_spill] sm:$0xff] %v12280_v40  ;;  %8677 = vmatmul.msk.bf16.gmra.mxu3 %vm679_vm2, %v7221_v39  ;;  %v6497_v39 = vld [vmem:[#allocation3 + $0x13d] sm:$0xff] }
 0x689   : > { %8717 = vmatmul.msk.bf16.gmra.mxu0 %vm7435_vm11, %v13201_v38  ;;  %v7198_v38 = vld [vmem:[#allocation4 + $0x80] sm:$0xff] }
 0x68a   : > { %v5903_v13 = vpop.f32.mrf.mxu2  ;;  %v7222_v22 = vpack.c.bf16 %v7199_v46, %v7198_v38 }
 0x68b   : > { %8626 = vmatmul.msk.bf16.gmra.mxu1 %vm724_vm5, %v6514_v36  ;;  %v6162_v30 = vpop.f32.mrf.mxu3  ;;  %v5942_v56 = vadd.f32 %v5903_v13, %v12091_v48  ;;  %v6515_v48 = vpack.c.bf16 %v6497_v39, %v6496_v37  ;;  %v13202_v13 = vld [vmem:[#allocation20_spill] sm:$0xff]  ;;  %v6740_v39 = vld [vmem:[#allocation3 + $0xbe] sm:$0xff] }
 0x68d   : > { %v12288_v6 = vadd.f32 %v6162_v30, %v5942_v56  ;;  %v12302_v30 = vld [vmem:[%s12743_s6] ss:$0 sm:$0xff] }
 0x68e   : > { %v12290_v33 = vpop.f32.mrf.mxu0 }
 0x692   : > { %v5905_v26 = vpop.f32.mrf.mxu2 }
 0x693   : > { %v6164_v3 = vpop.f32.mrf.mxu3  ;;  %v5943_v27 = vadd.f32 %v5905_v26, %v12105_v32 }
 0x695   : > { %v12293_v40 = vadd.f32 %v6164_v3, %v5943_v27  ;;  %v7201_v27 = vld [vmem:[#allocation4 + $0x98] sm:$0xff] }
 0x696   : > { %v7493_v36 = vpop.f32.mrf.mxu0 }
 0x697   : > { %8644 = vmatmul.msk.bf16.gmra.mxu2 %vm724_vm5, %v6765_v43 }
 0x698   : > { %8678 = vmatmul.msk.bf16.gmra.mxu3 %vm679_vm2, %v7222_v22 }
 0x699   : > { %8718 = vmatmul.msk.bf16.gmra.mxu0 %vm7435_vm11, %v13202_v13  ;;  %v7200_v13 = vld [vmem:[#allocation4 + $0x90] sm:$0xff] }
 0x69a   : > { %v6854_v32 = vpop.f32.mrf.mxu2 }
 0x69b   : > { %8627 = vmatmul.msk.bf16.gmra.mxu1 %vm724_vm5, %v6515_v48  ;;  %v7319_v56 = vpop.f32.mrf.mxu3  ;;  %v6944_v26 = vadd.f32 %v6854_v32, %v12116_v18  ;;  %v6739_v48 = vld [vmem:[#allocation3 + $0xb6] sm:$0xff] }
 0x69c   : > { %v12306_v46 = vadd.f32 %v7493_v36, %v7319_v56  ;;  %v6766_v32 = vpack.c.bf16 %v6740_v39, %v6739_v48  ;;  %v7223_v56 = vpack.c.bf16 %v7201_v27, %v7200_v13  ;;  %v6742_v13 = vld [vmem:[#allocation3 + $0xce] sm:$0xff] }
 0x69d   : > { %v6984_v43 = vadd.f32 %v12302_v30, %v6944_v26 }
 0x69e   : > { %v7495_v3 = vpop.f32.mrf.mxu0 }
 0x69f   : > { %v7020_v22 = vmax.f32 %v6984_v43, 0.0  ;;  %v13203_v43 = vld [vmem:[#allocation21_spill] sm:$0xff] }
 0x6a1   : > { %7058 = vst.msk [vmem:[#allocation5] sm:$0xff] %vm724_vm5, %v7020_v22 }
 0x6a2   : > { %v6856_v51 = vpop.f32.mrf.mxu2 }
 0x6a3   : > { %v7321_v37 = vpop.f32.mrf.mxu3  ;;  %v6945_v42 = vadd.f32 %v6856_v51, %v12127_v57 }
 0x6a4   : > { %v12311_v38 = vadd.f32 %v7495_v3, %v7321_v37 }
 0x6a5   : > { %v6985_v18 = vadd.f32 %v12302_v30, %v6945_v42 }
 0x6a6   : > { %v7498_v36 = vpop.f32.mrf.mxu0 }
 0x6a7   : > { %v7021_v26 = vmax.f32 %v6985_v18, 0.0  ;;  %8645 = vmatmul.msk.bf16.gmra.mxu2 %vm724_vm5, %v6766_v32  ;;  %v7203_v18 = vld [vmem:[#allocation4 + $0xa8] sm:$0xff] }
 0x6a8   : > { %8679 = vmatmul.msk.bf16.gmra.mxu3 %vm679_vm2, %v7223_v56 }
 0x6a9   : > { %8719 = vmatmul.msk.bf16.gmra.mxu0 %vm7435_vm11, %v13203_v43  ;;  %7059 = vst.msk [vmem:[#allocation5 + $0x8] sm:$0xff] %vm724_vm5, %v7021_v26  ;;  %v6741_v26 = vld [vmem:[#allocation3 + $0xc6] sm:$0xff]  ;;  %v7202_v43 = vld [vmem:[#allocation4 + $0xa0] sm:$0xff] }
 0x6aa   : > { %v6859_v57 = vpop.f32.mrf.mxu2 }
 0x6ab   : > { %v7324_v3 = vpop.f32.mrf.mxu3  ;;  %v6946_v22 = vadd.f32 %v6859_v57, %v12138_v4  ;;  %v6767_v57 = vpack.c.bf16 %v6742_v13, %v6741_v26 }
 0x6ac   : > { %v12320_v51 = vadd.f32 %v7498_v36, %v7324_v3  ;;  %v7224_v3 = vpack.c.bf16 %v7203_v18, %v7202_v43  ;;  %v6744_v43 = vld [vmem:[#allocation3 + $0xde] sm:$0xff] }
 0x6ad   : > { %v6986_v37 = vadd.f32 %v12302_v30, %v6946_v22 }
 0x6ae   : > { %v7500_v39 = vpop.f32.mrf.mxu0 }
 0x6af   : > { %v7022_v27 = vmax.f32 %v6986_v37, 0.0  ;;  %v13204_v37 = vld [vmem:[#allocation7_spill] sm:$0xff] }
 0x6b1   : > { %7066 = vst.msk [vmem:[#allocation5 + $0xe] sm:$0xfc] %vm7065_vm10, %v7022_v27 }
 0x6b2   : > { %v6861_v42 = vpop.f32.mrf.mxu2 }
 0x6b3   : > { %v7326_v48 = vpop.f32.mrf.mxu3  ;;  %v6947_v32 = vadd.f32 %v6861_v42, %v12150_v23 }
 0x6b4   : > { %v12325_v56 = vadd.f32 %v7500_v39, %v7326_v48 }
 0x6b5   : > { %v6987_v4 = vadd.f32 %v12302_v30, %v6947_v32 }
 0x6b6   : > { %v7503_v36 = vpop.f32.mrf.mxu0 }
 0x6b7   : > { %v7023_v22 = vmax.f32 %v6987_v4, 0.0  ;;  %8646 = vmatmul.msk.bf16.gmra.mxu2 %vm724_vm5, %v6767_v57  ;;  %v7205_v4 = vld [vmem:[#allocation4 + $0xb8] sm:$0xff] }
 0x6b8   : > { %8680 = vmatmul.msk.bf16.gmra.mxu3 %vm679_vm2, %v7224_v3 }
 0x6b9   : > { %8720 = vmatmul.msk.bf16.gmra.mxu0 %vm7435_vm11, %v13204_v37  ;;  %7067 = vst.msk [vmem:[#allocation5 + $0x16] sm:$0xff] %vm724_vm5, %v7023_v22 }
 0x6ba   : > { %v6864_v23 = vpop.f32.mrf.mxu2 }
 0x6bb   : > { %v7329_v39 = vpop.f32.mrf.mxu3  ;;  %v6948_v27 = vadd.f32 %v6864_v23, %v12161_v17  ;;  %v6743_v17 = vld [vmem:[#allocation3 + $0xd6] sm:$0xff] }
 0x6bc   : > { %v12334_v42 = vadd.f32 %v7503_v36, %v7329_v39  ;;  %v7204_v36 = vld [vmem:[#allocation4 + $0xb0] sm:$0xff]  ;;  %v6768_v37 = vpack.c.bf16 %v6744_v43, %v6743_v17  ;;  %v12343_v39 = vpop.f32.mrf.mxu1 }
 0x6bd   : > { %v6988_v48 = vadd.f32 %v12302_v30, %v6948_v27  ;;  %v7225_v23 = vpack.c.bf16 %v7205_v4, %v7204_v36 }
 0x6be   : > { %v7505_v13 = vpop.f32.mrf.mxu0 }
 0x6bf   : > { %v7024_v18 = vmax.f32 %v6988_v48, 0.0 }
 0x6c1   : > { %7069 = vst.msk [vmem:[#allocation5 + $0x1e] sm:$0x3] %vm7068_vm0, %v7024_v18 }
 0x6c2   : > { %7076 = vst.msk [vmem:[#allocation5 + $0x1c] sm:$0xf0] %vm7075_vm13, %v7024_v18  ;;  %v6866_v32 = vpop.f32.mrf.mxu2  ;;  %v13205_v18 = vld [vmem:[#allocation9_spill] sm:$0xff] }
 0x6c3   : > { %v7331_v26 = vpop.f32.mrf.mxu3  ;;  %v6949_v57 = vadd.f32 %v6866_v32, %v12173_v58 }
 0x6c4   : > { %v12340_v3 = vadd.f32 %v7505_v13, %v7331_v26 }
 0x6c5   : > { %v6989_v22 = vadd.f32 %v12302_v30, %v6949_v57  ;;  %v12354_v57 = vpop.f32.mrf.mxu1 }
 0x6c6   : > { %v7508_v48 = vpop.f32.mrf.mxu0 }
 0x6c7   : > { %v7025_v27 = vmax.f32 %v6989_v22, 0.0  ;;  %8647 = vmatmul.msk.bf16.gmra.mxu2 %vm724_vm5, %v6768_v37  ;;  %v6746_v37 = vld [vmem:[#allocation3 + $0xee] sm:$0xff] }
 0x6c8   : > { %8681 = vmatmul.msk.bf16.gmra.mxu3 %vm679_vm2, %v7225_v23  ;;  %v7207_v23 = vld [vmem:[#allocation4 + $0xc8] sm:$0xff] }
 0x6c9   : > { %8721 = vmatmul.msk.bf16.gmra.mxu0 %vm7435_vm11, %v13205_v18  ;;  %7077 = vst.msk [vmem:[#allocation5 + $0x24] sm:$0xff] %vm724_vm5, %v7025_v27  ;;  %v7206_v18 = vld [vmem:[#allocation4 + $0xc0] sm:$0xff] }
 0x6ca   : > { %v6869_v58 = vpop.f32.mrf.mxu2 }
 0x6cb   : > { %v7334_v13 = vpop.f32.mrf.mxu3  ;;  %v6950_v32 = vadd.f32 %v6869_v58, %v12184_v62 }
 0x6cc   : > { %v12351_v26 = vadd.f32 %v7508_v48, %v7334_v13  ;;  %v6745_v48 = vld [vmem:[#allocation3 + $0xe6] sm:$0xff] }
 0x6cd   : > { %v6990_v43 = vadd.f32 %v12302_v30, %v6950_v32  ;;  %v6769_v13 = vpack.c.bf16 %v6746_v37, %v6745_v48  ;;  %v7226_v32 = vpack.c.bf16 %v7207_v23, %v7206_v18  ;;  %v6748_v48 = vld [vmem:[#allocation3 + $0xfe] sm:$0xff]  ;;  %v7209_v18 = vld [vmem:[#allocation4 + $0xd8] sm:$0xff] }
 0x6ce   : > { %13206 = vst [vmem:[#allocation90_spill] sm:$0xff] %v12351_v26  ;;  %v7510_v17 = vpop.f32.mrf.mxu0 }
 0x6cf   : > { %v7026_v4 = vmax.f32 %v6990_v43, 0.0 }
 0x6d1   : > { %7079 = vst.msk [vmem:[#allocation5 + $0x2c] sm:$0xf] %vm7078_vm3, %v7026_v4 }
 0x6d2   : > { %7085 = vst.msk [vmem:[#allocation5 + $0x2a] sm:$0xc0] %vm7084_vm8, %v7026_v4  ;;  %v6871_v36 = vpop.f32.mrf.mxu2  ;;  %v13207_v4 = vld [vmem:[#allocation11_spill] sm:$0xff] }
 0x6d3   : > { %v7336_v22 = vpop.f32.mrf.mxu3  ;;  %v6951_v62 = vadd.f32 %v6871_v36, %v12196_v19 }
 0x6d4   : > { %v12359_v27 = vadd.f32 %v7510_v17, %v7336_v22  ;;  %v12369_v17 = vpop.f32.mrf.mxu1 }
 0x6d5   : > { %v6991_v58 = vadd.f32 %v12302_v30, %v6951_v62 }
 0x6d7   : > { %v7027_v43 = vmax.f32 %v6991_v58, 0.0  ;;  %8648 = vmatmul.msk.bf16.gmra.mxu2 %vm724_vm5, %v6769_v13  ;;  %v6747_v13 = vld [vmem:[#allocation3 + $0xf6] sm:$0xff] }
 0x6d8   : > { %8682 = vmatmul.msk.bf16.gmra.mxu3 %vm679_vm2, %v7226_v32  ;;  %v7208_v32 = vld [vmem:[#allocation4 + $0xd0] sm:$0xff] }
 0x6d9   : > { %8722 = vmatmul.msk.bf16.gmra.mxu0 %vm7435_vm11, %v13207_v4  ;;  %7086 = vst.msk [vmem:[#allocation5 + $0x32] sm:$0xff] %vm724_vm5, %v7027_v43 }
 0x6da   : > { %v6874_v26 = vpop.f32.mrf.mxu2 }
 0x6db   : > { %v12367_v19 = vpop.f32.mrf.mxu3  ;;  %v6952_v36 = vadd.f32 %v6874_v26, %v12207_v28  ;;  %v7227_v28 = vpack.c.bf16 %v7209_v18, %v7208_v32  ;;  %v7211_v32 = vld [vmem:[#allocation4 + $0xe8] sm:$0xff] }
 0x6dc   : > { %13208 = vst [vmem:[#allocation82_spill] sm:$0xff] %v12367_v19  ;;  %v12377_v43 = vpop.f32.mrf.mxu1  ;;  %v6770_v19 = vpack.c.bf16 %v6748_v48, %v6747_v13  ;;  %v6750_v13 = vld [vmem:[#allocation3 + $0x10e] sm:$0xff] }
 0x6dd   : > { %v6992_v22 = vadd.f32 %v12302_v30, %v6952_v36  ;;  %v13209_v36 = vld [vmem:[#allocation13_spill] sm:$0xff] }
 0x6df   : > { %v7028_v37 = vmax.f32 %v6992_v22, 0.0 }
 0x6e1   : > { %7087 = vst.msk [vmem:[#allocation5 + $0x3a] sm:$0x3f] %vm767_vm14, %v7028_v37 }
 0x6e2   : > { %v6876_v23 = vpop.f32.mrf.mxu2 }
 0x6e3   : > { %v12374_v62 = vpop.f32.mrf.mxu3  ;;  %v6953_v58 = vadd.f32 %v6876_v23, %v12219_v8 }
 0x6e5   : > { %v6993_v4 = vadd.f32 %v12302_v30, %v6953_v58  ;;  %v12389_v58 = vpop.f32.mrf.mxu1 }
 0x6e7   : > { %v7029_v26 = vmax.f32 %v6993_v4, 0.0  ;;  %8649 = vmatmul.msk.bf16.gmra.mxu2 %vm724_vm5, %v6770_v19 }
 0x6e8   : > { %8683 = vmatmul.msk.bf16.gmra.mxu3 %vm679_vm2, %v7227_v28  ;;  %v6749_v28 = vld [vmem:[#allocation3 + $0x106] sm:$0xff] }
 0x6e9   : > { %8723 = vmatmul.msk.bf16.gmra.mxu0 %vm7435_vm11, %v13209_v36  ;;  %7090 = vst.msk [vmem:[#allocation5 + $0x40] sm:$0xff] %vm724_vm5, %v7029_v26  ;;  %v7210_v26 = vld [vmem:[#allocation4 + $0xe0] sm:$0xff] }
 0x6ea   : > { %v6879_v22 = vpop.f32.mrf.mxu2 }
 0x6eb   : > { %v12385_v8 = vpop.f32.mrf.mxu3  ;;  %v6954_v37 = vadd.f32 %v6879_v22, %v12230_v60  ;;  %v7228_v60 = vpack.c.bf16 %v7211_v32, %v7210_v26  ;;  %v6438_v22 = vadd.f32 %v12023_v25, %v12034_v2  ;;  %v13213_v2 = vld [vmem:[#allocation66_spill] sm:$0xff] }
 0x6ec   : > { %13210 = vst [vmem:[#allocation22_spill] sm:$0xff] %v12385_v8  ;;  %v6771_v8 = vpack.c.bf16 %v6750_v13, %v6749_v28 }
 0x6ed   : > { %v6994_v23 = vadd.f32 %v12302_v30, %v6954_v37 }
 0x6ef   : > { %v7030_v48 = vmax.f32 %v6994_v23, 0.0  ;;  %v13211_v23 = vld [vmem:[#allocation15_spill] sm:$0xff] }
 0x6f1   : > { %7091 = vst.msk [vmem:[#allocation5 + $0x48] sm:$0xff] %vm724_vm5, %v7030_v48  ;;  %v6697_v48 = vadd.f32 %v12343_v39, %v6438_v22 }
 0x6f2   : > { %v6881_v19 = vpop.f32.mrf.mxu2 }
 0x6f3   : > { %v12392_v18 = vpop.f32.mrf.mxu3  ;;  %v6955_v4 = vadd.f32 %v6881_v19, %v12242_v12  ;;  %v12403_v12 = vpop.f32.mrf.mxu1 }
 0x6f5   : > { %v6995_v36 = vadd.f32 %v12302_v30, %v6955_v4 }
 0x6f7   : > { %v7031_v37 = vmax.f32 %v6995_v36, 0.0  ;;  %8650 = vmatmul.msk.bf16.gmra.mxu2 %vm724_vm5, %v6771_v8  ;;  %v6439_v8 = vadd.f32 %v13213_v2, %v12046_v49  ;;  %v6752_v36 = vld [vmem:[#allocation3 + $0x11e] sm:$0xff]  ;;  %v13214_v49 = vld [vmem:[#allocation69_spill] sm:$0xff] }
 0x6f8   : > { %8684 = vmatmul.msk.bf16.gmra.mxu3 %vm679_vm2, %v7228_v60  ;;  %v7213_v60 = vld [vmem:[#allocation4 + $0xf8] sm:$0xff] }
 0x6f9   : > { %8724 = vmatmul.msk.bf16.gmra.mxu0 %vm7435_vm11, %v13211_v23  ;;  %7095 = vst.msk [vmem:[#allocation5 + $0x4e] sm:$0xfc] %vm7065_vm10, %v7031_v37  ;;  %v6698_v28 = vadd.f32 %v12354_v57, %v6439_v8  ;;  %v6751_v23 = vld [vmem:[#allocation3 + $0x116] sm:$0xff] }
 0x6fa   : > { %v6884_v19 = vpop.f32.mrf.mxu2  ;;  %v13215_v2 = vld [vmem:[#allocation17_spill] sm:$0xff] }
 0x6fb   : > { %v12406_v13 = vpop.f32.mrf.mxu3  ;;  %v6956_v32 = vadd.f32 %v6884_v19, %v6697_v48  ;;  %v12415_v22 = vpop.f32.mrf.mxu1  ;;  %v7212_v48 = vld [vmem:[#allocation4 + $0xf0] sm:$0xff] }
 0x6fc   : > { %13212 = vst [vmem:[#allocation86_spill] sm:$0xff] %v12406_v13  ;;  %v7229_v13 = vpack.c.bf16 %v7213_v60, %v7212_v48  ;;  %v13216_v60 = vld [vmem:[#allocation61_spill] sm:$0xff] }
 0x6fd   : > { %v6996_v25 = vadd.f32 %v12302_v30, %v6956_v32  ;;  %v6772_v32 = vpack.c.bf16 %v6752_v36, %v6751_v23 }
 0x6ff   : > { %v7032_v4 = vmax.f32 %v6996_v25, 0.0  ;;  %v6440_v25 = vadd.f32 %v13214_v49, %v12065_v10  ;;  %v7574_v49 = vld [vmem:[#allocation5 + $0x8] sm:$0xff] }
 0x701   : > { %7096 = vst.msk [vmem:[#allocation5 + $0x56] sm:$0xff] %vm724_vm5, %v7032_v4  ;;  %v6699_v8 = vadd.f32 %v12369_v17, %v6440_v25 }
 0x702   : > { %v6886_v26 = vpop.f32.mrf.mxu2 }
 0x703   : > { %v12413_v39 = vpop.f32.mrf.mxu3  ;;  %v6957_v37 = vadd.f32 %v6886_v26, %v6698_v28  ;;  %v6642_v36 = vpop.f32.mrf.mxu1 }
 0x705   : > { %v6997_v19 = vadd.f32 %v12302_v30, %v6957_v37  ;;  %v6441_v37 = vadd.f32 %v13216_v60, %v12080_v55 }
 0x707   : > { %v7033_v57 = vmax.f32 %v6997_v19, 0.0  ;;  %8651 = vmatmul.msk.bf16.gmra.mxu2 %vm724_vm5, %v6772_v32  ;;  %v6700_v23 = vadd.f32 %v12377_v43, %v6441_v37  ;;  %v6753_v19 = vld [vmem:[#allocation3 + $0x126] sm:$0xff]  ;;  %v6754_v32 = vld [vmem:[#allocation3 + $0x12e] sm:$0xff] }
 0x708   : > { %8685 = vmatmul.msk.bf16.gmra.mxu3 %vm679_vm2, %v7229_v13 }
 0x709   : > { %8725 = vmatmul.msk.bf16.gmra.mxu0 %vm7435_vm11, %v13215_v2  ;;  %7097 = vst.msk [vmem:[#allocation5 + $0x5e] sm:$0x3] %vm7068_vm0, %v7033_v57 }
 0x70a   : > { %7101 = vst.msk [vmem:[#allocation5 + $0x5c] sm:$0xf0] %vm7075_vm13, %v7033_v57  ;;  %v6889_v4 = vpop.f32.mrf.mxu2  ;;  %v7573_v57 = vld [vmem:[#allocation5] sm:$0xff] }
 0x70b   : > { %v12427_v28 = vpop.f32.mrf.mxu3  ;;  %v6958_v26 = vadd.f32 %v6889_v4, %v6699_v8  ;;  %v6773_v8 = vpack.c.bf16 %v6754_v32, %v6753_v19  ;;  %v7605_v4 = vpack.c.bf16 %v7574_v49, %v7573_v57  ;;  %v6755_v49 = vld [vmem:[#allocation3 + $0x136] sm:$0xff] }
 0x70d   : > { %v6998_v10 = vadd.f32 %v12302_v30, %v6958_v26  ;;  %v13217_v26 = vld [vmem:[#allocation72_spill] sm:$0xff] }
 0x70e   : > { %v6442_v55 = vadd.f32 %v13217_v26, %v12099_v20  ;;  %v13218_v20 = vld [vmem:[#allocation64_spill] sm:$0xff] }
 0x70f   : > { %v7034_v13 = vmax.f32 %v6998_v10, 0.0  ;;  %v6645_v10 = vpop.f32.mrf.mxu1  ;;  %v6443_v19 = vadd.f32 %v13218_v20, %v12108_v5  ;;  %v13219_v5 = vld [vmem:[#allocation75_spill] sm:$0xff] }
 0x710   : > { %v6701_v43 = vadd.f32 %v12389_v58, %v6442_v55 }
 0x711   : > { %7102 = vst.msk [vmem:[#allocation5 + $0x64] sm:$0xff] %vm724_vm5, %v7034_v13  ;;  %v6702_v57 = vadd.f32 %v12403_v12, %v6443_v19 }
 0x712   : > { %v6891_v17 = vpop.f32.mrf.mxu2 }
 0x713   : > { %v12434_v48 = vpop.f32.mrf.mxu3  ;;  %v6959_v25 = vadd.f32 %v6891_v17, %v6700_v23 }
 0x715   : > { %v6999_v2 = vadd.f32 %v12302_v30, %v6959_v25  ;;  %v6756_v25 = vld [vmem:[#allocation3 + $0x13e] sm:$0xff] }
 0x716   : > { %v6774_v55 = vpack.c.bf16 %v6756_v25, %v6755_v49 }
 0x717   : > { %v7035_v60 = vmax.f32 %v6999_v2, 0.0  ;;  %8652 = vmatmul.msk.bf16.gmra.mxu2 %vm724_vm5, %v6773_v8  ;;  %v6647_v2 = vpop.f32.mrf.mxu1 }
 0x718   : > { %8734 = vmatmul.msk.bf16.vlgmr.msrb.gmra.mxu3 %vm724_vm5, %v7605_v4  ;;  %v7576_v4 = vld [vmem:[#allocation5 + $0x18] sm:$0xff] }
 0x719   : > { %7103 = vst.msk [vmem:[#allocation5 + $0x6c] sm:$0xf] %vm7078_vm3, %v7035_v60 }
 0x71a   : > { %7107 = vst.msk [vmem:[#allocation5 + $0x6a] sm:$0xc0] %vm7084_vm8, %v7035_v60  ;;  %v6894_v37 = vpop.f32.mrf.mxu2  ;;  %v7575_v60 = vld [vmem:[#allocation5 + $0x10] sm:$0xff] }
 0x71b   : > { %v12444_v13 = vpop.f32.mrf.mxu3  ;;  %v6960_v23 = vadd.f32 %v6894_v37, %v6701_v43  ;;  %v7606_v37 = vpack.c.bf16 %v7576_v4, %v7575_v60  ;;  %v7577_v60 = vld [vmem:[#allocation5 + $0x20] sm:$0xff] }
 0x71d   : > { %v7000_v17 = vadd.f32 %v12302_v30, %v6960_v23  ;;  %v6444_v23 = vadd.f32 %v13219_v5, %v12121_v50 }
 0x71f   : > { %v7036_v32 = vmax.f32 %v7000_v17, 0.0  ;;  %v6703_v12 = vadd.f32 %v12415_v22, %v6444_v23  ;;  %v7578_v22 = vld [vmem:[#allocation5 + $0x28] sm:$0xff]  ;;  %v6446_v23 = vadd.f32 %v12132_v31, %v12144_v29 }
 0x720   : > { %v7607_v5 = vpack.c.bf16 %v7578_v22, %v7577_v60  ;;  %v6448_v60 = vadd.f32 %v12155_v7, %v12167_v0 }
 0x721   : > { %7108 = vst.msk [vmem:[#allocation5 + $0x72] sm:$0xff] %vm724_vm5, %v7036_v32  ;;  %v6650_v32 = vpop.f32.mrf.mxu1 }
 0x722   : > { %v6896_v58 = vpop.f32.mrf.mxu2 }
 0x723   : > { %v12451_v8 = vpop.f32.mrf.mxu3  ;;  %v6961_v26 = vadd.f32 %v6896_v58, %v6702_v57  ;;  %v6445_v57 = vadd.f32 %v12123_v47, %v12130_v59  ;;  %v6705_v47 = vadd.f32 %v6645_v10, %v6446_v23  ;;  %v7580_v10 = vld [vmem:[#allocation5 + $0x38] sm:$0xff] }
 0x725   : > { %v7001_v43 = vadd.f32 %v12302_v30, %v6961_v26  ;;  %v6704_v58 = vadd.f32 %v6642_v36, %v6445_v57 }
 0x727   : > { %v7037_v17 = vmax.f32 %v7001_v43, 0.0  ;;  %8653 = vmatmul.msk.bf16.gmra.mxu2 %vm724_vm5, %v6774_v55 }
 0x728   : > { %8735 = vmatmul.msk.bf16.gmra.mxu3 %vm724_vm5, %v7606_v37 }
 0x729   : > { %7109 = vst.msk [vmem:[#allocation5 + $0x7a] sm:$0x3f] %vm767_vm14, %v7037_v17  ;;  %v6652_v43 = vpop.f32.mrf.mxu1 }
 0x72a   : > { %v6899_v20 = vpop.f32.mrf.mxu2 }
 0x72b   : > { %v12460_v19 = vpop.f32.mrf.mxu3  ;;  %v6962_v49 = vadd.f32 %v6899_v20, %v6703_v12 }
 0x72d   : > { %v7002_v25 = vadd.f32 %v12302_v30, %v6962_v49  ;;  %v6447_v49 = vadd.f32 %v12146_v16, %v12153_v35  ;;  %v6707_v16 = vadd.f32 %v6650_v32, %v6448_v60  ;;  %v7582_v32 = vld [vmem:[#allocation5 + $0x48] sm:$0xff]  ;;  %v6451_v60 = vadd.f32 %v12192_v14, %v12199_v9 }
 0x72f   : > { %v7038_v50 = vmax.f32 %v7002_v25, 0.0 }
 0x731   : > { %7112 = vst.msk [vmem:[#allocation5 + $0x80] sm:$0xff] %vm724_vm5, %v7038_v50  ;;  %v6655_v25 = vpop.f32.mrf.mxu1  ;;  %v6706_v50 = vadd.f32 %v6647_v2, %v6447_v49 }
 0x732   : > { %v6901_v4 = vpop.f32.mrf.mxu2 }
 0x733   : > { %v12466_v26 = vpop.f32.mrf.mxu3  ;;  %v6963_v55 = vadd.f32 %v6901_v4, %v6704_v58  ;;  %v7579_v4 = vld [vmem:[#allocation5 + $0x30] sm:$0xff] }
 0x735   : > { %v7003_v37 = vadd.f32 %v12302_v30, %v6963_v55  ;;  %v7608_v55 = vpack.c.bf16 %v7580_v10, %v7579_v4  ;;  %v6450_v10 = vadd.f32 %v12178_v11, %v12190_v53 }
 0x737   : > { %v7039_v17 = vmax.f32 %v7003_v37, 0.0 }
 0x738   : > { %8736 = vmatmul.msk.bf16.gmra.mxu3 %vm724_vm5, %v7607_v5 }
 0x739   : > { %7113 = vst.msk [vmem:[#allocation5 + $0x88] sm:$0xff] %vm724_vm5, %v7039_v17  ;;  %v6657_v35 = vpop.f32.mrf.mxu1 }
 0x73a   : > { %v6904_v59 = vpop.f32.mrf.mxu2 }
 0x73b   : > { %v12473_v36 = vpop.f32.mrf.mxu3  ;;  %v6964_v12 = vadd.f32 %v6904_v59, %v6705_v47  ;;  %v6449_v47 = vadd.f32 %v12169_v41, %v12176_v61  ;;  %v6709_v61 = vadd.f32 %v6655_v25, %v6450_v10  ;;  %v7584_v25 = vld [vmem:[#allocation5 + $0x58] sm:$0xff] }
 0x73d   : > { %v7004_v20 = vadd.f32 %v12302_v30, %v6964_v12  ;;  %v6708_v12 = vadd.f32 %v6652_v43, %v6449_v47 }
 0x73f   : > { %v7040_v57 = vmax.f32 %v7004_v20, 0.0 }
 0x741   : > { %7117 = vst.msk [vmem:[#allocation5 + $0x8e] sm:$0xfc] %vm7065_vm10, %v7040_v57  ;;  %v6660_v20 = vpop.f32.mrf.mxu1  ;;  %v7581_v57 = vld [vmem:[#allocation5 + $0x40] sm:$0xff] }
 0x742   : > { %v6906_v31 = vpop.f32.mrf.mxu2 }
 0x743   : > { %v12479_v29 = vpop.f32.mrf.mxu3  ;;  %v6965_v58 = vadd.f32 %v6906_v31, %v6706_v50  ;;  %v7609_v31 = vpack.c.bf16 %v7582_v32, %v7581_v57  ;;  %v6453_v57 = vadd.f32 %v12215_v63, %v12222_v45 }
 0x745   : > { %v7005_v22 = vadd.f32 %v12302_v30, %v6965_v58 }
 0x747   : > { %v7041_v37 = vmax.f32 %v7005_v22, 0.0 }
 0x748   : > { %8737 = vmatmul.msk.bf16.gmra.mxu3 %vm724_vm5, %v7608_v55 }
 0x749   : > { %7118 = vst.msk [vmem:[#allocation5 + $0x96] sm:$0xff] %vm724_vm5, %v7041_v37  ;;  %v6662_v22 = vpop.f32.mrf.mxu1 }
 0x74a   : > { %v6909_v2 = vpop.f32.mrf.mxu2 }
 0x74b   : > { %v12486_v5 = vpop.f32.mrf.mxu3  ;;  %v6966_v23 = vadd.f32 %v6909_v2, %v6707_v16  ;;  %v6710_v16 = vadd.f32 %v6657_v35, %v6451_v60 }
 0x74d   : > { %v7006_v17 = vadd.f32 %v12302_v30, %v6966_v23  ;;  %v7583_v23 = vld [vmem:[#allocation5 + $0x50] sm:$0xff] }
 0x74e   : > { %v7610_v47 = vpack.c.bf16 %v7584_v25, %v7583_v23  ;;  %v13220_v25 = vld [vmem:[#allocation29_spill] sm:$0xff] }
 0x74f   : > { %v7042_v59 = vmax.f32 %v7006_v17, 0.0 }
 0x751   : > { %7119 = vst.msk [vmem:[#allocation5 + $0x9e] sm:$0x3] %vm7068_vm0, %v7042_v59 }
 0x752   : > { %7123 = vst.msk [vmem:[#allocation5 + $0x9c] sm:$0xf0] %vm7075_vm13, %v7042_v59  ;;  %v6911_v7 = vpop.f32.mrf.mxu2  ;;  %v6452_v59 = vadd.f32 %v12201_v15, %v12213_v34 }
 0x753   : > { %v12493_v0 = vpop.f32.mrf.mxu3  ;;  %v6967_v49 = vadd.f32 %v6911_v7, %v6708_v12  ;;  %v6665_v12 = vpop.f32.mrf.mxu1 }
 0x754   : > { %v6711_v9 = vadd.f32 %v6660_v20, %v6452_v59  ;;  %v7586_v20 = vld [vmem:[#allocation5 + $0x68] sm:$0xff] }
 0x755   : > { %v7007_v50 = vadd.f32 %v12302_v30, %v6967_v49 }
 0x757   : > { %v7043_v41 = vmax.f32 %v7007_v50, 0.0 }
 0x758   : > { %8738 = vmatmul.msk.bf16.gmra.mxu3 %vm724_vm5, %v7609_v31  ;;  %v6712_v31 = vadd.f32 %v6662_v22, %v6453_v57 }
 0x759   : > { %7124 = vst.msk [vmem:[#allocation5 + $0xa4] sm:$0xff] %vm724_vm5, %v7043_v41 }
 0x75a   : > { %v6914_v43 = vpop.f32.mrf.mxu2 }
 0x75b   : > { %v12500_v58 = vpop.f32.mrf.mxu3  ;;  %v6968_v4 = vadd.f32 %v6914_v43, %v6709_v61  ;;  %v6667_v10 = vpop.f32.mrf.mxu1  ;;  %v7585_v61 = vld [vmem:[#allocation5 + $0x60] sm:$0xff] }
 0x75d   : > { %v7008_v55 = vadd.f32 %v12302_v30, %v6968_v4  ;;  %v7611_v4 = vpack.c.bf16 %v7586_v20, %v7585_v61  ;;  %v13222_v20 = vld [vmem:[#allocation70_spill] sm:$0xff] }
 0x75f   : > { %v7044_v37 = vmax.f32 %v7008_v55, 0.0  ;;  %v6454_v55 = vadd.f32 %v12224_v44, %v12236_v24 }
 0x761   : > { %7125 = vst.msk [vmem:[#allocation5 + $0xac] sm:$0xf] %vm7078_vm3, %v7044_v37  ;;  %v6713_v63 = vadd.f32 %v6665_v12, %v6454_v55  ;;  %v7587_v12 = vld [vmem:[#allocation5 + $0x70] sm:$0xff] }
 0x762   : > { %7129 = vst.msk [vmem:[#allocation5 + $0xaa] sm:$0xc0] %vm7084_vm8, %v7044_v37  ;;  %v6916_v11 = vpop.f32.mrf.mxu2 }
 0x763   : > { %v12507_v53 = vpop.f32.mrf.mxu3  ;;  %v6969_v2 = vadd.f32 %v6916_v11, %v6710_v16  ;;  %v6670_v37 = vpop.f32.mrf.mxu1 }
 0x765   : > { %v7009_v17 = vadd.f32 %v12302_v30, %v6969_v2  ;;  %v6455_v2 = vadd.f32 %v13220_v25, %v12245_v52  ;;  %v13223_v25 = vld [vmem:[#allocation73_spill] sm:$0xff] }
 0x767   : > { %v7045_v14 = vmax.f32 %v7009_v17, 0.0  ;;  %v6714_v17 = vadd.f32 %v6667_v10, %v6455_v2  ;;  %v6458_v2 = vadd.f32 %v13223_v25, %v12273_v54  ;;  %v13226_v25 = vld [vmem:[#allocation76_spill] sm:$0xff] }
 0x768   : > { %8739 = vmatmul.msk.bf16.gmra.mxu3 %vm724_vm5, %v7610_v47  ;;  %v7588_v47 = vld [vmem:[#allocation5 + $0x78] sm:$0xff] }
 0x769   : > { %7130 = vst.msk [vmem:[#allocation5 + $0xb2] sm:$0xff] %vm724_vm5, %v7045_v14 }
 0x76a   : > { %v6919_v35 = vpop.f32.mrf.mxu2 }
 0x76b   : > { %v12514_v7 = vpop.f32.mrf.mxu3  ;;  %v6970_v32 = vadd.f32 %v6919_v35, %v6711_v9  ;;  %v6672_v14 = vpop.f32.mrf.mxu1  ;;  %v7612_v35 = vpack.c.bf16 %v7588_v47, %v7587_v12 }
 0x76d   : > { %v7010_v49 = vadd.f32 %v12302_v30, %v6970_v32  ;;  %v13221_v32 = vld [vmem:[#allocation67_spill] sm:$0xff] }
 0x76f   : > { %v7046_v50 = vmax.f32 %v7010_v49, 0.0  ;;  %v6456_v49 = vadd.f32 %v13221_v32, %v12255_v21  ;;  %v13224_v32 = vld [vmem:[#allocation78_spill] sm:$0xff] }
 0x771   : > { %7131 = vst.msk [vmem:[#allocation5 + $0xba] sm:$0x3f] %vm767_vm14, %v7046_v50  ;;  %v6715_v52 = vadd.f32 %v6670_v37, %v6456_v49  ;;  %v13225_v49 = vld [vmem:[#allocation87_spill] sm:$0xff] }
 0x772   : > { %v6921_v15 = vpop.f32.mrf.mxu2 }
 0x773   : > { %v12520_v34 = vpop.f32.mrf.mxu3  ;;  %v6971_v41 = vadd.f32 %v6921_v15, %v6712_v31  ;;  %v6675_v61 = vpop.f32.mrf.mxu1 }
 0x775   : > { %v7011_v43 = vadd.f32 %v12302_v30, %v6971_v41  ;;  %v6457_v41 = vadd.f32 %v13222_v20, %v12260_v1 }
 0x777   : > { %v7047_v60 = vmax.f32 %v7011_v43, 0.0 }
 0x778   : > { %8740 = vmatmul.msk.bf16.gmra.mxu3 %vm724_vm5, %v7611_v4  ;;  %v6716_v4 = vadd.f32 %v6672_v14, %v6457_v41 }
 0x779   : > { %7134 = vst.msk [vmem:[#allocation5 + $0xc0] sm:$0xff] %vm724_vm5, %v7047_v60  ;;  %v7590_v60 = vld [vmem:[#allocation5 + $0x88] sm:$0xff] }
 0x77a   : > { %v6924_v45 = vpop.f32.mrf.mxu2 }
 0x77b   : > { %v12527_v22 = vpop.f32.mrf.mxu3  ;;  %v6972_v16 = vadd.f32 %v6924_v45, %v6713_v63  ;;  %v7589_v45 = vld [vmem:[#allocation5 + $0x80] sm:$0xff] }
 0x77d   : > { %v7012_v11 = vadd.f32 %v12302_v30, %v6972_v16  ;;  %v7613_v16 = vpack.c.bf16 %v7590_v60, %v7589_v45  ;;  %v7591_v60 = vld [vmem:[#allocation5 + $0x90] sm:$0xff] }
 0x77f   : > { %v7048_v23 = vmax.f32 %v7012_v11, 0.0  ;;  %v388_v11 = vld [vmem:[%s8944_s24] sm:$0xff]  }
 0x781   : > { %7135 = vst.msk [vmem:[#allocation5 + $0xc8] sm:$0xff] %vm724_vm5, %v7048_v23  ;;  %v6717_v23 = vadd.f32 %v6675_v61, %v6458_v2  ;;  %v7592_v61 = vld [vmem:[#allocation5 + $0x98] sm:$0xff]  ;;  %v6460_v2 = vadd.f32 %v13226_v25, %v12288_v6 }
 0x782   : > { %v6926_v44 = vpop.f32.mrf.mxu2 }
 0x783   : > { %v12533_v24 = vpop.f32.mrf.mxu3  ;;  %v6973_v59 = vadd.f32 %v6926_v44, %v6714_v17  ;;  %v6677_v17 = vpop.f32.mrf.mxu1  ;;  %v7806_v44 = vunpack.c.l.bf16 %v388_v11 }
 0x785   : > { %v7013_v9 = vadd.f32 %v12302_v30, %v6973_v59 }
 0x787   : > { %v7049_v57 = vmax.f32 %v7013_v9, 0.0  ;;  %v12559_v9 = vld [vmem:[%s12747_s10] ss:$0 sm:$0xff] }
 0x788   : > { %8741 = vmatmul.msk.bf16.gmra.mxu3 %vm724_vm5, %v7612_v35 }
 0x789   : > { %7139 = vst.msk [vmem:[#allocation5 + $0xce] sm:$0xfc] %vm7065_vm10, %v7049_v57  ;;  %v6459_v57 = vadd.f32 %v13225_v49, %v13224_v32  ;;  %v6461_v32 = vadd.f32 %v12290_v33, %v12293_v40  ;;  %v7593_v40 = vld [vmem:[#allocation5 + $0xa0] sm:$0xff] }
 0x78a   : > { %v6929_v50 = vpop.f32.mrf.mxu2 }
 0x78b   : > { %v12540_v31 = vpop.f32.mrf.mxu3  ;;  %v6974_v10 = vadd.f32 %v6929_v50, %v6715_v52 }
 0x78d   : > { %v7014_v15 = vadd.f32 %v12302_v30, %v6974_v10 }
 0x78f   : > { %v7050_v43 = vmax.f32 %v7014_v15, 0.0  ;;  %v7807_v15 = vunpack.c.h.bf16 %v388_v11 }
 0x791   : > { %7140 = vst.msk [vmem:[#allocation5 + $0xd6] sm:$0xff] %vm724_vm5, %v7050_v43 }
 0x792   : > { %v6931_v21 = vpop.f32.mrf.mxu2 }
 0x793   : > { %v12546_v55 = vpop.f32.mrf.mxu3  ;;  %v6975_v63 = vadd.f32 %v6931_v21, %v6716_v4  ;;  %v6680_v21 = vpop.f32.mrf.mxu1 }
 0x795   : > { %v7015_v37 = vadd.f32 %v12302_v30, %v6975_v63 }
 0x797   : > { %v7051_v1 = vmax.f32 %v7015_v37, 0.0  ;;  %v7614_v37 = vpack.c.bf16 %v7592_v61, %v7591_v60 }
 0x798   : > { %8742 = vmatmul.msk.bf16.gmra.mxu3 %vm724_vm5, %v7613_v16  ;;  %v390_v16 = vld [vmem:[%s8944_s24 + $0x8] sm:$0xff]  }
 0x799   : > { %7141 = vst.msk [vmem:[#allocation5 + $0xde] sm:$0x3] %vm7068_vm0, %v7051_v1 }
 0x79a   : > { %7145 = vst.msk [vmem:[#allocation5 + $0xdc] sm:$0xf0] %vm7075_vm13, %v7051_v1  ;;  %v6934_v47 = vpop.f32.mrf.mxu2 }
 0x79b   : > { %v7694_v59 = vpop.f32.mrf.mxu3  ;;  %v6976_v12 = vadd.f32 %v6934_v47, %v6717_v23  ;;  %v12581_v23 = vpop.f32.mrf.mxu0 }
 0x79c   : > { %v7774_v14 = vadd.f32 %v7694_v59, %v12306_v46  ;;  %v6718_v46 = vadd.f32 %v6677_v17, %v6459_v57  ;;  %v6719_v17 = vadd.f32 %v6680_v21, %v6460_v2  ;;  %v392_v21 = vld [vmem:[%s8944_s24 + $0x10] sm:$0xff]  }
 0x79d   : > { %v7016_v54 = vadd.f32 %v12302_v30, %v6976_v12 }
 0x79e   : > { %v7838_v35 = vadd.f32 %v7806_v44, %v7774_v14  ;;  %v7808_v44 = vunpack.c.l.bf16 %v390_v16 }
 0x79f   : > { %v7052_v52 = vmax.f32 %v7016_v54, 0.0 }
 0x7a0   : > { %v7874_v50 = vadd.f32 %v12559_v9, %v7838_v35  ;;  %v6682_v35 = vpop.f32.mrf.mxu1 }
 0x7a1   : > { %7146 = vst.msk [vmem:[#allocation5 + $0xe4] sm:$0xff] %vm724_vm5, %v7052_v52  ;;  %v6720_v52 = vadd.f32 %v6682_v35, %v6461_v32 }
 0x7a2   : > { %v7906_v10 = vmax.f32 %v7874_v50, 0.0  ;;  %v6936_v20 = vpop.f32.mrf.mxu2 }
 0x7a3   : > { %v7696_v41 = vpop.f32.mrf.mxu3  ;;  %v6977_v43 = vadd.f32 %v6936_v20, %v6718_v46  ;;  %v7809_v46 = vunpack.c.h.bf16 %v390_v16  ;;  %v7594_v20 = vld [vmem:[#allocation5 + $0xa8] sm:$0xff]  ;;  %v7515_v61 = vpop.f32.mrf.mxu0 }
 0x7a4   : > { %7938 = vst.msk [vmem:[%s12569_s28] sm:$0xff] %vm505_vm1, %v7906_v10  ;;  %v7775_v4 = vadd.f32 %v7696_v41, %v12311_v38 }
 0x7a5   : > { %v7017_v63 = vadd.f32 %v12302_v30, %v6977_v43 }
 0x7a6   : > { %v7839_v45 = vadd.f32 %v7807_v15, %v7775_v4  ;;  %v7615_v4 = vpack.c.bf16 %v7594_v20, %v7593_v40  ;;  %v7598_v20 = vld [vmem:[#allocation5 + $0xc8] sm:$0xff] }
 0x7a7   : > { %v7053_v11 = vmax.f32 %v7017_v63, 0.0 }
 0x7a8   : > { %v7875_v1 = vadd.f32 %v12559_v9, %v7839_v45  ;;  %8743 = vmatmul.msk.bf16.gmra.mxu3 %vm724_vm5, %v7614_v37  ;;  %v7810_v37 = vunpack.c.l.bf16 %v392_v21 }
 0x7a9   : > { %7147 = vst.msk [vmem:[#allocation5 + $0xec] sm:$0xf] %vm7078_vm3, %v7053_v11 }
 0x7aa   : > { %v7907_v38 = vmax.f32 %v7875_v1, 0.0  ;;  %7151 = vst.msk [vmem:[#allocation5 + $0xea] sm:$0xc0] %vm7084_vm8, %v7053_v11  ;;  %v6939_v47 = vpop.f32.mrf.mxu2  ;;  %v7811_v1 = vunpack.c.h.bf16 %v392_v21  ;;  %v13228_v21 = vld [vmem:[#allocation82_spill] sm:$0xff] }
 0x7ab   : > { %v7699_v59 = vpop.f32.mrf.mxu3  ;;  %v6978_v6 = vadd.f32 %v6939_v47, %v6719_v17  ;;  %v7518_v25 = vpop.f32.mrf.mxu0  ;;  %v7595_v47 = vld [vmem:[#allocation5 + $0xb0] sm:$0xff] }
 0x7ac   : > { %7939 = vst.msk [vmem:[%s12569_s28 + $0x8] sm:$0xff] %vm505_vm1, %v7907_v38  ;;  %v7776_v12 = vadd.f32 %v7699_v59, %v12320_v51  ;;  %v7596_v38 = vld [vmem:[#allocation5 + $0xb8] sm:$0xff] }
 0x7ad   : > { %v7018_v14 = vadd.f32 %v12302_v30, %v6978_v6  ;;  %v7616_v6 = vpack.c.bf16 %v7596_v38, %v7595_v47  ;;  %v7600_v38 = vld [vmem:[#allocation5 + $0xd8] sm:$0xff] }
 0x7ae   : > { %v7840_v54 = vadd.f32 %v7808_v44, %v7776_v12  ;;  %v394_v12 = vld [vmem:[%s8944_s24 + $0x18] sm:$0xff]  }
 0x7af   : > { %v7054_v49 = vmax.f32 %v7018_v14, 0.0  ;;  %v7812_v35 = vunpack.c.l.bf16 %v394_v12 }
 0x7b0   : > { %v7876_v57 = vadd.f32 %v12559_v9, %v7840_v54 }
 0x7b1   : > { %7152 = vst.msk [vmem:[#allocation5 + $0xf2] sm:$0xff] %vm724_vm5, %v7054_v49  ;;  %v13227_v49 = vld [vmem:[#allocation90_spill] sm:$0xff] }
 0x7b2   : > { %v7908_v50 = vmax.f32 %v7876_v57, 0.0  ;;  %v6941_v10 = vpop.f32.mrf.mxu2 }
 0x7b3   : > { %v7701_v15 = vpop.f32.mrf.mxu3  ;;  %v6979_v51 = vadd.f32 %v6941_v10, %v6720_v52  ;;  %v7520_v14 = vpop.f32.mrf.mxu0 }
 0x7b4   : > { %7940 = vst.msk [vmem:[%s12569_s28 + $0x10] sm:$0xff] %vm505_vm1, %v7908_v50  ;;  %v7777_v41 = vadd.f32 %v7701_v15, %v12325_v56 }
 0x7b5   : > { %v7019_v33 = vadd.f32 %v12302_v30, %v6979_v51 }
 0x7b6   : > { %v7841_v43 = vadd.f32 %v7809_v46, %v7777_v41  ;;  %v7813_v46 = vunpack.c.h.bf16 %v394_v12  ;;  %v7597_v41 = vld [vmem:[#allocation5 + $0xc0] sm:$0xff]  ;;  %v398_v12 = vld [vmem:[%s8944_s24 + $0x28] sm:$0xff]  }
 0x7b7   : > { %v7055_v60 = vmax.f32 %v7019_v33, 0.0  ;;  %v7617_v33 = vpack.c.bf16 %v7598_v20, %v7597_v41  ;;  %v7601_v41 = vld [vmem:[#allocation5 + $0xe0] sm:$0xff] }
 0x7b8   : > { %v7877_v63 = vadd.f32 %v12559_v9, %v7841_v43  ;;  %8744 = vmatmul.msk.bf16.gmra.mxu3 %vm724_vm5, %v7615_v4  ;;  %v396_v43 = vld [vmem:[%s8944_s24 + $0x20] sm:$0xff]  }
 0x7b9   : > { %7153 = vst.msk [vmem:[#allocation5 + $0xfa] sm:$0x3f] %vm767_vm14, %v7055_v60  ;;  %v7514_v60 = vadd.f32 %v12581_v23, %v13228_v21  ;;  %v13230_v21 = vld [vmem:[#allocation86_spill] sm:$0xff] }
 0x7ba   : > { %v7909_v45 = vmax.f32 %v7877_v63, 0.0 }
 0x7bb   : > { %v7704_v16 = vpop.f32.mrf.mxu3  ;;  %v7523_v10 = vpop.f32.mrf.mxu0 }
 0x7bc   : > { %7941 = vst.msk [vmem:[%s12569_s28 + $0x18] sm:$0xff] %vm505_vm1, %v7909_v45  ;;  %v7778_v56 = vadd.f32 %v7704_v16, %v12334_v42  ;;  %v7814_v45 = vunpack.c.l.bf16 %v396_v43 }
 0x7be   : > { %v7842_v30 = vadd.f32 %v7810_v37, %v7778_v56 }
 0x7c0   : > { %v7878_v2 = vadd.f32 %v12559_v9, %v7842_v30 }
 0x7c2   : > { %v7910_v11 = vmax.f32 %v7878_v2, 0.0  ;;  %v7516_v2 = vadd.f32 %v7515_v61, %v12374_v62 }
 0x7c3   : > { %v7706_v17 = vpop.f32.mrf.mxu3 }
 0x7c4   : > { %7942 = vst.msk [vmem:[%s12569_s28 + $0x20] sm:$0xff] %vm505_vm1, %v7910_v11  ;;  %v7779_v44 = vadd.f32 %v7706_v17, %v12340_v3 }
 0x7c6   : > { %v7843_v59 = vadd.f32 %v7811_v1, %v7779_v44  ;;  %v7815_v1 = vunpack.c.h.bf16 %v396_v43  ;;  %v7599_v44 = vld [vmem:[#allocation5 + $0xd0] sm:$0xff]  ;;  %v400_v43 = vld [vmem:[%s8944_s24 + $0x30] sm:$0xff]  }
 0x7c8   : > { %v7879_v42 = vadd.f32 %v12559_v9, %v7843_v59  ;;  %8745 = vmatmul.msk.bf16.gmra.mxu3 %vm724_vm5, %v7616_v6  ;;  %v7618_v59 = vpack.c.bf16 %v7600_v38, %v7599_v44 }
 0x7ca   : > { %v7911_v54 = vmax.f32 %v7879_v42, 0.0 }
 0x7cb   : > { %v7709_v32 = vpop.f32.mrf.mxu3 }
 0x7cc   : > { %7943 = vst.msk [vmem:[%s12569_s28 + $0x28] sm:$0xff] %vm505_vm1, %v7911_v54  ;;  %v7780_v57 = vadd.f32 %v7709_v32, %v13227_v49  ;;  %v13229_v54 = vld [vmem:[#allocation22_spill] sm:$0xff] }
 0x7cd   : > { %v7519_v62 = vadd.f32 %v7518_v25, %v13229_v54 }
 0x7ce   : > { %v7844_v52 = vadd.f32 %v7812_v35, %v7780_v57  ;;  %v7816_v35 = vunpack.c.l.bf16 %v398_v12 }
 0x7d0   : > { %v7880_v3 = vadd.f32 %v12559_v9, %v7844_v52 }
 0x7d2   : > { %v7912_v50 = vmax.f32 %v7880_v3, 0.0 }
 0x7d3   : > { %v7711_v15 = vpop.f32.mrf.mxu3 }
 0x7d4   : > { %7944 = vst.msk [vmem:[%s12569_s28 + $0x30] sm:$0xff] %vm505_vm1, %v7912_v50  ;;  %v7781_v51 = vadd.f32 %v7711_v15, %v12359_v27  ;;  %v7525_v27 = vpop.f32.mrf.mxu0  ;;  %v7521_v50 = vadd.f32 %v7520_v14, %v12392_v18  ;;  %v7817_v15 = vunpack.c.h.bf16 %v398_v12  ;;  %v7818_v14 = vunpack.c.l.bf16 %v400_v43 }
 0x7d6   : > { %v7845_v40 = vadd.f32 %v7813_v46, %v7781_v51  ;;  %v7602_v51 = vld [vmem:[#allocation5 + $0xe8] sm:$0xff] }
 0x7d8   : > { %v7881_v4 = vadd.f32 %v12559_v9, %v7845_v40  ;;  %8746 = vmatmul.msk.bf16.gmra.mxu3 %vm724_vm5, %v7617_v33  ;;  %v7619_v33 = vpack.c.bf16 %v7602_v51, %v7601_v41 }
 0x7da   : > { %v7913_v63 = vmax.f32 %v7881_v4, 0.0 }
 0x7db   : > { %v7714_v37 = vpop.f32.mrf.mxu3 }
 0x7dc   : > { %7945 = vst.msk [vmem:[%s12569_s28 + $0x38] sm:$0xff] %vm505_vm1, %v7913_v63  ;;  %v7782_v16 = vadd.f32 %v7714_v37, %v7514_v60  ;;  %v7528_v6 = vpop.f32.mrf.mxu0  ;;  %v7524_v60 = vadd.f32 %v7523_v10, %v13230_v21 }
 0x7de   : > { %v7846_v56 = vadd.f32 %v7814_v45, %v7782_v16 }
 0x7e0   : > { %v7882_v30 = vadd.f32 %v12559_v9, %v7846_v56 }
 0x7e2   : > { %v7914_v11 = vmax.f32 %v7882_v30, 0.0  ;;  %v7526_v30 = vadd.f32 %v7525_v27, %v12413_v39  ;;  %v7529_v39 = vadd.f32 %v7528_v6, %v12427_v28 }
 0x7e3   : > { %v7716_v17 = vpop.f32.mrf.mxu3 }
 0x7e4   : > { %7946 = vst.msk [vmem:[%s12569_s28 + $0x40] sm:$0xff] %vm505_vm1, %v7914_v11  ;;  %v7783_v23 = vadd.f32 %v7716_v17, %v7516_v2  ;;  %v7530_v3 = vpop.f32.mrf.mxu0  ;;  %v7819_v11 = vunpack.c.h.bf16 %v400_v43  ;;  %v7604_v17 = vld [vmem:[#allocation5 + $0xf8] sm:$0xff] }
 0x7e6   : > { %v7847_v47 = vadd.f32 %v7815_v1, %v7783_v23  ;;  %v7603_v23 = vld [vmem:[#allocation5 + $0xf0] sm:$0xff] }
 0x7e8   : > { %v7883_v42 = vadd.f32 %v12559_v9, %v7847_v47  ;;  %8747 = vmatmul.msk.bf16.gmra.mxu3 %vm724_vm5, %v7618_v59  ;;  %v7620_v47 = vpack.c.bf16 %v7604_v17, %v7603_v23  ;;  %v402_v59 = vld [vmem:[%s8944_s24 + $0x38] sm:$0xff]  }
 0x7ea   : > { %v7915_v61 = vmax.f32 %v7883_v42, 0.0  ;;  %v7820_v42 = vunpack.c.l.bf16 %v402_v59 }
 0x7eb   : > { %v7719_v32 = vpop.f32.mrf.mxu3 }
 0x7ec   : > { %7947 = vst.msk [vmem:[%s12569_s28 + $0x48] sm:$0xff] %vm505_vm1, %v7915_v61  ;;  %v7784_v49 = vadd.f32 %v7719_v32, %v7519_v62  ;;  %v7533_v63 = vpop.f32.mrf.mxu0 }
 0x7ed   : > { %v7534_v51 = vadd.f32 %v7533_v63, %v12444_v13  ;;  %v406_v63 = vld [vmem:[%s8944_s24 + $0x48] sm:$0xff]  }
 0x7ee   : > { %v7848_v57 = vadd.f32 %v7816_v35, %v7784_v49  ;;  %v7531_v49 = vadd.f32 %v7530_v3, %v12434_v48 }
 0x7f0   : > { %v7884_v52 = vadd.f32 %v12559_v9, %v7848_v57 }
 0x7f2   : > { %v7916_v46 = vmax.f32 %v7884_v52, 0.0  ;;  %v7821_v52 = vunpack.c.h.bf16 %v402_v59  ;;  %v408_v59 = vld [vmem:[%s8944_s24 + $0x50] sm:$0xff]  }
 0x7f3   : > { %v7721_v20 = vpop.f32.mrf.mxu3 }
 0x7f4   : > { %7948 = vst.msk [vmem:[%s12569_s28 + $0x50] sm:$0xff] %vm505_vm1, %v7916_v46  ;;  %v7785_v25 = vadd.f32 %v7721_v20, %v7521_v50  ;;  %v7535_v38 = vpop.f32.mrf.mxu0  ;;  %v404_v46 = vld [vmem:[%s8944_s24 + $0x40] sm:$0xff]  }
 0x7f5   : > { %v7822_v41 = vunpack.c.l.bf16 %v404_v46  ;;  %v7536_v43 = vadd.f32 %v7535_v38, %v12451_v8  ;;  %v7823_v21 = vunpack.c.h.bf16 %v404_v46  ;;  %v7825_v38 = vunpack.c.h.bf16 %v406_v63 }
 0x7f6   : > { %v7849_v40 = vadd.f32 %v7817_v15, %v7785_v25 }
 0x7f8   : > { %v7885_v4 = vadd.f32 %v12559_v9, %v7849_v40  ;;  %8748 = vmatmul.msk.bf16.gmra.mxu3 %vm724_vm5, %v7619_v33 }
 0x7fa   : > { %v7917_v18 = vmax.f32 %v7885_v4, 0.0 }
 0x7fb   : > { %v7724_v45 = vpop.f32.mrf.mxu3 }
 0x7fc   : > { %7949 = vst.msk [vmem:[%s12569_s28 + $0x58] sm:$0xff] %vm505_vm1, %v7917_v18  ;;  %v7786_v37 = vadd.f32 %v7724_v45, %v7524_v60  ;;  %v7538_v35 = vpop.f32.mrf.mxu0 }
 0x7fe   : > { %v7850_v16 = vadd.f32 %v7818_v14, %v7786_v37  ;;  %v7539_v37 = vadd.f32 %v7538_v35, %v12460_v19 }
 0x800   : > { %v7886_v56 = vadd.f32 %v12559_v9, %v7850_v16 }
 0x802   : > { %v7918_v2 = vmax.f32 %v7886_v56, 0.0  ;;  %v7824_v56 = vunpack.c.l.bf16 %v406_v63 }
 0x803   : > { %v7726_v1 = vpop.f32.mrf.mxu3 }
 0x804   : > { %7950 = vst.msk [vmem:[%s12569_s28 + $0x60] sm:$0xff] %vm505_vm1, %v7918_v2  ;;  %v7787_v10 = vadd.f32 %v7726_v1, %v7526_v30  ;;  %v7540_v20 = vpop.f32.mrf.mxu0 }
 0x805   : > { %v7541_v17 = vadd.f32 %v7540_v20, %v12466_v26 }
 0x806   : > { %v7851_v44 = vadd.f32 %v7819_v11, %v7787_v10 }
 0x808   : > { %v7887_v12 = vadd.f32 %v12559_v9, %v7851_v44  ;;  %8749 = vmatmul.msk.bf16.gmra.mxu3 %vm724_vm5, %v7620_v47 }
 0x80a   : > { %v7919_v27 = vmax.f32 %v7887_v12, 0.0 }
 0x80b   : > { %v7729_v54 = vpop.f32.mrf.mxu3 }
 0x80c   : > { %7951 = vst.msk [vmem:[%s12569_s28 + $0x68] sm:$0xff] %vm505_vm1, %v7919_v27  ;;  %v7788_v62 = vadd.f32 %v7729_v54, %v7529_v39  ;;  %v7543_v60 = vpop.f32.mrf.mxu0 }
 0x80d   : > { %v7544_v39 = vadd.f32 %v7543_v60, %v12473_v36  ;;  %v412_v60 = vld [vmem:[%s8944_s24 + $0x60] sm:$0xff]  }
 0x80e   : > { %v7852_v61 = vadd.f32 %v7820_v42, %v7788_v62  ;;  %v7826_v42 = vunpack.c.l.bf16 %v408_v59  ;;  %v7830_v63 = vunpack.c.l.bf16 %v412_v60 }
 0x810   : > { %v7888_v32 = vadd.f32 %v12559_v9, %v7852_v61 }
 0x812   : > { %v7920_v57 = vmax.f32 %v7888_v32, 0.0 }
 0x813   : > { %v7731_v50 = vpop.f32.mrf.mxu3 }
 0x814   : > { %7952 = vst.msk [vmem:[%s12569_s28 + $0x70] sm:$0xff] %vm505_vm1, %v7920_v57  ;;  %v7789_v28 = vadd.f32 %v7731_v50, %v7531_v49  ;;  %v7545_v2 = vpop.f32.mrf.mxu0  ;;  %v7827_v57 = vunpack.c.h.bf16 %v408_v59 }
 0x815   : > { %v7546_v32 = vadd.f32 %v7545_v2, %v12479_v29  ;;  %v7831_v2 = vunpack.c.h.bf16 %v412_v60 }
 0x816   : > { %v7853_v6 = vadd.f32 %v7821_v52, %v7789_v28  ;;  %v410_v28 = vld [vmem:[%s8944_s24 + $0x58] sm:$0xff]  }
 0x817   : > { %v7828_v20 = vunpack.c.l.bf16 %v410_v28 }
 0x818   : > { %v7889_v15 = vadd.f32 %v12559_v9, %v7853_v6 }
 0x81a   : > { %v7921_v25 = vmax.f32 %v7889_v15, 0.0 }
 0x81b   : > { %v7734_v40 = vpop.f32.mrf.mxu3 }
 0x81c   : > { %7953 = vst.msk [vmem:[%s12569_s28 + $0x78] sm:$0xff] %vm505_vm1, %v7921_v25  ;;  %v7790_v48 = vadd.f32 %v7734_v40, %v7534_v51  ;;  %v7548_v47 = vpop.f32.mrf.mxu0 }
 0x81d   : > { %v7549_v46 = vadd.f32 %v7548_v47, %v12486_v5 }
 0x81e   : > { %v7854_v3 = vadd.f32 %v7822_v41, %v7790_v48 }
 0x820   : > { %v7890_v33 = vadd.f32 %v12559_v9, %v7854_v3 }
 0x822   : > { %v7922_v4 = vmax.f32 %v7890_v33, 0.0  ;;  %v7829_v33 = vunpack.c.h.bf16 %v410_v28 }
 0x823   : > { %v7736_v18 = vpop.f32.mrf.mxu3 }
 0x824   : > { %7954 = vst.msk [vmem:[%s12569_s28 + $0x80] sm:$0xff] %vm505_vm1, %v7922_v4  ;;  %v7791_v13 = vadd.f32 %v7736_v18, %v7536_v43  ;;  %v7550_v35 = vpop.f32.mrf.mxu0 }
 0x825   : > { %v7551_v48 = vadd.f32 %v7550_v35, %v12493_v0 }
 0x826   : > { %v7855_v14 = vadd.f32 %v7823_v21, %v7791_v13 }
 0x828   : > { %v7891_v45 = vadd.f32 %v12559_v9, %v7855_v14 }
 0x82a   : > { %v7923_v16 = vmax.f32 %v7891_v45, 0.0 }
 0x82b   : > { %v7739_v30 = vpop.f32.mrf.mxu3 }
 0x82c   : > { %7955 = vst.msk [vmem:[%s12569_s28 + $0x88] sm:$0xff] %vm505_vm1, %v7923_v16  ;;  %v7792_v8 = vadd.f32 %v7739_v30, %v7539_v37  ;;  %v7553_v51 = vpop.f32.mrf.mxu0 }
 0x82d   : > { %v7554_v13 = vadd.f32 %v7553_v51, %v12500_v58 }
 0x82e   : > { %v7856_v11 = vadd.f32 %v7824_v56, %v7792_v8 }
 0x830   : > { %v7892_v1 = vadd.f32 %v12559_v9, %v7856_v11 }
 0x832   : > { %v7924_v10 = vmax.f32 %v7892_v1, 0.0 }
 0x833   : > { %v7741_v23 = vpop.f32.mrf.mxu3 }
 0x834   : > { %7956 = vst.msk [vmem:[%s12569_s28 + $0x90] sm:$0xff] %vm505_vm1, %v7924_v10  ;;  %v7793_v19 = vadd.f32 %v7741_v23, %v7541_v17  ;;  %v7555_v4 = vpop.f32.mrf.mxu0  ;;  %v414_v17 = vld [vmem:[%s8944_s24 + $0x68] sm:$0xff]  }
 0x835   : > { %v7556_v30 = vadd.f32 %v7555_v4, %v12507_v53 }
 0x836   : > { %v7857_v44 = vadd.f32 %v7825_v38, %v7793_v19 }
 0x838   : > { %v7893_v12 = vadd.f32 %v12559_v9, %v7857_v44  ;;  %v7832_v44 = vunpack.c.l.bf16 %v414_v17 }
 0x83a   : > { %v7925_v27 = vmax.f32 %v7893_v12, 0.0 }
 0x83b   : > { %v7744_v54 = vpop.f32.mrf.mxu3 }
 0x83c   : > { %7957 = vst.msk [vmem:[%s12569_s28 + $0x98] sm:$0xff] %vm505_vm1, %v7925_v27  ;;  %v7794_v26 = vadd.f32 %v7744_v54, %v7544_v39  ;;  %v7558_v16 = vpop.f32.mrf.mxu0 }
 0x83d   : > { %v7559_v23 = vadd.f32 %v7558_v16, %v12514_v7 }
 0x83e   : > { %v7858_v62 = vadd.f32 %v7826_v42, %v7794_v26  ;;  %v7833_v42 = vunpack.c.h.bf16 %v414_v17 }
 0x840   : > { %v7894_v61 = vadd.f32 %v12559_v9, %v7858_v62 }
 0x842   : > { %v7926_v49 = vmax.f32 %v7894_v61, 0.0  ;;  %v416_v61 = vld [vmem:[%s8944_s24 + $0x70] sm:$0xff]  }
 0x843   : > { %v7746_v52 = vpop.f32.mrf.mxu3 }
 0x844   : > { %7958 = vst.msk [vmem:[%s12569_s28 + $0xa0] sm:$0xff] %vm505_vm1, %v7926_v49  ;;  %v7795_v36 = vadd.f32 %v7746_v52, %v7546_v32  ;;  %v7560_v38 = vpop.f32.mrf.mxu0 }
 0x845   : > { %v7561_v39 = vadd.f32 %v7560_v38, %v12520_v34 }
 0x846   : > { %v7859_v50 = vadd.f32 %v7827_v57, %v7795_v36  ;;  %v7834_v57 = vunpack.c.l.bf16 %v416_v61 }
 0x848   : > { %v7895_v6 = vadd.f32 %v12559_v9, %v7859_v50 }
 0x84a   : > { %v7927_v15 = vmax.f32 %v7895_v6, 0.0 }
 0x84b   : > { %v7749_v25 = vpop.f32.mrf.mxu3 }
 0x84c   : > { %7959 = vst.msk [vmem:[%s12569_s28 + $0xa8] sm:$0xff] %vm505_vm1, %v7927_v15  ;;  %v7796_v29 = vadd.f32 %v7749_v25, %v7549_v46  ;;  %v7563_v54 = vpop.f32.mrf.mxu0  ;;  %v7835_v15 = vunpack.c.h.bf16 %v416_v61 }
 0x84d   : > { %v7564_v32 = vadd.f32 %v7563_v54, %v12527_v22 }
 0x84e   : > { %v7860_v41 = vadd.f32 %v7828_v20, %v7796_v29  ;;  %v418_v29 = vld [vmem:[%s8944_s24 + $0x78] sm:$0xff]  }
 0x850   : > { %v7896_v40 = vadd.f32 %v12559_v9, %v7860_v41 }
 0x852   : > { %v7928_v3 = vmax.f32 %v7896_v40, 0.0 }
 0x853   : > { %v7751_v43 = vpop.f32.mrf.mxu3 }
 0x854   : > { %7960 = vst.msk [vmem:[%s12569_s28 + $0xb0] sm:$0xff] %vm505_vm1, %v7928_v3  ;;  %v7797_v5 = vadd.f32 %v7751_v43, %v7551_v48  ;;  %v7565_v36 = vpop.f32.mrf.mxu0  ;;  %v7836_v3 = vunpack.c.l.bf16 %v418_v29 }
 0x855   : > { %v7566_v6 = vadd.f32 %v7565_v36, %v12533_v24 }
 0x856   : > { %v7861_v21 = vadd.f32 %v7829_v33, %v7797_v5 }
 0x858   : > { %v7897_v18 = vadd.f32 %v12559_v9, %v7861_v21 }
 0x85a   : > { %v7929_v14 = vmax.f32 %v7897_v18, 0.0  ;;  %v7837_v18 = vunpack.c.h.bf16 %v418_v29 }
 0x85b   : > { %v7754_v45 = vpop.f32.mrf.mxu3 }
 0x85c   : > { %7961 = vst.msk [vmem:[%s12569_s28 + $0xb8] sm:$0xff] %vm505_vm1, %v7929_v14  ;;  %v7798_v0 = vadd.f32 %v7754_v45, %v7554_v13  ;;  %v7568_v25 = vpop.f32.mrf.mxu0 }
 0x85d   : > { %v7569_v40 = vadd.f32 %v7568_v25, %v12540_v31 }
 0x85e   : > { %v7862_v37 = vadd.f32 %v7830_v63, %v7798_v0 }
 0x860   : > { %v7898_v56 = vadd.f32 %v12559_v9, %v7862_v37 }
 0x862   : > { %v7930_v8 = vmax.f32 %v7898_v56, 0.0 }
 0x863   : > { %v7756_v11 = vpop.f32.mrf.mxu3 }
 0x864   : > { %7962 = vst.msk [vmem:[%s12569_s28 + $0xc0] sm:$0xff] %vm505_vm1, %v7930_v8  ;;  %v7799_v58 = vadd.f32 %v7756_v11, %v7556_v30  ;;  %v7570_v4 = vpop.f32.mrf.mxu0 }
 0x865   : > { %v7571_v21 = vadd.f32 %v7570_v4, %v12546_v55 }
 0x866   : > { %v7863_v1 = vadd.f32 %v7831_v2, %v7799_v58 }
 0x868   : > { %v7899_v10 = vadd.f32 %v12559_v9, %v7863_v1 }
 0x86a   : > { %v7931_v19 = vmax.f32 %v7899_v10, 0.0 }
 0x86b   : > { %v7759_v47 = vpop.f32.mrf.mxu3 }
 0x86c   : > { %7963 = vst.msk [vmem:[%s12569_s28 + $0xc8] sm:$0xff] %vm505_vm1, %v7931_v19  ;;  %v7800_v53 = vadd.f32 %v7759_v47, %v7559_v23 }
 0x86e   : > { %v7864_v59 = vadd.f32 %v7832_v44, %v7800_v53 }
 0x870   : > { %v7900_v12 = vadd.f32 %v12559_v9, %v7864_v59 }
 0x872   : > { %v7932_v27 = vmax.f32 %v7900_v12, 0.0 }
 0x873   : > { %v7761_v26 = vpop.f32.mrf.mxu3 }
 0x874   : > { %7964 = vst.msk [vmem:[%s12569_s28 + $0xd0] sm:$0xff] %vm505_vm1, %v7932_v27  ;;  %v7801_v7 = vadd.f32 %v7761_v26, %v7561_v39 }
 0x876   : > { %v7865_v62 = vadd.f32 %v7833_v42, %v7801_v7 }
 0x878   : > { %v7901_v35 = vadd.f32 %v12559_v9, %v7865_v62 }
 0x87a   : > { %v7933_v49 = vmax.f32 %v7901_v35, 0.0 }
 0x87b   : > { %v7764_v52 = vpop.f32.mrf.mxu3 }
 0x87c   : > { %7965 = vst.msk [vmem:[%s12569_s28 + $0xd8] sm:$0xff] %vm505_vm1, %v7933_v49  ;;  %v7802_v34 = vadd.f32 %v7764_v52, %v7564_v32 }
 0x87e   : > { %v7866_v50 = vadd.f32 %v7834_v57, %v7802_v34 }
 0x880   : > { %v7902_v28 = vadd.f32 %v12559_v9, %v7866_v50 }
 0x882   : > { %v7934_v46 = vmax.f32 %v7902_v28, 0.0 }
 0x883   : > { %v7766_v20 = vpop.f32.mrf.mxu3 }
 0x884   : > { %7966 = vst.msk [vmem:[%s12569_s28 + $0xe0] sm:$0xff] %vm505_vm1, %v7934_v46  ;;  %v7803_v22 = vadd.f32 %v7766_v20, %v7566_v6 }
 0x886   : > { %v7867_v51 = vadd.f32 %v7835_v15, %v7803_v22 }
 0x888   : > { %v7903_v41 = vadd.f32 %v12559_v9, %v7867_v51 }
 0x88a   : > { %v7935_v48 = vmax.f32 %v7903_v41, 0.0 }
 0x88b   : > { %v7769_v33 = vpop.f32.mrf.mxu3 }
 0x88c   : > { %7967 = vst.msk [vmem:[%s12569_s28 + $0xe8] sm:$0xff] %vm505_vm1, %v7935_v48  ;;  %v7804_v24 = vadd.f32 %v7769_v33, %v7569_v40 }
 0x88e   : > { %v7868_v43 = vadd.f32 %v7836_v3, %v7804_v24 }
 0x890   : > { %v7904_v5 = vadd.f32 %v12559_v9, %v7868_v43 }
 0x892   : > { %v7936_v60 = vmax.f32 %v7904_v5, 0.0 }
 0x893   : > { %v7771_v13 = vpop.f32.mrf.mxu3 }
 0x894   : > { %7968 = vst.msk [vmem:[%s12569_s28 + $0xf0] sm:$0xff] %vm505_vm1, %v7936_v60  ;;  %v7805_v14 = vadd.f32 %v7771_v13, %v7571_v21 }
 0x896   : > { %v7869_v31 = vadd.f32 %v7837_v18, %v7805_v14 }
 0x898   : > { %v7905_v63 = vadd.f32 %v12559_v9, %v7869_v31 }
 0x89a   : > { %v7937_v45 = vmax.f32 %v7905_v63, 0.0 }
 0x89c   : > { %7969 = vst.msk [vmem:[%s12569_s28 + $0xf8] sm:$0xff] %vm505_vm1, %v7937_v45 }
 0x89d PF: > { %s21_s17 = sadd.s32 1, %s8863_s17  }
 0x89e   : > { %p18_p4 = scmp.ge.s32.totalorder %s21_s17, 4  }
 0x8a0   :  { %20 = sbr.rel (!%p18_p4) target bundleno = 1 (0x1), region = 94 }

</bundles_post_ra>
